<compile_context>
chip_gen: v6e
topology: v6e:2x2x1
jax: 0.10.0
libtpu: 0.0.40
codegen_flags: <defaults>
</compile_context>

<pallas_src>
import math
import jax
import jax.numpy as jnp
from jax.experimental import pallas as pl
from jax.experimental.pallas import tpu as pltpu  # noqa: F401  (TPU backend)

# ---------------- model config (small, deterministic) ----------------
D_MODEL = 32
N_HEADS = 4
D_K = D_MODEL // N_HEADS
D_FF = 64
N_LAYERS = 2
VOCAB = 64
MAX_LEN = 64
EPS = 1e-6
NEG_INF = -1e9


# ---------------- in-kernel building blocks (pure value functions) ----------

def _ln_val(x, g, b):
    # Annotated-Transformer LayerNorm: g * (x - mean) / (std + eps) + b.
    # std is the unbiased estimator (ddof=1) and eps is added OUTSIDE the
    # sqrt, matching torch.Tensor.std() as used by TransforMAP.
    mean = jnp.mean(x, axis=-1, keepdims=True)
    d = x - mean
    var = jnp.sum(d * d, axis=-1, keepdims=True) / (x.shape[-1] - 1)
    return g * d / (jnp.sqrt(var) + EPS) + b


def _mha_val(x_q, x_kv, qkv_w_ref, qkv_b_ref, out_w_ref, out_b_ref,
             layer, mask_add, B, Sq, Sk):
    # x_q: (B*Sq, D), x_kv: (B*Sk, D)
    # qkv_w_ref: (L, 3, H, D, Dk)  packed per-head [q, k, v] projections
    # qkv_b_ref: (L, 3, H, 1, Dk)
    # out_w_ref: (L, H, Dk, D)     per-head slice of the output projection
    # out_b_ref: (L, 1, D)
    # mask_add : (B, Sq, Sk) additive mask (0 for keep, -1e9 for masked).
    #            NOTE: a fully-masked row degrades to softmax of raw scores
    #            (rather than exactly uniform); no such rows exist here.
    scale = 1.0 / math.sqrt(D_K)
    acc = None
    for h in range(N_HEADS):
        qh = (jnp.dot(x_q, qkv_w_ref[layer, 0, h],
                      preferred_element_type=jnp.float32)
              + qkv_b_ref[layer, 0, h]).reshape(B, Sq, D_K)
        kh = (jnp.dot(x_kv, qkv_w_ref[layer, 1, h],
                      preferred_element_type=jnp.float32)
              + qkv_b_ref[layer, 1, h]).reshape(B, Sk, D_K)
        vh = (jnp.dot(x_kv, qkv_w_ref[layer, 2, h],
                      preferred_element_type=jnp.float32)
              + qkv_b_ref[layer, 2, h]).reshape(B, Sk, D_K)
        # batched dot_general contracting the last axes (no explicit k.T)
        s = jnp.einsum('bqd,bkd->bqk', qh, kh,
                       preferred_element_type=jnp.float32) * scale
        s = s + mask_add
        m = jnp.max(s, axis=-1, keepdims=True)
        e = jnp.exp(s - m)
        p = e / jnp.sum(e, axis=-1, keepdims=True)
        oh = jnp.einsum('bqk,bkd->bqd', p, vh,
                        preferred_element_type=jnp.float32)
        # per-head contribution to the output projection (heads concatenated
        # along lanes is equivalent to summing per-head row-block products)
        contrib = jnp.dot(oh.reshape(B * Sq, D_K), out_w_ref[layer, h],
                          preferred_element_type=jnp.float32)
        acc = contrib if acc is None else acc + contrib
    return acc + out_b_ref[layer]


def _ff_val(x, w1_ref, b1_ref, w2_ref, b2_ref, layer):
    h = jnp.maximum(
        jnp.dot(x, w1_ref[layer], preferred_element_type=jnp.float32)
        + b1_ref[layer], 0.0)
    return jnp.dot(h, w2_ref[layer], preferred_element_type=jnp.float32) + b2_ref[layer]


# ---------------- fused Pallas kernels (one per stack) ----------------------

def _encoder_kernel(emb_ref, pe_ref, mask_ref,
                    qkv_w_ref, qkv_b_ref, out_w_ref, out_b_ref,
                    ff_w1_ref, ff_b1_ref, ff_w2_ref, ff_b2_ref,
                    ln_g_ref, ln_b_ref, norm_g_ref, norm_b_ref,
                    o_ref):
    B, Sq, _ = mask_ref.shape
    mask_add = jnp.where(mask_ref[...] != 0.0, 0.0, NEG_INF)   # once per kernel
    # Embeddings: lut(x) * sqrt(d_model) + positional encoding
    x = emb_ref[...] * math.sqrt(D_MODEL)
    x = (x.reshape(B, Sq, D_MODEL) + pe_ref[...][None]).reshape(B * Sq, D_MODEL)
    for l in range(N_LAYERS):
        # SublayerConnection: x + dropout(sublayer(norm(x)))  (dropout = identity)
        xn = _ln_val(x, ln_g_ref[l, 0], ln_b_ref[l, 0])
        x = x + _mha_val(xn, xn, qkv_w_ref, qkv_b_ref, out_w_ref, out_b_ref,
                         l, mask_add, B, Sq, Sq)
        xn = _ln_val(x, ln_g_ref[l, 1], ln_b_ref[l, 1])
        x = x + _ff_val(xn, ff_w1_ref, ff_b1_ref, ff_w2_ref, ff_b2_ref, l)
    o_ref[...] = _ln_val(x, norm_g_ref[...], norm_b_ref[...])


def _decoder_kernel(emb_ref, pe_ref, mem_ref, smask_ref, tmask_ref,
                    sa_qkv_w_ref, sa_qkv_b_ref, sa_out_w_ref, sa_out_b_ref,
                    ca_qkv_w_ref, ca_qkv_b_ref, ca_out_w_ref, ca_out_b_ref,
                    ff_w1_ref, ff_b1_ref, ff_w2_ref, ff_b2_ref,
                    ln_g_ref, ln_b_ref, norm_g_ref, norm_b_ref,
                    o_ref):
    B, St, Ss = smask_ref.shape
    smask_add = jnp.where(smask_ref[...] != 0.0, 0.0, NEG_INF)
    tmask_add = jnp.where(tmask_ref[...] != 0.0, 0.0, NEG_INF)
    mem = mem_ref[...]                                          # (B*Ss, D)
    x = emb_ref[...] * math.sqrt(D_MODEL)
    x = (x.reshape(B, St, D_MODEL) + pe_ref[...][None]).reshape(B * St, D_MODEL)
    for l in range(N_LAYERS):
        xn = _ln_val(x, ln_g_ref[l, 0], ln_b_ref[l, 0])
        x = x + _mha_val(xn, xn, sa_qkv_w_ref, sa_qkv_b_ref,
                         sa_out_w_ref, sa_out_b_ref, l, tmask_add, B, St, St)
        xn = _ln_val(x, ln_g_ref[l, 1], ln_b_ref[l, 1])
        x = x + _mha_val(xn, mem, ca_qkv_w_ref, ca_qkv_b_ref,
                         ca_out_w_ref, ca_out_b_ref, l, smask_add, B, St, Ss)
        xn = _ln_val(x, ln_g_ref[l, 2], ln_b_ref[l, 2])
        x = x + _ff_val(xn, ff_w1_ref, ff_b1_ref, ff_w2_ref, ff_b2_ref, l)
    o_ref[...] = _ln_val(x, norm_g_ref[...], norm_b_ref[...])


# ---------------- wrappers (glue in plain JAX) -------------------------------

def encode(params, src, src_mask):
    B, Ss = src.shape
    # TODO(synk): embedding token gather stays in plain JAX (data-dependent gather).
    e = jnp.take(params['src_emb'], src.reshape(-1), axis=0)          # (B*Ss, D)
    pe = params['pe'][:Ss]                                            # (Ss, D)
    mask = jnp.broadcast_to(src_mask, (B, Ss, Ss)).astype(jnp.float32)
    p = params['enc']
    mem = pl.pallas_call(
        _encoder_kernel,
        out_shape=jax.ShapeDtypeStruct((B * Ss, D_MODEL), jnp.float32),
    )(e, pe, mask,
      p['qkv_w'], p['qkv_b'], p['out_w'], p['out_b'],
      p['ff_w1'], p['ff_b1'], p['ff_w2'], p['ff_b2'],
      p['ln_g'], p['ln_b'], p['norm_g'], p['norm_b'])
    return mem                                                        # (B*Ss, D)


def decode(params, memory_flat, src_mask, tgt, tgt_mask):
    B, St = tgt.shape
    Ss = src_mask.shape[-1]
    e = jnp.take(params['tgt_emb'], tgt.reshape(-1), axis=0)          # (B*St, D)
    pe = params['pe'][:St]
    smask = jnp.broadcast_to(src_mask, (B, St, Ss)).astype(jnp.float32)
    tmask = jnp.broadcast_to(tgt_mask, (B, St, St)).astype(jnp.float32)
    p = params['dec']
    out = pl.pallas_call(
        _decoder_kernel,
        out_shape=jax.ShapeDtypeStruct((B * St, D_MODEL), jnp.float32),
    )(e, pe, memory_flat, smask, tmask,
      p['sa_qkv_w'], p['sa_qkv_b'], p['sa_out_w'], p['sa_out_b'],
      p['ca_qkv_w'], p['ca_qkv_b'], p['ca_out_w'], p['ca_out_b'],
      p['ff_w1'], p['ff_b1'], p['ff_w2'], p['ff_b2'],
      p['ln_g'], p['ln_b'], p['norm_g'], p['norm_b'])
    return out.reshape(B, St, D_MODEL)


def transformer_forward(params, src, tgt, src_mask, tgt_mask):
    # forward(src, tgt, src_mask, tgt_mask)
    #   = decode(encode(src, src_mask), src_mask, tgt, tgt_mask)
    memory = encode(params, src, src_mask)
    return decode(params, memory, src_mask, tgt, tgt_mask)


# ---------------- deterministic parameter init ------------------------------

def _positional_encoding(max_len, d_model):
    pos = jnp.arange(max_len, dtype=jnp.float32)[:, None]
    div = jnp.exp(jnp.arange(0, d_model, 2, dtype=jnp.float32)
                  * (-math.log(10000.0) / d_model))
    pe = jnp.zeros((max_len, d_model), jnp.float32)
    pe = pe.at[:, 0::2].set(jnp.sin(pos * div))
    pe = pe.at[:, 1::2].set(jnp.cos(pos * div))
    return pe


def init_params(key):
    keys = iter(jax.random.split(key, 64))

    def rnd(shape):
        return jax.random.normal(next(keys), shape, jnp.float32) * 0.02

    def attn_stack():
        # Generate full (D, D) q/k/v/o projections per layer, then pre-split
        # into per-head packs so the kernel indexes heads with integers only.
        qkv_ws, out_ws = [], []
        for _ in range(N_LAYERS):
            wq, wk, wv, wo = (rnd((D_MODEL, D_MODEL)) for _ in range(4))
            qkv_ws.append(jnp.stack(
                [w.reshape(D_MODEL, N_HEADS, D_K).transpose(1, 0, 2)
                 for w in (wq, wk, wv)]))                    # (3, H, D, Dk)
            out_ws.append(wo.reshape(N_HEADS, D_K, D_MODEL))  # (H, Dk, D)
        return dict(
            qkv_w=jnp.stack(qkv_ws),                                      # (L,3,H,D,Dk)
            qkv_b=jnp.zeros((N_LAYERS, 3, N_HEADS, 1, D_K), jnp.float32),  # (L,3,H,1,Dk)
            out_w=jnp.stack(out_ws),                                      # (L,H,Dk,D)
            out_b=jnp.zeros((N_LAYERS, 1, D_MODEL), jnp.float32),
        )

    def ff_stack():
        return dict(
            ff_w1=jnp.stack([rnd((D_MODEL, D_FF)) for _ in range(N_LAYERS)]),
            ff_b1=jnp.zeros((N_LAYERS, 1, D_FF), jnp.float32),
            ff_w2=jnp.stack([rnd((D_FF, D_MODEL)) for _ in range(N_LAYERS)]),
            ff_b2=jnp.zeros((N_LAYERS, 1, D_MODEL), jnp.float32),
        )

    def ln_stack(n):
        return (jnp.ones((N_LAYERS, n, 1, D_MODEL), jnp.float32),
                jnp.zeros((N_LAYERS, n, 1, D_MODEL), jnp.float32))

    def prefixed(d, pre):
        return {pre + k: v for k, v in d.items()}

    enc_ln_g, enc_ln_b = ln_stack(2)
    enc = dict(**attn_stack(), **ff_stack(),
               ln_g=enc_ln_g, ln_b=enc_ln_b,
               norm_g=jnp.ones((1, D_MODEL), jnp.float32),
               norm_b=jnp.zeros((1, D_MODEL), jnp.float32))

    dec_ln_g, dec_ln_b = ln_stack(3)
    dec = dict(**prefixed(attn_stack(), 'sa_'),
               **prefixed(attn_stack(), 'ca_'),
               **ff_stack(),
               ln_g=dec_ln_g, ln_b=dec_ln_b,
               norm_g=jnp.ones((1, D_MODEL), jnp.float32),
               norm_b=jnp.zeros((1, D_MODEL), jnp.float32))

    return {
        'src_emb': jax.random.normal(next(keys), (VOCAB, D_MODEL), jnp.float32),
        'tgt_emb': jax.random.normal(next(keys), (VOCAB, D_MODEL), jnp.float32),
        'pe': _positional_encoding(MAX_LEN, D_MODEL),
        'enc': enc,
        'dec': dec,
    }


# ---------------- main -------------------------------------------------------

if __name__ == "__main__":
    key = jax.random.PRNGKey(0)
    pkey, skey, tkey = jax.random.split(key, 3)

    B, S_SRC, S_TGT = 2, 8, 8
    params = init_params(pkey)

    src = jax.random.randint(skey, (B, S_SRC), 0, VOCAB, dtype=jnp.int32)
    tgt = jax.random.randint(tkey, (B, S_TGT), 0, VOCAB, dtype=jnp.int32)

    # src_mask: (B, 1, S_src) all-ones pad mask; tgt_mask: (B, S_tgt, S_tgt)
    # causal (subsequent) mask, as in the annotated transformer.
    src_mask = jnp.ones((B, 1, S_SRC), jnp.float32)
    tgt_mask = jnp.broadcast_to(jnp.tril(jnp.ones((S_TGT, S_TGT), jnp.float32)),
                                (B, S_TGT, S_TGT))

    fwd = jax.jit(transformer_forward)
    out = fwd(params, src, tgt, src_mask, tgt_mask)
    out = jax.block_until_ready(out)

    assert out.shape == (B, S_TGT, D_MODEL), out.shape
    assert jnp.all(jnp.isfinite(out))
    print("KERNEL_OK")
</pallas_src>

<mosaic_0001>
module attributes {stable_mosaic.version = 11 : i64} {
  func.func @_encoder_kernel(%arg0: memref<16x32xf32, #tpu.memory_space<vmem>>, %arg1: memref<8x32xf32, #tpu.memory_space<vmem>>, %arg2: memref<2x8x8xf32, #tpu.memory_space<vmem>>, %arg3: memref<2x3x4x32x8xf32, #tpu.memory_space<vmem>>, %arg4: memref<2x3x4x1x8xf32, #tpu.memory_space<vmem>>, %arg5: memref<2x4x8x32xf32, #tpu.memory_space<vmem>>, %arg6: memref<2x1x32xf32, #tpu.memory_space<vmem>>, %arg7: memref<2x32x64xf32, #tpu.memory_space<vmem>>, %arg8: memref<2x1x64xf32, #tpu.memory_space<vmem>>, %arg9: memref<2x64x32xf32, #tpu.memory_space<vmem>>, %arg10: memref<2x1x32xf32, #tpu.memory_space<vmem>>, %arg11: memref<2x2x1x32xf32, #tpu.memory_space<vmem>>, %arg12: memref<2x2x1x32xf32, #tpu.memory_space<vmem>>, %arg13: memref<1x32xf32, #tpu.memory_space<vmem>>, %arg14: memref<1x32xf32, #tpu.memory_space<vmem>>, %arg15: memref<16x32xf32, #tpu.memory_space<vmem>>) attributes {dimension_semantics = [], scalar_prefetch = 0 : i64, scratch_operands = 0 : i64, tpu.core_type = #tpu.core_type<tc>} {
    %c0 = arith.constant 0 : index
    %c0_0 = arith.constant 0 : index
    %c0_1 = arith.constant 0 : index
    %0 = vector.load %arg2[%c0, %c0_0, %c0_1] : memref<2x8x8xf32, #tpu.memory_space<vmem>>, vector<2x8x8xf32>
    %cst = arith.constant 0.000000e+00 : f32
    %1 = vector.broadcast %cst : f32 to vector<2x8x8xf32>
    %2 = arith.cmpf one, %0, %1 : vector<2x8x8xf32>
    %cst_2 = arith.constant 0.000000e+00 : f32
    %cst_3 = arith.constant -1.000000e+09 : f32
    %3 = vector.broadcast %cst_2 : f32 to vector<2x8x8xf32>
    %4 = vector.broadcast %cst_3 : f32 to vector<2x8x8xf32>
    %5 = arith.select %2, %3, %4 : vector<2x8x8xi1>, vector<2x8x8xf32>
    %c0_4 = arith.constant 0 : index
    %c0_5 = arith.constant 0 : index
    %6 = vector.load %arg0[%c0_4, %c0_5] : memref<16x32xf32, #tpu.memory_space<vmem>>, vector<16x32xf32>
    %cst_6 = arith.constant 5.65685415 : f32
    %7 = vector.broadcast %cst_6 : f32 to vector<16x32xf32>
    %8 = arith.mulf %6, %7 : vector<16x32xf32>
    %9 = vector.shape_cast %8 : vector<16x32xf32> to vector<2x8x32xf32>
    %c0_7 = arith.constant 0 : index
    %c0_8 = arith.constant 0 : index
    %10 = vector.load %arg1[%c0_7, %c0_8] : memref<8x32xf32, #tpu.memory_space<vmem>>, vector<8x32xf32>
    %11 = vector.shape_cast %10 : vector<8x32xf32> to vector<1x8x32xf32>
    %12 = vector.broadcast %11 : vector<1x8x32xf32> to vector<2x8x32xf32>
    %13 = arith.addf %9, %12 : vector<2x8x32xf32>
    %14 = vector.shape_cast %13 : vector<2x8x32xf32> to vector<16x32xf32>
    %c0_9 = arith.constant 0 : index
    %c0_10 = arith.constant 0 : index
    %c0_11 = arith.constant 0 : index
    %c0_12 = arith.constant 0 : index
    %15 = vector.load %arg11[%c0_9, %c0_10, %c0_11, %c0_12] : memref<2x2x1x32xf32, #tpu.memory_space<vmem>>, vector<1x1x1x32xf32>
    %16 = vector.shape_cast %15 : vector<1x1x1x32xf32> to vector<1x32xf32>
    %c0_13 = arith.constant 0 : index
    %c0_14 = arith.constant 0 : index
    %c0_15 = arith.constant 0 : index
    %c0_16 = arith.constant 0 : index
    %17 = vector.load %arg12[%c0_13, %c0_14, %c0_15, %c0_16] : memref<2x2x1x32xf32, #tpu.memory_space<vmem>>, vector<1x1x1x32xf32>
    %18 = vector.shape_cast %17 : vector<1x1x1x32xf32> to vector<1x32xf32>
    %cst_17 = arith.constant dense<0.000000e+00> : vector<16xf32>
    %19 = vector.multi_reduction <add>, %14, %cst_17 [1] : vector<16x32xf32> to vector<16xf32>
    %20 = vector.shape_cast %19 : vector<16xf32> to vector<16x1xf32>
    %cst_18 = arith.constant 3.200000e+01 : f32
    %21 = vector.broadcast %cst_18 : f32 to vector<16x1xf32>
    %22 = arith.divf %20, %21 : vector<16x1xf32>
    %23 = vector.broadcast %22 : vector<16x1xf32> to vector<16x32xf32>
    %24 = arith.subf %14, %23 : vector<16x32xf32>
    %25 = arith.mulf %24, %24 : vector<16x32xf32>
    %cst_19 = arith.constant dense<0.000000e+00> : vector<16xf32>
    %26 = vector.multi_reduction <add>, %25, %cst_19 [1] : vector<16x32xf32> to vector<16xf32>
    %27 = vector.shape_cast %26 : vector<16xf32> to vector<16x1xf32>
    %cst_20 = arith.constant 3.100000e+01 : f32
    %28 = vector.broadcast %cst_20 : f32 to vector<16x1xf32>
    %29 = arith.divf %27, %28 : vector<16x1xf32>
    %30 = vector.broadcast %16 : vector<1x32xf32> to vector<16x32xf32>
    %31 = arith.mulf %30, %24 : vector<16x32xf32>
    %32 = math.sqrt %29 : vector<16x1xf32>
    %cst_21 = arith.constant 9.99999997E-7 : f32
    %33 = vector.broadcast %cst_21 : f32 to vector<16x1xf32>
    %34 = arith.addf %32, %33 : vector<16x1xf32>
    %35 = vector.broadcast %34 : vector<16x1xf32> to vector<16x32xf32>
    %36 = arith.divf %31, %35 : vector<16x32xf32>
    %37 = vector.broadcast %18 : vector<1x32xf32> to vector<16x32xf32>
    %38 = arith.addf %36, %37 : vector<16x32xf32>
    %c0_22 = arith.constant 0 : index
    %c0_23 = arith.constant 0 : index
    %c0_24 = arith.constant 0 : index
    %c0_25 = arith.constant 0 : index
    %c0_26 = arith.constant 0 : index
    %39 = vector.load %arg3[%c0_22, %c0_23, %c0_24, %c0_25, %c0_26] : memref<2x3x4x32x8xf32, #tpu.memory_space<vmem>>, vector<1x1x1x32x8xf32>
    %40 = vector.shape_cast %39 : vector<1x1x1x32x8xf32> to vector<32x8xf32>
    %cst_27 = arith.constant dense<0.000000e+00> : vector<16x8xf32>
    %41 = tpu.matmul %38, %40, %cst_27 {dimension_numbers = #tpu.dot_dimension_numbers<[1], [0], [0], [1], [0, 0, 1, 1], [], []>} : vector<16x32xf32>, vector<32x8xf32>, vector<16x8xf32> -> vector<16x8xf32>
    %c0_28 = arith.constant 0 : index
    %c0_29 = arith.constant 0 : index
    %c0_30 = arith.constant 0 : index
    %c0_31 = arith.constant 0 : index
    %c0_32 = arith.constant 0 : index
    %42 = vector.load %arg4[%c0_28, %c0_29, %c0_30, %c0_31, %c0_32] : memref<2x3x4x1x8xf32, #tpu.memory_space<vmem>>, vector<1x1x1x1x8xf32>
    %43 = vector.shape_cast %42 : vector<1x1x1x1x8xf32> to vector<1x8xf32>
    %44 = vector.broadcast %43 : vector<1x8xf32> to vector<16x8xf32>
    %45 = arith.addf %41, %44 : vector<16x8xf32>
    %46 = vector.shape_cast %45 : vector<16x8xf32> to vector<2x8x8xf32>
    %c0_33 = arith.constant 0 : index
    %c1 = arith.constant 1 : index
    %c0_34 = arith.constant 0 : index
    %c0_35 = arith.constant 0 : index
    %c0_36 = arith.constant 0 : index
    %47 = vector.load %arg3[%c0_33, %c1, %c0_34, %c0_35, %c0_36] : memref<2x3x4x32x8xf32, #tpu.memory_space<vmem>>, vector<1x1x1x32x8xf32>
    %48 = vector.shape_cast %47 : vector<1x1x1x32x8xf32> to vector<32x8xf32>
    %cst_37 = arith.constant dense<0.000000e+00> : vector<16x8xf32>
    %49 = tpu.matmul %38, %48, %cst_37 {dimension_numbers = #tpu.dot_dimension_numbers<[1], [0], [0], [1], [0, 0, 1, 1], [], []>} : vector<16x32xf32>, vector<32x8xf32>, vector<16x8xf32> -> vector<16x8xf32>
    %c0_38 = arith.constant 0 : index
    %c1_39 = arith.constant 1 : index
    %c0_40 = arith.constant 0 : index
    %c0_41 = arith.constant 0 : index
    %c0_42 = arith.constant 0 : index
    %50 = vector.load %arg4[%c0_38, %c1_39, %c0_40, %c0_41, %c0_42] : memref<2x3x4x1x8xf32, #tpu.memory_space<vmem>>, vector<1x1x1x1x8xf32>
    %51 = vector.shape_cast %50 : vector<1x1x1x1x8xf32> to vector<1x8xf32>
    %52 = vector.broadcast %51 : vector<1x8xf32> to vector<16x8xf32>
    %53 = arith.addf %49, %52 : vector<16x8xf32>
    %54 = vector.shape_cast %53 : vector<16x8xf32> to vector<2x8x8xf32>
    %c0_43 = arith.constant 0 : index
    %c2 = arith.constant 2 : index
    %c0_44 = arith.constant 0 : index
    %c0_45 = arith.constant 0 : index
    %c0_46 = arith.constant 0 : index
    %55 = vector.load %arg3[%c0_43, %c2, %c0_44, %c0_45, %c0_46] : memref<2x3x4x32x8xf32, #tpu.memory_space<vmem>>, vector<1x1x1x32x8xf32>
    %56 = vector.shape_cast %55 : vector<1x1x1x32x8xf32> to vector<32x8xf32>
    %cst_47 = arith.constant dense<0.000000e+00> : vector<16x8xf32>
    %57 = tpu.matmul %38, %56, %cst_47 {dimension_numbers = #tpu.dot_dimension_numbers<[1], [0], [0], [1], [0, 0, 1, 1], [], []>} : vector<16x32xf32>, vector<32x8xf32>, vector<16x8xf32> -> vector<16x8xf32>
    %c0_48 = arith.constant 0 : index
    %c2_49 = arith.constant 2 : index
    %c0_50 = arith.constant 0 : index
    %c0_51 = arith.constant 0 : index
    %c0_52 = arith.constant 0 : index
    %58 = vector.load %arg4[%c0_48, %c2_49, %c0_50, %c0_51, %c0_52] : memref<2x3x4x1x8xf32, #tpu.memory_space<vmem>>, vector<1x1x1x1x8xf32>
    %59 = vector.shape_cast %58 : vector<1x1x1x1x8xf32> to vector<1x8xf32>
    %60 = vector.broadcast %59 : vector<1x8xf32> to vector<16x8xf32>
    %61 = arith.addf %57, %60 : vector<16x8xf32>
    %62 = vector.shape_cast %61 : vector<16x8xf32> to vector<2x8x8xf32>
    "tpu.trace_start"() <{level = 10 : i32, message = "bqd,bkd->bqk"}> : () -> ()
    %cst_53 = arith.constant dense<0.000000e+00> : vector<2x8x8xf32>
    %63 = tpu.matmul %46, %54, %cst_53 {dimension_numbers = #tpu.dot_dimension_numbers<[2], [2], [1], [1], [0, 0, 0, 1, 1, 1], [0], [0]>} : vector<2x8x8xf32>, vector<2x8x8xf32>, vector<2x8x8xf32> -> vector<2x8x8xf32>
    "tpu.trace_stop"() : () -> ()
    %cst_54 = arith.constant 0.353553385 : f32
    %64 = vector.broadcast %cst_54 : f32 to vector<2x8x8xf32>
    %65 = arith.mulf %63, %64 : vector<2x8x8xf32>
    %66 = arith.addf %65, %5 : vector<2x8x8xf32>
    %cst_55 = arith.constant dense<0xFF800000> : vector<2x8xf32>
    %67 = vector.multi_reduction <maximumf>, %66, %cst_55 [2] : vector<2x8x8xf32> to vector<2x8xf32>
    %68 = vector.shape_cast %67 : vector<2x8xf32> to vector<2x8x1xf32>
    %69 = vector.broadcast %68 : vector<2x8x1xf32> to vector<2x8x8xf32>
    %70 = arith.subf %66, %69 : vector<2x8x8xf32>
    %71 = math.exp %70 : vector<2x8x8xf32>
    %cst_56 = arith.constant dense<0.000000e+00> : vector<2x8xf32>
    %72 = vector.multi_reduction <add>, %71, %cst_56 [2] : vector<2x8x8xf32> to vector<2x8xf32>
    %73 = vector.shape_cast %72 : vector<2x8xf32> to vector<2x8x1xf32>
    %74 = vector.broadcast %73 : vector<2x8x1xf32> to vector<2x8x8xf32>
    %75 = arith.divf %71, %74 : vector<2x8x8xf32>
    "tpu.trace_start"() <{level = 10 : i32, message = "bqk,bkd->bqd"}> : () -> ()
    %cst_57 = arith.constant dense<0.000000e+00> : vector<2x8x8xf32>
    %76 = tpu.matmul %75, %62, %cst_57 {dimension_numbers = #tpu.dot_dimension_numbers<[2], [1], [1], [2], [0, 0, 0, 1, 1, 2], [0], [0]>} : vector<2x8x8xf32>, vector<2x8x8xf32>, vector<2x8x8xf32> -> vector<2x8x8xf32>
    "tpu.trace_stop"() : () -> ()
    %77 = vector.shape_cast %76 : vector<2x8x8xf32> to vector<16x8xf32>
    %c0_58 = arith.constant 0 : index
    %c0_59 = arith.constant 0 : index
    %c0_60 = arith.constant 0 : index
    %c0_61 = arith.constant 0 : index
    %78 = vector.load %arg5[%c0_58, %c0_59, %c0_60, %c0_61] : memref<2x4x8x32xf32, #tpu.memory_space<vmem>>, vector<1x1x8x32xf32>
    %79 = vector.shape_cast %78 : vector<1x1x8x32xf32> to vector<8x32xf32>
    %cst_62 = arith.constant dense<0.000000e+00> : vector<16x32xf32>
    %80 = tpu.matmul %77, %79, %cst_62 {dimension_numbers = #tpu.dot_dimension_numbers<[1], [0], [0], [1], [0, 0, 1, 1], [], []>} : vector<16x8xf32>, vector<8x32xf32>, vector<16x32xf32> -> vector<16x32xf32>
    %c0_63 = arith.constant 0 : index
    %c0_64 = arith.constant 0 : index
    %c1_65 = arith.constant 1 : index
    %c0_66 = arith.constant 0 : index
    %c0_67 = arith.constant 0 : index
    %81 = vector.load %arg3[%c0_63, %c0_64, %c1_65, %c0_66, %c0_67] : memref<2x3x4x32x8xf32, #tpu.memory_space<vmem>>, vector<1x1x1x32x8xf32>
    %82 = vector.shape_cast %81 : vector<1x1x1x32x8xf32> to vector<32x8xf32>
    %cst_68 = arith.constant dense<0.000000e+00> : vector<16x8xf32>
    %83 = tpu.matmul %38, %82, %cst_68 {dimension_numbers = #tpu.dot_dimension_numbers<[1], [0], [0], [1], [0, 0, 1, 1], [], []>} : vector<16x32xf32>, vector<32x8xf32>, vector<16x8xf32> -> vector<16x8xf32>
    %c0_69 = arith.constant 0 : index
    %c0_70 = arith.constant 0 : index
    %c1_71 = arith.constant 1 : index
    %c0_72 = arith.constant 0 : index
    %c0_73 = arith.constant 0 : index
    %84 = vector.load %arg4[%c0_69, %c0_70, %c1_71, %c0_72, %c0_73] : memref<2x3x4x1x8xf32, #tpu.memory_space<vmem>>, vector<1x1x1x1x8xf32>
    %85 = vector.shape_cast %84 : vector<1x1x1x1x8xf32> to vector<1x8xf32>
    %86 = vector.broadcast %85 : vector<1x8xf32> to vector<16x8xf32>
    %87 = arith.addf %83, %86 : vector<16x8xf32>
    %88 = vector.shape_cast %87 : vector<16x8xf32> to vector<2x8x8xf32>
    %c0_74 = arith.constant 0 : index
    %c1_75 = arith.constant 1 : index
    %c1_76 = arith.constant 1 : index
    %c0_77 = arith.constant 0 : index
    %c0_78 = arith.constant 0 : index
    %89 = vector.load %arg3[%c0_74, %c1_75, %c1_76, %c0_77, %c0_78] : memref<2x3x4x32x8xf32, #tpu.memory_space<vmem>>, vector<1x1x1x32x8xf32>
    %90 = vector.shape_cast %89 : vector<1x1x1x32x8xf32> to vector<32x8xf32>
    %cst_79 = arith.constant dense<0.000000e+00> : vector<16x8xf32>
    %91 = tpu.matmul %38, %90, %cst_79 {dimension_numbers = #tpu.dot_dimension_numbers<[1], [0], [0], [1], [0, 0, 1, 1], [], []>} : vector<16x32xf32>, vector<32x8xf32>, vector<16x8xf32> -> vector<16x8xf32>
    %c0_80 = arith.constant 0 : index
    %c1_81 = arith.constant 1 : index
    %c1_82 = arith.constant 1 : index
    %c0_83 = arith.constant 0 : index
    %c0_84 = arith.constant 0 : index
    %92 = vector.load %arg4[%c0_80, %c1_81, %c1_82, %c0_83, %c0_84] : memref<2x3x4x1x8xf32, #tpu.memory_space<vmem>>, vector<1x1x1x1x8xf32>
    %93 = vector.shape_cast %92 : vector<1x1x1x1x8xf32> to vector<1x8xf32>
    %94 = vector.broadcast %93 : vector<1x8xf32> to vector<16x8xf32>
    %95 = arith.addf %91, %94 : vector<16x8xf32>
    %96 = vector.shape_cast %95 : vector<16x8xf32> to vector<2x8x8xf32>
    %c0_85 = arith.constant 0 : index
    %c2_86 = arith.constant 2 : index
    %c1_87 = arith.constant 1 : index
    %c0_88 = arith.constant 0 : index
    %c0_89 = arith.constant 0 : index
    %97 = vector.load %arg3[%c0_85, %c2_86, %c1_87, %c0_88, %c0_89] : memref<2x3x4x32x8xf32, #tpu.memory_space<vmem>>, vector<1x1x1x32x8xf32>
    %98 = vector.shape_cast %97 : vector<1x1x1x32x8xf32> to vector<32x8xf32>
    %cst_90 = arith.constant dense<0.000000e+00> : vector<16x8xf32>
    %99 = tpu.matmul %38, %98, %cst_90 {dimension_numbers = #tpu.dot_dimension_numbers<[1], [0], [0], [1], [0, 0, 1, 1], [], []>} : vector<16x32xf32>, vector<32x8xf32>, vector<16x8xf32> -> vector<16x8xf32>
    %c0_91 = arith.constant 0 : index
    %c2_92 = arith.constant 2 : index
    %c1_93 = arith.constant 1 : index
    %c0_94 = arith.constant 0 : index
    %c0_95 = arith.constant 0 : index
    %100 = vector.load %arg4[%c0_91, %c2_92, %c1_93, %c0_94, %c0_95] : memref<2x3x4x1x8xf32, #tpu.memory_space<vmem>>, vector<1x1x1x1x8xf32>
    %101 = vector.shape_cast %100 : vector<1x1x1x1x8xf32> to vector<1x8xf32>
    %102 = vector.broadcast %101 : vector<1x8xf32> to vector<16x8xf32>
    %103 = arith.addf %99, %102 : vector<16x8xf32>
    %104 = vector.shape_cast %103 : vector<16x8xf32> to vector<2x8x8xf32>
    "tpu.trace_start"() <{level = 10 : i32, message = "bqd,bkd->bqk"}> : () -> ()
    %cst_96 = arith.constant dense<0.000000e+00> : vector<2x8x8xf32>
    %105 = tpu.matmul %88, %96, %cst_96 {dimension_numbers = #tpu.dot_dimension_numbers<[2], [2], [1], [1], [0, 0, 0, 1, 1, 1], [0], [0]>} : vector<2x8x8xf32>, vector<2x8x8xf32>, vector<2x8x8xf32> -> vector<2x8x8xf32>
    "tpu.trace_stop"() : () -> ()
    %cst_97 = arith.constant 0.353553385 : f32
    %106 = vector.broadcast %cst_97 : f32 to vector<2x8x8xf32>
    %107 = arith.mulf %105, %106 : vector<2x8x8xf32>
    %108 = arith.addf %107, %5 : vector<2x8x8xf32>
    %cst_98 = arith.constant dense<0xFF800000> : vector<2x8xf32>
    %109 = vector.multi_reduction <maximumf>, %108, %cst_98 [2] : vector<2x8x8xf32> to vector<2x8xf32>
    %110 = vector.shape_cast %109 : vector<2x8xf32> to vector<2x8x1xf32>
    %111 = vector.broadcast %110 : vector<2x8x1xf32> to vector<2x8x8xf32>
    %112 = arith.subf %108, %111 : vector<2x8x8xf32>
    %113 = math.exp %112 : vector<2x8x8xf32>
    %cst_99 = arith.constant dense<0.000000e+00> : vector<2x8xf32>
    %114 = vector.multi_reduction <add>, %113, %cst_99 [2] : vector<2x8x8xf32> to vector<2x8xf32>
    %115 = vector.shape_cast %114 : vector<2x8xf32> to vector<2x8x1xf32>
    %116 = vector.broadcast %115 : vector<2x8x1xf32> to vector<2x8x8xf32>
    %117 = arith.divf %113, %116 : vector<2x8x8xf32>
    "tpu.trace_start"() <{level = 10 : i32, message = "bqk,bkd->bqd"}> : () -> ()
    %cst_100 = arith.constant dense<0.000000e+00> : vector<2x8x8xf32>
    %118 = tpu.matmul %117, %104, %cst_100 {dimension_numbers = #tpu.dot_dimension_numbers<[2], [1], [1], [2], [0, 0, 0, 1, 1, 2], [0], [0]>} : vector<2x8x8xf32>, vector<2x8x8xf32>, vector<2x8x8xf32> -> vector<2x8x8xf32>
    "tpu.trace_stop"() : () -> ()
    %119 = vector.shape_cast %118 : vector<2x8x8xf32> to vector<16x8xf32>
    %c0_101 = arith.constant 0 : index
    %c1_102 = arith.constant 1 : index
    %c0_103 = arith.constant 0 : index
    %c0_104 = arith.constant 0 : index
    %120 = vector.load %arg5[%c0_101, %c1_102, %c0_103, %c0_104] : memref<2x4x8x32xf32, #tpu.memory_space<vmem>>, vector<1x1x8x32xf32>
    %121 = vector.shape_cast %120 : vector<1x1x8x32xf32> to vector<8x32xf32>
    %cst_105 = arith.constant dense<0.000000e+00> : vector<16x32xf32>
    %122 = tpu.matmul %119, %121, %cst_105 {dimension_numbers = #tpu.dot_dimension_numbers<[1], [0], [0], [1], [0, 0, 1, 1], [], []>} : vector<16x8xf32>, vector<8x32xf32>, vector<16x32xf32> -> vector<16x32xf32>
    %123 = arith.addf %80, %122 : vector<16x32xf32>
    %c0_106 = arith.constant 0 : index
    %c0_107 = arith.constant 0 : index
    %c2_108 = arith.constant 2 : index
    %c0_109 = arith.constant 0 : index
    %c0_110 = arith.constant 0 : index
    %124 = vector.load %arg3[%c0_106, %c0_107, %c2_108, %c0_109, %c0_110] : memref<2x3x4x32x8xf32, #tpu.memory_space<vmem>>, vector<1x1x1x32x8xf32>
    %125 = vector.shape_cast %124 : vector<1x1x1x32x8xf32> to vector<32x8xf32>
    %cst_111 = arith.constant dense<0.000000e+00> : vector<16x8xf32>
    %126 = tpu.matmul %38, %125, %cst_111 {dimension_numbers = #tpu.dot_dimension_numbers<[1], [0], [0], [1], [0, 0, 1, 1], [], []>} : vector<16x32xf32>, vector<32x8xf32>, vector<16x8xf32> -> vector<16x8xf32>
    %c0_112 = arith.constant 0 : index
    %c0_113 = arith.constant 0 : index
    %c2_114 = arith.constant 2 : index
    %c0_115 = arith.constant 0 : index
    %c0_116 = arith.constant 0 : index
    %127 = vector.load %arg4[%c0_112, %c0_113, %c2_114, %c0_115, %c0_116] : memref<2x3x4x1x8xf32, #tpu.memory_space<vmem>>, vector<1x1x1x1x8xf32>
    %128 = vector.shape_cast %127 : vector<1x1x1x1x8xf32> to vector<1x8xf32>
    %129 = vector.broadcast %128 : vector<1x8xf32> to vector<16x8xf32>
    %130 = arith.addf %126, %129 : vector<16x8xf32>
    %131 = vector.shape_cast %130 : vector<16x8xf32> to vector<2x8x8xf32>
    %c0_117 = arith.constant 0 : index
    %c1_118 = arith.constant 1 : index
    %c2_119 = arith.constant 2 : index
    %c0_120 = arith.constant 0 : index
    %c0_121 = arith.constant 0 : index
    %132 = vector.load %arg3[%c0_117, %c1_118, %c2_119, %c0_120, %c0_121] : memref<2x3x4x32x8xf32, #tpu.memory_space<vmem>>, vector<1x1x1x32x8xf32>
    %133 = vector.shape_cast %132 : vector<1x1x1x32x8xf32> to vector<32x8xf32>
    %cst_122 = arith.constant dense<0.000000e+00> : vector<16x8xf32>
    %134 = tpu.matmul %38, %133, %cst_122 {dimension_numbers = #tpu.dot_dimension_numbers<[1], [0], [0], [1], [0, 0, 1, 1], [], []>} : vector<16x32xf32>, vector<32x8xf32>, vector<16x8xf32> -> vector<16x8xf32>
    %c0_123 = arith.constant 0 : index
    %c1_124 = arith.constant 1 : index
    %c2_125 = arith.constant 2 : index
    %c0_126 = arith.constant 0 : index
    %c0_127 = arith.constant 0 : index
    %135 = vector.load %arg4[%c0_123, %c1_124, %c2_125, %c0_126, %c0_127] : memref<2x3x4x1x8xf32, #tpu.memory_space<vmem>>, vector<1x1x1x1x8xf32>
    %136 = vector.shape_cast %135 : vector<1x1x1x1x8xf32> to vector<1x8xf32>
    %137 = vector.broadcast %136 : vector<1x8xf32> to vector<16x8xf32>
    %138 = arith.addf %134, %137 : vector<16x8xf32>
    %139 = vector.shape_cast %138 : vector<16x8xf32> to vector<2x8x8xf32>
    %c0_128 = arith.constant 0 : index
    %c2_129 = arith.constant 2 : index
    %c2_130 = arith.constant 2 : index
    %c0_131 = arith.constant 0 : index
    %c0_132 = arith.constant 0 : index
    %140 = vector.load %arg3[%c0_128, %c2_129, %c2_130, %c0_131, %c0_132] : memref<2x3x4x32x8xf32, #tpu.memory_space<vmem>>, vector<1x1x1x32x8xf32>
    %141 = vector.shape_cast %140 : vector<1x1x1x32x8xf32> to vector<32x8xf32>
    %cst_133 = arith.constant dense<0.000000e+00> : vector<16x8xf32>
    %142 = tpu.matmul %38, %141, %cst_133 {dimension_numbers = #tpu.dot_dimension_numbers<[1], [0], [0], [1], [0, 0, 1, 1], [], []>} : vector<16x32xf32>, vector<32x8xf32>, vector<16x8xf32> -> vector<16x8xf32>
    %c0_134 = arith.constant 0 : index
    %c2_135 = arith.constant 2 : index
    %c2_136 = arith.constant 2 : index
    %c0_137 = arith.constant 0 : index
    %c0_138 = arith.constant 0 : index
    %143 = vector.load %arg4[%c0_134, %c2_135, %c2_136, %c0_137, %c0_138] : memref<2x3x4x1x8xf32, #tpu.memory_space<vmem>>, vector<1x1x1x1x8xf32>
    %144 = vector.shape_cast %143 : vector<1x1x1x1x8xf32> to vector<1x8xf32>
    %145 = vector.broadcast %144 : vector<1x8xf32> to vector<16x8xf32>
    %146 = arith.addf %142, %145 : vector<16x8xf32>
    %147 = vector.shape_cast %146 : vector<16x8xf32> to vector<2x8x8xf32>
    "tpu.trace_start"() <{level = 10 : i32, message = "bqd,bkd->bqk"}> : () -> ()
    %cst_139 = arith.constant dense<0.000000e+00> : vector<2x8x8xf32>
    %148 = tpu.matmul %131, %139, %cst_139 {dimension_numbers = #tpu.dot_dimension_numbers<[2], [2], [1], [1], [0, 0, 0, 1, 1, 1], [0], [0]>} : vector<2x8x8xf32>, vector<2x8x8xf32>, vector<2x8x8xf32> -> vector<2x8x8xf32>
    "tpu.trace_stop"() : () -> ()
    %cst_140 = arith.constant 0.353553385 : f32
    %149 = vector.broadcast %cst_140 : f32 to vector<2x8x8xf32>
    %150 = arith.mulf %148, %149 : vector<2x8x8xf32>
    %151 = arith.addf %150, %5 : vector<2x8x8xf32>
    %cst_141 = arith.constant dense<0xFF800000> : vector<2x8xf32>
    %152 = vector.multi_reduction <maximumf>, %151, %cst_141 [2] : vector<2x8x8xf32> to vector<2x8xf32>
    %153 = vector.shape_cast %152 : vector<2x8xf32> to vector<2x8x1xf32>
    %154 = vector.broadcast %153 : vector<2x8x1xf32> to vector<2x8x8xf32>
    %155 = arith.subf %151, %154 : vector<2x8x8xf32>
    %156 = math.exp %155 : vector<2x8x8xf32>
    %cst_142 = arith.constant dense<0.000000e+00> : vector<2x8xf32>
    %157 = vector.multi_reduction <add>, %156, %cst_142 [2] : vector<2x8x8xf32> to vector<2x8xf32>
    %158 = vector.shape_cast %157 : vector<2x8xf32> to vector<2x8x1xf32>
    %159 = vector.broadcast %158 : vector<2x8x1xf32> to vector<2x8x8xf32>
    %160 = arith.divf %156, %159 : vector<2x8x8xf32>
    "tpu.trace_start"() <{level = 10 : i32, message = "bqk,bkd->bqd"}> : () -> ()
    %cst_143 = arith.constant dense<0.000000e+00> : vector<2x8x8xf32>
    %161 = tpu.matmul %160, %147, %cst_143 {dimension_numbers = #tpu.dot_dimension_numbers<[2], [1], [1], [2], [0, 0, 0, 1, 1, 2], [0], [0]>} : vector<2x8x8xf32>, vector<2x8x8xf32>, vector<2x8x8xf32> -> vector<2x8x8xf32>
    "tpu.trace_stop"() : () -> ()
    %162 = vector.shape_cast %161 : vector<2x8x8xf32> to vector<16x8xf32>
    %c0_144 = arith.constant 0 : index
    %c2_145 = arith.constant 2 : index
    %c0_146 = arith.constant 0 : index
    %c0_147 = arith.constant 0 : index
    %163 = vector.load %arg5[%c0_144, %c2_145, %c0_146, %c0_147] : memref<2x4x8x32xf32, #tpu.memory_space<vmem>>, vector<1x1x8x32xf32>
    %164 = vector.shape_cast %163 : vector<1x1x8x32xf32> to vector<8x32xf32>
    %cst_148 = arith.constant dense<0.000000e+00> : vector<16x32xf32>
    %165 = tpu.matmul %162, %164, %cst_148 {dimension_numbers = #tpu.dot_dimension_numbers<[1], [0], [0], [1], [0, 0, 1, 1], [], []>} : vector<16x8xf32>, vector<8x32xf32>, vector<16x32xf32> -> vector<16x32xf32>
    %166 = arith.addf %123, %165 : vector<16x32xf32>
    %c0_149 = arith.constant 0 : index
    %c0_150 = arith.constant 0 : index
    %c3 = arith.constant 3 : index
    %c0_151 = arith.constant 0 : index
    %c0_152 = arith.constant 0 : index
    %167 = vector.load %arg3[%c0_149, %c0_150, %c3, %c0_151, %c0_152] : memref<2x3x4x32x8xf32, #tpu.memory_space<vmem>>, vector<1x1x1x32x8xf32>
    %168 = vector.shape_cast %167 : vector<1x1x1x32x8xf32> to vector<32x8xf32>
    %cst_153 = arith.constant dense<0.000000e+00> : vector<16x8xf32>
    %169 = tpu.matmul %38, %168, %cst_153 {dimension_numbers = #tpu.dot_dimension_numbers<[1], [0], [0], [1], [0, 0, 1, 1], [], []>} : vector<16x32xf32>, vector<32x8xf32>, vector<16x8xf32> -> vector<16x8xf32>
    %c0_154 = arith.constant 0 : index
    %c0_155 = arith.constant 0 : index
    %c3_156 = arith.constant 3 : index
    %c0_157 = arith.constant 0 : index
    %c0_158 = arith.constant 0 : index
    %170 = vector.load %arg4[%c0_154, %c0_155, %c3_156, %c0_157, %c0_158] : memref<2x3x4x1x8xf32, #tpu.memory_space<vmem>>, vector<1x1x1x1x8xf32>
    %171 = vector.shape_cast %170 : vector<1x1x1x1x8xf32> to vector<1x8xf32>
    %172 = vector.broadcast %171 : vector<1x8xf32> to vector<16x8xf32>
    %173 = arith.addf %169, %172 : vector<16x8xf32>
    %174 = vector.shape_cast %173 : vector<16x8xf32> to vector<2x8x8xf32>
    %c0_159 = arith.constant 0 : index
    %c1_160 = arith.constant 1 : index
    %c3_161 = arith.constant 3 : index
    %c0_162 = arith.constant 0 : index
    %c0_163 = arith.constant 0 : index
    %175 = vector.load %arg3[%c0_159, %c1_160, %c3_161, %c0_162, %c0_163] : memref<2x3x4x32x8xf32, #tpu.memory_space<vmem>>, vector<1x1x1x32x8xf32>
    %176 = vector.shape_cast %175 : vector<1x1x1x32x8xf32> to vector<32x8xf32>
    %cst_164 = arith.constant dense<0.000000e+00> : vector<16x8xf32>
    %177 = tpu.matmul %38, %176, %cst_164 {dimension_numbers = #tpu.dot_dimension_numbers<[1], [0], [0], [1], [0, 0, 1, 1], [], []>} : vector<16x32xf32>, vector<32x8xf32>, vector<16x8xf32> -> vector<16x8xf32>
    %c0_165 = arith.constant 0 : index
    %c1_166 = arith.constant 1 : index
    %c3_167 = arith.constant 3 : index
    %c0_168 = arith.constant 0 : index
    %c0_169 = arith.constant 0 : index
    %178 = vector.load %arg4[%c0_165, %c1_166, %c3_167, %c0_168, %c0_169] : memref<2x3x4x1x8xf32, #tpu.memory_space<vmem>>, vector<1x1x1x1x8xf32>
    %179 = vector.shape_cast %178 : vector<1x1x1x1x8xf32> to vector<1x8xf32>
    %180 = vector.broadcast %179 : vector<1x8xf32> to vector<16x8xf32>
    %181 = arith.addf %177, %180 : vector<16x8xf32>
    %182 = vector.shape_cast %181 : vector<16x8xf32> to vector<2x8x8xf32>
    %c0_170 = arith.constant 0 : index
    %c2_171 = arith.constant 2 : index
    %c3_172 = arith.constant 3 : index
    %c0_173 = arith.constant 0 : index
    %c0_174 = arith.constant 0 : index
    %183 = vector.load %arg3[%c0_170, %c2_171, %c3_172, %c0_173, %c0_174] : memref<2x3x4x32x8xf32, #tpu.memory_space<vmem>>, vector<1x1x1x32x8xf32>
    %184 = vector.shape_cast %183 : vector<1x1x1x32x8xf32> to vector<32x8xf32>
    %cst_175 = arith.constant dense<0.000000e+00> : vector<16x8xf32>
    %185 = tpu.matmul %38, %184, %cst_175 {dimension_numbers = #tpu.dot_dimension_numbers<[1], [0], [0], [1], [0, 0, 1, 1], [], []>} : vector<16x32xf32>, vector<32x8xf32>, vector<16x8xf32> -> vector<16x8xf32>
    %c0_176 = arith.constant 0 : index
    %c2_177 = arith.constant 2 : index
    %c3_178 = arith.constant 3 : index
    %c0_179 = arith.constant 0 : index
    %c0_180 = arith.constant 0 : index
    %186 = vector.load %arg4[%c0_176, %c2_177, %c3_178, %c0_179, %c0_180] : memref<2x3x4x1x8xf32, #tpu.memory_space<vmem>>, vector<1x1x1x1x8xf32>
    %187 = vector.shape_cast %186 : vector<1x1x1x1x8xf32> to vector<1x8xf32>
    %188 = vector.broadcast %187 : vector<1x8xf32> to vector<16x8xf32>
    %189 = arith.addf %185, %188 : vector<16x8xf32>
    %190 = vector.shape_cast %189 : vector<16x8xf32> to vector<2x8x8xf32>
    "tpu.trace_start"() <{level = 10 : i32, message = "bqd,bkd->bqk"}> : () -> ()
    %cst_181 = arith.constant dense<0.000000e+00> : vector<2x8x8xf32>
    %191 = tpu.matmul %174, %182, %cst_181 {dimension_numbers = #tpu.dot_dimension_numbers<[2], [2], [1], [1], [0, 0, 0, 1, 1, 1], [0], [0]>} : vector<2x8x8xf32>, vector<2x8x8xf32>, vector<2x8x8xf32> -> vector<2x8x8xf32>
    "tpu.trace_stop"() : () -> ()
    %cst_182 = arith.constant 0.353553385 : f32
    %192 = vector.broadcast %cst_182 : f32 to vector<2x8x8xf32>
    %193 = arith.mulf %191, %192 : vector<2x8x8xf32>
    %194 = arith.addf %193, %5 : vector<2x8x8xf32>
    %cst_183 = arith.constant dense<0xFF800000> : vector<2x8xf32>
    %195 = vector.multi_reduction <maximumf>, %194, %cst_183 [2] : vector<2x8x8xf32> to vector<2x8xf32>
    %196 = vector.shape_cast %195 : vector<2x8xf32> to vector<2x8x1xf32>
    %197 = vector.broadcast %196 : vector<2x8x1xf32> to vector<2x8x8xf32>
    %198 = arith.subf %194, %197 : vector<2x8x8xf32>
    %199 = math.exp %198 : vector<2x8x8xf32>
    %cst_184 = arith.constant dense<0.000000e+00> : vector<2x8xf32>
    %200 = vector.multi_reduction <add>, %199, %cst_184 [2] : vector<2x8x8xf32> to vector<2x8xf32>
    %201 = vector.shape_cast %200 : vector<2x8xf32> to vector<2x8x1xf32>
    %202 = vector.broadcast %201 : vector<2x8x1xf32> to vector<2x8x8xf32>
    %203 = arith.divf %199, %202 : vector<2x8x8xf32>
    "tpu.trace_start"() <{level = 10 : i32, message = "bqk,bkd->bqd"}> : () -> ()
    %cst_185 = arith.constant dense<0.000000e+00> : vector<2x8x8xf32>
    %204 = tpu.matmul %203, %190, %cst_185 {dimension_numbers = #tpu.dot_dimension_numbers<[2], [1], [1], [2], [0, 0, 0, 1, 1, 2], [0], [0]>} : vector<2x8x8xf32>, vector<2x8x8xf32>, vector<2x8x8xf32> -> vector<2x8x8xf32>
    "tpu.trace_stop"() : () -> ()
    %205 = vector.shape_cast %204 : vector<2x8x8xf32> to vector<16x8xf32>
    %c0_186 = arith.constant 0 : index
    %c3_187 = arith.constant 3 : index
    %c0_188 = arith.constant 0 : index
    %c0_189 = arith.constant 0 : index
    %206 = vector.load %arg5[%c0_186, %c3_187, %c0_188, %c0_189] : memref<2x4x8x32xf32, #tpu.memory_space<vmem>>, vector<1x1x8x32xf32>
    %207 = vector.shape_cast %206 : vector<1x1x8x32xf32> to vector<8x32xf32>
    %cst_190 = arith.constant dense<0.000000e+00> : vector<16x32xf32>
    %208 = tpu.matmul %205, %207, %cst_190 {dimension_numbers = #tpu.dot_dimension_numbers<[1], [0], [0], [1], [0, 0, 1, 1], [], []>} : vector<16x8xf32>, vector<8x32xf32>, vector<16x32xf32> -> vector<16x32xf32>
    %209 = arith.addf %166, %208 : vector<16x32xf32>
    %c0_191 = arith.constant 0 : index
    %c0_192 = arith.constant 0 : index
    %c0_193 = arith.constant 0 : index
    %210 = vector.load %arg6[%c0_191, %c0_192, %c0_193] : memref<2x1x32xf32, #tpu.memory_space<vmem>>, vector<1x1x32xf32>
    %211 = vector.shape_cast %210 : vector<1x1x32xf32> to vector<1x32xf32>
    %212 = vector.broadcast %211 : vector<1x32xf32> to vector<16x32xf32>
    %213 = arith.addf %209, %212 : vector<16x32xf32>
    %214 = arith.addf %14, %213 : vector<16x32xf32>
    %c0_194 = arith.constant 0 : index
    %c1_195 = arith.constant 1 : index
    %c0_196 = arith.constant 0 : index
    %c0_197 = arith.constant 0 : index
    %215 = vector.load %arg11[%c0_194, %c1_195, %c0_196, %c0_197] : memref<2x2x1x32xf32, #tpu.memory_space<vmem>>, vector<1x1x1x32xf32>
    %216 = vector.shape_cast %215 : vector<1x1x1x32xf32> to vector<1x32xf32>
    %c0_198 = arith.constant 0 : index
    %c1_199 = arith.constant 1 : index
    %c0_200 = arith.constant 0 : index
    %c0_201 = arith.constant 0 : index
    %217 = vector.load %arg12[%c0_198, %c1_199, %c0_200, %c0_201] : memref<2x2x1x32xf32, #tpu.memory_space<vmem>>, vector<1x1x1x32xf32>
    %218 = vector.shape_cast %217 : vector<1x1x1x32xf32> to vector<1x32xf32>
    %cst_202 = arith.constant dense<0.000000e+00> : vector<16xf32>
    %219 = vector.multi_reduction <add>, %214, %cst_202 [1] : vector<16x32xf32> to vector<16xf32>
    %220 = vector.shape_cast %219 : vector<16xf32> to vector<16x1xf32>
    %cst_203 = arith.constant 3.200000e+01 : f32
    %221 = vector.broadcast %cst_203 : f32 to vector<16x1xf32>
    %222 = arith.divf %220, %221 : vector<16x1xf32>
    %223 = vector.broadcast %222 : vector<16x1xf32> to vector<16x32xf32>
    %224 = arith.subf %214, %223 : vector<16x32xf32>
    %225 = arith.mulf %224, %224 : vector<16x32xf32>
    %cst_204 = arith.constant dense<0.000000e+00> : vector<16xf32>
    %226 = vector.multi_reduction <add>, %225, %cst_204 [1] : vector<16x32xf32> to vector<16xf32>
    %227 = vector.shape_cast %226 : vector<16xf32> to vector<16x1xf32>
    %cst_205 = arith.constant 3.100000e+01 : f32
    %228 = vector.broadcast %cst_205 : f32 to vector<16x1xf32>
    %229 = arith.divf %227, %228 : vector<16x1xf32>
    %230 = vector.broadcast %216 : vector<1x32xf32> to vector<16x32xf32>
    %231 = arith.mulf %230, %224 : vector<16x32xf32>
    %232 = math.sqrt %229 : vector<16x1xf32>
    %cst_206 = arith.constant 9.99999997E-7 : f32
    %233 = vector.broadcast %cst_206 : f32 to vector<16x1xf32>
    %234 = arith.addf %232, %233 : vector<16x1xf32>
    %235 = vector.broadcast %234 : vector<16x1xf32> to vector<16x32xf32>
    %236 = arith.divf %231, %235 : vector<16x32xf32>
    %237 = vector.broadcast %218 : vector<1x32xf32> to vector<16x32xf32>
    %238 = arith.addf %236, %237 : vector<16x32xf32>
    %c0_207 = arith.constant 0 : index
    %c0_208 = arith.constant 0 : index
    %c0_209 = arith.constant 0 : index
    %239 = vector.load %arg7[%c0_207, %c0_208, %c0_209] : memref<2x32x64xf32, #tpu.memory_space<vmem>>, vector<1x32x64xf32>
    %240 = vector.shape_cast %239 : vector<1x32x64xf32> to vector<32x64xf32>
    %cst_210 = arith.constant dense<0.000000e+00> : vector<16x64xf32>
    %241 = tpu.matmul %238, %240, %cst_210 {dimension_numbers = #tpu.dot_dimension_numbers<[1], [0], [0], [1], [0, 0, 1, 1], [], []>} : vector<16x32xf32>, vector<32x64xf32>, vector<16x64xf32> -> vector<16x64xf32>
    %c0_211 = arith.constant 0 : index
    %c0_212 = arith.constant 0 : index
    %c0_213 = arith.constant 0 : index
    %242 = vector.load %arg8[%c0_211, %c0_212, %c0_213] : memref<2x1x64xf32, #tpu.memory_space<vmem>>, vector<1x1x64xf32>
    %243 = vector.shape_cast %242 : vector<1x1x64xf32> to vector<1x64xf32>
    %244 = vector.broadcast %243 : vector<1x64xf32> to vector<16x64xf32>
    %245 = arith.addf %241, %244 : vector<16x64xf32>
    %cst_214 = arith.constant 0.000000e+00 : f32
    %246 = vector.broadcast %cst_214 : f32 to vector<16x64xf32>
    %247 = arith.maximumf %245, %246 : vector<16x64xf32>
    %c0_215 = arith.constant 0 : index
    %c0_216 = arith.constant 0 : index
    %c0_217 = arith.constant 0 : index
    %248 = vector.load %arg9[%c0_215, %c0_216, %c0_217] : memref<2x64x32xf32, #tpu.memory_space<vmem>>, vector<1x64x32xf32>
    %249 = vector.shape_cast %248 : vector<1x64x32xf32> to vector<64x32xf32>
    %cst_218 = arith.constant dense<0.000000e+00> : vector<16x32xf32>
    %250 = tpu.matmul %247, %249, %cst_218 {dimension_numbers = #tpu.dot_dimension_numbers<[1], [0], [0], [1], [0, 0, 1, 1], [], []>} : vector<16x64xf32>, vector<64x32xf32>, vector<16x32xf32> -> vector<16x32xf32>
    %c0_219 = arith.constant 0 : index
    %c0_220 = arith.constant 0 : index
    %c0_221 = arith.constant 0 : index
    %251 = vector.load %arg10[%c0_219, %c0_220, %c0_221] : memref<2x1x32xf32, #tpu.memory_space<vmem>>, vector<1x1x32xf32>
    %252 = vector.shape_cast %251 : vector<1x1x32xf32> to vector<1x32xf32>
    %253 = vector.broadcast %252 : vector<1x32xf32> to vector<16x32xf32>
    %254 = arith.addf %250, %253 : vector<16x32xf32>
    %255 = arith.addf %214, %254 : vector<16x32xf32>
    %c1_222 = arith.constant 1 : index
    %c0_223 = arith.constant 0 : index
    %c0_224 = arith.constant 0 : index
    %c0_225 = arith.constant 0 : index
    %256 = vector.load %arg11[%c1_222, %c0_223, %c0_224, %c0_225] : memref<2x2x1x32xf32, #tpu.memory_space<vmem>>, vector<1x1x1x32xf32>
    %257 = vector.shape_cast %256 : vector<1x1x1x32xf32> to vector<1x32xf32>
    %c1_226 = arith.constant 1 : index
    %c0_227 = arith.constant 0 : index
    %c0_228 = arith.constant 0 : index
    %c0_229 = arith.constant 0 : index
    %258 = vector.load %arg12[%c1_226, %c0_227, %c0_228, %c0_229] : memref<2x2x1x32xf32, #tpu.memory_space<vmem>>, vector<1x1x1x32xf32>
    %259 = vector.shape_cast %258 : vector<1x1x1x32xf32> to vector<1x32xf32>
    %cst_230 = arith.constant dense<0.000000e+00> : vector<16xf32>
    %260 = vector.multi_reduction <add>, %255, %cst_230 [1] : vector<16x32xf32> to vector<16xf32>
    %261 = vector.shape_cast %260 : vector<16xf32> to vector<16x1xf32>
    %cst_231 = arith.constant 3.200000e+01 : f32
    %262 = vector.broadcast %cst_231 : f32 to vector<16x1xf32>
    %263 = arith.divf %261, %262 : vector<16x1xf32>
    %264 = vector.broadcast %263 : vector<16x1xf32> to vector<16x32xf32>
    %265 = arith.subf %255, %264 : vector<16x32xf32>
    %266 = arith.mulf %265, %265 : vector<16x32xf32>
    %cst_232 = arith.constant dense<0.000000e+00> : vector<16xf32>
    %267 = vector.multi_reduction <add>, %266, %cst_232 [1] : vector<16x32xf32> to vector<16xf32>
    %268 = vector.shape_cast %267 : vector<16xf32> to vector<16x1xf32>
    %cst_233 = arith.constant 3.100000e+01 : f32
    %269 = vector.broadcast %cst_233 : f32 to vector<16x1xf32>
    %270 = arith.divf %268, %269 : vector<16x1xf32>
    %271 = vector.broadcast %257 : vector<1x32xf32> to vector<16x32xf32>
    %272 = arith.mulf %271, %265 : vector<16x32xf32>
    %273 = math.sqrt %270 : vector<16x1xf32>
    %cst_234 = arith.constant 9.99999997E-7 : f32
    %274 = vector.broadcast %cst_234 : f32 to vector<16x1xf32>
    %275 = arith.addf %273, %274 : vector<16x1xf32>
    %276 = vector.broadcast %275 : vector<16x1xf32> to vector<16x32xf32>
    %277 = arith.divf %272, %276 : vector<16x32xf32>
    %278 = vector.broadcast %259 : vector<1x32xf32> to vector<16x32xf32>
    %279 = arith.addf %277, %278 : vector<16x32xf32>
    %c1_235 = arith.constant 1 : index
    %c0_236 = arith.constant 0 : index
    %c0_237 = arith.constant 0 : index
    %c0_238 = arith.constant 0 : index
    %c0_239 = arith.constant 0 : index
    %280 = vector.load %arg3[%c1_235, %c0_236, %c0_237, %c0_238, %c0_239] : memref<2x3x4x32x8xf32, #tpu.memory_space<vmem>>, vector<1x1x1x32x8xf32>
    %281 = vector.shape_cast %280 : vector<1x1x1x32x8xf32> to vector<32x8xf32>
    %cst_240 = arith.constant dense<0.000000e+00> : vector<16x8xf32>
    %282 = tpu.matmul %279, %281, %cst_240 {dimension_numbers = #tpu.dot_dimension_numbers<[1], [0], [0], [1], [0, 0, 1, 1], [], []>} : vector<16x32xf32>, vector<32x8xf32>, vector<16x8xf32> -> vector<16x8xf32>
    %c1_241 = arith.constant 1 : index
    %c0_242 = arith.constant 0 : index
    %c0_243 = arith.constant 0 : index
    %c0_244 = arith.constant 0 : index
    %c0_245 = arith.constant 0 : index
    %283 = vector.load %arg4[%c1_241, %c0_242, %c0_243, %c0_244, %c0_245] : memref<2x3x4x1x8xf32, #tpu.memory_space<vmem>>, vector<1x1x1x1x8xf32>
    %284 = vector.shape_cast %283 : vector<1x1x1x1x8xf32> to vector<1x8xf32>
    %285 = vector.broadcast %284 : vector<1x8xf32> to vector<16x8xf32>
    %286 = arith.addf %282, %285 : vector<16x8xf32>
    %287 = vector.shape_cast %286 : vector<16x8xf32> to vector<2x8x8xf32>
    %c1_246 = arith.constant 1 : index
    %c1_247 = arith.constant 1 : index
    %c0_248 = arith.constant 0 : index
    %c0_249 = arith.constant 0 : index
    %c0_250 = arith.constant 0 : index
    %288 = vector.load %arg3[%c1_246, %c1_247, %c0_248, %c0_249, %c0_250] : memref<2x3x4x32x8xf32, #tpu.memory_space<vmem>>, vector<1x1x1x32x8xf32>
    %289 = vector.shape_cast %288 : vector<1x1x1x32x8xf32> to vector<32x8xf32>
    %cst_251 = arith.constant dense<0.000000e+00> : vector<16x8xf32>
    %290 = tpu.matmul %279, %289, %cst_251 {dimension_numbers = #tpu.dot_dimension_numbers<[1], [0], [0], [1], [0, 0, 1, 1], [], []>} : vector<16x32xf32>, vector<32x8xf32>, vector<16x8xf32> -> vector<16x8xf32>
    %c1_252 = arith.constant 1 : index
    %c1_253 = arith.constant 1 : index
    %c0_254 = arith.constant 0 : index
    %c0_255 = arith.constant 0 : index
    %c0_256 = arith.constant 0 : index
    %291 = vector.load %arg4[%c1_252, %c1_253, %c0_254, %c0_255, %c0_256] : memref<2x3x4x1x8xf32, #tpu.memory_space<vmem>>, vector<1x1x1x1x8xf32>
    %292 = vector.shape_cast %291 : vector<1x1x1x1x8xf32> to vector<1x8xf32>
    %293 = vector.broadcast %292 : vector<1x8xf32> to vector<16x8xf32>
    %294 = arith.addf %290, %293 : vector<16x8xf32>
    %295 = vector.shape_cast %294 : vector<16x8xf32> to vector<2x8x8xf32>
    %c1_257 = arith.constant 1 : index
    %c2_258 = arith.constant 2 : index
    %c0_259 = arith.constant 0 : index
    %c0_260 = arith.constant 0 : index
    %c0_261 = arith.constant 0 : index
    %296 = vector.load %arg3[%c1_257, %c2_258, %c0_259, %c0_260, %c0_261] : memref<2x3x4x32x8xf32, #tpu.memory_space<vmem>>, vector<1x1x1x32x8xf32>
    %297 = vector.shape_cast %296 : vector<1x1x1x32x8xf32> to vector<32x8xf32>
    %cst_262 = arith.constant dense<0.000000e+00> : vector<16x8xf32>
    %298 = tpu.matmul %279, %297, %cst_262 {dimension_numbers = #tpu.dot_dimension_numbers<[1], [0], [0], [1], [0, 0, 1, 1], [], []>} : vector<16x32xf32>, vector<32x8xf32>, vector<16x8xf32> -> vector<16x8xf32>
    %c1_263 = arith.constant 1 : index
    %c2_264 = arith.constant 2 : index
    %c0_265 = arith.constant 0 : index
    %c0_266 = arith.constant 0 : index
    %c0_267 = arith.constant 0 : index
    %299 = vector.load %arg4[%c1_263, %c2_264, %c0_265, %c0_266, %c0_267] : memref<2x3x4x1x8xf32, #tpu.memory_space<vmem>>, vector<1x1x1x1x8xf32>
    %300 = vector.shape_cast %299 : vector<1x1x1x1x8xf32> to vector<1x8xf32>
    %301 = vector.broadcast %300 : vector<1x8xf32> to vector<16x8xf32>
    %302 = arith.addf %298, %301 : vector<16x8xf32>
    %303 = vector.shape_cast %302 : vector<16x8xf32> to vector<2x8x8xf32>
    "tpu.trace_start"() <{level = 10 : i32, message = "bqd,bkd->bqk"}> : () -> ()
    %cst_268 = arith.constant dense<0.000000e+00> : vector<2x8x8xf32>
    %304 = tpu.matmul %287, %295, %cst_268 {dimension_numbers = #tpu.dot_dimension_numbers<[2], [2], [1], [1], [0, 0, 0, 1, 1, 1], [0], [0]>} : vector<2x8x8xf32>, vector<2x8x8xf32>, vector<2x8x8xf32> -> vector<2x8x8xf32>
    "tpu.trace_stop"() : () -> ()
    %cst_269 = arith.constant 0.353553385 : f32
    %305 = vector.broadcast %cst_269 : f32 to vector<2x8x8xf32>
    %306 = arith.mulf %304, %305 : vector<2x8x8xf32>
    %307 = arith.addf %306, %5 : vector<2x8x8xf32>
    %cst_270 = arith.constant dense<0xFF800000> : vector<2x8xf32>
    %308 = vector.multi_reduction <maximumf>, %307, %cst_270 [2] : vector<2x8x8xf32> to vector<2x8xf32>
    %309 = vector.shape_cast %308 : vector<2x8xf32> to vector<2x8x1xf32>
    %310 = vector.broadcast %309 : vector<2x8x1xf32> to vector<2x8x8xf32>
    %311 = arith.subf %307, %310 : vector<2x8x8xf32>
    %312 = math.exp %311 : vector<2x8x8xf32>
    %cst_271 = arith.constant dense<0.000000e+00> : vector<2x8xf32>
    %313 = vector.multi_reduction <add>, %312, %cst_271 [2] : vector<2x8x8xf32> to vector<2x8xf32>
    %314 = vector.shape_cast %313 : vector<2x8xf32> to vector<2x8x1xf32>
    %315 = vector.broadcast %314 : vector<2x8x1xf32> to vector<2x8x8xf32>
    %316 = arith.divf %312, %315 : vector<2x8x8xf32>
    "tpu.trace_start"() <{level = 10 : i32, message = "bqk,bkd->bqd"}> : () -> ()
    %cst_272 = arith.constant dense<0.000000e+00> : vector<2x8x8xf32>
    %317 = tpu.matmul %316, %303, %cst_272 {dimension_numbers = #tpu.dot_dimension_numbers<[2], [1], [1], [2], [0, 0, 0, 1, 1, 2], [0], [0]>} : vector<2x8x8xf32>, vector<2x8x8xf32>, vector<2x8x8xf32> -> vector<2x8x8xf32>
    "tpu.trace_stop"() : () -> ()
    %318 = vector.shape_cast %317 : vector<2x8x8xf32> to vector<16x8xf32>
    %c1_273 = arith.constant 1 : index
    %c0_274 = arith.constant 0 : index
    %c0_275 = arith.constant 0 : index
    %c0_276 = arith.constant 0 : index
    %319 = vector.load %arg5[%c1_273, %c0_274, %c0_275, %c0_276] : memref<2x4x8x32xf32, #tpu.memory_space<vmem>>, vector<1x1x8x32xf32>
    %320 = vector.shape_cast %319 : vector<1x1x8x32xf32> to vector<8x32xf32>
    %cst_277 = arith.constant dense<0.000000e+00> : vector<16x32xf32>
    %321 = tpu.matmul %318, %320, %cst_277 {dimension_numbers = #tpu.dot_dimension_numbers<[1], [0], [0], [1], [0, 0, 1, 1], [], []>} : vector<16x8xf32>, vector<8x32xf32>, vector<16x32xf32> -> vector<16x32xf32>
    %c1_278 = arith.constant 1 : index
    %c0_279 = arith.constant 0 : index
    %c1_280 = arith.constant 1 : index
    %c0_281 = arith.constant 0 : index
    %c0_282 = arith.constant 0 : index
    %322 = vector.load %arg3[%c1_278, %c0_279, %c1_280, %c0_281, %c0_282] : memref<2x3x4x32x8xf32, #tpu.memory_space<vmem>>, vector<1x1x1x32x8xf32>
    %323 = vector.shape_cast %322 : vector<1x1x1x32x8xf32> to vector<32x8xf32>
    %cst_283 = arith.constant dense<0.000000e+00> : vector<16x8xf32>
    %324 = tpu.matmul %279, %323, %cst_283 {dimension_numbers = #tpu.dot_dimension_numbers<[1], [0], [0], [1], [0, 0, 1, 1], [], []>} : vector<16x32xf32>, vector<32x8xf32>, vector<16x8xf32> -> vector<16x8xf32>
    %c1_284 = arith.constant 1 : index
    %c0_285 = arith.constant 0 : index
    %c1_286 = arith.constant 1 : index
    %c0_287 = arith.constant 0 : index
    %c0_288 = arith.constant 0 : index
    %325 = vector.load %arg4[%c1_284, %c0_285, %c1_286, %c0_287, %c0_288] : memref<2x3x4x1x8xf32, #tpu.memory_space<vmem>>, vector<1x1x1x1x8xf32>
    %326 = vector.shape_cast %325 : vector<1x1x1x1x8xf32> to vector<1x8xf32>
    %327 = vector.broadcast %326 : vector<1x8xf32> to vector<16x8xf32>
    %328 = arith.addf %324, %327 : vector<16x8xf32>
    %329 = vector.shape_cast %328 : vector<16x8xf32> to vector<2x8x8xf32>
    %c1_289 = arith.constant 1 : index
    %c1_290 = arith.constant 1 : index
    %c1_291 = arith.constant 1 : index
    %c0_292 = arith.constant 0 : index
    %c0_293 = arith.constant 0 : index
    %330 = vector.load %arg3[%c1_289, %c1_290, %c1_291, %c0_292, %c0_293] : memref<2x3x4x32x8xf32, #tpu.memory_space<vmem>>, vector<1x1x1x32x8xf32>
    %331 = vector.shape_cast %330 : vector<1x1x1x32x8xf32> to vector<32x8xf32>
    %cst_294 = arith.constant dense<0.000000e+00> : vector<16x8xf32>
    %332 = tpu.matmul %279, %331, %cst_294 {dimension_numbers = #tpu.dot_dimension_numbers<[1], [0], [0], [1], [0, 0, 1, 1], [], []>} : vector<16x32xf32>, vector<32x8xf32>, vector<16x8xf32> -> vector<16x8xf32>
    %c1_295 = arith.constant 1 : index
    %c1_296 = arith.constant 1 : index
    %c1_297 = arith.constant 1 : index
    %c0_298 = arith.constant 0 : index
    %c0_299 = arith.constant 0 : index
    %333 = vector.load %arg4[%c1_295, %c1_296, %c1_297, %c0_298, %c0_299] : memref<2x3x4x1x8xf32, #tpu.memory_space<vmem>>, vector<1x1x1x1x8xf32>
    %334 = vector.shape_cast %333 : vector<1x1x1x1x8xf32> to vector<1x8xf32>
    %335 = vector.broadcast %334 : vector<1x8xf32> to vector<16x8xf32>
    %336 = arith.addf %332, %335 : vector<16x8xf32>
    %337 = vector.shape_cast %336 : vector<16x8xf32> to vector<2x8x8xf32>
    %c1_300 = arith.constant 1 : index
    %c2_301 = arith.constant 2 : index
    %c1_302 = arith.constant 1 : index
    %c0_303 = arith.constant 0 : index
    %c0_304 = arith.constant 0 : index
    %338 = vector.load %arg3[%c1_300, %c2_301, %c1_302, %c0_303, %c0_304] : memref<2x3x4x32x8xf32, #tpu.memory_space<vmem>>, vector<1x1x1x32x8xf32>
    %339 = vector.shape_cast %338 : vector<1x1x1x32x8xf32> to vector<32x8xf32>
    %cst_305 = arith.constant dense<0.000000e+00> : vector<16x8xf32>
    %340 = tpu.matmul %279, %339, %cst_305 {dimension_numbers = #tpu.dot_dimension_numbers<[1], [0], [0], [1], [0, 0, 1, 1], [], []>} : vector<16x32xf32>, vector<32x8xf32>, vector<16x8xf32> -> vector<16x8xf32>
    %c1_306 = arith.constant 1 : index
    %c2_307 = arith.constant 2 : index
    %c1_308 = arith.constant 1 : index
    %c0_309 = arith.constant 0 : index
    %c0_310 = arith.constant 0 : index
    %341 = vector.load %arg4[%c1_306, %c2_307, %c1_308, %c0_309, %c0_310] : memref<2x3x4x1x8xf32, #tpu.memory_space<vmem>>, vector<1x1x1x1x8xf32>
    %342 = vector.shape_cast %341 : vector<1x1x1x1x8xf32> to vector<1x8xf32>
    %343 = vector.broadcast %342 : vector<1x8xf32> to vector<16x8xf32>
    %344 = arith.addf %340, %343 : vector<16x8xf32>
    %345 = vector.shape_cast %344 : vector<16x8xf32> to vector<2x8x8xf32>
    "tpu.trace_start"() <{level = 10 : i32, message = "bqd,bkd->bqk"}> : () -> ()
    %cst_311 = arith.constant dense<0.000000e+00> : vector<2x8x8xf32>
    %346 = tpu.matmul %329, %337, %cst_311 {dimension_numbers = #tpu.dot_dimension_numbers<[2], [2], [1], [1], [0, 0, 0, 1, 1, 1], [0], [0]>} : vector<2x8x8xf32>, vector<2x8x8xf32>, vector<2x8x8xf32> -> vector<2x8x8xf32>
    "tpu.trace_stop"() : () -> ()
    %cst_312 = arith.constant 0.353553385 : f32
    %347 = vector.broadcast %cst_312 : f32 to vector<2x8x8xf32>
    %348 = arith.mulf %346, %347 : vector<2x8x8xf32>
    %349 = arith.addf %348, %5 : vector<2x8x8xf32>
    %cst_313 = arith.constant dense<0xFF800000> : vector<2x8xf32>
    %350 = vector.multi_reduction <maximumf>, %349, %cst_313 [2] : vector<2x8x8xf32> to vector<2x8xf32>
    %351 = vector.shape_cast %350 : vector<2x8xf32> to vector<2x8x1xf32>
    %352 = vector.broadcast %351 : vector<2x8x1xf32> to vector<2x8x8xf32>
    %353 = arith.subf %349, %352 : vector<2x8x8xf32>
    %354 = math.exp %353 : vector<2x8x8xf32>
    %cst_314 = arith.constant dense<0.000000e+00> : vector<2x8xf32>
    %355 = vector.multi_reduction <add>, %354, %cst_314 [2] : vector<2x8x8xf32> to vector<2x8xf32>
    %356 = vector.shape_cast %355 : vector<2x8xf32> to vector<2x8x1xf32>
    %357 = vector.broadcast %356 : vector<2x8x1xf32> to vector<2x8x8xf32>
    %358 = arith.divf %354, %357 : vector<2x8x8xf32>
    "tpu.trace_start"() <{level = 10 : i32, message = "bqk,bkd->bqd"}> : () -> ()
    %cst_315 = arith.constant dense<0.000000e+00> : vector<2x8x8xf32>
    %359 = tpu.matmul %358, %345, %cst_315 {dimension_numbers = #tpu.dot_dimension_numbers<[2], [1], [1], [2], [0, 0, 0, 1, 1, 2], [0], [0]>} : vector<2x8x8xf32>, vector<2x8x8xf32>, vector<2x8x8xf32> -> vector<2x8x8xf32>
    "tpu.trace_stop"() : () -> ()
    %360 = vector.shape_cast %359 : vector<2x8x8xf32> to vector<16x8xf32>
    %c1_316 = arith.constant 1 : index
    %c1_317 = arith.constant 1 : index
    %c0_318 = arith.constant 0 : index
    %c0_319 = arith.constant 0 : index
    %361 = vector.load %arg5[%c1_316, %c1_317, %c0_318, %c0_319] : memref<2x4x8x32xf32, #tpu.memory_space<vmem>>, vector<1x1x8x32xf32>
    %362 = vector.shape_cast %361 : vector<1x1x8x32xf32> to vector<8x32xf32>
    %cst_320 = arith.constant dense<0.000000e+00> : vector<16x32xf32>
    %363 = tpu.matmul %360, %362, %cst_320 {dimension_numbers = #tpu.dot_dimension_numbers<[1], [0], [0], [1], [0, 0, 1, 1], [], []>} : vector<16x8xf32>, vector<8x32xf32>, vector<16x32xf32> -> vector<16x32xf32>
    %364 = arith.addf %321, %363 : vector<16x32xf32>
    %c1_321 = arith.constant 1 : index
    %c0_322 = arith.constant 0 : index
    %c2_323 = arith.constant 2 : index
    %c0_324 = arith.constant 0 : index
    %c0_325 = arith.constant 0 : index
    %365 = vector.load %arg3[%c1_321, %c0_322, %c2_323, %c0_324, %c0_325] : memref<2x3x4x32x8xf32, #tpu.memory_space<vmem>>, vector<1x1x1x32x8xf32>
    %366 = vector.shape_cast %365 : vector<1x1x1x32x8xf32> to vector<32x8xf32>
    %cst_326 = arith.constant dense<0.000000e+00> : vector<16x8xf32>
    %367 = tpu.matmul %279, %366, %cst_326 {dimension_numbers = #tpu.dot_dimension_numbers<[1], [0], [0], [1], [0, 0, 1, 1], [], []>} : vector<16x32xf32>, vector<32x8xf32>, vector<16x8xf32> -> vector<16x8xf32>
    %c1_327 = arith.constant 1 : index
    %c0_328 = arith.constant 0 : index
    %c2_329 = arith.constant 2 : index
    %c0_330 = arith.constant 0 : index
    %c0_331 = arith.constant 0 : index
    %368 = vector.load %arg4[%c1_327, %c0_328, %c2_329, %c0_330, %c0_331] : memref<2x3x4x1x8xf32, #tpu.memory_space<vmem>>, vector<1x1x1x1x8xf32>
    %369 = vector.shape_cast %368 : vector<1x1x1x1x8xf32> to vector<1x8xf32>
    %370 = vector.broadcast %369 : vector<1x8xf32> to vector<16x8xf32>
    %371 = arith.addf %367, %370 : vector<16x8xf32>
    %372 = vector.shape_cast %371 : vector<16x8xf32> to vector<2x8x8xf32>
    %c1_332 = arith.constant 1 : index
    %c1_333 = arith.constant 1 : index
    %c2_334 = arith.constant 2 : index
    %c0_335 = arith.constant 0 : index
    %c0_336 = arith.constant 0 : index
    %373 = vector.load %arg3[%c1_332, %c1_333, %c2_334, %c0_335, %c0_336] : memref<2x3x4x32x8xf32, #tpu.memory_space<vmem>>, vector<1x1x1x32x8xf32>
    %374 = vector.shape_cast %373 : vector<1x1x1x32x8xf32> to vector<32x8xf32>
    %cst_337 = arith.constant dense<0.000000e+00> : vector<16x8xf32>
    %375 = tpu.matmul %279, %374, %cst_337 {dimension_numbers = #tpu.dot_dimension_numbers<[1], [0], [0], [1], [0, 0, 1, 1], [], []>} : vector<16x32xf32>, vector<32x8xf32>, vector<16x8xf32> -> vector<16x8xf32>
    %c1_338 = arith.constant 1 : index
    %c1_339 = arith.constant 1 : index
    %c2_340 = arith.constant 2 : index
    %c0_341 = arith.constant 0 : index
    %c0_342 = arith.constant 0 : index
    %376 = vector.load %arg4[%c1_338, %c1_339, %c2_340, %c0_341, %c0_342] : memref<2x3x4x1x8xf32, #tpu.memory_space<vmem>>, vector<1x1x1x1x8xf32>
    %377 = vector.shape_cast %376 : vector<1x1x1x1x8xf32> to vector<1x8xf32>
    %378 = vector.broadcast %377 : vector<1x8xf32> to vector<16x8xf32>
    %379 = arith.addf %375, %378 : vector<16x8xf32>
    %380 = vector.shape_cast %379 : vector<16x8xf32> to vector<2x8x8xf32>
    %c1_343 = arith.constant 1 : index
    %c2_344 = arith.constant 2 : index
    %c2_345 = arith.constant 2 : index
    %c0_346 = arith.constant 0 : index
    %c0_347 = arith.constant 0 : index
    %381 = vector.load %arg3[%c1_343, %c2_344, %c2_345, %c0_346, %c0_347] : memref<2x3x4x32x8xf32, #tpu.memory_space<vmem>>, vector<1x1x1x32x8xf32>
    %382 = vector.shape_cast %381 : vector<1x1x1x32x8xf32> to vector<32x8xf32>
    %cst_348 = arith.constant dense<0.000000e+00> : vector<16x8xf32>
    %383 = tpu.matmul %279, %382, %cst_348 {dimension_numbers = #tpu.dot_dimension_numbers<[1], [0], [0], [1], [0, 0, 1, 1], [], []>} : vector<16x32xf32>, vector<32x8xf32>, vector<16x8xf32> -> vector<16x8xf32>
    %c1_349 = arith.constant 1 : index
    %c2_350 = arith.constant 2 : index
    %c2_351 = arith.constant 2 : index
    %c0_352 = arith.constant 0 : index
    %c0_353 = arith.constant 0 : index
    %384 = vector.load %arg4[%c1_349, %c2_350, %c2_351, %c0_352, %c0_353] : memref<2x3x4x1x8xf32, #tpu.memory_space<vmem>>, vector<1x1x1x1x8xf32>
    %385 = vector.shape_cast %384 : vector<1x1x1x1x8xf32> to vector<1x8xf32>
    %386 = vector.broadcast %385 : vector<1x8xf32> to vector<16x8xf32>
    %387 = arith.addf %383, %386 : vector<16x8xf32>
    %388 = vector.shape_cast %387 : vector<16x8xf32> to vector<2x8x8xf32>
    "tpu.trace_start"() <{level = 10 : i32, message = "bqd,bkd->bqk"}> : () -> ()
    %cst_354 = arith.constant dense<0.000000e+00> : vector<2x8x8xf32>
    %389 = tpu.matmul %372, %380, %cst_354 {dimension_numbers = #tpu.dot_dimension_numbers<[2], [2], [1], [1], [0, 0, 0, 1, 1, 1], [0], [0]>} : vector<2x8x8xf32>, vector<2x8x8xf32>, vector<2x8x8xf32> -> vector<2x8x8xf32>
    "tpu.trace_stop"() : () -> ()
    %cst_355 = arith.constant 0.353553385 : f32
    %390 = vector.broadcast %cst_355 : f32 to vector<2x8x8xf32>
    %391 = arith.mulf %389, %390 : vector<2x8x8xf32>
    %392 = arith.addf %391, %5 : vector<2x8x8xf32>
    %cst_356 = arith.constant dense<0xFF800000> : vector<2x8xf32>
    %393 = vector.multi_reduction <maximumf>, %392, %cst_356 [2] : vector<2x8x8xf32> to vector<2x8xf32>
    %394 = vector.shape_cast %393 : vector<2x8xf32> to vector<2x8x1xf32>
    %395 = vector.broadcast %394 : vector<2x8x1xf32> to vector<2x8x8xf32>
    %396 = arith.subf %392, %395 : vector<2x8x8xf32>
    %397 = math.exp %396 : vector<2x8x8xf32>
    %cst_357 = arith.constant dense<0.000000e+00> : vector<2x8xf32>
    %398 = vector.multi_reduction <add>, %397, %cst_357 [2] : vector<2x8x8xf32> to vector<2x8xf32>
    %399 = vector.shape_cast %398 : vector<2x8xf32> to vector<2x8x1xf32>
    %400 = vector.broadcast %399 : vector<2x8x1xf32> to vector<2x8x8xf32>
    %401 = arith.divf %397, %400 : vector<2x8x8xf32>
    "tpu.trace_start"() <{level = 10 : i32, message = "bqk,bkd->bqd"}> : () -> ()
    %cst_358 = arith.constant dense<0.000000e+00> : vector<2x8x8xf32>
    %402 = tpu.matmul %401, %388, %cst_358 {dimension_numbers = #tpu.dot_dimension_numbers<[2], [1], [1], [2], [0, 0, 0, 1, 1, 2], [0], [0]>} : vector<2x8x8xf32>, vector<2x8x8xf32>, vector<2x8x8xf32> -> vector<2x8x8xf32>
    "tpu.trace_stop"() : () -> ()
    %403 = vector.shape_cast %402 : vector<2x8x8xf32> to vector<16x8xf32>
    %c1_359 = arith.constant 1 : index
    %c2_360 = arith.constant 2 : index
    %c0_361 = arith.constant 0 : index
    %c0_362 = arith.constant 0 : index
    %404 = vector.load %arg5[%c1_359, %c2_360, %c0_361, %c0_362] : memref<2x4x8x32xf32, #tpu.memory_space<vmem>>, vector<1x1x8x32xf32>
    %405 = vector.shape_cast %404 : vector<1x1x8x32xf32> to vector<8x32xf32>
    %cst_363 = arith.constant dense<0.000000e+00> : vector<16x32xf32>
    %406 = tpu.matmul %403, %405, %cst_363 {dimension_numbers = #tpu.dot_dimension_numbers<[1], [0], [0], [1], [0, 0, 1, 1], [], []>} : vector<16x8xf32>, vector<8x32xf32>, vector<16x32xf32> -> vector<16x32xf32>
    %407 = arith.addf %364, %406 : vector<16x32xf32>
    %c1_364 = arith.constant 1 : index
    %c0_365 = arith.constant 0 : index
    %c3_366 = arith.constant 3 : index
    %c0_367 = arith.constant 0 : index
    %c0_368 = arith.constant 0 : index
    %408 = vector.load %arg3[%c1_364, %c0_365, %c3_366, %c0_367, %c0_368] : memref<2x3x4x32x8xf32, #tpu.memory_space<vmem>>, vector<1x1x1x32x8xf32>
    %409 = vector.shape_cast %408 : vector<1x1x1x32x8xf32> to vector<32x8xf32>
    %cst_369 = arith.constant dense<0.000000e+00> : vector<16x8xf32>
    %410 = tpu.matmul %279, %409, %cst_369 {dimension_numbers = #tpu.dot_dimension_numbers<[1], [0], [0], [1], [0, 0, 1, 1], [], []>} : vector<16x32xf32>, vector<32x8xf32>, vector<16x8xf32> -> vector<16x8xf32>
    %c1_370 = arith.constant 1 : index
    %c0_371 = arith.constant 0 : index
    %c3_372 = arith.constant 3 : index
    %c0_373 = arith.constant 0 : index
    %c0_374 = arith.constant 0 : index
    %411 = vector.load %arg4[%c1_370, %c0_371, %c3_372, %c0_373, %c0_374] : memref<2x3x4x1x8xf32, #tpu.memory_space<vmem>>, vector<1x1x1x1x8xf32>
    %412 = vector.shape_cast %411 : vector<1x1x1x1x8xf32> to vector<1x8xf32>
    %413 = vector.broadcast %412 : vector<1x8xf32> to vector<16x8xf32>
    %414 = arith.addf %410, %413 : vector<16x8xf32>
    %415 = vector.shape_cast %414 : vector<16x8xf32> to vector<2x8x8xf32>
    %c1_375 = arith.constant 1 : index
    %c1_376 = arith.constant 1 : index
    %c3_377 = arith.constant 3 : index
    %c0_378 = arith.constant 0 : index
    %c0_379 = arith.constant 0 : index
    %416 = vector.load %arg3[%c1_375, %c1_376, %c3_377, %c0_378, %c0_379] : memref<2x3x4x32x8xf32, #tpu.memory_space<vmem>>, vector<1x1x1x32x8xf32>
    %417 = vector.shape_cast %416 : vector<1x1x1x32x8xf32> to vector<32x8xf32>
    %cst_380 = arith.constant dense<0.000000e+00> : vector<16x8xf32>
    %418 = tpu.matmul %279, %417, %cst_380 {dimension_numbers = #tpu.dot_dimension_numbers<[1], [0], [0], [1], [0, 0, 1, 1], [], []>} : vector<16x32xf32>, vector<32x8xf32>, vector<16x8xf32> -> vector<16x8xf32>
    %c1_381 = arith.constant 1 : index
    %c1_382 = arith.constant 1 : index
    %c3_383 = arith.constant 3 : index
    %c0_384 = arith.constant 0 : index
    %c0_385 = arith.constant 0 : index
    %419 = vector.load %arg4[%c1_381, %c1_382, %c3_383, %c0_384, %c0_385] : memref<2x3x4x1x8xf32, #tpu.memory_space<vmem>>, vector<1x1x1x1x8xf32>
    %420 = vector.shape_cast %419 : vector<1x1x1x1x8xf32> to vector<1x8xf32>
    %421 = vector.broadcast %420 : vector<1x8xf32> to vector<16x8xf32>
    %422 = arith.addf %418, %421 : vector<16x8xf32>
    %423 = vector.shape_cast %422 : vector<16x8xf32> to vector<2x8x8xf32>
    %c1_386 = arith.constant 1 : index
    %c2_387 = arith.constant 2 : index
    %c3_388 = arith.constant 3 : index
    %c0_389 = arith.constant 0 : index
    %c0_390 = arith.constant 0 : index
    %424 = vector.load %arg3[%c1_386, %c2_387, %c3_388, %c0_389, %c0_390] : memref<2x3x4x32x8xf32, #tpu.memory_space<vmem>>, vector<1x1x1x32x8xf32>
    %425 = vector.shape_cast %424 : vector<1x1x1x32x8xf32> to vector<32x8xf32>
    %cst_391 = arith.constant dense<0.000000e+00> : vector<16x8xf32>
    %426 = tpu.matmul %279, %425, %cst_391 {dimension_numbers = #tpu.dot_dimension_numbers<[1], [0], [0], [1], [0, 0, 1, 1], [], []>} : vector<16x32xf32>, vector<32x8xf32>, vector<16x8xf32> -> vector<16x8xf32>
    %c1_392 = arith.constant 1 : index
    %c2_393 = arith.constant 2 : index
    %c3_394 = arith.constant 3 : index
    %c0_395 = arith.constant 0 : index
    %c0_396 = arith.constant 0 : index
    %427 = vector.load %arg4[%c1_392, %c2_393, %c3_394, %c0_395, %c0_396] : memref<2x3x4x1x8xf32, #tpu.memory_space<vmem>>, vector<1x1x1x1x8xf32>
    %428 = vector.shape_cast %427 : vector<1x1x1x1x8xf32> to vector<1x8xf32>
    %429 = vector.broadcast %428 : vector<1x8xf32> to vector<16x8xf32>
    %430 = arith.addf %426, %429 : vector<16x8xf32>
    %431 = vector.shape_cast %430 : vector<16x8xf32> to vector<2x8x8xf32>
    "tpu.trace_start"() <{level = 10 : i32, message = "bqd,bkd->bqk"}> : () -> ()
    %cst_397 = arith.constant dense<0.000000e+00> : vector<2x8x8xf32>
    %432 = tpu.matmul %415, %423, %cst_397 {dimension_numbers = #tpu.dot_dimension_numbers<[2], [2], [1], [1], [0, 0, 0, 1, 1, 1], [0], [0]>} : vector<2x8x8xf32>, vector<2x8x8xf32>, vector<2x8x8xf32> -> vector<2x8x8xf32>
    "tpu.trace_stop"() : () -> ()
    %cst_398 = arith.constant 0.353553385 : f32
    %433 = vector.broadcast %cst_398 : f32 to vector<2x8x8xf32>
    %434 = arith.mulf %432, %433 : vector<2x8x8xf32>
    %435 = arith.addf %434, %5 : vector<2x8x8xf32>
    %cst_399 = arith.constant dense<0xFF800000> : vector<2x8xf32>
    %436 = vector.multi_reduction <maximumf>, %435, %cst_399 [2] : vector<2x8x8xf32> to vector<2x8xf32>
    %437 = vector.shape_cast %436 : vector<2x8xf32> to vector<2x8x1xf32>
    %438 = vector.broadcast %437 : vector<2x8x1xf32> to vector<2x8x8xf32>
    %439 = arith.subf %435, %438 : vector<2x8x8xf32>
    %440 = math.exp %439 : vector<2x8x8xf32>
    %cst_400 = arith.constant dense<0.000000e+00> : vector<2x8xf32>
    %441 = vector.multi_reduction <add>, %440, %cst_400 [2] : vector<2x8x8xf32> to vector<2x8xf32>
    %442 = vector.shape_cast %441 : vector<2x8xf32> to vector<2x8x1xf32>
    %443 = vector.broadcast %442 : vector<2x8x1xf32> to vector<2x8x8xf32>
    %444 = arith.divf %440, %443 : vector<2x8x8xf32>
    "tpu.trace_start"() <{level = 10 : i32, message = "bqk,bkd->bqd"}> : () -> ()
    %cst_401 = arith.constant dense<0.000000e+00> : vector<2x8x8xf32>
    %445 = tpu.matmul %444, %431, %cst_401 {dimension_numbers = #tpu.dot_dimension_numbers<[2], [1], [1], [2], [0, 0, 0, 1, 1, 2], [0], [0]>} : vector<2x8x8xf32>, vector<2x8x8xf32>, vector<2x8x8xf32> -> vector<2x8x8xf32>
    "tpu.trace_stop"() : () -> ()
    %446 = vector.shape_cast %445 : vector<2x8x8xf32> to vector<16x8xf32>
    %c1_402 = arith.constant 1 : index
    %c3_403 = arith.constant 3 : index
    %c0_404 = arith.constant 0 : index
    %c0_405 = arith.constant 0 : index
    %447 = vector.load %arg5[%c1_402, %c3_403, %c0_404, %c0_405] : memref<2x4x8x32xf32, #tpu.memory_space<vmem>>, vector<1x1x8x32xf32>
    %448 = vector.shape_cast %447 : vector<1x1x8x32xf32> to vector<8x32xf32>
    %cst_406 = arith.constant dense<0.000000e+00> : vector<16x32xf32>
    %449 = tpu.matmul %446, %448, %cst_406 {dimension_numbers = #tpu.dot_dimension_numbers<[1], [0], [0], [1], [0, 0, 1, 1], [], []>} : vector<16x8xf32>, vector<8x32xf32>, vector<16x32xf32> -> vector<16x32xf32>
    %450 = arith.addf %407, %449 : vector<16x32xf32>
    %c1_407 = arith.constant 1 : index
    %c0_408 = arith.constant 0 : index
    %c0_409 = arith.constant 0 : index
    %451 = vector.load %arg6[%c1_407, %c0_408, %c0_409] : memref<2x1x32xf32, #tpu.memory_space<vmem>>, vector<1x1x32xf32>
    %452 = vector.shape_cast %451 : vector<1x1x32xf32> to vector<1x32xf32>
    %453 = vector.broadcast %452 : vector<1x32xf32> to vector<16x32xf32>
    %454 = arith.addf %450, %453 : vector<16x32xf32>
    %455 = arith.addf %255, %454 : vector<16x32xf32>
    %c1_410 = arith.constant 1 : index
    %c1_411 = arith.constant 1 : index
    %c0_412 = arith.constant 0 : index
    %c0_413 = arith.constant 0 : index
    %456 = vector.load %arg11[%c1_410, %c1_411, %c0_412, %c0_413] : memref<2x2x1x32xf32, #tpu.memory_space<vmem>>, vector<1x1x1x32xf32>
    %457 = vector.shape_cast %456 : vector<1x1x1x32xf32> to vector<1x32xf32>
    %c1_414 = arith.constant 1 : index
    %c1_415 = arith.constant 1 : index
    %c0_416 = arith.constant 0 : index
    %c0_417 = arith.constant 0 : index
    %458 = vector.load %arg12[%c1_414, %c1_415, %c0_416, %c0_417] : memref<2x2x1x32xf32, #tpu.memory_space<vmem>>, vector<1x1x1x32xf32>
    %459 = vector.shape_cast %458 : vector<1x1x1x32xf32> to vector<1x32xf32>
    %cst_418 = arith.constant dense<0.000000e+00> : vector<16xf32>
    %460 = vector.multi_reduction <add>, %455, %cst_418 [1] : vector<16x32xf32> to vector<16xf32>
    %461 = vector.shape_cast %460 : vector<16xf32> to vector<16x1xf32>
    %cst_419 = arith.constant 3.200000e+01 : f32
    %462 = vector.broadcast %cst_419 : f32 to vector<16x1xf32>
    %463 = arith.divf %461, %462 : vector<16x1xf32>
    %464 = vector.broadcast %463 : vector<16x1xf32> to vector<16x32xf32>
    %465 = arith.subf %455, %464 : vector<16x32xf32>
    %466 = arith.mulf %465, %465 : vector<16x32xf32>
    %cst_420 = arith.constant dense<0.000000e+00> : vector<16xf32>
    %467 = vector.multi_reduction <add>, %466, %cst_420 [1] : vector<16x32xf32> to vector<16xf32>
    %468 = vector.shape_cast %467 : vector<16xf32> to vector<16x1xf32>
    %cst_421 = arith.constant 3.100000e+01 : f32
    %469 = vector.broadcast %cst_421 : f32 to vector<16x1xf32>
    %470 = arith.divf %468, %469 : vector<16x1xf32>
    %471 = vector.broadcast %457 : vector<1x32xf32> to vector<16x32xf32>
    %472 = arith.mulf %471, %465 : vector<16x32xf32>
    %473 = math.sqrt %470 : vector<16x1xf32>
    %cst_422 = arith.constant 9.99999997E-7 : f32
    %474 = vector.broadcast %cst_422 : f32 to vector<16x1xf32>
    %475 = arith.addf %473, %474 : vector<16x1xf32>
    %476 = vector.broadcast %475 : vector<16x1xf32> to vector<16x32xf32>
    %477 = arith.divf %472, %476 : vector<16x32xf32>
    %478 = vector.broadcast %459 : vector<1x32xf32> to vector<16x32xf32>
    %479 = arith.addf %477, %478 : vector<16x32xf32>
    %c1_423 = arith.constant 1 : index
    %c0_424 = arith.constant 0 : index
    %c0_425 = arith.constant 0 : index
    %480 = vector.load %arg7[%c1_423, %c0_424, %c0_425] : memref<2x32x64xf32, #tpu.memory_space<vmem>>, vector<1x32x64xf32>
    %481 = vector.shape_cast %480 : vector<1x32x64xf32> to vector<32x64xf32>
    %cst_426 = arith.constant dense<0.000000e+00> : vector<16x64xf32>
    %482 = tpu.matmul %479, %481, %cst_426 {dimension_numbers = #tpu.dot_dimension_numbers<[1], [0], [0], [1], [0, 0, 1, 1], [], []>} : vector<16x32xf32>, vector<32x64xf32>, vector<16x64xf32> -> vector<16x64xf32>
    %c1_427 = arith.constant 1 : index
    %c0_428 = arith.constant 0 : index
    %c0_429 = arith.constant 0 : index
    %483 = vector.load %arg8[%c1_427, %c0_428, %c0_429] : memref<2x1x64xf32, #tpu.memory_space<vmem>>, vector<1x1x64xf32>
    %484 = vector.shape_cast %483 : vector<1x1x64xf32> to vector<1x64xf32>
    %485 = vector.broadcast %484 : vector<1x64xf32> to vector<16x64xf32>
    %486 = arith.addf %482, %485 : vector<16x64xf32>
    %cst_430 = arith.constant 0.000000e+00 : f32
    %487 = vector.broadcast %cst_430 : f32 to vector<16x64xf32>
    %488 = arith.maximumf %486, %487 : vector<16x64xf32>
    %c1_431 = arith.constant 1 : index
    %c0_432 = arith.constant 0 : index
    %c0_433 = arith.constant 0 : index
    %489 = vector.load %arg9[%c1_431, %c0_432, %c0_433] : memref<2x64x32xf32, #tpu.memory_space<vmem>>, vector<1x64x32xf32>
    %490 = vector.shape_cast %489 : vector<1x64x32xf32> to vector<64x32xf32>
    %cst_434 = arith.constant dense<0.000000e+00> : vector<16x32xf32>
    %491 = tpu.matmul %488, %490, %cst_434 {dimension_numbers = #tpu.dot_dimension_numbers<[1], [0], [0], [1], [0, 0, 1, 1], [], []>} : vector<16x64xf32>, vector<64x32xf32>, vector<16x32xf32> -> vector<16x32xf32>
    %c1_435 = arith.constant 1 : index
    %c0_436 = arith.constant 0 : index
    %c0_437 = arith.constant 0 : index
    %492 = vector.load %arg10[%c1_435, %c0_436, %c0_437] : memref<2x1x32xf32, #tpu.memory_space<vmem>>, vector<1x1x32xf32>
    %493 = vector.shape_cast %492 : vector<1x1x32xf32> to vector<1x32xf32>
    %494 = vector.broadcast %493 : vector<1x32xf32> to vector<16x32xf32>
    %495 = arith.addf %491, %494 : vector<16x32xf32>
    %496 = arith.addf %455, %495 : vector<16x32xf32>
    %c0_438 = arith.constant 0 : index
    %c0_439 = arith.constant 0 : index
    %497 = vector.load %arg13[%c0_438, %c0_439] : memref<1x32xf32, #tpu.memory_space<vmem>>, vector<1x32xf32>
    %c0_440 = arith.constant 0 : index
    %c0_441 = arith.constant 0 : index
    %498 = vector.load %arg14[%c0_440, %c0_441] : memref<1x32xf32, #tpu.memory_space<vmem>>, vector<1x32xf32>
    %cst_442 = arith.constant dense<0.000000e+00> : vector<16xf32>
    %499 = vector.multi_reduction <add>, %496, %cst_442 [1] : vector<16x32xf32> to vector<16xf32>
    %500 = vector.shape_cast %499 : vector<16xf32> to vector<16x1xf32>
    %cst_443 = arith.constant 3.200000e+01 : f32
    %501 = vector.broadcast %cst_443 : f32 to vector<16x1xf32>
    %502 = arith.divf %500, %501 : vector<16x1xf32>
    %503 = vector.broadcast %502 : vector<16x1xf32> to vector<16x32xf32>
    %504 = arith.subf %496, %503 : vector<16x32xf32>
    %505 = arith.mulf %504, %504 : vector<16x32xf32>
    %cst_444 = arith.constant dense<0.000000e+00> : vector<16xf32>
    %506 = vector.multi_reduction <add>, %505, %cst_444 [1] : vector<16x32xf32> to vector<16xf32>
    %507 = vector.shape_cast %506 : vector<16xf32> to vector<16x1xf32>
    %cst_445 = arith.constant 3.100000e+01 : f32
    %508 = vector.broadcast %cst_445 : f32 to vector<16x1xf32>
    %509 = arith.divf %507, %508 : vector<16x1xf32>
    %510 = vector.broadcast %497 : vector<1x32xf32> to vector<16x32xf32>
    %511 = arith.mulf %510, %504 : vector<16x32xf32>
    %512 = math.sqrt %509 : vector<16x1xf32>
    %cst_446 = arith.constant 9.99999997E-7 : f32
    %513 = vector.broadcast %cst_446 : f32 to vector<16x1xf32>
    %514 = arith.addf %512, %513 : vector<16x1xf32>
    %515 = vector.broadcast %514 : vector<16x1xf32> to vector<16x32xf32>
    %516 = arith.divf %511, %515 : vector<16x32xf32>
    %517 = vector.broadcast %498 : vector<1x32xf32> to vector<16x32xf32>
    %518 = arith.addf %516, %517 : vector<16x32xf32>
    %c0_447 = arith.constant 0 : index
    %c0_448 = arith.constant 0 : index
    %519 = vector.load %arg15[%c0_447, %c0_448] : memref<16x32xf32, #tpu.memory_space<vmem>>, vector<16x32xf32>
    tpu.vector_store %arg15[%c0_447, %c0_448], %518 {strides = array<i32>} : memref<16x32xf32, #tpu.memory_space<vmem>>, vector<16x32xf32>,
    return
  }
}

module attributes {stable_mosaic.version = 11 : i64} {
  func.func @_decoder_kernel(%arg0: memref<16x32xf32, #tpu.memory_space<vmem>>, %arg1: memref<8x32xf32, #tpu.memory_space<vmem>>, %arg2: memref<16x32xf32, #tpu.memory_space<vmem>>, %arg3: memref<2x8x8xf32, #tpu.memory_space<vmem>>, %arg4: memref<2x8x8xf32, #tpu.memory_space<vmem>>, %arg5: memref<2x3x4x32x8xf32, #tpu.memory_space<vmem>>, %arg6: memref<2x3x4x1x8xf32, #tpu.memory_space<vmem>>, %arg7: memref<2x4x8x32xf32, #tpu.memory_space<vmem>>, %arg8: memref<2x1x32xf32, #tpu.memory_space<vmem>>, %arg9: memref<2x3x4x32x8xf32, #tpu.memory_space<vmem>>, %arg10: memref<2x3x4x1x8xf32, #tpu.memory_space<vmem>>, %arg11: memref<2x4x8x32xf32, #tpu.memory_space<vmem>>, %arg12: memref<2x1x32xf32, #tpu.memory_space<vmem>>, %arg13: memref<2x32x64xf32, #tpu.memory_space<vmem>>, %arg14: memref<2x1x64xf32, #tpu.memory_space<vmem>>, %arg15: memref<2x64x32xf32, #tpu.memory_space<vmem>>, %arg16: memref<2x1x32xf32, #tpu.memory_space<vmem>>, %arg17: memref<2x3x1x32xf32, #tpu.memory_space<vmem>>, %arg18: memref<2x3x1x32xf32, #tpu.memory_space<vmem>>, %arg19: memref<1x32xf32, #tpu.memory_space<vmem>>, %arg20: memref<1x32xf32, #tpu.memory_space<vmem>>, %arg21: memref<16x32xf32, #tpu.memory_space<vmem>>) attributes {dimension_semantics = [], scalar_prefetch = 0 : i64, scratch_operands = 0 : i64, tpu.core_type = #tpu.core_type<tc>} {
    %c0 = arith.constant 0 : index
    %c0_0 = arith.constant 0 : index
    %c0_1 = arith.constant 0 : index
    %0 = vector.load %arg3[%c0, %c0_0, %c0_1] : memref<2x8x8xf32, #tpu.memory_space<vmem>>, vector<2x8x8xf32>
    %cst = arith.constant 0.000000e+00 : f32
    %1 = vector.broadcast %cst : f32 to vector<2x8x8xf32>
    %2 = arith.cmpf one, %0, %1 : vector<2x8x8xf32>
    %cst_2 = arith.constant 0.000000e+00 : f32
    %cst_3 = arith.constant -1.000000e+09 : f32
    %3 = vector.broadcast %cst_2 : f32 to vector<2x8x8xf32>
    %4 = vector.broadcast %cst_3 : f32 to vector<2x8x8xf32>
    %5 = arith.select %2, %3, %4 : vector<2x8x8xi1>, vector<2x8x8xf32>
    %c0_4 = arith.constant 0 : index
    %c0_5 = arith.constant 0 : index
    %c0_6 = arith.constant 0 : index
    %6 = vector.load %arg4[%c0_4, %c0_5, %c0_6] : memref<2x8x8xf32, #tpu.memory_space<vmem>>, vector<2x8x8xf32>
    %cst_7 = arith.constant 0.000000e+00 : f32
    %7 = vector.broadcast %cst_7 : f32 to vector<2x8x8xf32>
    %8 = arith.cmpf one, %6, %7 : vector<2x8x8xf32>
    %cst_8 = arith.constant 0.000000e+00 : f32
    %cst_9 = arith.constant -1.000000e+09 : f32
    %9 = vector.broadcast %cst_8 : f32 to vector<2x8x8xf32>
    %10 = vector.broadcast %cst_9 : f32 to vector<2x8x8xf32>
    %11 = arith.select %8, %9, %10 : vector<2x8x8xi1>, vector<2x8x8xf32>
    %c0_10 = arith.constant 0 : index
    %c0_11 = arith.constant 0 : index
    %12 = vector.load %arg2[%c0_10, %c0_11] : memref<16x32xf32, #tpu.memory_space<vmem>>, vector<16x32xf32>
    %c0_12 = arith.constant 0 : index
    %c0_13 = arith.constant 0 : index
    %13 = vector.load %arg0[%c0_12, %c0_13] : memref<16x32xf32, #tpu.memory_space<vmem>>, vector<16x32xf32>
    %cst_14 = arith.constant 5.65685415 : f32
    %14 = vector.broadcast %cst_14 : f32 to vector<16x32xf32>
    %15 = arith.mulf %13, %14 : vector<16x32xf32>
    %16 = vector.shape_cast %15 : vector<16x32xf32> to vector<2x8x32xf32>
    %c0_15 = arith.constant 0 : index
    %c0_16 = arith.constant 0 : index
    %17 = vector.load %arg1[%c0_15, %c0_16] : memref<8x32xf32, #tpu.memory_space<vmem>>, vector<8x32xf32>
    %18 = vector.shape_cast %17 : vector<8x32xf32> to vector<1x8x32xf32>
    %19 = vector.broadcast %18 : vector<1x8x32xf32> to vector<2x8x32xf32>
    %20 = arith.addf %16, %19 : vector<2x8x32xf32>
    %21 = vector.shape_cast %20 : vector<2x8x32xf32> to vector<16x32xf32>
    %c0_17 = arith.constant 0 : index
    %c0_18 = arith.constant 0 : index
    %c0_19 = arith.constant 0 : index
    %c0_20 = arith.constant 0 : index
    %22 = vector.load %arg17[%c0_17, %c0_18, %c0_19, %c0_20] : memref<2x3x1x32xf32, #tpu.memory_space<vmem>>, vector<1x1x1x32xf32>
    %23 = vector.shape_cast %22 : vector<1x1x1x32xf32> to vector<1x32xf32>
    %c0_21 = arith.constant 0 : index
    %c0_22 = arith.constant 0 : index
    %c0_23 = arith.constant 0 : index
    %c0_24 = arith.constant 0 : index
    %24 = vector.load %arg18[%c0_21, %c0_22, %c0_23, %c0_24] : memref<2x3x1x32xf32, #tpu.memory_space<vmem>>, vector<1x1x1x32xf32>
    %25 = vector.shape_cast %24 : vector<1x1x1x32xf32> to vector<1x32xf32>
    %cst_25 = arith.constant dense<0.000000e+00> : vector<16xf32>
    %26 = vector.multi_reduction <add>, %21, %cst_25 [1] : vector<16x32xf32> to vector<16xf32>
    %27 = vector.shape_cast %26 : vector<16xf32> to vector<16x1xf32>
    %cst_26 = arith.constant 3.200000e+01 : f32
    %28 = vector.broadcast %cst_26 : f32 to vector<16x1xf32>
    %29 = arith.divf %27, %28 : vector<16x1xf32>
    %30 = vector.broadcast %29 : vector<16x1xf32> to vector<16x32xf32>
    %31 = arith.subf %21, %30 : vector<16x32xf32>
    %32 = arith.mulf %31, %31 : vector<16x32xf32>
    %cst_27 = arith.constant dense<0.000000e+00> : vector<16xf32>
    %33 = vector.multi_reduction <add>, %32, %cst_27 [1] : vector<16x32xf32> to vector<16xf32>
    %34 = vector.shape_cast %33 : vector<16xf32> to vector<16x1xf32>
    %cst_28 = arith.constant 3.100000e+01 : f32
    %35 = vector.broadcast %cst_28 : f32 to vector<16x1xf32>
    %36 = arith.divf %34, %35 : vector<16x1xf32>
    %37 = vector.broadcast %23 : vector<1x32xf32> to vector<16x32xf32>
    %38 = arith.mulf %37, %31 : vector<16x32xf32>
    %39 = math.sqrt %36 : vector<16x1xf32>
    %cst_29 = arith.constant 9.99999997E-7 : f32
    %40 = vector.broadcast %cst_29 : f32 to vector<16x1xf32>
    %41 = arith.addf %39, %40 : vector<16x1xf32>
    %42 = vector.broadcast %41 : vector<16x1xf32> to vector<16x32xf32>
    %43 = arith.divf %38, %42 : vector<16x32xf32>
    %44 = vector.broadcast %25 : vector<1x32xf32> to vector<16x32xf32>
    %45 = arith.addf %43, %44 : vector<16x32xf32>
    %c0_30 = arith.constant 0 : index
    %c0_31 = arith.constant 0 : index
    %c0_32 = arith.constant 0 : index
    %c0_33 = arith.constant 0 : index
    %c0_34 = arith.constant 0 : index
    %46 = vector.load %arg5[%c0_30, %c0_31, %c0_32, %c0_33, %c0_34] : memref<2x3x4x32x8xf32, #tpu.memory_space<vmem>>, vector<1x1x1x32x8xf32>
    %47 = vector.shape_cast %46 : vector<1x1x1x32x8xf32> to vector<32x8xf32>
    %cst_35 = arith.constant dense<0.000000e+00> : vector<16x8xf32>
    %48 = tpu.matmul %45, %47, %cst_35 {dimension_numbers = #tpu.dot_dimension_numbers<[1], [0], [0], [1], [0, 0, 1, 1], [], []>} : vector<16x32xf32>, vector<32x8xf32>, vector<16x8xf32> -> vector<16x8xf32>
    %c0_36 = arith.constant 0 : index
    %c0_37 = arith.constant 0 : index
    %c0_38 = arith.constant 0 : index
    %c0_39 = arith.constant 0 : index
    %c0_40 = arith.constant 0 : index
    %49 = vector.load %arg6[%c0_36, %c0_37, %c0_38, %c0_39, %c0_40] : memref<2x3x4x1x8xf32, #tpu.memory_space<vmem>>, vector<1x1x1x1x8xf32>
    %50 = vector.shape_cast %49 : vector<1x1x1x1x8xf32> to vector<1x8xf32>
    %51 = vector.broadcast %50 : vector<1x8xf32> to vector<16x8xf32>
    %52 = arith.addf %48, %51 : vector<16x8xf32>
    %53 = vector.shape_cast %52 : vector<16x8xf32> to vector<2x8x8xf32>
    %c0_41 = arith.constant 0 : index
    %c1 = arith.constant 1 : index
    %c0_42 = arith.constant 0 : index
    %c0_43 = arith.constant 0 : index
    %c0_44 = arith.constant 0 : index
    %54 = vector.load %arg5[%c0_41, %c1, %c0_42, %c0_43, %c0_44] : memref<2x3x4x32x8xf32, #tpu.memory_space<vmem>>, vector<1x1x1x32x8xf32>
    %55 = vector.shape_cast %54 : vector<1x1x1x32x8xf32> to vector<32x8xf32>
    %cst_45 = arith.constant dense<0.000000e+00> : vector<16x8xf32>
    %56 = tpu.matmul %45, %55, %cst_45 {dimension_numbers = #tpu.dot_dimension_numbers<[1], [0], [0], [1], [0, 0, 1, 1], [], []>} : vector<16x32xf32>, vector<32x8xf32>, vector<16x8xf32> -> vector<16x8xf32>
    %c0_46 = arith.constant 0 : index
    %c1_47 = arith.constant 1 : index
    %c0_48 = arith.constant 0 : index
    %c0_49 = arith.constant 0 : index
    %c0_50 = arith.constant 0 : index
    %57 = vector.load %arg6[%c0_46, %c1_47, %c0_48, %c0_49, %c0_50] : memref<2x3x4x1x8xf32, #tpu.memory_space<vmem>>, vector<1x1x1x1x8xf32>
    %58 = vector.shape_cast %57 : vector<1x1x1x1x8xf32> to vector<1x8xf32>
    %59 = vector.broadcast %58 : vector<1x8xf32> to vector<16x8xf32>
    %60 = arith.addf %56, %59 : vector<16x8xf32>
    %61 = vector.shape_cast %60 : vector<16x8xf32> to vector<2x8x8xf32>
    %c0_51 = arith.constant 0 : index
    %c2 = arith.constant 2 : index
    %c0_52 = arith.constant 0 : index
    %c0_53 = arith.constant 0 : index
    %c0_54 = arith.constant 0 : index
    %62 = vector.load %arg5[%c0_51, %c2, %c0_52, %c0_53, %c0_54] : memref<2x3x4x32x8xf32, #tpu.memory_space<vmem>>, vector<1x1x1x32x8xf32>
    %63 = vector.shape_cast %62 : vector<1x1x1x32x8xf32> to vector<32x8xf32>
    %cst_55 = arith.constant dense<0.000000e+00> : vector<16x8xf32>
    %64 = tpu.matmul %45, %63, %cst_55 {dimension_numbers = #tpu.dot_dimension_numbers<[1], [0], [0], [1], [0, 0, 1, 1], [], []>} : vector<16x32xf32>, vector<32x8xf32>, vector<16x8xf32> -> vector<16x8xf32>
    %c0_56 = arith.constant 0 : index
    %c2_57 = arith.constant 2 : index
    %c0_58 = arith.constant 0 : index
    %c0_59 = arith.constant 0 : index
    %c0_60 = arith.constant 0 : index
    %65 = vector.load %arg6[%c0_56, %c2_57, %c0_58, %c0_59, %c0_60] : memref<2x3x4x1x8xf32, #tpu.memory_space<vmem>>, vector<1x1x1x1x8xf32>
    %66 = vector.shape_cast %65 : vector<1x1x1x1x8xf32> to vector<1x8xf32>
    %67 = vector.broadcast %66 : vector<1x8xf32> to vector<16x8xf32>
    %68 = arith.addf %64, %67 : vector<16x8xf32>
    %69 = vector.shape_cast %68 : vector<16x8xf32> to vector<2x8x8xf32>
    "tpu.trace_start"() <{level = 10 : i32, message = "bqd,bkd->bqk"}> : () -> ()
    %cst_61 = arith.constant dense<0.000000e+00> : vector<2x8x8xf32>
    %70 = tpu.matmul %53, %61, %cst_61 {dimension_numbers = #tpu.dot_dimension_numbers<[2], [2], [1], [1], [0, 0, 0, 1, 1, 1], [0], [0]>} : vector<2x8x8xf32>, vector<2x8x8xf32>, vector<2x8x8xf32> -> vector<2x8x8xf32>
    "tpu.trace_stop"() : () -> ()
    %cst_62 = arith.constant 0.353553385 : f32
    %71 = vector.broadcast %cst_62 : f32 to vector<2x8x8xf32>
    %72 = arith.mulf %70, %71 : vector<2x8x8xf32>
    %73 = arith.addf %72, %11 : vector<2x8x8xf32>
    %cst_63 = arith.constant dense<0xFF800000> : vector<2x8xf32>
    %74 = vector.multi_reduction <maximumf>, %73, %cst_63 [2] : vector<2x8x8xf32> to vector<2x8xf32>
    %75 = vector.shape_cast %74 : vector<2x8xf32> to vector<2x8x1xf32>
    %76 = vector.broadcast %75 : vector<2x8x1xf32> to vector<2x8x8xf32>
    %77 = arith.subf %73, %76 : vector<2x8x8xf32>
    %78 = math.exp %77 : vector<2x8x8xf32>
    %cst_64 = arith.constant dense<0.000000e+00> : vector<2x8xf32>
    %79 = vector.multi_reduction <add>, %78, %cst_64 [2] : vector<2x8x8xf32> to vector<2x8xf32>
    %80 = vector.shape_cast %79 : vector<2x8xf32> to vector<2x8x1xf32>
    %81 = vector.broadcast %80 : vector<2x8x1xf32> to vector<2x8x8xf32>
    %82 = arith.divf %78, %81 : vector<2x8x8xf32>
    "tpu.trace_start"() <{level = 10 : i32, message = "bqk,bkd->bqd"}> : () -> ()
    %cst_65 = arith.constant dense<0.000000e+00> : vector<2x8x8xf32>
    %83 = tpu.matmul %82, %69, %cst_65 {dimension_numbers = #tpu.dot_dimension_numbers<[2], [1], [1], [2], [0, 0, 0, 1, 1, 2], [0], [0]>} : vector<2x8x8xf32>, vector<2x8x8xf32>, vector<2x8x8xf32> -> vector<2x8x8xf32>
    "tpu.trace_stop"() : () -> ()
    %84 = vector.shape_cast %83 : vector<2x8x8xf32> to vector<16x8xf32>
    %c0_66 = arith.constant 0 : index
    %c0_67 = arith.constant 0 : index
    %c0_68 = arith.constant 0 : index
    %c0_69 = arith.constant 0 : index
    %85 = vector.load %arg7[%c0_66, %c0_67, %c0_68, %c0_69] : memref<2x4x8x32xf32, #tpu.memory_space<vmem>>, vector<1x1x8x32xf32>
    %86 = vector.shape_cast %85 : vector<1x1x8x32xf32> to vector<8x32xf32>
    %cst_70 = arith.constant dense<0.000000e+00> : vector<16x32xf32>
    %87 = tpu.matmul %84, %86, %cst_70 {dimension_numbers = #tpu.dot_dimension_numbers<[1], [0], [0], [1], [0, 0, 1, 1], [], []>} : vector<16x8xf32>, vector<8x32xf32>, vector<16x32xf32> -> vector<16x32xf32>
    %c0_71 = arith.constant 0 : index
    %c0_72 = arith.constant 0 : index
    %c1_73 = arith.constant 1 : index
    %c0_74 = arith.constant 0 : index
    %c0_75 = arith.constant 0 : index
    %88 = vector.load %arg5[%c0_71, %c0_72, %c1_73, %c0_74, %c0_75] : memref<2x3x4x32x8xf32, #tpu.memory_space<vmem>>, vector<1x1x1x32x8xf32>
    %89 = vector.shape_cast %88 : vector<1x1x1x32x8xf32> to vector<32x8xf32>
    %cst_76 = arith.constant dense<0.000000e+00> : vector<16x8xf32>
    %90 = tpu.matmul %45, %89, %cst_76 {dimension_numbers = #tpu.dot_dimension_numbers<[1], [0], [0], [1], [0, 0, 1, 1], [], []>} : vector<16x32xf32>, vector<32x8xf32>, vector<16x8xf32> -> vector<16x8xf32>
    %c0_77 = arith.constant 0 : index
    %c0_78 = arith.constant 0 : index
    %c1_79 = arith.constant 1 : index
    %c0_80 = arith.constant 0 : index
    %c0_81 = arith.constant 0 : index
    %91 = vector.load %arg6[%c0_77, %c0_78, %c1_79, %c0_80, %c0_81] : memref<2x3x4x1x8xf32, #tpu.memory_space<vmem>>, vector<1x1x1x1x8xf32>
    %92 = vector.shape_cast %91 : vector<1x1x1x1x8xf32> to vector<1x8xf32>
    %93 = vector.broadcast %92 : vector<1x8xf32> to vector<16x8xf32>
    %94 = arith.addf %90, %93 : vector<16x8xf32>
    %95 = vector.shape_cast %94 : vector<16x8xf32> to vector<2x8x8xf32>
    %c0_82 = arith.constant 0 : index
    %c1_83 = arith.constant 1 : index
    %c1_84 = arith.constant 1 : index
    %c0_85 = arith.constant 0 : index
    %c0_86 = arith.constant 0 : index
    %96 = vector.load %arg5[%c0_82, %c1_83, %c1_84, %c0_85, %c0_86] : memref<2x3x4x32x8xf32, #tpu.memory_space<vmem>>, vector<1x1x1x32x8xf32>
    %97 = vector.shape_cast %96 : vector<1x1x1x32x8xf32> to vector<32x8xf32>
    %cst_87 = arith.constant dense<0.000000e+00> : vector<16x8xf32>
    %98 = tpu.matmul %45, %97, %cst_87 {dimension_numbers = #tpu.dot_dimension_numbers<[1], [0], [0], [1], [0, 0, 1, 1], [], []>} : vector<16x32xf32>, vector<32x8xf32>, vector<16x8xf32> -> vector<16x8xf32>
    %c0_88 = arith.constant 0 : index
    %c1_89 = arith.constant 1 : index
    %c1_90 = arith.constant 1 : index
    %c0_91 = arith.constant 0 : index
    %c0_92 = arith.constant 0 : index
    %99 = vector.load %arg6[%c0_88, %c1_89, %c1_90, %c0_91, %c0_92] : memref<2x3x4x1x8xf32, #tpu.memory_space<vmem>>, vector<1x1x1x1x8xf32>
    %100 = vector.shape_cast %99 : vector<1x1x1x1x8xf32> to vector<1x8xf32>
    %101 = vector.broadcast %100 : vector<1x8xf32> to vector<16x8xf32>
    %102 = arith.addf %98, %101 : vector<16x8xf32>
    %103 = vector.shape_cast %102 : vector<16x8xf32> to vector<2x8x8xf32>
    %c0_93 = arith.constant 0 : index
    %c2_94 = arith.constant 2 : index
    %c1_95 = arith.constant 1 : index
    %c0_96 = arith.constant 0 : index
    %c0_97 = arith.constant 0 : index
    %104 = vector.load %arg5[%c0_93, %c2_94, %c1_95, %c0_96, %c0_97] : memref<2x3x4x32x8xf32, #tpu.memory_space<vmem>>, vector<1x1x1x32x8xf32>
    %105 = vector.shape_cast %104 : vector<1x1x1x32x8xf32> to vector<32x8xf32>
    %cst_98 = arith.constant dense<0.000000e+00> : vector<16x8xf32>
    %106 = tpu.matmul %45, %105, %cst_98 {dimension_numbers = #tpu.dot_dimension_numbers<[1], [0], [0], [1], [0, 0, 1, 1], [], []>} : vector<16x32xf32>, vector<32x8xf32>, vector<16x8xf32> -> vector<16x8xf32>
    %c0_99 = arith.constant 0 : index
    %c2_100 = arith.constant 2 : index
    %c1_101 = arith.constant 1 : index
    %c0_102 = arith.constant 0 : index
    %c0_103 = arith.constant 0 : index
    %107 = vector.load %arg6[%c0_99, %c2_100, %c1_101, %c0_102, %c0_103] : memref<2x3x4x1x8xf32, #tpu.memory_space<vmem>>, vector<1x1x1x1x8xf32>
    %108 = vector.shape_cast %107 : vector<1x1x1x1x8xf32> to vector<1x8xf32>
    %109 = vector.broadcast %108 : vector<1x8xf32> to vector<16x8xf32>
    %110 = arith.addf %106, %109 : vector<16x8xf32>
    %111 = vector.shape_cast %110 : vector<16x8xf32> to vector<2x8x8xf32>
    "tpu.trace_start"() <{level = 10 : i32, message = "bqd,bkd->bqk"}> : () -> ()
    %cst_104 = arith.constant dense<0.000000e+00> : vector<2x8x8xf32>
    %112 = tpu.matmul %95, %103, %cst_104 {dimension_numbers = #tpu.dot_dimension_numbers<[2], [2], [1], [1], [0, 0, 0, 1, 1, 1], [0], [0]>} : vector<2x8x8xf32>, vector<2x8x8xf32>, vector<2x8x8xf32> -> vector<2x8x8xf32>
    "tpu.trace_stop"() : () -> ()
    %cst_105 = arith.constant 0.353553385 : f32
    %113 = vector.broadcast %cst_105 : f32 to vector<2x8x8xf32>
    %114 = arith.mulf %112, %113 : vector<2x8x8xf32>
    %115 = arith.addf %114, %11 : vector<2x8x8xf32>
    %cst_106 = arith.constant dense<0xFF800000> : vector<2x8xf32>
    %116 = vector.multi_reduction <maximumf>, %115, %cst_106 [2] : vector<2x8x8xf32> to vector<2x8xf32>
    %117 = vector.shape_cast %116 : vector<2x8xf32> to vector<2x8x1xf32>
    %118 = vector.broadcast %117 : vector<2x8x1xf32> to vector<2x8x8xf32>
    %119 = arith.subf %115, %118 : vector<2x8x8xf32>
    %120 = math.exp %119 : vector<2x8x8xf32>
    %cst_107 = arith.constant dense<0.000000e+00> : vector<2x8xf32>
    %121 = vector.multi_reduction <add>, %120, %cst_107 [2] : vector<2x8x8xf32> to vector<2x8xf32>
    %122 = vector.shape_cast %121 : vector<2x8xf32> to vector<2x8x1xf32>
    %123 = vector.broadcast %122 : vector<2x8x1xf32> to vector<2x8x8xf32>
    %124 = arith.divf %120, %123 : vector<2x8x8xf32>
    "tpu.trace_start"() <{level = 10 : i32, message = "bqk,bkd->bqd"}> : () -> ()
    %cst_108 = arith.constant dense<0.000000e+00> : vector<2x8x8xf32>
    %125 = tpu.matmul %124, %111, %cst_108 {dimension_numbers = #tpu.dot_dimension_numbers<[2], [1], [1], [2], [0, 0, 0, 1, 1, 2], [0], [0]>} : vector<2x8x8xf32>, vector<2x8x8xf32>, vector<2x8x8xf32> -> vector<2x8x8xf32>
    "tpu.trace_stop"() : () -> ()
    %126 = vector.shape_cast %125 : vector<2x8x8xf32> to vector<16x8xf32>
    %c0_109 = arith.constant 0 : index
    %c1_110 = arith.constant 1 : index
    %c0_111 = arith.constant 0 : index
    %c0_112 = arith.constant 0 : index
    %127 = vector.load %arg7[%c0_109, %c1_110, %c0_111, %c0_112] : memref<2x4x8x32xf32, #tpu.memory_space<vmem>>, vector<1x1x8x32xf32>
    %128 = vector.shape_cast %127 : vector<1x1x8x32xf32> to vector<8x32xf32>
    %cst_113 = arith.constant dense<0.000000e+00> : vector<16x32xf32>
    %129 = tpu.matmul %126, %128, %cst_113 {dimension_numbers = #tpu.dot_dimension_numbers<[1], [0], [0], [1], [0, 0, 1, 1], [], []>} : vector<16x8xf32>, vector<8x32xf32>, vector<16x32xf32> -> vector<16x32xf32>
    %130 = arith.addf %87, %129 : vector<16x32xf32>
    %c0_114 = arith.constant 0 : index
    %c0_115 = arith.constant 0 : index
    %c2_116 = arith.constant 2 : index
    %c0_117 = arith.constant 0 : index
    %c0_118 = arith.constant 0 : index
    %131 = vector.load %arg5[%c0_114, %c0_115, %c2_116, %c0_117, %c0_118] : memref<2x3x4x32x8xf32, #tpu.memory_space<vmem>>, vector<1x1x1x32x8xf32>
    %132 = vector.shape_cast %131 : vector<1x1x1x32x8xf32> to vector<32x8xf32>
    %cst_119 = arith.constant dense<0.000000e+00> : vector<16x8xf32>
    %133 = tpu.matmul %45, %132, %cst_119 {dimension_numbers = #tpu.dot_dimension_numbers<[1], [0], [0], [1], [0, 0, 1, 1], [], []>} : vector<16x32xf32>, vector<32x8xf32>, vector<16x8xf32> -> vector<16x8xf32>
    %c0_120 = arith.constant 0 : index
    %c0_121 = arith.constant 0 : index
    %c2_122 = arith.constant 2 : index
    %c0_123 = arith.constant 0 : index
    %c0_124 = arith.constant 0 : index
    %134 = vector.load %arg6[%c0_120, %c0_121, %c2_122, %c0_123, %c0_124] : memref<2x3x4x1x8xf32, #tpu.memory_space<vmem>>, vector<1x1x1x1x8xf32>
    %135 = vector.shape_cast %134 : vector<1x1x1x1x8xf32> to vector<1x8xf32>
    %136 = vector.broadcast %135 : vector<1x8xf32> to vector<16x8xf32>
    %137 = arith.addf %133, %136 : vector<16x8xf32>
    %138 = vector.shape_cast %137 : vector<16x8xf32> to vector<2x8x8xf32>
    %c0_125 = arith.constant 0 : index
    %c1_126 = arith.constant 1 : index
    %c2_127 = arith.constant 2 : index
    %c0_128 = arith.constant 0 : index
    %c0_129 = arith.constant 0 : index
    %139 = vector.load %arg5[%c0_125, %c1_126, %c2_127, %c0_128, %c0_129] : memref<2x3x4x32x8xf32, #tpu.memory_space<vmem>>, vector<1x1x1x32x8xf32>
    %140 = vector.shape_cast %139 : vector<1x1x1x32x8xf32> to vector<32x8xf32>
    %cst_130 = arith.constant dense<0.000000e+00> : vector<16x8xf32>
    %141 = tpu.matmul %45, %140, %cst_130 {dimension_numbers = #tpu.dot_dimension_numbers<[1], [0], [0], [1], [0, 0, 1, 1], [], []>} : vector<16x32xf32>, vector<32x8xf32>, vector<16x8xf32> -> vector<16x8xf32>
    %c0_131 = arith.constant 0 : index
    %c1_132 = arith.constant 1 : index
    %c2_133 = arith.constant 2 : index
    %c0_134 = arith.constant 0 : index
    %c0_135 = arith.constant 0 : index
    %142 = vector.load %arg6[%c0_131, %c1_132, %c2_133, %c0_134, %c0_135] : memref<2x3x4x1x8xf32, #tpu.memory_space<vmem>>, vector<1x1x1x1x8xf32>
    %143 = vector.shape_cast %142 : vector<1x1x1x1x8xf32> to vector<1x8xf32>
    %144 = vector.broadcast %143 : vector<1x8xf32> to vector<16x8xf32>
    %145 = arith.addf %141, %144 : vector<16x8xf32>
    %146 = vector.shape_cast %145 : vector<16x8xf32> to vector<2x8x8xf32>
    %c0_136 = arith.constant 0 : index
    %c2_137 = arith.constant 2 : index
    %c2_138 = arith.constant 2 : index
    %c0_139 = arith.constant 0 : index
    %c0_140 = arith.constant 0 : index
    %147 = vector.load %arg5[%c0_136, %c2_137, %c2_138, %c0_139, %c0_140] : memref<2x3x4x32x8xf32, #tpu.memory_space<vmem>>, vector<1x1x1x32x8xf32>
    %148 = vector.shape_cast %147 : vector<1x1x1x32x8xf32> to vector<32x8xf32>
    %cst_141 = arith.constant dense<0.000000e+00> : vector<16x8xf32>
    %149 = tpu.matmul %45, %148, %cst_141 {dimension_numbers = #tpu.dot_dimension_numbers<[1], [0], [0], [1], [0, 0, 1, 1], [], []>} : vector<16x32xf32>, vector<32x8xf32>, vector<16x8xf32> -> vector<16x8xf32>
    %c0_142 = arith.constant 0 : index
    %c2_143 = arith.constant 2 : index
    %c2_144 = arith.constant 2 : index
    %c0_145 = arith.constant 0 : index
    %c0_146 = arith.constant 0 : index
    %150 = vector.load %arg6[%c0_142, %c2_143, %c2_144, %c0_145, %c0_146] : memref<2x3x4x1x8xf32, #tpu.memory_space<vmem>>, vector<1x1x1x1x8xf32>
    %151 = vector.shape_cast %150 : vector<1x1x1x1x8xf32> to vector<1x8xf32>
    %152 = vector.broadcast %151 : vector<1x8xf32> to vector<16x8xf32>
    %153 = arith.addf %149, %152 : vector<16x8xf32>
    %154 = vector.shape_cast %153 : vector<16x8xf32> to vector<2x8x8xf32>
    "tpu.trace_start"() <{level = 10 : i32, message = "bqd,bkd->bqk"}> : () -> ()
    %cst_147 = arith.constant dense<0.000000e+00> : vector<2x8x8xf32>
    %155 = tpu.matmul %138, %146, %cst_147 {dimension_numbers = #tpu.dot_dimension_numbers<[2], [2], [1], [1], [0, 0, 0, 1, 1, 1], [0], [0]>} : vector<2x8x8xf32>, vector<2x8x8xf32>, vector<2x8x8xf32> -> vector<2x8x8xf32>
    "tpu.trace_stop"() : () -> ()
    %cst_148 = arith.constant 0.353553385 : f32
    %156 = vector.broadcast %cst_148 : f32 to vector<2x8x8xf32>
    %157 = arith.mulf %155, %156 : vector<2x8x8xf32>
    %158 = arith.addf %157, %11 : vector<2x8x8xf32>
    %cst_149 = arith.constant dense<0xFF800000> : vector<2x8xf32>
    %159 = vector.multi_reduction <maximumf>, %158, %cst_149 [2] : vector<2x8x8xf32> to vector<2x8xf32>
    %160 = vector.shape_cast %159 : vector<2x8xf32> to vector<2x8x1xf32>
    %161 = vector.broadcast %160 : vector<2x8x1xf32> to vector<2x8x8xf32>
    %162 = arith.subf %158, %161 : vector<2x8x8xf32>
    %163 = math.exp %162 : vector<2x8x8xf32>
    %cst_150 = arith.constant dense<0.000000e+00> : vector<2x8xf32>
    %164 = vector.multi_reduction <add>, %163, %cst_150 [2] : vector<2x8x8xf32> to vector<2x8xf32>
    %165 = vector.shape_cast %164 : vector<2x8xf32> to vector<2x8x1xf32>
    %166 = vector.broadcast %165 : vector<2x8x1xf32> to vector<2x8x8xf32>
    %167 = arith.divf %163, %166 : vector<2x8x8xf32>
    "tpu.trace_start"() <{level = 10 : i32, message = "bqk,bkd->bqd"}> : () -> ()
    %cst_151 = arith.constant dense<0.000000e+00> : vector<2x8x8xf32>
    %168 = tpu.matmul %167, %154, %cst_151 {dimension_numbers = #tpu.dot_dimension_numbers<[2], [1], [1], [2], [0, 0, 0, 1, 1, 2], [0], [0]>} : vector<2x8x8xf32>, vector<2x8x8xf32>, vector<2x8x8xf32> -> vector<2x8x8xf32>
    "tpu.trace_stop"() : () -> ()
    %169 = vector.shape_cast %168 : vector<2x8x8xf32> to vector<16x8xf32>
    %c0_152 = arith.constant 0 : index
    %c2_153 = arith.constant 2 : index
    %c0_154 = arith.constant 0 : index
    %c0_155 = arith.constant 0 : index
    %170 = vector.load %arg7[%c0_152, %c2_153, %c0_154, %c0_155] : memref<2x4x8x32xf32, #tpu.memory_space<vmem>>, vector<1x1x8x32xf32>
    %171 = vector.shape_cast %170 : vector<1x1x8x32xf32> to vector<8x32xf32>
    %cst_156 = arith.constant dense<0.000000e+00> : vector<16x32xf32>
    %172 = tpu.matmul %169, %171, %cst_156 {dimension_numbers = #tpu.dot_dimension_numbers<[1], [0], [0], [1], [0, 0, 1, 1], [], []>} : vector<16x8xf32>, vector<8x32xf32>, vector<16x32xf32> -> vector<16x32xf32>
    %173 = arith.addf %130, %172 : vector<16x32xf32>
    %c0_157 = arith.constant 0 : index
    %c0_158 = arith.constant 0 : index
    %c3 = arith.constant 3 : index
    %c0_159 = arith.constant 0 : index
    %c0_160 = arith.constant 0 : index
    %174 = vector.load %arg5[%c0_157, %c0_158, %c3, %c0_159, %c0_160] : memref<2x3x4x32x8xf32, #tpu.memory_space<vmem>>, vector<1x1x1x32x8xf32>
    %175 = vector.shape_cast %174 : vector<1x1x1x32x8xf32> to vector<32x8xf32>
    %cst_161 = arith.constant dense<0.000000e+00> : vector<16x8xf32>
    %176 = tpu.matmul %45, %175, %cst_161 {dimension_numbers = #tpu.dot_dimension_numbers<[1], [0], [0], [1], [0, 0, 1, 1], [], []>} : vector<16x32xf32>, vector<32x8xf32>, vector<16x8xf32> -> vector<16x8xf32>
    %c0_162 = arith.constant 0 : index
    %c0_163 = arith.constant 0 : index
    %c3_164 = arith.constant 3 : index
    %c0_165 = arith.constant 0 : index
    %c0_166 = arith.constant 0 : index
    %177 = vector.load %arg6[%c0_162, %c0_163, %c3_164, %c0_165, %c0_166] : memref<2x3x4x1x8xf32, #tpu.memory_space<vmem>>, vector<1x1x1x1x8xf32>
    %178 = vector.shape_cast %177 : vector<1x1x1x1x8xf32> to vector<1x8xf32>
    %179 = vector.broadcast %178 : vector<1x8xf32> to vector<16x8xf32>
    %180 = arith.addf %176, %179 : vector<16x8xf32>
    %181 = vector.shape_cast %180 : vector<16x8xf32> to vector<2x8x8xf32>
    %c0_167 = arith.constant 0 : index
    %c1_168 = arith.constant 1 : index
    %c3_169 = arith.constant 3 : index
    %c0_170 = arith.constant 0 : index
    %c0_171 = arith.constant 0 : index
    %182 = vector.load %arg5[%c0_167, %c1_168, %c3_169, %c0_170, %c0_171] : memref<2x3x4x32x8xf32, #tpu.memory_space<vmem>>, vector<1x1x1x32x8xf32>
    %183 = vector.shape_cast %182 : vector<1x1x1x32x8xf32> to vector<32x8xf32>
    %cst_172 = arith.constant dense<0.000000e+00> : vector<16x8xf32>
    %184 = tpu.matmul %45, %183, %cst_172 {dimension_numbers = #tpu.dot_dimension_numbers<[1], [0], [0], [1], [0, 0, 1, 1], [], []>} : vector<16x32xf32>, vector<32x8xf32>, vector<16x8xf32> -> vector<16x8xf32>
    %c0_173 = arith.constant 0 : index
    %c1_174 = arith.constant 1 : index
    %c3_175 = arith.constant 3 : index
    %c0_176 = arith.constant 0 : index
    %c0_177 = arith.constant 0 : index
    %185 = vector.load %arg6[%c0_173, %c1_174, %c3_175, %c0_176, %c0_177] : memref<2x3x4x1x8xf32, #tpu.memory_space<vmem>>, vector<1x1x1x1x8xf32>
    %186 = vector.shape_cast %185 : vector<1x1x1x1x8xf32> to vector<1x8xf32>
    %187 = vector.broadcast %186 : vector<1x8xf32> to vector<16x8xf32>
    %188 = arith.addf %184, %187 : vector<16x8xf32>
    %189 = vector.shape_cast %188 : vector<16x8xf32> to vector<2x8x8xf32>
    %c0_178 = arith.constant 0 : index
    %c2_179 = arith.constant 2 : index
    %c3_180 = arith.constant 3 : index
    %c0_181 = arith.constant 0 : index
    %c0_182 = arith.constant 0 : index
    %190 = vector.load %arg5[%c0_178, %c2_179, %c3_180, %c0_181, %c0_182] : memref<2x3x4x32x8xf32, #tpu.memory_space<vmem>>, vector<1x1x1x32x8xf32>
    %191 = vector.shape_cast %190 : vector<1x1x1x32x8xf32> to vector<32x8xf32>
    %cst_183 = arith.constant dense<0.000000e+00> : vector<16x8xf32>
    %192 = tpu.matmul %45, %191, %cst_183 {dimension_numbers = #tpu.dot_dimension_numbers<[1], [0], [0], [1], [0, 0, 1, 1], [], []>} : vector<16x32xf32>, vector<32x8xf32>, vector<16x8xf32> -> vector<16x8xf32>
    %c0_184 = arith.constant 0 : index
    %c2_185 = arith.constant 2 : index
    %c3_186 = arith.constant 3 : index
    %c0_187 = arith.constant 0 : index
    %c0_188 = arith.constant 0 : index
    %193 = vector.load %arg6[%c0_184, %c2_185, %c3_186, %c0_187, %c0_188] : memref<2x3x4x1x8xf32, #tpu.memory_space<vmem>>, vector<1x1x1x1x8xf32>
    %194 = vector.shape_cast %193 : vector<1x1x1x1x8xf32> to vector<1x8xf32>
    %195 = vector.broadcast %194 : vector<1x8xf32> to vector<16x8xf32>
    %196 = arith.addf %192, %195 : vector<16x8xf32>
    %197 = vector.shape_cast %196 : vector<16x8xf32> to vector<2x8x8xf32>
    "tpu.trace_start"() <{level = 10 : i32, message = "bqd,bkd->bqk"}> : () -> ()
    %cst_189 = arith.constant dense<0.000000e+00> : vector<2x8x8xf32>
    %198 = tpu.matmul %181, %189, %cst_189 {dimension_numbers = #tpu.dot_dimension_numbers<[2], [2], [1], [1], [0, 0, 0, 1, 1, 1], [0], [0]>} : vector<2x8x8xf32>, vector<2x8x8xf32>, vector<2x8x8xf32> -> vector<2x8x8xf32>
    "tpu.trace_stop"() : () -> ()
    %cst_190 = arith.constant 0.353553385 : f32
    %199 = vector.broadcast %cst_190 : f32 to vector<2x8x8xf32>
    %200 = arith.mulf %198, %199 : vector<2x8x8xf32>
    %201 = arith.addf %200, %11 : vector<2x8x8xf32>
    %cst_191 = arith.constant dense<0xFF800000> : vector<2x8xf32>
    %202 = vector.multi_reduction <maximumf>, %201, %cst_191 [2] : vector<2x8x8xf32> to vector<2x8xf32>
    %203 = vector.shape_cast %202 : vector<2x8xf32> to vector<2x8x1xf32>
    %204 = vector.broadcast %203 : vector<2x8x1xf32> to vector<2x8x8xf32>
    %205 = arith.subf %201, %204 : vector<2x8x8xf32>
    %206 = math.exp %205 : vector<2x8x8xf32>
    %cst_192 = arith.constant dense<0.000000e+00> : vector<2x8xf32>
    %207 = vector.multi_reduction <add>, %206, %cst_192 [2] : vector<2x8x8xf32> to vector<2x8xf32>
    %208 = vector.shape_cast %207 : vector<2x8xf32> to vector<2x8x1xf32>
    %209 = vector.broadcast %208 : vector<2x8x1xf32> to vector<2x8x8xf32>
    %210 = arith.divf %206, %209 : vector<2x8x8xf32>
    "tpu.trace_start"() <{level = 10 : i32, message = "bqk,bkd->bqd"}> : () -> ()
    %cst_193 = arith.constant dense<0.000000e+00> : vector<2x8x8xf32>
    %211 = tpu.matmul %210, %197, %cst_193 {dimension_numbers = #tpu.dot_dimension_numbers<[2], [1], [1], [2], [0, 0, 0, 1, 1, 2], [0], [0]>} : vector<2x8x8xf32>, vector<2x8x8xf32>, vector<2x8x8xf32> -> vector<2x8x8xf32>
    "tpu.trace_stop"() : () -> ()
    %212 = vector.shape_cast %211 : vector<2x8x8xf32> to vector<16x8xf32>
    %c0_194 = arith.constant 0 : index
    %c3_195 = arith.constant 3 : index
    %c0_196 = arith.constant 0 : index
    %c0_197 = arith.constant 0 : index
    %213 = vector.load %arg7[%c0_194, %c3_195, %c0_196, %c0_197] : memref<2x4x8x32xf32, #tpu.memory_space<vmem>>, vector<1x1x8x32xf32>
    %214 = vector.shape_cast %213 : vector<1x1x8x32xf32> to vector<8x32xf32>
    %cst_198 = arith.constant dense<0.000000e+00> : vector<16x32xf32>
    %215 = tpu.matmul %212, %214, %cst_198 {dimension_numbers = #tpu.dot_dimension_numbers<[1], [0], [0], [1], [0, 0, 1, 1], [], []>} : vector<16x8xf32>, vector<8x32xf32>, vector<16x32xf32> -> vector<16x32xf32>
    %216 = arith.addf %173, %215 : vector<16x32xf32>
    %c0_199 = arith.constant 0 : index
    %c0_200 = arith.constant 0 : index
    %c0_201 = arith.constant 0 : index
    %217 = vector.load %arg8[%c0_199, %c0_200, %c0_201] : memref<2x1x32xf32, #tpu.memory_space<vmem>>, vector<1x1x32xf32>
    %218 = vector.shape_cast %217 : vector<1x1x32xf32> to vector<1x32xf32>
    %219 = vector.broadcast %218 : vector<1x32xf32> to vector<16x32xf32>
    %220 = arith.addf %216, %219 : vector<16x32xf32>
    %221 = arith.addf %21, %220 : vector<16x32xf32>
    %c0_202 = arith.constant 0 : index
    %c1_203 = arith.constant 1 : index
    %c0_204 = arith.constant 0 : index
    %c0_205 = arith.constant 0 : index
    %222 = vector.load %arg17[%c0_202, %c1_203, %c0_204, %c0_205] : memref<2x3x1x32xf32, #tpu.memory_space<vmem>>, vector<1x1x1x32xf32>
    %223 = vector.shape_cast %222 : vector<1x1x1x32xf32> to vector<1x32xf32>
    %c0_206 = arith.constant 0 : index
    %c1_207 = arith.constant 1 : index
    %c0_208 = arith.constant 0 : index
    %c0_209 = arith.constant 0 : index
    %224 = vector.load %arg18[%c0_206, %c1_207, %c0_208, %c0_209] : memref<2x3x1x32xf32, #tpu.memory_space<vmem>>, vector<1x1x1x32xf32>
    %225 = vector.shape_cast %224 : vector<1x1x1x32xf32> to vector<1x32xf32>
    %cst_210 = arith.constant dense<0.000000e+00> : vector<16xf32>
    %226 = vector.multi_reduction <add>, %221, %cst_210 [1] : vector<16x32xf32> to vector<16xf32>
    %227 = vector.shape_cast %226 : vector<16xf32> to vector<16x1xf32>
    %cst_211 = arith.constant 3.200000e+01 : f32
    %228 = vector.broadcast %cst_211 : f32 to vector<16x1xf32>
    %229 = arith.divf %227, %228 : vector<16x1xf32>
    %230 = vector.broadcast %229 : vector<16x1xf32> to vector<16x32xf32>
    %231 = arith.subf %221, %230 : vector<16x32xf32>
    %232 = arith.mulf %231, %231 : vector<16x32xf32>
    %cst_212 = arith.constant dense<0.000000e+00> : vector<16xf32>
    %233 = vector.multi_reduction <add>, %232, %cst_212 [1] : vector<16x32xf32> to vector<16xf32>
    %234 = vector.shape_cast %233 : vector<16xf32> to vector<16x1xf32>
    %cst_213 = arith.constant 3.100000e+01 : f32
    %235 = vector.broadcast %cst_213 : f32 to vector<16x1xf32>
    %236 = arith.divf %234, %235 : vector<16x1xf32>
    %237 = vector.broadcast %223 : vector<1x32xf32> to vector<16x32xf32>
    %238 = arith.mulf %237, %231 : vector<16x32xf32>
    %239 = math.sqrt %236 : vector<16x1xf32>
    %cst_214 = arith.constant 9.99999997E-7 : f32
    %240 = vector.broadcast %cst_214 : f32 to vector<16x1xf32>
    %241 = arith.addf %239, %240 : vector<16x1xf32>
    %242 = vector.broadcast %241 : vector<16x1xf32> to vector<16x32xf32>
    %243 = arith.divf %238, %242 : vector<16x32xf32>
    %244 = vector.broadcast %225 : vector<1x32xf32> to vector<16x32xf32>
    %245 = arith.addf %243, %244 : vector<16x32xf32>
    %c0_215 = arith.constant 0 : index
    %c0_216 = arith.constant 0 : index
    %c0_217 = arith.constant 0 : index
    %c0_218 = arith.constant 0 : index
    %c0_219 = arith.constant 0 : index
    %246 = vector.load %arg9[%c0_215, %c0_216, %c0_217, %c0_218, %c0_219] : memref<2x3x4x32x8xf32, #tpu.memory_space<vmem>>, vector<1x1x1x32x8xf32>
    %247 = vector.shape_cast %246 : vector<1x1x1x32x8xf32> to vector<32x8xf32>
    %cst_220 = arith.constant dense<0.000000e+00> : vector<16x8xf32>
    %248 = tpu.matmul %245, %247, %cst_220 {dimension_numbers = #tpu.dot_dimension_numbers<[1], [0], [0], [1], [0, 0, 1, 1], [], []>} : vector<16x32xf32>, vector<32x8xf32>, vector<16x8xf32> -> vector<16x8xf32>
    %c0_221 = arith.constant 0 : index
    %c0_222 = arith.constant 0 : index
    %c0_223 = arith.constant 0 : index
    %c0_224 = arith.constant 0 : index
    %c0_225 = arith.constant 0 : index
    %249 = vector.load %arg10[%c0_221, %c0_222, %c0_223, %c0_224, %c0_225] : memref<2x3x4x1x8xf32, #tpu.memory_space<vmem>>, vector<1x1x1x1x8xf32>
    %250 = vector.shape_cast %249 : vector<1x1x1x1x8xf32> to vector<1x8xf32>
    %251 = vector.broadcast %250 : vector<1x8xf32> to vector<16x8xf32>
    %252 = arith.addf %248, %251 : vector<16x8xf32>
    %253 = vector.shape_cast %252 : vector<16x8xf32> to vector<2x8x8xf32>
    %c0_226 = arith.constant 0 : index
    %c1_227 = arith.constant 1 : index
    %c0_228 = arith.constant 0 : index
    %c0_229 = arith.constant 0 : index
    %c0_230 = arith.constant 0 : index
    %254 = vector.load %arg9[%c0_226, %c1_227, %c0_228, %c0_229, %c0_230] : memref<2x3x4x32x8xf32, #tpu.memory_space<vmem>>, vector<1x1x1x32x8xf32>
    %255 = vector.shape_cast %254 : vector<1x1x1x32x8xf32> to vector<32x8xf32>
    %cst_231 = arith.constant dense<0.000000e+00> : vector<16x8xf32>
    %256 = tpu.matmul %12, %255, %cst_231 {dimension_numbers = #tpu.dot_dimension_numbers<[1], [0], [0], [1], [0, 0, 1, 1], [], []>} : vector<16x32xf32>, vector<32x8xf32>, vector<16x8xf32> -> vector<16x8xf32>
    %c0_232 = arith.constant 0 : index
    %c1_233 = arith.constant 1 : index
    %c0_234 = arith.constant 0 : index
    %c0_235 = arith.constant 0 : index
    %c0_236 = arith.constant 0 : index
    %257 = vector.load %arg10[%c0_232, %c1_233, %c0_234, %c0_235, %c0_236] : memref<2x3x4x1x8xf32, #tpu.memory_space<vmem>>, vector<1x1x1x1x8xf32>
    %258 = vector.shape_cast %257 : vector<1x1x1x1x8xf32> to vector<1x8xf32>
    %259 = vector.broadcast %258 : vector<1x8xf32> to vector<16x8xf32>
    %260 = arith.addf %256, %259 : vector<16x8xf32>
    %261 = vector.shape_cast %260 : vector<16x8xf32> to vector<2x8x8xf32>
    %c0_237 = arith.constant 0 : index
    %c2_238 = arith.constant 2 : index
    %c0_239 = arith.constant 0 : index
    %c0_240 = arith.constant 0 : index
    %c0_241 = arith.constant 0 : index
    %262 = vector.load %arg9[%c0_237, %c2_238, %c0_239, %c0_240, %c0_241] : memref<2x3x4x32x8xf32, #tpu.memory_space<vmem>>, vector<1x1x1x32x8xf32>
    %263 = vector.shape_cast %262 : vector<1x1x1x32x8xf32> to vector<32x8xf32>
    %cst_242 = arith.constant dense<0.000000e+00> : vector<16x8xf32>
    %264 = tpu.matmul %12, %263, %cst_242 {dimension_numbers = #tpu.dot_dimension_numbers<[1], [0], [0], [1], [0, 0, 1, 1], [], []>} : vector<16x32xf32>, vector<32x8xf32>, vector<16x8xf32> -> vector<16x8xf32>
    %c0_243 = arith.constant 0 : index
    %c2_244 = arith.constant 2 : index
    %c0_245 = arith.constant 0 : index
    %c0_246 = arith.constant 0 : index
    %c0_247 = arith.constant 0 : index
    %265 = vector.load %arg10[%c0_243, %c2_244, %c0_245, %c0_246, %c0_247] : memref<2x3x4x1x8xf32, #tpu.memory_space<vmem>>, vector<1x1x1x1x8xf32>
    %266 = vector.shape_cast %265 : vector<1x1x1x1x8xf32> to vector<1x8xf32>
    %267 = vector.broadcast %266 : vector<1x8xf32> to vector<16x8xf32>
    %268 = arith.addf %264, %267 : vector<16x8xf32>
    %269 = vector.shape_cast %268 : vector<16x8xf32> to vector<2x8x8xf32>
    "tpu.trace_start"() <{level = 10 : i32, message = "bqd,bkd->bqk"}> : () -> ()
    %cst_248 = arith.constant dense<0.000000e+00> : vector<2x8x8xf32>
    %270 = tpu.matmul %253, %261, %cst_248 {dimension_numbers = #tpu.dot_dimension_numbers<[2], [2], [1], [1], [0, 0, 0, 1, 1, 1], [0], [0]>} : vector<2x8x8xf32>, vector<2x8x8xf32>, vector<2x8x8xf32> -> vector<2x8x8xf32>
    "tpu.trace_stop"() : () -> ()
    %cst_249 = arith.constant 0.353553385 : f32
    %271 = vector.broadcast %cst_249 : f32 to vector<2x8x8xf32>
    %272 = arith.mulf %270, %271 : vector<2x8x8xf32>
    %273 = arith.addf %272, %5 : vector<2x8x8xf32>
    %cst_250 = arith.constant dense<0xFF800000> : vector<2x8xf32>
    %274 = vector.multi_reduction <maximumf>, %273, %cst_250 [2] : vector<2x8x8xf32> to vector<2x8xf32>
    %275 = vector.shape_cast %274 : vector<2x8xf32> to vector<2x8x1xf32>
    %276 = vector.broadcast %275 : vector<2x8x1xf32> to vector<2x8x8xf32>
    %277 = arith.subf %273, %276 : vector<2x8x8xf32>
    %278 = math.exp %277 : vector<2x8x8xf32>
    %cst_251 = arith.constant dense<0.000000e+00> : vector<2x8xf32>
    %279 = vector.multi_reduction <add>, %278, %cst_251 [2] : vector<2x8x8xf32> to vector<2x8xf32>
    %280 = vector.shape_cast %279 : vector<2x8xf32> to vector<2x8x1xf32>
    %281 = vector.broadcast %280 : vector<2x8x1xf32> to vector<2x8x8xf32>
    %282 = arith.divf %278, %281 : vector<2x8x8xf32>
    "tpu.trace_start"() <{level = 10 : i32, message = "bqk,bkd->bqd"}> : () -> ()
    %cst_252 = arith.constant dense<0.000000e+00> : vector<2x8x8xf32>
    %283 = tpu.matmul %282, %269, %cst_252 {dimension_numbers = #tpu.dot_dimension_numbers<[2], [1], [1], [2], [0, 0, 0, 1, 1, 2], [0], [0]>} : vector<2x8x8xf32>, vector<2x8x8xf32>, vector<2x8x8xf32> -> vector<2x8x8xf32>
    "tpu.trace_stop"() : () -> ()
    %284 = vector.shape_cast %283 : vector<2x8x8xf32> to vector<16x8xf32>
    %c0_253 = arith.constant 0 : index
    %c0_254 = arith.constant 0 : index
    %c0_255 = arith.constant 0 : index
    %c0_256 = arith.constant 0 : index
    %285 = vector.load %arg11[%c0_253, %c0_254, %c0_255, %c0_256] : memref<2x4x8x32xf32, #tpu.memory_space<vmem>>, vector<1x1x8x32xf32>
    %286 = vector.shape_cast %285 : vector<1x1x8x32xf32> to vector<8x32xf32>
    %cst_257 = arith.constant dense<0.000000e+00> : vector<16x32xf32>
    %287 = tpu.matmul %284, %286, %cst_257 {dimension_numbers = #tpu.dot_dimension_numbers<[1], [0], [0], [1], [0, 0, 1, 1], [], []>} : vector<16x8xf32>, vector<8x32xf32>, vector<16x32xf32> -> vector<16x32xf32>
    %c0_258 = arith.constant 0 : index
    %c0_259 = arith.constant 0 : index
    %c1_260 = arith.constant 1 : index
    %c0_261 = arith.constant 0 : index
    %c0_262 = arith.constant 0 : index
    %288 = vector.load %arg9[%c0_258, %c0_259, %c1_260, %c0_261, %c0_262] : memref<2x3x4x32x8xf32, #tpu.memory_space<vmem>>, vector<1x1x1x32x8xf32>
    %289 = vector.shape_cast %288 : vector<1x1x1x32x8xf32> to vector<32x8xf32>
    %cst_263 = arith.constant dense<0.000000e+00> : vector<16x8xf32>
    %290 = tpu.matmul %245, %289, %cst_263 {dimension_numbers = #tpu.dot_dimension_numbers<[1], [0], [0], [1], [0, 0, 1, 1], [], []>} : vector<16x32xf32>, vector<32x8xf32>, vector<16x8xf32> -> vector<16x8xf32>
    %c0_264 = arith.constant 0 : index
    %c0_265 = arith.constant 0 : index
    %c1_266 = arith.constant 1 : index
    %c0_267 = arith.constant 0 : index
    %c0_268 = arith.constant 0 : index
    %291 = vector.load %arg10[%c0_264, %c0_265, %c1_266, %c0_267, %c0_268] : memref<2x3x4x1x8xf32, #tpu.memory_space<vmem>>, vector<1x1x1x1x8xf32>
    %292 = vector.shape_cast %291 : vector<1x1x1x1x8xf32> to vector<1x8xf32>
    %293 = vector.broadcast %292 : vector<1x8xf32> to vector<16x8xf32>
    %294 = arith.addf %290, %293 : vector<16x8xf32>
    %295 = vector.shape_cast %294 : vector<16x8xf32> to vector<2x8x8xf32>
    %c0_269 = arith.constant 0 : index
    %c1_270 = arith.constant 1 : index
    %c1_271 = arith.constant 1 : index
    %c0_272 = arith.constant 0 : index
    %c0_273 = arith.constant 0 : index
    %296 = vector.load %arg9[%c0_269, %c1_270, %c1_271, %c0_272, %c0_273] : memref<2x3x4x32x8xf32, #tpu.memory_space<vmem>>, vector<1x1x1x32x8xf32>
    %297 = vector.shape_cast %296 : vector<1x1x1x32x8xf32> to vector<32x8xf32>
    %cst_274 = arith.constant dense<0.000000e+00> : vector<16x8xf32>
    %298 = tpu.matmul %12, %297, %cst_274 {dimension_numbers = #tpu.dot_dimension_numbers<[1], [0], [0], [1], [0, 0, 1, 1], [], []>} : vector<16x32xf32>, vector<32x8xf32>, vector<16x8xf32> -> vector<16x8xf32>
    %c0_275 = arith.constant 0 : index
    %c1_276 = arith.constant 1 : index
    %c1_277 = arith.constant 1 : index
    %c0_278 = arith.constant 0 : index
    %c0_279 = arith.constant 0 : index
    %299 = vector.load %arg10[%c0_275, %c1_276, %c1_277, %c0_278, %c0_279] : memref<2x3x4x1x8xf32, #tpu.memory_space<vmem>>, vector<1x1x1x1x8xf32>
    %300 = vector.shape_cast %299 : vector<1x1x1x1x8xf32> to vector<1x8xf32>
    %301 = vector.broadcast %300 : vector<1x8xf32> to vector<16x8xf32>
    %302 = arith.addf %298, %301 : vector<16x8xf32>
    %303 = vector.shape_cast %302 : vector<16x8xf32> to vector<2x8x8xf32>
    %c0_280 = arith.constant 0 : index
    %c2_281 = arith.constant 2 : index
    %c1_282 = arith.constant 1 : index
    %c0_283 = arith.constant 0 : index
    %c0_284 = arith.constant 0 : index
    %304 = vector.load %arg9[%c0_280, %c2_281, %c1_282, %c0_283, %c0_284] : memref<2x3x4x32x8xf32, #tpu.memory_space<vmem>>, vector<1x1x1x32x8xf32>
    %305 = vector.shape_cast %304 : vector<1x1x1x32x8xf32> to vector<32x8xf32>
    %cst_285 = arith.constant dense<0.000000e+00> : vector<16x8xf32>
    %306 = tpu.matmul %12, %305, %cst_285 {dimension_numbers = #tpu.dot_dimension_numbers<[1], [0], [0], [1], [0, 0, 1, 1], [], []>} : vector<16x32xf32>, vector<32x8xf32>, vector<16x8xf32> -> vector<16x8xf32>
    %c0_286 = arith.constant 0 : index
    %c2_287 = arith.constant 2 : index
    %c1_288 = arith.constant 1 : index
    %c0_289 = arith.constant 0 : index
    %c0_290 = arith.constant 0 : index
    %307 = vector.load %arg10[%c0_286, %c2_287, %c1_288, %c0_289, %c0_290] : memref<2x3x4x1x8xf32, #tpu.memory_space<vmem>>, vector<1x1x1x1x8xf32>
    %308 = vector.shape_cast %307 : vector<1x1x1x1x8xf32> to vector<1x8xf32>
    %309 = vector.broadcast %308 : vector<1x8xf32> to vector<16x8xf32>
    %310 = arith.addf %306, %309 : vector<16x8xf32>
    %311 = vector.shape_cast %310 : vector<16x8xf32> to vector<2x8x8xf32>
    "tpu.trace_start"() <{level = 10 : i32, message = "bqd,bkd->bqk"}> : () -> ()
    %cst_291 = arith.constant dense<0.000000e+00> : vector<2x8x8xf32>
    %312 = tpu.matmul %295, %303, %cst_291 {dimension_numbers = #tpu.dot_dimension_numbers<[2], [2], [1], [1], [0, 0, 0, 1, 1, 1], [0], [0]>} : vector<2x8x8xf32>, vector<2x8x8xf32>, vector<2x8x8xf32> -> vector<2x8x8xf32>
    "tpu.trace_stop"() : () -> ()
    %cst_292 = arith.constant 0.353553385 : f32
    %313 = vector.broadcast %cst_292 : f32 to vector<2x8x8xf32>
    %314 = arith.mulf %312, %313 : vector<2x8x8xf32>
    %315 = arith.addf %314, %5 : vector<2x8x8xf32>
    %cst_293 = arith.constant dense<0xFF800000> : vector<2x8xf32>
    %316 = vector.multi_reduction <maximumf>, %315, %cst_293 [2] : vector<2x8x8xf32> to vector<2x8xf32>
    %317 = vector.shape_cast %316 : vector<2x8xf32> to vector<2x8x1xf32>
    %318 = vector.broadcast %317 : vector<2x8x1xf32> to vector<2x8x8xf32>
    %319 = arith.subf %315, %318 : vector<2x8x8xf32>
    %320 = math.exp %319 : vector<2x8x8xf32>
    %cst_294 = arith.constant dense<0.000000e+00> : vector<2x8xf32>
    %321 = vector.multi_reduction <add>, %320, %cst_294 [2] : vector<2x8x8xf32> to vector<2x8xf32>
    %322 = vector.shape_cast %321 : vector<2x8xf32> to vector<2x8x1xf32>
    %323 = vector.broadcast %322 : vector<2x8x1xf32> to vector<2x8x8xf32>
    %324 = arith.divf %320, %323 : vector<2x8x8xf32>
    "tpu.trace_start"() <{level = 10 : i32, message = "bqk,bkd->bqd"}> : () -> ()
    %cst_295 = arith.constant dense<0.000000e+00> : vector<2x8x8xf32>
    %325 = tpu.matmul %324, %311, %cst_295 {dimension_numbers = #tpu.dot_dimension_numbers<[2], [1], [1], [2], [0, 0, 0, 1, 1, 2], [0], [0]>} : vector<2x8x8xf32>, vector<2x8x8xf32>, vector<2x8x8xf32> -> vector<2x8x8xf32>
    "tpu.trace_stop"() : () -> ()
    %326 = vector.shape_cast %325 : vector<2x8x8xf32> to vector<16x8xf32>
    %c0_296 = arith.constant 0 : index
    %c1_297 = arith.constant 1 : index
    %c0_298 = arith.constant 0 : index
    %c0_299 = arith.constant 0 : index
    %327 = vector.load %arg11[%c0_296, %c1_297, %c0_298, %c0_299] : memref<2x4x8x32xf32, #tpu.memory_space<vmem>>, vector<1x1x8x32xf32>
    %328 = vector.shape_cast %327 : vector<1x1x8x32xf32> to vector<8x32xf32>
    %cst_300 = arith.constant dense<0.000000e+00> : vector<16x32xf32>
    %329 = tpu.matmul %326, %328, %cst_300 {dimension_numbers = #tpu.dot_dimension_numbers<[1], [0], [0], [1], [0, 0, 1, 1], [], []>} : vector<16x8xf32>, vector<8x32xf32>, vector<16x32xf32> -> vector<16x32xf32>
    %330 = arith.addf %287, %329 : vector<16x32xf32>
    %c0_301 = arith.constant 0 : index
    %c0_302 = arith.constant 0 : index
    %c2_303 = arith.constant 2 : index
    %c0_304 = arith.constant 0 : index
    %c0_305 = arith.constant 0 : index
    %331 = vector.load %arg9[%c0_301, %c0_302, %c2_303, %c0_304, %c0_305] : memref<2x3x4x32x8xf32, #tpu.memory_space<vmem>>, vector<1x1x1x32x8xf32>
    %332 = vector.shape_cast %331 : vector<1x1x1x32x8xf32> to vector<32x8xf32>
    %cst_306 = arith.constant dense<0.000000e+00> : vector<16x8xf32>
    %333 = tpu.matmul %245, %332, %cst_306 {dimension_numbers = #tpu.dot_dimension_numbers<[1], [0], [0], [1], [0, 0, 1, 1], [], []>} : vector<16x32xf32>, vector<32x8xf32>, vector<16x8xf32> -> vector<16x8xf32>
    %c0_307 = arith.constant 0 : index
    %c0_308 = arith.constant 0 : index
    %c2_309 = arith.constant 2 : index
    %c0_310 = arith.constant 0 : index
    %c0_311 = arith.constant 0 : index
    %334 = vector.load %arg10[%c0_307, %c0_308, %c2_309, %c0_310, %c0_311] : memref<2x3x4x1x8xf32, #tpu.memory_space<vmem>>, vector<1x1x1x1x8xf32>
    %335 = vector.shape_cast %334 : vector<1x1x1x1x8xf32> to vector<1x8xf32>
    %336 = vector.broadcast %335 : vector<1x8xf32> to vector<16x8xf32>
    %337 = arith.addf %333, %336 : vector<16x8xf32>
    %338 = vector.shape_cast %337 : vector<16x8xf32> to vector<2x8x8xf32>
    %c0_312 = arith.constant 0 : index
    %c1_313 = arith.constant 1 : index
    %c2_314 = arith.constant 2 : index
    %c0_315 = arith.constant 0 : index
    %c0_316 = arith.constant 0 : index
    %339 = vector.load %arg9[%c0_312, %c1_313, %c2_314, %c0_315, %c0_316] : memref<2x3x4x32x8xf32, #tpu.memory_space<vmem>>, vector<1x1x1x32x8xf32>
    %340 = vector.shape_cast %339 : vector<1x1x1x32x8xf32> to vector<32x8xf32>
    %cst_317 = arith.constant dense<0.000000e+00> : vector<16x8xf32>
    %341 = tpu.matmul %12, %340, %cst_317 {dimension_numbers = #tpu.dot_dimension_numbers<[1], [0], [0], [1], [0, 0, 1, 1], [], []>} : vector<16x32xf32>, vector<32x8xf32>, vector<16x8xf32> -> vector<16x8xf32>
    %c0_318 = arith.constant 0 : index
    %c1_319 = arith.constant 1 : index
    %c2_320 = arith.constant 2 : index
    %c0_321 = arith.constant 0 : index
    %c0_322 = arith.constant 0 : index
    %342 = vector.load %arg10[%c0_318, %c1_319, %c2_320, %c0_321, %c0_322] : memref<2x3x4x1x8xf32, #tpu.memory_space<vmem>>, vector<1x1x1x1x8xf32>
    %343 = vector.shape_cast %342 : vector<1x1x1x1x8xf32> to vector<1x8xf32>
    %344 = vector.broadcast %343 : vector<1x8xf32> to vector<16x8xf32>
    %345 = arith.addf %341, %344 : vector<16x8xf32>
    %346 = vector.shape_cast %345 : vector<16x8xf32> to vector<2x8x8xf32>
    %c0_323 = arith.constant 0 : index
    %c2_324 = arith.constant 2 : index
    %c2_325 = arith.constant 2 : index
    %c0_326 = arith.constant 0 : index
    %c0_327 = arith.constant 0 : index
    %347 = vector.load %arg9[%c0_323, %c2_324, %c2_325, %c0_326, %c0_327] : memref<2x3x4x32x8xf32, #tpu.memory_space<vmem>>, vector<1x1x1x32x8xf32>
    %348 = vector.shape_cast %347 : vector<1x1x1x32x8xf32> to vector<32x8xf32>
    %cst_328 = arith.constant dense<0.000000e+00> : vector<16x8xf32>
    %349 = tpu.matmul %12, %348, %cst_328 {dimension_numbers = #tpu.dot_dimension_numbers<[1], [0], [0], [1], [0, 0, 1, 1], [], []>} : vector<16x32xf32>, vector<32x8xf32>, vector<16x8xf32> -> vector<16x8xf32>
    %c0_329 = arith.constant 0 : index
    %c2_330 = arith.constant 2 : index
    %c2_331 = arith.constant 2 : index
    %c0_332 = arith.constant 0 : index
    %c0_333 = arith.constant 0 : index
    %350 = vector.load %arg10[%c0_329, %c2_330, %c2_331, %c0_332, %c0_333] : memref<2x3x4x1x8xf32, #tpu.memory_space<vmem>>, vector<1x1x1x1x8xf32>
    %351 = vector.shape_cast %350 : vector<1x1x1x1x8xf32> to vector<1x8xf32>
    %352 = vector.broadcast %351 : vector<1x8xf32> to vector<16x8xf32>
    %353 = arith.addf %349, %352 : vector<16x8xf32>
    %354 = vector.shape_cast %353 : vector<16x8xf32> to vector<2x8x8xf32>
    "tpu.trace_start"() <{level = 10 : i32, message = "bqd,bkd->bqk"}> : () -> ()
    %cst_334 = arith.constant dense<0.000000e+00> : vector<2x8x8xf32>
    %355 = tpu.matmul %338, %346, %cst_334 {dimension_numbers = #tpu.dot_dimension_numbers<[2], [2], [1], [1], [0, 0, 0, 1, 1, 1], [0], [0]>} : vector<2x8x8xf32>, vector<2x8x8xf32>, vector<2x8x8xf32> -> vector<2x8x8xf32>
    "tpu.trace_stop"() : () -> ()
    %cst_335 = arith.constant 0.353553385 : f32
    %356 = vector.broadcast %cst_335 : f32 to vector<2x8x8xf32>
    %357 = arith.mulf %355, %356 : vector<2x8x8xf32>
    %358 = arith.addf %357, %5 : vector<2x8x8xf32>
    %cst_336 = arith.constant dense<0xFF800000> : vector<2x8xf32>
    %359 = vector.multi_reduction <maximumf>, %358, %cst_336 [2] : vector<2x8x8xf32> to vector<2x8xf32>
    %360 = vector.shape_cast %359 : vector<2x8xf32> to vector<2x8x1xf32>
    %361 = vector.broadcast %360 : vector<2x8x1xf32> to vector<2x8x8xf32>
    %362 = arith.subf %358, %361 : vector<2x8x8xf32>
    %363 = math.exp %362 : vector<2x8x8xf32>
    %cst_337 = arith.constant dense<0.000000e+00> : vector<2x8xf32>
    %364 = vector.multi_reduction <add>, %363, %cst_337 [2] : vector<2x8x8xf32> to vector<2x8xf32>
    %365 = vector.shape_cast %364 : vector<2x8xf32> to vector<2x8x1xf32>
    %366 = vector.broadcast %365 : vector<2x8x1xf32> to vector<2x8x8xf32>
    %367 = arith.divf %363, %366 : vector<2x8x8xf32>
    "tpu.trace_start"() <{level = 10 : i32, message = "bqk,bkd->bqd"}> : () -> ()
    %cst_338 = arith.constant dense<0.000000e+00> : vector<2x8x8xf32>
    %368 = tpu.matmul %367, %354, %cst_338 {dimension_numbers = #tpu.dot_dimension_numbers<[2], [1], [1], [2], [0, 0, 0, 1, 1, 2], [0], [0]>} : vector<2x8x8xf32>, vector<2x8x8xf32>, vector<2x8x8xf32> -> vector<2x8x8xf32>
    "tpu.trace_stop"() : () -> ()
    %369 = vector.shape_cast %368 : vector<2x8x8xf32> to vector<16x8xf32>
    %c0_339 = arith.constant 0 : index
    %c2_340 = arith.constant 2 : index
    %c0_341 = arith.constant 0 : index
    %c0_342 = arith.constant 0 : index
    %370 = vector.load %arg11[%c0_339, %c2_340, %c0_341, %c0_342] : memref<2x4x8x32xf32, #tpu.memory_space<vmem>>, vector<1x1x8x32xf32>
    %371 = vector.shape_cast %370 : vector<1x1x8x32xf32> to vector<8x32xf32>
    %cst_343 = arith.constant dense<0.000000e+00> : vector<16x32xf32>
    %372 = tpu.matmul %369, %371, %cst_343 {dimension_numbers = #tpu.dot_dimension_numbers<[1], [0], [0], [1], [0, 0, 1, 1], [], []>} : vector<16x8xf32>, vector<8x32xf32>, vector<16x32xf32> -> vector<16x32xf32>
    %373 = arith.addf %330, %372 : vector<16x32xf32>
    %c0_344 = arith.constant 0 : index
    %c0_345 = arith.constant 0 : index
    %c3_346 = arith.constant 3 : index
    %c0_347 = arith.constant 0 : index
    %c0_348 = arith.constant 0 : index
    %374 = vector.load %arg9[%c0_344, %c0_345, %c3_346, %c0_347, %c0_348] : memref<2x3x4x32x8xf32, #tpu.memory_space<vmem>>, vector<1x1x1x32x8xf32>
    %375 = vector.shape_cast %374 : vector<1x1x1x32x8xf32> to vector<32x8xf32>
    %cst_349 = arith.constant dense<0.000000e+00> : vector<16x8xf32>
    %376 = tpu.matmul %245, %375, %cst_349 {dimension_numbers = #tpu.dot_dimension_numbers<[1], [0], [0], [1], [0, 0, 1, 1], [], []>} : vector<16x32xf32>, vector<32x8xf32>, vector<16x8xf32> -> vector<16x8xf32>
    %c0_350 = arith.constant 0 : index
    %c0_351 = arith.constant 0 : index
    %c3_352 = arith.constant 3 : index
    %c0_353 = arith.constant 0 : index
    %c0_354 = arith.constant 0 : index
    %377 = vector.load %arg10[%c0_350, %c0_351, %c3_352, %c0_353, %c0_354] : memref<2x3x4x1x8xf32, #tpu.memory_space<vmem>>, vector<1x1x1x1x8xf32>
    %378 = vector.shape_cast %377 : vector<1x1x1x1x8xf32> to vector<1x8xf32>
    %379 = vector.broadcast %378 : vector<1x8xf32> to vector<16x8xf32>
    %380 = arith.addf %376, %379 : vector<16x8xf32>
    %381 = vector.shape_cast %380 : vector<16x8xf32> to vector<2x8x8xf32>
    %c0_355 = arith.constant 0 : index
    %c1_356 = arith.constant 1 : index
    %c3_357 = arith.constant 3 : index
    %c0_358 = arith.constant 0 : index
    %c0_359 = arith.constant 0 : index
    %382 = vector.load %arg9[%c0_355, %c1_356, %c3_357, %c0_358, %c0_359] : memref<2x3x4x32x8xf32, #tpu.memory_space<vmem>>, vector<1x1x1x32x8xf32>
    %383 = vector.shape_cast %382 : vector<1x1x1x32x8xf32> to vector<32x8xf32>
    %cst_360 = arith.constant dense<0.000000e+00> : vector<16x8xf32>
    %384 = tpu.matmul %12, %383, %cst_360 {dimension_numbers = #tpu.dot_dimension_numbers<[1], [0], [0], [1], [0, 0, 1, 1], [], []>} : vector<16x32xf32>, vector<32x8xf32>, vector<16x8xf32> -> vector<16x8xf32>
    %c0_361 = arith.constant 0 : index
    %c1_362 = arith.constant 1 : index
    %c3_363 = arith.constant 3 : index
    %c0_364 = arith.constant 0 : index
    %c0_365 = arith.constant 0 : index
    %385 = vector.load %arg10[%c0_361, %c1_362, %c3_363, %c0_364, %c0_365] : memref<2x3x4x1x8xf32, #tpu.memory_space<vmem>>, vector<1x1x1x1x8xf32>
    %386 = vector.shape_cast %385 : vector<1x1x1x1x8xf32> to vector<1x8xf32>
    %387 = vector.broadcast %386 : vector<1x8xf32> to vector<16x8xf32>
    %388 = arith.addf %384, %387 : vector<16x8xf32>
    %389 = vector.shape_cast %388 : vector<16x8xf32> to vector<2x8x8xf32>
    %c0_366 = arith.constant 0 : index
    %c2_367 = arith.constant 2 : index
    %c3_368 = arith.constant 3 : index
    %c0_369 = arith.constant 0 : index
    %c0_370 = arith.constant 0 : index
    %390 = vector.load %arg9[%c0_366, %c2_367, %c3_368, %c0_369, %c0_370] : memref<2x3x4x32x8xf32, #tpu.memory_space<vmem>>, vector<1x1x1x32x8xf32>
    %391 = vector.shape_cast %390 : vector<1x1x1x32x8xf32> to vector<32x8xf32>
    %cst_371 = arith.constant dense<0.000000e+00> : vector<16x8xf32>
    %392 = tpu.matmul %12, %391, %cst_371 {dimension_numbers = #tpu.dot_dimension_numbers<[1], [0], [0], [1], [0, 0, 1, 1], [], []>} : vector<16x32xf32>, vector<32x8xf32>, vector<16x8xf32> -> vector<16x8xf32>
    %c0_372 = arith.constant 0 : index
    %c2_373 = arith.constant 2 : index
    %c3_374 = arith.constant 3 : index
    %c0_375 = arith.constant 0 : index
    %c0_376 = arith.constant 0 : index
    %393 = vector.load %arg10[%c0_372, %c2_373, %c3_374, %c0_375, %c0_376] : memref<2x3x4x1x8xf32, #tpu.memory_space<vmem>>, vector<1x1x1x1x8xf32>
    %394 = vector.shape_cast %393 : vector<1x1x1x1x8xf32> to vector<1x8xf32>
    %395 = vector.broadcast %394 : vector<1x8xf32> to vector<16x8xf32>
    %396 = arith.addf %392, %395 : vector<16x8xf32>
    %397 = vector.shape_cast %396 : vector<16x8xf32> to vector<2x8x8xf32>
    "tpu.trace_start"() <{level = 10 : i32, message = "bqd,bkd->bqk"}> : () -> ()
    %cst_377 = arith.constant dense<0.000000e+00> : vector<2x8x8xf32>
    %398 = tpu.matmul %381, %389, %cst_377 {dimension_numbers = #tpu.dot_dimension_numbers<[2], [2], [1], [1], [0, 0, 0, 1, 1, 1], [0], [0]>} : vector<2x8x8xf32>, vector<2x8x8xf32>, vector<2x8x8xf32> -> vector<2x8x8xf32>
    "tpu.trace_stop"() : () -> ()
    %cst_378 = arith.constant 0.353553385 : f32
    %399 = vector.broadcast %cst_378 : f32 to vector<2x8x8xf32>
    %400 = arith.mulf %398, %399 : vector<2x8x8xf32>
    %401 = arith.addf %400, %5 : vector<2x8x8xf32>
    %cst_379 = arith.constant dense<0xFF800000> : vector<2x8xf32>
    %402 = vector.multi_reduction <maximumf>, %401, %cst_379 [2] : vector<2x8x8xf32> to vector<2x8xf32>
    %403 = vector.shape_cast %402 : vector<2x8xf32> to vector<2x8x1xf32>
    %404 = vector.broadcast %403 : vector<2x8x1xf32> to vector<2x8x8xf32>
    %405 = arith.subf %401, %404 : vector<2x8x8xf32>
    %406 = math.exp %405 : vector<2x8x8xf32>
    %cst_380 = arith.constant dense<0.000000e+00> : vector<2x8xf32>
    %407 = vector.multi_reduction <add>, %406, %cst_380 [2] : vector<2x8x8xf32> to vector<2x8xf32>
    %408 = vector.shape_cast %407 : vector<2x8xf32> to vector<2x8x1xf32>
    %409 = vector.broadcast %408 : vector<2x8x1xf32> to vector<2x8x8xf32>
    %410 = arith.divf %406, %409 : vector<2x8x8xf32>
    "tpu.trace_start"() <{level = 10 : i32, message = "bqk,bkd->bqd"}> : () -> ()
    %cst_381 = arith.constant dense<0.000000e+00> : vector<2x8x8xf32>
    %411 = tpu.matmul %410, %397, %cst_381 {dimension_numbers = #tpu.dot_dimension_numbers<[2], [1], [1], [2], [0, 0, 0, 1, 1, 2], [0], [0]>} : vector<2x8x8xf32>, vector<2x8x8xf32>, vector<2x8x8xf32> -> vector<2x8x8xf32>
    "tpu.trace_stop"() : () -> ()
    %412 = vector.shape_cast %411 : vector<2x8x8xf32> to vector<16x8xf32>
    %c0_382 = arith.constant 0 : index
    %c3_383 = arith.constant 3 : index
    %c0_384 = arith.constant 0 : index
    %c0_385 = arith.constant 0 : index
    %413 = vector.load %arg11[%c0_382, %c3_383, %c0_384, %c0_385] : memref<2x4x8x32xf32, #tpu.memory_space<vmem>>, vector<1x1x8x32xf32>
    %414 = vector.shape_cast %413 : vector<1x1x8x32xf32> to vector<8x32xf32>
    %cst_386 = arith.constant dense<0.000000e+00> : vector<16x32xf32>
    %415 = tpu.matmul %412, %414, %cst_386 {dimension_numbers = #tpu.dot_dimension_numbers<[1], [0], [0], [1], [0, 0, 1, 1], [], []>} : vector<16x8xf32>, vector<8x32xf32>, vector<16x32xf32> -> vector<16x32xf32>
    %416 = arith.addf %373, %415 : vector<16x32xf32>
    %c0_387 = arith.constant 0 : index
    %c0_388 = arith.constant 0 : index
    %c0_389 = arith.constant 0 : index
    %417 = vector.load %arg12[%c0_387, %c0_388, %c0_389] : memref<2x1x32xf32, #tpu.memory_space<vmem>>, vector<1x1x32xf32>
    %418 = vector.shape_cast %417 : vector<1x1x32xf32> to vector<1x32xf32>
    %419 = vector.broadcast %418 : vector<1x32xf32> to vector<16x32xf32>
    %420 = arith.addf %416, %419 : vector<16x32xf32>
    %421 = arith.addf %221, %420 : vector<16x32xf32>
    %c0_390 = arith.constant 0 : index
    %c2_391 = arith.constant 2 : index
    %c0_392 = arith.constant 0 : index
    %c0_393 = arith.constant 0 : index
    %422 = vector.load %arg17[%c0_390, %c2_391, %c0_392, %c0_393] : memref<2x3x1x32xf32, #tpu.memory_space<vmem>>, vector<1x1x1x32xf32>
    %423 = vector.shape_cast %422 : vector<1x1x1x32xf32> to vector<1x32xf32>
    %c0_394 = arith.constant 0 : index
    %c2_395 = arith.constant 2 : index
    %c0_396 = arith.constant 0 : index
    %c0_397 = arith.constant 0 : index
    %424 = vector.load %arg18[%c0_394, %c2_395, %c0_396, %c0_397] : memref<2x3x1x32xf32, #tpu.memory_space<vmem>>, vector<1x1x1x32xf32>
    %425 = vector.shape_cast %424 : vector<1x1x1x32xf32> to vector<1x32xf32>
    %cst_398 = arith.constant dense<0.000000e+00> : vector<16xf32>
    %426 = vector.multi_reduction <add>, %421, %cst_398 [1] : vector<16x32xf32> to vector<16xf32>
    %427 = vector.shape_cast %426 : vector<16xf32> to vector<16x1xf32>
    %cst_399 = arith.constant 3.200000e+01 : f32
    %428 = vector.broadcast %cst_399 : f32 to vector<16x1xf32>
    %429 = arith.divf %427, %428 : vector<16x1xf32>
    %430 = vector.broadcast %429 : vector<16x1xf32> to vector<16x32xf32>
    %431 = arith.subf %421, %430 : vector<16x32xf32>
    %432 = arith.mulf %431, %431 : vector<16x32xf32>
    %cst_400 = arith.constant dense<0.000000e+00> : vector<16xf32>
    %433 = vector.multi_reduction <add>, %432, %cst_400 [1] : vector<16x32xf32> to vector<16xf32>
    %434 = vector.shape_cast %433 : vector<16xf32> to vector<16x1xf32>
    %cst_401 = arith.constant 3.100000e+01 : f32
    %435 = vector.broadcast %cst_401 : f32 to vector<16x1xf32>
    %436 = arith.divf %434, %435 : vector<16x1xf32>
    %437 = vector.broadcast %423 : vector<1x32xf32> to vector<16x32xf32>
    %438 = arith.mulf %437, %431 : vector<16x32xf32>
    %439 = math.sqrt %436 : vector<16x1xf32>
    %cst_402 = arith.constant 9.99999997E-7 : f32
    %440 = vector.broadcast %cst_402 : f32 to vector<16x1xf32>
    %441 = arith.addf %439, %440 : vector<16x1xf32>
    %442 = vector.broadcast %441 : vector<16x1xf32> to vector<16x32xf32>
    %443 = arith.divf %438, %442 : vector<16x32xf32>
    %444 = vector.broadcast %425 : vector<1x32xf32> to vector<16x32xf32>
    %445 = arith.addf %443, %444 : vector<16x32xf32>
    %c0_403 = arith.constant 0 : index
    %c0_404 = arith.constant 0 : index
    %c0_405 = arith.constant 0 : index
    %446 = vector.load %arg13[%c0_403, %c0_404, %c0_405] : memref<2x32x64xf32, #tpu.memory_space<vmem>>, vector<1x32x64xf32>
    %447 = vector.shape_cast %446 : vector<1x32x64xf32> to vector<32x64xf32>
    %cst_406 = arith.constant dense<0.000000e+00> : vector<16x64xf32>
    %448 = tpu.matmul %445, %447, %cst_406 {dimension_numbers = #tpu.dot_dimension_numbers<[1], [0], [0], [1], [0, 0, 1, 1], [], []>} : vector<16x32xf32>, vector<32x64xf32>, vector<16x64xf32> -> vector<16x64xf32>
    %c0_407 = arith.constant 0 : index
    %c0_408 = arith.constant 0 : index
    %c0_409 = arith.constant 0 : index
    %449 = vector.load %arg14[%c0_407, %c0_408, %c0_409] : memref<2x1x64xf32, #tpu.memory_space<vmem>>, vector<1x1x64xf32>
    %450 = vector.shape_cast %449 : vector<1x1x64xf32> to vector<1x64xf32>
    %451 = vector.broadcast %450 : vector<1x64xf32> to vector<16x64xf32>
    %452 = arith.addf %448, %451 : vector<16x64xf32>
    %cst_410 = arith.constant 0.000000e+00 : f32
    %453 = vector.broadcast %cst_410 : f32 to vector<16x64xf32>
    %454 = arith.maximumf %452, %453 : vector<16x64xf32>
    %c0_411 = arith.constant 0 : index
    %c0_412 = arith.constant 0 : index
    %c0_413 = arith.constant 0 : index
    %455 = vector.load %arg15[%c0_411, %c0_412, %c0_413] : memref<2x64x32xf32, #tpu.memory_space<vmem>>, vector<1x64x32xf32>
    %456 = vector.shape_cast %455 : vector<1x64x32xf32> to vector<64x32xf32>
    %cst_414 = arith.constant dense<0.000000e+00> : vector<16x32xf32>
    %457 = tpu.matmul %454, %456, %cst_414 {dimension_numbers = #tpu.dot_dimension_numbers<[1], [0], [0], [1], [0, 0, 1, 1], [], []>} : vector<16x64xf32>, vector<64x32xf32>, vector<16x32xf32> -> vector<16x32xf32>
    %c0_415 = arith.constant 0 : index
    %c0_416 = arith.constant 0 : index
    %c0_417 = arith.constant 0 : index
    %458 = vector.load %arg16[%c0_415, %c0_416, %c0_417] : memref<2x1x32xf32, #tpu.memory_space<vmem>>, vector<1x1x32xf32>
    %459 = vector.shape_cast %458 : vector<1x1x32xf32> to vector<1x32xf32>
    %460 = vector.broadcast %459 : vector<1x32xf32> to vector<16x32xf32>
    %461 = arith.addf %457, %460 : vector<16x32xf32>
    %462 = arith.addf %421, %461 : vector<16x32xf32>
    %c1_418 = arith.constant 1 : index
    %c0_419 = arith.constant 0 : index
    %c0_420 = arith.constant 0 : index
    %c0_421 = arith.constant 0 : index
    %463 = vector.load %arg17[%c1_418, %c0_419, %c0_420, %c0_421] : memref<2x3x1x32xf32, #tpu.memory_space<vmem>>, vector<1x1x1x32xf32>
    %464 = vector.shape_cast %463 : vector<1x1x1x32xf32> to vector<1x32xf32>
    %c1_422 = arith.constant 1 : index
    %c0_423 = arith.constant 0 : index
    %c0_424 = arith.constant 0 : index
    %c0_425 = arith.constant 0 : index
    %465 = vector.load %arg18[%c1_422, %c0_423, %c0_424, %c0_425] : memref<2x3x1x32xf32, #tpu.memory_space<vmem>>, vector<1x1x1x32xf32>
    %466 = vector.shape_cast %465 : vector<1x1x1x32xf32> to vector<1x32xf32>
    %cst_426 = arith.constant dense<0.000000e+00> : vector<16xf32>
    %467 = vector.multi_reduction <add>, %462, %cst_426 [1] : vector<16x32xf32> to vector<16xf32>
    %468 = vector.shape_cast %467 : vector<16xf32> to vector<16x1xf32>
    %cst_427 = arith.constant 3.200000e+01 : f32
    %469 = vector.broadcast %cst_427 : f32 to vector<16x1xf32>
    %470 = arith.divf %468, %469 : vector<16x1xf32>
    %471 = vector.broadcast %470 : vector<16x1xf32> to vector<16x32xf32>
    %472 = arith.subf %462, %471 : vector<16x32xf32>
    %473 = arith.mulf %472, %472 : vector<16x32xf32>
    %cst_428 = arith.constant dense<0.000000e+00> : vector<16xf32>
    %474 = vector.multi_reduction <add>, %473, %cst_428 [1] : vector<16x32xf32> to vector<16xf32>
    %475 = vector.shape_cast %474 : vector<16xf32> to vector<16x1xf32>
    %cst_429 = arith.constant 3.100000e+01 : f32
    %476 = vector.broadcast %cst_429 : f32 to vector<16x1xf32>
    %477 = arith.divf %475, %476 : vector<16x1xf32>
    %478 = vector.broadcast %464 : vector<1x32xf32> to vector<16x32xf32>
    %479 = arith.mulf %478, %472 : vector<16x32xf32>
    %480 = math.sqrt %477 : vector<16x1xf32>
    %cst_430 = arith.constant 9.99999997E-7 : f32
    %481 = vector.broadcast %cst_430 : f32 to vector<16x1xf32>
    %482 = arith.addf %480, %481 : vector<16x1xf32>
    %483 = vector.broadcast %482 : vector<16x1xf32> to vector<16x32xf32>
    %484 = arith.divf %479, %483 : vector<16x32xf32>
    %485 = vector.broadcast %466 : vector<1x32xf32> to vector<16x32xf32>
    %486 = arith.addf %484, %485 : vector<16x32xf32>
    %c1_431 = arith.constant 1 : index
    %c0_432 = arith.constant 0 : index
    %c0_433 = arith.constant 0 : index
    %c0_434 = arith.constant 0 : index
    %c0_435 = arith.constant 0 : index
    %487 = vector.load %arg5[%c1_431, %c0_432, %c0_433, %c0_434, %c0_435] : memref<2x3x4x32x8xf32, #tpu.memory_space<vmem>>, vector<1x1x1x32x8xf32>
    %488 = vector.shape_cast %487 : vector<1x1x1x32x8xf32> to vector<32x8xf32>
    %cst_436 = arith.constant dense<0.000000e+00> : vector<16x8xf32>
    %489 = tpu.matmul %486, %488, %cst_436 {dimension_numbers = #tpu.dot_dimension_numbers<[1], [0], [0], [1], [0, 0, 1, 1], [], []>} : vector<16x32xf32>, vector<32x8xf32>, vector<16x8xf32> -> vector<16x8xf32>
    %c1_437 = arith.constant 1 : index
    %c0_438 = arith.constant 0 : index
    %c0_439 = arith.constant 0 : index
    %c0_440 = arith.constant 0 : index
    %c0_441 = arith.constant 0 : index
    %490 = vector.load %arg6[%c1_437, %c0_438, %c0_439, %c0_440, %c0_441] : memref<2x3x4x1x8xf32, #tpu.memory_space<vmem>>, vector<1x1x1x1x8xf32>
    %491 = vector.shape_cast %490 : vector<1x1x1x1x8xf32> to vector<1x8xf32>
    %492 = vector.broadcast %491 : vector<1x8xf32> to vector<16x8xf32>
    %493 = arith.addf %489, %492 : vector<16x8xf32>
    %494 = vector.shape_cast %493 : vector<16x8xf32> to vector<2x8x8xf32>
    %c1_442 = arith.constant 1 : index
    %c1_443 = arith.constant 1 : index
    %c0_444 = arith.constant 0 : index
    %c0_445 = arith.constant 0 : index
    %c0_446 = arith.constant 0 : index
    %495 = vector.load %arg5[%c1_442, %c1_443, %c0_444, %c0_445, %c0_446] : memref<2x3x4x32x8xf32, #tpu.memory_space<vmem>>, vector<1x1x1x32x8xf32>
    %496 = vector.shape_cast %495 : vector<1x1x1x32x8xf32> to vector<32x8xf32>
    %cst_447 = arith.constant dense<0.000000e+00> : vector<16x8xf32>
    %497 = tpu.matmul %486, %496, %cst_447 {dimension_numbers = #tpu.dot_dimension_numbers<[1], [0], [0], [1], [0, 0, 1, 1], [], []>} : vector<16x32xf32>, vector<32x8xf32>, vector<16x8xf32> -> vector<16x8xf32>
    %c1_448 = arith.constant 1 : index
    %c1_449 = arith.constant 1 : index
    %c0_450 = arith.constant 0 : index
    %c0_451 = arith.constant 0 : index
    %c0_452 = arith.constant 0 : index
    %498 = vector.load %arg6[%c1_448, %c1_449, %c0_450, %c0_451, %c0_452] : memref<2x3x4x1x8xf32, #tpu.memory_space<vmem>>, vector<1x1x1x1x8xf32>
    %499 = vector.shape_cast %498 : vector<1x1x1x1x8xf32> to vector<1x8xf32>
    %500 = vector.broadcast %499 : vector<1x8xf32> to vector<16x8xf32>
    %501 = arith.addf %497, %500 : vector<16x8xf32>
    %502 = vector.shape_cast %501 : vector<16x8xf32> to vector<2x8x8xf32>
    %c1_453 = arith.constant 1 : index
    %c2_454 = arith.constant 2 : index
    %c0_455 = arith.constant 0 : index
    %c0_456 = arith.constant 0 : index
    %c0_457 = arith.constant 0 : index
    %503 = vector.load %arg5[%c1_453, %c2_454, %c0_455, %c0_456, %c0_457] : memref<2x3x4x32x8xf32, #tpu.memory_space<vmem>>, vector<1x1x1x32x8xf32>
    %504 = vector.shape_cast %503 : vector<1x1x1x32x8xf32> to vector<32x8xf32>
    %cst_458 = arith.constant dense<0.000000e+00> : vector<16x8xf32>
    %505 = tpu.matmul %486, %504, %cst_458 {dimension_numbers = #tpu.dot_dimension_numbers<[1], [0], [0], [1], [0, 0, 1, 1], [], []>} : vector<16x32xf32>, vector<32x8xf32>, vector<16x8xf32> -> vector<16x8xf32>
    %c1_459 = arith.constant 1 : index
    %c2_460 = arith.constant 2 : index
    %c0_461 = arith.constant 0 : index
    %c0_462 = arith.constant 0 : index
    %c0_463 = arith.constant 0 : index
    %506 = vector.load %arg6[%c1_459, %c2_460, %c0_461, %c0_462, %c0_463] : memref<2x3x4x1x8xf32, #tpu.memory_space<vmem>>, vector<1x1x1x1x8xf32>
    %507 = vector.shape_cast %506 : vector<1x1x1x1x8xf32> to vector<1x8xf32>
    %508 = vector.broadcast %507 : vector<1x8xf32> to vector<16x8xf32>
    %509 = arith.addf %505, %508 : vector<16x8xf32>
    %510 = vector.shape_cast %509 : vector<16x8xf32> to vector<2x8x8xf32>
    "tpu.trace_start"() <{level = 10 : i32, message = "bqd,bkd->bqk"}> : () -> ()
    %cst_464 = arith.constant dense<0.000000e+00> : vector<2x8x8xf32>
    %511 = tpu.matmul %494, %502, %cst_464 {dimension_numbers = #tpu.dot_dimension_numbers<[2], [2], [1], [1], [0, 0, 0, 1, 1, 1], [0], [0]>} : vector<2x8x8xf32>, vector<2x8x8xf32>, vector<2x8x8xf32> -> vector<2x8x8xf32>
    "tpu.trace_stop"() : () -> ()
    %cst_465 = arith.constant 0.353553385 : f32
    %512 = vector.broadcast %cst_465 : f32 to vector<2x8x8xf32>
    %513 = arith.mulf %511, %512 : vector<2x8x8xf32>
    %514 = arith.addf %513, %11 : vector<2x8x8xf32>
    %cst_466 = arith.constant dense<0xFF800000> : vector<2x8xf32>
    %515 = vector.multi_reduction <maximumf>, %514, %cst_466 [2] : vector<2x8x8xf32> to vector<2x8xf32>
    %516 = vector.shape_cast %515 : vector<2x8xf32> to vector<2x8x1xf32>
    %517 = vector.broadcast %516 : vector<2x8x1xf32> to vector<2x8x8xf32>
    %518 = arith.subf %514, %517 : vector<2x8x8xf32>
    %519 = math.exp %518 : vector<2x8x8xf32>
    %cst_467 = arith.constant dense<0.000000e+00> : vector<2x8xf32>
    %520 = vector.multi_reduction <add>, %519, %cst_467 [2] : vector<2x8x8xf32> to vector<2x8xf32>
    %521 = vector.shape_cast %520 : vector<2x8xf32> to vector<2x8x1xf32>
    %522 = vector.broadcast %521 : vector<2x8x1xf32> to vector<2x8x8xf32>
    %523 = arith.divf %519, %522 : vector<2x8x8xf32>
    "tpu.trace_start"() <{level = 10 : i32, message = "bqk,bkd->bqd"}> : () -> ()
    %cst_468 = arith.constant dense<0.000000e+00> : vector<2x8x8xf32>
    %524 = tpu.matmul %523, %510, %cst_468 {dimension_numbers = #tpu.dot_dimension_numbers<[2], [1], [1], [2], [0, 0, 0, 1, 1, 2], [0], [0]>} : vector<2x8x8xf32>, vector<2x8x8xf32>, vector<2x8x8xf32> -> vector<2x8x8xf32>
    "tpu.trace_stop"() : () -> ()
    %525 = vector.shape_cast %524 : vector<2x8x8xf32> to vector<16x8xf32>
    %c1_469 = arith.constant 1 : index
    %c0_470 = arith.constant 0 : index
    %c0_471 = arith.constant 0 : index
    %c0_472 = arith.constant 0 : index
    %526 = vector.load %arg7[%c1_469, %c0_470, %c0_471, %c0_472] : memref<2x4x8x32xf32, #tpu.memory_space<vmem>>, vector<1x1x8x32xf32>
    %527 = vector.shape_cast %526 : vector<1x1x8x32xf32> to vector<8x32xf32>
    %cst_473 = arith.constant dense<0.000000e+00> : vector<16x32xf32>
    %528 = tpu.matmul %525, %527, %cst_473 {dimension_numbers = #tpu.dot_dimension_numbers<[1], [0], [0], [1], [0, 0, 1, 1], [], []>} : vector<16x8xf32>, vector<8x32xf32>, vector<16x32xf32> -> vector<16x32xf32>
    %c1_474 = arith.constant 1 : index
    %c0_475 = arith.constant 0 : index
    %c1_476 = arith.constant 1 : index
    %c0_477 = arith.constant 0 : index
    %c0_478 = arith.constant 0 : index
    %529 = vector.load %arg5[%c1_474, %c0_475, %c1_476, %c0_477, %c0_478] : memref<2x3x4x32x8xf32, #tpu.memory_space<vmem>>, vector<1x1x1x32x8xf32>
    %530 = vector.shape_cast %529 : vector<1x1x1x32x8xf32> to vector<32x8xf32>
    %cst_479 = arith.constant dense<0.000000e+00> : vector<16x8xf32>
    %531 = tpu.matmul %486, %530, %cst_479 {dimension_numbers = #tpu.dot_dimension_numbers<[1], [0], [0], [1], [0, 0, 1, 1], [], []>} : vector<16x32xf32>, vector<32x8xf32>, vector<16x8xf32> -> vector<16x8xf32>
    %c1_480 = arith.constant 1 : index
    %c0_481 = arith.constant 0 : index
    %c1_482 = arith.constant 1 : index
    %c0_483 = arith.constant 0 : index
    %c0_484 = arith.constant 0 : index
    %532 = vector.load %arg6[%c1_480, %c0_481, %c1_482, %c0_483, %c0_484] : memref<2x3x4x1x8xf32, #tpu.memory_space<vmem>>, vector<1x1x1x1x8xf32>
    %533 = vector.shape_cast %532 : vector<1x1x1x1x8xf32> to vector<1x8xf32>
    %534 = vector.broadcast %533 : vector<1x8xf32> to vector<16x8xf32>
    %535 = arith.addf %531, %534 : vector<16x8xf32>
    %536 = vector.shape_cast %535 : vector<16x8xf32> to vector<2x8x8xf32>
    %c1_485 = arith.constant 1 : index
    %c1_486 = arith.constant 1 : index
    %c1_487 = arith.constant 1 : index
    %c0_488 = arith.constant 0 : index
    %c0_489 = arith.constant 0 : index
    %537 = vector.load %arg5[%c1_485, %c1_486, %c1_487, %c0_488, %c0_489] : memref<2x3x4x32x8xf32, #tpu.memory_space<vmem>>, vector<1x1x1x32x8xf32>
    %538 = vector.shape_cast %537 : vector<1x1x1x32x8xf32> to vector<32x8xf32>
    %cst_490 = arith.constant dense<0.000000e+00> : vector<16x8xf32>
    %539 = tpu.matmul %486, %538, %cst_490 {dimension_numbers = #tpu.dot_dimension_numbers<[1], [0], [0], [1], [0, 0, 1, 1], [], []>} : vector<16x32xf32>, vector<32x8xf32>, vector<16x8xf32> -> vector<16x8xf32>
    %c1_491 = arith.constant 1 : index
    %c1_492 = arith.constant 1 : index
    %c1_493 = arith.constant 1 : index
    %c0_494 = arith.constant 0 : index
    %c0_495 = arith.constant 0 : index
    %540 = vector.load %arg6[%c1_491, %c1_492, %c1_493, %c0_494, %c0_495] : memref<2x3x4x1x8xf32, #tpu.memory_space<vmem>>, vector<1x1x1x1x8xf32>
    %541 = vector.shape_cast %540 : vector<1x1x1x1x8xf32> to vector<1x8xf32>
    %542 = vector.broadcast %541 : vector<1x8xf32> to vector<16x8xf32>
    %543 = arith.addf %539, %542 : vector<16x8xf32>
    %544 = vector.shape_cast %543 : vector<16x8xf32> to vector<2x8x8xf32>
    %c1_496 = arith.constant 1 : index
    %c2_497 = arith.constant 2 : index
    %c1_498 = arith.constant 1 : index
    %c0_499 = arith.constant 0 : index
    %c0_500 = arith.constant 0 : index
    %545 = vector.load %arg5[%c1_496, %c2_497, %c1_498, %c0_499, %c0_500] : memref<2x3x4x32x8xf32, #tpu.memory_space<vmem>>, vector<1x1x1x32x8xf32>
    %546 = vector.shape_cast %545 : vector<1x1x1x32x8xf32> to vector<32x8xf32>
    %cst_501 = arith.constant dense<0.000000e+00> : vector<16x8xf32>
    %547 = tpu.matmul %486, %546, %cst_501 {dimension_numbers = #tpu.dot_dimension_numbers<[1], [0], [0], [1], [0, 0, 1, 1], [], []>} : vector<16x32xf32>, vector<32x8xf32>, vector<16x8xf32> -> vector<16x8xf32>
    %c1_502 = arith.constant 1 : index
    %c2_503 = arith.constant 2 : index
    %c1_504 = arith.constant 1 : index
    %c0_505 = arith.constant 0 : index
    %c0_506 = arith.constant 0 : index
    %548 = vector.load %arg6[%c1_502, %c2_503, %c1_504, %c0_505, %c0_506] : memref<2x3x4x1x8xf32, #tpu.memory_space<vmem>>, vector<1x1x1x1x8xf32>
    %549 = vector.shape_cast %548 : vector<1x1x1x1x8xf32> to vector<1x8xf32>
    %550 = vector.broadcast %549 : vector<1x8xf32> to vector<16x8xf32>
    %551 = arith.addf %547, %550 : vector<16x8xf32>
    %552 = vector.shape_cast %551 : vector<16x8xf32> to vector<2x8x8xf32>
    "tpu.trace_start"() <{level = 10 : i32, message = "bqd,bkd->bqk"}> : () -> ()
    %cst_507 = arith.constant dense<0.000000e+00> : vector<2x8x8xf32>
    %553 = tpu.matmul %536, %544, %cst_507 {dimension_numbers = #tpu.dot_dimension_numbers<[2], [2], [1], [1], [0, 0, 0, 1, 1, 1], [0], [0]>} : vector<2x8x8xf32>, vector<2x8x8xf32>, vector<2x8x8xf32> -> vector<2x8x8xf32>
    "tpu.trace_stop"() : () -> ()
    %cst_508 = arith.constant 0.353553385 : f32
    %554 = vector.broadcast %cst_508 : f32 to vector<2x8x8xf32>
    %555 = arith.mulf %553, %554 : vector<2x8x8xf32>
    %556 = arith.addf %555, %11 : vector<2x8x8xf32>
    %cst_509 = arith.constant dense<0xFF800000> : vector<2x8xf32>
    %557 = vector.multi_reduction <maximumf>, %556, %cst_509 [2] : vector<2x8x8xf32> to vector<2x8xf32>
    %558 = vector.shape_cast %557 : vector<2x8xf32> to vector<2x8x1xf32>
    %559 = vector.broadcast %558 : vector<2x8x1xf32> to vector<2x8x8xf32>
    %560 = arith.subf %556, %559 : vector<2x8x8xf32>
    %561 = math.exp %560 : vector<2x8x8xf32>
    %cst_510 = arith.constant dense<0.000000e+00> : vector<2x8xf32>
    %562 = vector.multi_reduction <add>, %561, %cst_510 [2] : vector<2x8x8xf32> to vector<2x8xf32>
    %563 = vector.shape_cast %562 : vector<2x8xf32> to vector<2x8x1xf32>
    %564 = vector.broadcast %563 : vector<2x8x1xf32> to vector<2x8x8xf32>
    %565 = arith.divf %561, %564 : vector<2x8x8xf32>
    "tpu.trace_start"() <{level = 10 : i32, message = "bqk,bkd->bqd"}> : () -> ()
    %cst_511 = arith.constant dense<0.000000e+00> : vector<2x8x8xf32>
    %566 = tpu.matmul %565, %552, %cst_511 {dimension_numbers = #tpu.dot_dimension_numbers<[2], [1], [1], [2], [0, 0, 0, 1, 1, 2], [0], [0]>} : vector<2x8x8xf32>, vector<2x8x8xf32>, vector<2x8x8xf32> -> vector<2x8x8xf32>
    "tpu.trace_stop"() : () -> ()
    %567 = vector.shape_cast %566 : vector<2x8x8xf32> to vector<16x8xf32>
    %c1_512 = arith.constant 1 : index
    %c1_513 = arith.constant 1 : index
    %c0_514 = arith.constant 0 : index
    %c0_515 = arith.constant 0 : index
    %568 = vector.load %arg7[%c1_512, %c1_513, %c0_514, %c0_515] : memref<2x4x8x32xf32, #tpu.memory_space<vmem>>, vector<1x1x8x32xf32>
    %569 = vector.shape_cast %568 : vector<1x1x8x32xf32> to vector<8x32xf32>
    %cst_516 = arith.constant dense<0.000000e+00> : vector<16x32xf32>
    %570 = tpu.matmul %567, %569, %cst_516 {dimension_numbers = #tpu.dot_dimension_numbers<[1], [0], [0], [1], [0, 0, 1, 1], [], []>} : vector<16x8xf32>, vector<8x32xf32>, vector<16x32xf32> -> vector<16x32xf32>
    %571 = arith.addf %528, %570 : vector<16x32xf32>
    %c1_517 = arith.constant 1 : index
    %c0_518 = arith.constant 0 : index
    %c2_519 = arith.constant 2 : index
    %c0_520 = arith.constant 0 : index
    %c0_521 = arith.constant 0 : index
    %572 = vector.load %arg5[%c1_517, %c0_518, %c2_519, %c0_520, %c0_521] : memref<2x3x4x32x8xf32, #tpu.memory_space<vmem>>, vector<1x1x1x32x8xf32>
    %573 = vector.shape_cast %572 : vector<1x1x1x32x8xf32> to vector<32x8xf32>
    %cst_522 = arith.constant dense<0.000000e+00> : vector<16x8xf32>
    %574 = tpu.matmul %486, %573, %cst_522 {dimension_numbers = #tpu.dot_dimension_numbers<[1], [0], [0], [1], [0, 0, 1, 1], [], []>} : vector<16x32xf32>, vector<32x8xf32>, vector<16x8xf32> -> vector<16x8xf32>
    %c1_523 = arith.constant 1 : index
    %c0_524 = arith.constant 0 : index
    %c2_525 = arith.constant 2 : index
    %c0_526 = arith.constant 0 : index
    %c0_527 = arith.constant 0 : index
    %575 = vector.load %arg6[%c1_523, %c0_524, %c2_525, %c0_526, %c0_527] : memref<2x3x4x1x8xf32, #tpu.memory_space<vmem>>, vector<1x1x1x1x8xf32>
    %576 = vector.shape_cast %575 : vector<1x1x1x1x8xf32> to vector<1x8xf32>
    %577 = vector.broadcast %576 : vector<1x8xf32> to vector<16x8xf32>
    %578 = arith.addf %574, %577 : vector<16x8xf32>
    %579 = vector.shape_cast %578 : vector<16x8xf32> to vector<2x8x8xf32>
    %c1_528 = arith.constant 1 : index
    %c1_529 = arith.constant 1 : index
    %c2_530 = arith.constant 2 : index
    %c0_531 = arith.constant 0 : index
    %c0_532 = arith.constant 0 : index
    %580 = vector.load %arg5[%c1_528, %c1_529, %c2_530, %c0_531, %c0_532] : memref<2x3x4x32x8xf32, #tpu.memory_space<vmem>>, vector<1x1x1x32x8xf32>
    %581 = vector.shape_cast %580 : vector<1x1x1x32x8xf32> to vector<32x8xf32>
    %cst_533 = arith.constant dense<0.000000e+00> : vector<16x8xf32>
    %582 = tpu.matmul %486, %581, %cst_533 {dimension_numbers = #tpu.dot_dimension_numbers<[1], [0], [0], [1], [0, 0, 1, 1], [], []>} : vector<16x32xf32>, vector<32x8xf32>, vector<16x8xf32> -> vector<16x8xf32>
    %c1_534 = arith.constant 1 : index
    %c1_535 = arith.constant 1 : index
    %c2_536 = arith.constant 2 : index
    %c0_537 = arith.constant 0 : index
    %c0_538 = arith.constant 0 : index
    %583 = vector.load %arg6[%c1_534, %c1_535, %c2_536, %c0_537, %c0_538] : memref<2x3x4x1x8xf32, #tpu.memory_space<vmem>>, vector<1x1x1x1x8xf32>
    %584 = vector.shape_cast %583 : vector<1x1x1x1x8xf32> to vector<1x8xf32>
    %585 = vector.broadcast %584 : vector<1x8xf32> to vector<16x8xf32>
    %586 = arith.addf %582, %585 : vector<16x8xf32>
    %587 = vector.shape_cast %586 : vector<16x8xf32> to vector<2x8x8xf32>
    %c1_539 = arith.constant 1 : index
    %c2_540 = arith.constant 2 : index
    %c2_541 = arith.constant 2 : index
    %c0_542 = arith.constant 0 : index
    %c0_543 = arith.constant 0 : index
    %588 = vector.load %arg5[%c1_539, %c2_540, %c2_541, %c0_542, %c0_543] : memref<2x3x4x32x8xf32, #tpu.memory_space<vmem>>, vector<1x1x1x32x8xf32>
    %589 = vector.shape_cast %588 : vector<1x1x1x32x8xf32> to vector<32x8xf32>
    %cst_544 = arith.constant dense<0.000000e+00> : vector<16x8xf32>
    %590 = tpu.matmul %486, %589, %cst_544 {dimension_numbers = #tpu.dot_dimension_numbers<[1], [0], [0], [1], [0, 0, 1, 1], [], []>} : vector<16x32xf32>, vector<32x8xf32>, vector<16x8xf32> -> vector<16x8xf32>
    %c1_545 = arith.constant 1 : index
    %c2_546 = arith.constant 2 : index
    %c2_547 = arith.constant 2 : index
    %c0_548 = arith.constant 0 : index
    %c0_549 = arith.constant 0 : index
    %591 = vector.load %arg6[%c1_545, %c2_546, %c2_547, %c0_548, %c0_549] : memref<2x3x4x1x8xf32, #tpu.memory_space<vmem>>, vector<1x1x1x1x8xf32>
    %592 = vector.shape_cast %591 : vector<1x1x1x1x8xf32> to vector<1x8xf32>
    %593 = vector.broadcast %592 : vector<1x8xf32> to vector<16x8xf32>
    %594 = arith.addf %590, %593 : vector<16x8xf32>
    %595 = vector.shape_cast %594 : vector<16x8xf32> to vector<2x8x8xf32>
    "tpu.trace_start"() <{level = 10 : i32, message = "bqd,bkd->bqk"}> : () -> ()
    %cst_550 = arith.constant dense<0.000000e+00> : vector<2x8x8xf32>
    %596 = tpu.matmul %579, %587, %cst_550 {dimension_numbers = #tpu.dot_dimension_numbers<[2], [2], [1], [1], [0, 0, 0, 1, 1, 1], [0], [0]>} : vector<2x8x8xf32>, vector<2x8x8xf32>, vector<2x8x8xf32> -> vector<2x8x8xf32>
    "tpu.trace_stop"() : () -> ()
    %cst_551 = arith.constant 0.353553385 : f32
    %597 = vector.broadcast %cst_551 : f32 to vector<2x8x8xf32>
    %598 = arith.mulf %596, %597 : vector<2x8x8xf32>
    %599 = arith.addf %598, %11 : vector<2x8x8xf32>
    %cst_552 = arith.constant dense<0xFF800000> : vector<2x8xf32>
    %600 = vector.multi_reduction <maximumf>, %599, %cst_552 [2] : vector<2x8x8xf32> to vector<2x8xf32>
    %601 = vector.shape_cast %600 : vector<2x8xf32> to vector<2x8x1xf32>
    %602 = vector.broadcast %601 : vector<2x8x1xf32> to vector<2x8x8xf32>
    %603 = arith.subf %599, %602 : vector<2x8x8xf32>
    %604 = math.exp %603 : vector<2x8x8xf32>
    %cst_553 = arith.constant dense<0.000000e+00> : vector<2x8xf32>
    %605 = vector.multi_reduction <add>, %604, %cst_553 [2] : vector<2x8x8xf32> to vector<2x8xf32>
    %606 = vector.shape_cast %605 : vector<2x8xf32> to vector<2x8x1xf32>
    %607 = vector.broadcast %606 : vector<2x8x1xf32> to vector<2x8x8xf32>
    %608 = arith.divf %604, %607 : vector<2x8x8xf32>
    "tpu.trace_start"() <{level = 10 : i32, message = "bqk,bkd->bqd"}> : () -> ()
    %cst_554 = arith.constant dense<0.000000e+00> : vector<2x8x8xf32>
    %609 = tpu.matmul %608, %595, %cst_554 {dimension_numbers = #tpu.dot_dimension_numbers<[2], [1], [1], [2], [0, 0, 0, 1, 1, 2], [0], [0]>} : vector<2x8x8xf32>, vector<2x8x8xf32>, vector<2x8x8xf32> -> vector<2x8x8xf32>
    "tpu.trace_stop"() : () -> ()
    %610 = vector.shape_cast %609 : vector<2x8x8xf32> to vector<16x8xf32>
    %c1_555 = arith.constant 1 : index
    %c2_556 = arith.constant 2 : index
    %c0_557 = arith.constant 0 : index
    %c0_558 = arith.constant 0 : index
    %611 = vector.load %arg7[%c1_555, %c2_556, %c0_557, %c0_558] : memref<2x4x8x32xf32, #tpu.memory_space<vmem>>, vector<1x1x8x32xf32>
    %612 = vector.shape_cast %611 : vector<1x1x8x32xf32> to vector<8x32xf32>
    %cst_559 = arith.constant dense<0.000000e+00> : vector<16x32xf32>
    %613 = tpu.matmul %610, %612, %cst_559 {dimension_numbers = #tpu.dot_dimension_numbers<[1], [0], [0], [1], [0, 0, 1, 1], [], []>} : vector<16x8xf32>, vector<8x32xf32>, vector<16x32xf32> -> vector<16x32xf32>
    %614 = arith.addf %571, %613 : vector<16x32xf32>
    %c1_560 = arith.constant 1 : index
    %c0_561 = arith.constant 0 : index
    %c3_562 = arith.constant 3 : index
    %c0_563 = arith.constant 0 : index
    %c0_564 = arith.constant 0 : index
    %615 = vector.load %arg5[%c1_560, %c0_561, %c3_562, %c0_563, %c0_564] : memref<2x3x4x32x8xf32, #tpu.memory_space<vmem>>, vector<1x1x1x32x8xf32>
    %616 = vector.shape_cast %615 : vector<1x1x1x32x8xf32> to vector<32x8xf32>
    %cst_565 = arith.constant dense<0.000000e+00> : vector<16x8xf32>
    %617 = tpu.matmul %486, %616, %cst_565 {dimension_numbers = #tpu.dot_dimension_numbers<[1], [0], [0], [1], [0, 0, 1, 1], [], []>} : vector<16x32xf32>, vector<32x8xf32>, vector<16x8xf32> -> vector<16x8xf32>
    %c1_566 = arith.constant 1 : index
    %c0_567 = arith.constant 0 : index
    %c3_568 = arith.constant 3 : index
    %c0_569 = arith.constant 0 : index
    %c0_570 = arith.constant 0 : index
    %618 = vector.load %arg6[%c1_566, %c0_567, %c3_568, %c0_569, %c0_570] : memref<2x3x4x1x8xf32, #tpu.memory_space<vmem>>, vector<1x1x1x1x8xf32>
    %619 = vector.shape_cast %618 : vector<1x1x1x1x8xf32> to vector<1x8xf32>
    %620 = vector.broadcast %619 : vector<1x8xf32> to vector<16x8xf32>
    %621 = arith.addf %617, %620 : vector<16x8xf32>
    %622 = vector.shape_cast %621 : vector<16x8xf32> to vector<2x8x8xf32>
    %c1_571 = arith.constant 1 : index
    %c1_572 = arith.constant 1 : index
    %c3_573 = arith.constant 3 : index
    %c0_574 = arith.constant 0 : index
    %c0_575 = arith.constant 0 : index
    %623 = vector.load %arg5[%c1_571, %c1_572, %c3_573, %c0_574, %c0_575] : memref<2x3x4x32x8xf32, #tpu.memory_space<vmem>>, vector<1x1x1x32x8xf32>
    %624 = vector.shape_cast %623 : vector<1x1x1x32x8xf32> to vector<32x8xf32>
    %cst_576 = arith.constant dense<0.000000e+00> : vector<16x8xf32>
    %625 = tpu.matmul %486, %624, %cst_576 {dimension_numbers = #tpu.dot_dimension_numbers<[1], [0], [0], [1], [0, 0, 1, 1], [], []>} : vector<16x32xf32>, vector<32x8xf32>, vector<16x8xf32> -> vector<16x8xf32>
    %c1_577 = arith.constant 1 : index
    %c1_578 = arith.constant 1 : index
    %c3_579 = arith.constant 3 : index
    %c0_580 = arith.constant 0 : index
    %c0_581 = arith.constant 0 : index
    %626 = vector.load %arg6[%c1_577, %c1_578, %c3_579, %c0_580, %c0_581] : memref<2x3x4x1x8xf32, #tpu.memory_space<vmem>>, vector<1x1x1x1x8xf32>
    %627 = vector.shape_cast %626 : vector<1x1x1x1x8xf32> to vector<1x8xf32>
    %628 = vector.broadcast %627 : vector<1x8xf32> to vector<16x8xf32>
    %629 = arith.addf %625, %628 : vector<16x8xf32>
    %630 = vector.shape_cast %629 : vector<16x8xf32> to vector<2x8x8xf32>
    %c1_582 = arith.constant 1 : index
    %c2_583 = arith.constant 2 : index
    %c3_584 = arith.constant 3 : index
    %c0_585 = arith.constant 0 : index
    %c0_586 = arith.constant 0 : index
    %631 = vector.load %arg5[%c1_582, %c2_583, %c3_584, %c0_585, %c0_586] : memref<2x3x4x32x8xf32, #tpu.memory_space<vmem>>, vector<1x1x1x32x8xf32>
    %632 = vector.shape_cast %631 : vector<1x1x1x32x8xf32> to vector<32x8xf32>
    %cst_587 = arith.constant dense<0.000000e+00> : vector<16x8xf32>
    %633 = tpu.matmul %486, %632, %cst_587 {dimension_numbers = #tpu.dot_dimension_numbers<[1], [0], [0], [1], [0, 0, 1, 1], [], []>} : vector<16x32xf32>, vector<32x8xf32>, vector<16x8xf32> -> vector<16x8xf32>
    %c1_588 = arith.constant 1 : index
    %c2_589 = arith.constant 2 : index
    %c3_590 = arith.constant 3 : index
    %c0_591 = arith.constant 0 : index
    %c0_592 = arith.constant 0 : index
    %634 = vector.load %arg6[%c1_588, %c2_589, %c3_590, %c0_591, %c0_592] : memref<2x3x4x1x8xf32, #tpu.memory_space<vmem>>, vector<1x1x1x1x8xf32>
    %635 = vector.shape_cast %634 : vector<1x1x1x1x8xf32> to vector<1x8xf32>
    %636 = vector.broadcast %635 : vector<1x8xf32> to vector<16x8xf32>
    %637 = arith.addf %633, %636 : vector<16x8xf32>
    %638 = vector.shape_cast %637 : vector<16x8xf32> to vector<2x8x8xf32>
    "tpu.trace_start"() <{level = 10 : i32, message = "bqd,bkd->bqk"}> : () -> ()
    %cst_593 = arith.constant dense<0.000000e+00> : vector<2x8x8xf32>
    %639 = tpu.matmul %622, %630, %cst_593 {dimension_numbers = #tpu.dot_dimension_numbers<[2], [2], [1], [1], [0, 0, 0, 1, 1, 1], [0], [0]>} : vector<2x8x8xf32>, vector<2x8x8xf32>, vector<2x8x8xf32> -> vector<2x8x8xf32>
    "tpu.trace_stop"() : () -> ()
    %cst_594 = arith.constant 0.353553385 : f32
    %640 = vector.broadcast %cst_594 : f32 to vector<2x8x8xf32>
    %641 = arith.mulf %639, %640 : vector<2x8x8xf32>
    %642 = arith.addf %641, %11 : vector<2x8x8xf32>
    %cst_595 = arith.constant dense<0xFF800000> : vector<2x8xf32>
    %643 = vector.multi_reduction <maximumf>, %642, %cst_595 [2] : vector<2x8x8xf32> to vector<2x8xf32>
    %644 = vector.shape_cast %643 : vector<2x8xf32> to vector<2x8x1xf32>
    %645 = vector.broadcast %644 : vector<2x8x1xf32> to vector<2x8x8xf32>
    %646 = arith.subf %642, %645 : vector<2x8x8xf32>
    %647 = math.exp %646 : vector<2x8x8xf32>
    %cst_596 = arith.constant dense<0.000000e+00> : vector<2x8xf32>
    %648 = vector.multi_reduction <add>, %647, %cst_596 [2] : vector<2x8x8xf32> to vector<2x8xf32>
    %649 = vector.shape_cast %648 : vector<2x8xf32> to vector<2x8x1xf32>
    %650 = vector.broadcast %649 : vector<2x8x1xf32> to vector<2x8x8xf32>
    %651 = arith.divf %647, %650 : vector<2x8x8xf32>
    "tpu.trace_start"() <{level = 10 : i32, message = "bqk,bkd->bqd"}> : () -> ()
    %cst_597 = arith.constant dense<0.000000e+00> : vector<2x8x8xf32>
    %652 = tpu.matmul %651, %638, %cst_597 {dimension_numbers = #tpu.dot_dimension_numbers<[2], [1], [1], [2], [0, 0, 0, 1, 1, 2], [0], [0]>} : vector<2x8x8xf32>, vector<2x8x8xf32>, vector<2x8x8xf32> -> vector<2x8x8xf32>
    "tpu.trace_stop"() : () -> ()
    %653 = vector.shape_cast %652 : vector<2x8x8xf32> to vector<16x8xf32>
    %c1_598 = arith.constant 1 : index
    %c3_599 = arith.constant 3 : index
    %c0_600 = arith.constant 0 : index
    %c0_601 = arith.constant 0 : index
    %654 = vector.load %arg7[%c1_598, %c3_599, %c0_600, %c0_601] : memref<2x4x8x32xf32, #tpu.memory_space<vmem>>, vector<1x1x8x32xf32>
    %655 = vector.shape_cast %654 : vector<1x1x8x32xf32> to vector<8x32xf32>
    %cst_602 = arith.constant dense<0.000000e+00> : vector<16x32xf32>
    %656 = tpu.matmul %653, %655, %cst_602 {dimension_numbers = #tpu.dot_dimension_numbers<[1], [0], [0], [1], [0, 0, 1, 1], [], []>} : vector<16x8xf32>, vector<8x32xf32>, vector<16x32xf32> -> vector<16x32xf32>
    %657 = arith.addf %614, %656 : vector<16x32xf32>
    %c1_603 = arith.constant 1 : index
    %c0_604 = arith.constant 0 : index
    %c0_605 = arith.constant 0 : index
    %658 = vector.load %arg8[%c1_603, %c0_604, %c0_605] : memref<2x1x32xf32, #tpu.memory_space<vmem>>, vector<1x1x32xf32>
    %659 = vector.shape_cast %658 : vector<1x1x32xf32> to vector<1x32xf32>
    %660 = vector.broadcast %659 : vector<1x32xf32> to vector<16x32xf32>
    %661 = arith.addf %657, %660 : vector<16x32xf32>
    %662 = arith.addf %462, %661 : vector<16x32xf32>
    %c1_606 = arith.constant 1 : index
    %c1_607 = arith.constant 1 : index
    %c0_608 = arith.constant 0 : index
    %c0_609 = arith.constant 0 : index
    %663 = vector.load %arg17[%c1_606, %c1_607, %c0_608, %c0_609] : memref<2x3x1x32xf32, #tpu.memory_space<vmem>>, vector<1x1x1x32xf32>
    %664 = vector.shape_cast %663 : vector<1x1x1x32xf32> to vector<1x32xf32>
    %c1_610 = arith.constant 1 : index
    %c1_611 = arith.constant 1 : index
    %c0_612 = arith.constant 0 : index
    %c0_613 = arith.constant 0 : index
    %665 = vector.load %arg18[%c1_610, %c1_611, %c0_612, %c0_613] : memref<2x3x1x32xf32, #tpu.memory_space<vmem>>, vector<1x1x1x32xf32>
    %666 = vector.shape_cast %665 : vector<1x1x1x32xf32> to vector<1x32xf32>
    %cst_614 = arith.constant dense<0.000000e+00> : vector<16xf32>
    %667 = vector.multi_reduction <add>, %662, %cst_614 [1] : vector<16x32xf32> to vector<16xf32>
    %668 = vector.shape_cast %667 : vector<16xf32> to vector<16x1xf32>
    %cst_615 = arith.constant 3.200000e+01 : f32
    %669 = vector.broadcast %cst_615 : f32 to vector<16x1xf32>
    %670 = arith.divf %668, %669 : vector<16x1xf32>
    %671 = vector.broadcast %670 : vector<16x1xf32> to vector<16x32xf32>
    %672 = arith.subf %662, %671 : vector<16x32xf32>
    %673 = arith.mulf %672, %672 : vector<16x32xf32>
    %cst_616 = arith.constant dense<0.000000e+00> : vector<16xf32>
    %674 = vector.multi_reduction <add>, %673, %cst_616 [1] : vector<16x32xf32> to vector<16xf32>
    %675 = vector.shape_cast %674 : vector<16xf32> to vector<16x1xf32>
    %cst_617 = arith.constant 3.100000e+01 : f32
    %676 = vector.broadcast %cst_617 : f32 to vector<16x1xf32>
    %677 = arith.divf %675, %676 : vector<16x1xf32>
    %678 = vector.broadcast %664 : vector<1x32xf32> to vector<16x32xf32>
    %679 = arith.mulf %678, %672 : vector<16x32xf32>
    %680 = math.sqrt %677 : vector<16x1xf32>
    %cst_618 = arith.constant 9.99999997E-7 : f32
    %681 = vector.broadcast %cst_618 : f32 to vector<16x1xf32>
    %682 = arith.addf %680, %681 : vector<16x1xf32>
    %683 = vector.broadcast %682 : vector<16x1xf32> to vector<16x32xf32>
    %684 = arith.divf %679, %683 : vector<16x32xf32>
    %685 = vector.broadcast %666 : vector<1x32xf32> to vector<16x32xf32>
    %686 = arith.addf %684, %685 : vector<16x32xf32>
    %c1_619 = arith.constant 1 : index
    %c0_620 = arith.constant 0 : index
    %c0_621 = arith.constant 0 : index
    %c0_622 = arith.constant 0 : index
    %c0_623 = arith.constant 0 : index
    %687 = vector.load %arg9[%c1_619, %c0_620, %c0_621, %c0_622, %c0_623] : memref<2x3x4x32x8xf32, #tpu.memory_space<vmem>>, vector<1x1x1x32x8xf32>
    %688 = vector.shape_cast %687 : vector<1x1x1x32x8xf32> to vector<32x8xf32>
    %cst_624 = arith.constant dense<0.000000e+00> : vector<16x8xf32>
    %689 = tpu.matmul %686, %688, %cst_624 {dimension_numbers = #tpu.dot_dimension_numbers<[1], [0], [0], [1], [0, 0, 1, 1], [], []>} : vector<16x32xf32>, vector<32x8xf32>, vector<16x8xf32> -> vector<16x8xf32>
    %c1_625 = arith.constant 1 : index
    %c0_626 = arith.constant 0 : index
    %c0_627 = arith.constant 0 : index
    %c0_628 = arith.constant 0 : index
    %c0_629 = arith.constant 0 : index
    %690 = vector.load %arg10[%c1_625, %c0_626, %c0_627, %c0_628, %c0_629] : memref<2x3x4x1x8xf32, #tpu.memory_space<vmem>>, vector<1x1x1x1x8xf32>
    %691 = vector.shape_cast %690 : vector<1x1x1x1x8xf32> to vector<1x8xf32>
    %692 = vector.broadcast %691 : vector<1x8xf32> to vector<16x8xf32>
    %693 = arith.addf %689, %692 : vector<16x8xf32>
    %694 = vector.shape_cast %693 : vector<16x8xf32> to vector<2x8x8xf32>
    %c1_630 = arith.constant 1 : index
    %c1_631 = arith.constant 1 : index
    %c0_632 = arith.constant 0 : index
    %c0_633 = arith.constant 0 : index
    %c0_634 = arith.constant 0 : index
    %695 = vector.load %arg9[%c1_630, %c1_631, %c0_632, %c0_633, %c0_634] : memref<2x3x4x32x8xf32, #tpu.memory_space<vmem>>, vector<1x1x1x32x8xf32>
    %696 = vector.shape_cast %695 : vector<1x1x1x32x8xf32> to vector<32x8xf32>
    %cst_635 = arith.constant dense<0.000000e+00> : vector<16x8xf32>
    %697 = tpu.matmul %12, %696, %cst_635 {dimension_numbers = #tpu.dot_dimension_numbers<[1], [0], [0], [1], [0, 0, 1, 1], [], []>} : vector<16x32xf32>, vector<32x8xf32>, vector<16x8xf32> -> vector<16x8xf32>
    %c1_636 = arith.constant 1 : index
    %c1_637 = arith.constant 1 : index
    %c0_638 = arith.constant 0 : index
    %c0_639 = arith.constant 0 : index
    %c0_640 = arith.constant 0 : index
    %698 = vector.load %arg10[%c1_636, %c1_637, %c0_638, %c0_639, %c0_640] : memref<2x3x4x1x8xf32, #tpu.memory_space<vmem>>, vector<1x1x1x1x8xf32>
    %699 = vector.shape_cast %698 : vector<1x1x1x1x8xf32> to vector<1x8xf32>
    %700 = vector.broadcast %699 : vector<1x8xf32> to vector<16x8xf32>
    %701 = arith.addf %697, %700 : vector<16x8xf32>
    %702 = vector.shape_cast %701 : vector<16x8xf32> to vector<2x8x8xf32>
    %c1_641 = arith.constant 1 : index
    %c2_642 = arith.constant 2 : index
    %c0_643 = arith.constant 0 : index
    %c0_644 = arith.constant 0 : index
    %c0_645 = arith.constant 0 : index
    %703 = vector.load %arg9[%c1_641, %c2_642, %c0_643, %c0_644, %c0_645] : memref<2x3x4x32x8xf32, #tpu.memory_space<vmem>>, vector<1x1x1x32x8xf32>
    %704 = vector.shape_cast %703 : vector<1x1x1x32x8xf32> to vector<32x8xf32>
    %cst_646 = arith.constant dense<0.000000e+00> : vector<16x8xf32>
    %705 = tpu.matmul %12, %704, %cst_646 {dimension_numbers = #tpu.dot_dimension_numbers<[1], [0], [0], [1], [0, 0, 1, 1], [], []>} : vector<16x32xf32>, vector<32x8xf32>, vector<16x8xf32> -> vector<16x8xf32>
    %c1_647 = arith.constant 1 : index
    %c2_648 = arith.constant 2 : index
    %c0_649 = arith.constant 0 : index
    %c0_650 = arith.constant 0 : index
    %c0_651 = arith.constant 0 : index
    %706 = vector.load %arg10[%c1_647, %c2_648, %c0_649, %c0_650, %c0_651] : memref<2x3x4x1x8xf32, #tpu.memory_space<vmem>>, vector<1x1x1x1x8xf32>
    %707 = vector.shape_cast %706 : vector<1x1x1x1x8xf32> to vector<1x8xf32>
    %708 = vector.broadcast %707 : vector<1x8xf32> to vector<16x8xf32>
    %709 = arith.addf %705, %708 : vector<16x8xf32>
    %710 = vector.shape_cast %709 : vector<16x8xf32> to vector<2x8x8xf32>
    "tpu.trace_start"() <{level = 10 : i32, message = "bqd,bkd->bqk"}> : () -> ()
    %cst_652 = arith.constant dense<0.000000e+00> : vector<2x8x8xf32>
    %711 = tpu.matmul %694, %702, %cst_652 {dimension_numbers = #tpu.dot_dimension_numbers<[2], [2], [1], [1], [0, 0, 0, 1, 1, 1], [0], [0]>} : vector<2x8x8xf32>, vector<2x8x8xf32>, vector<2x8x8xf32> -> vector<2x8x8xf32>
    "tpu.trace_stop"() : () -> ()
    %cst_653 = arith.constant 0.353553385 : f32
    %712 = vector.broadcast %cst_653 : f32 to vector<2x8x8xf32>
    %713 = arith.mulf %711, %712 : vector<2x8x8xf32>
    %714 = arith.addf %713, %5 : vector<2x8x8xf32>
    %cst_654 = arith.constant dense<0xFF800000> : vector<2x8xf32>
    %715 = vector.multi_reduction <maximumf>, %714, %cst_654 [2] : vector<2x8x8xf32> to vector<2x8xf32>
    %716 = vector.shape_cast %715 : vector<2x8xf32> to vector<2x8x1xf32>
    %717 = vector.broadcast %716 : vector<2x8x1xf32> to vector<2x8x8xf32>
    %718 = arith.subf %714, %717 : vector<2x8x8xf32>
    %719 = math.exp %718 : vector<2x8x8xf32>
    %cst_655 = arith.constant dense<0.000000e+00> : vector<2x8xf32>
    %720 = vector.multi_reduction <add>, %719, %cst_655 [2] : vector<2x8x8xf32> to vector<2x8xf32>
    %721 = vector.shape_cast %720 : vector<2x8xf32> to vector<2x8x1xf32>
    %722 = vector.broadcast %721 : vector<2x8x1xf32> to vector<2x8x8xf32>
    %723 = arith.divf %719, %722 : vector<2x8x8xf32>
    "tpu.trace_start"() <{level = 10 : i32, message = "bqk,bkd->bqd"}> : () -> ()
    %cst_656 = arith.constant dense<0.000000e+00> : vector<2x8x8xf32>
    %724 = tpu.matmul %723, %710, %cst_656 {dimension_numbers = #tpu.dot_dimension_numbers<[2], [1], [1], [2], [0, 0, 0, 1, 1, 2], [0], [0]>} : vector<2x8x8xf32>, vector<2x8x8xf32>, vector<2x8x8xf32> -> vector<2x8x8xf32>
    "tpu.trace_stop"() : () -> ()
    %725 = vector.shape_cast %724 : vector<2x8x8xf32> to vector<16x8xf32>
    %c1_657 = arith.constant 1 : index
    %c0_658 = arith.constant 0 : index
    %c0_659 = arith.constant 0 : index
    %c0_660 = arith.constant 0 : index
    %726 = vector.load %arg11[%c1_657, %c0_658, %c0_659, %c0_660] : memref<2x4x8x32xf32, #tpu.memory_space<vmem>>, vector<1x1x8x32xf32>
    %727 = vector.shape_cast %726 : vector<1x1x8x32xf32> to vector<8x32xf32>
    %cst_661 = arith.constant dense<0.000000e+00> : vector<16x32xf32>
    %728 = tpu.matmul %725, %727, %cst_661 {dimension_numbers = #tpu.dot_dimension_numbers<[1], [0], [0], [1], [0, 0, 1, 1], [], []>} : vector<16x8xf32>, vector<8x32xf32>, vector<16x32xf32> -> vector<16x32xf32>
    %c1_662 = arith.constant 1 : index
    %c0_663 = arith.constant 0 : index
    %c1_664 = arith.constant 1 : index
    %c0_665 = arith.constant 0 : index
    %c0_666 = arith.constant 0 : index
    %729 = vector.load %arg9[%c1_662, %c0_663, %c1_664, %c0_665, %c0_666] : memref<2x3x4x32x8xf32, #tpu.memory_space<vmem>>, vector<1x1x1x32x8xf32>
    %730 = vector.shape_cast %729 : vector<1x1x1x32x8xf32> to vector<32x8xf32>
    %cst_667 = arith.constant dense<0.000000e+00> : vector<16x8xf32>
    %731 = tpu.matmul %686, %730, %cst_667 {dimension_numbers = #tpu.dot_dimension_numbers<[1], [0], [0], [1], [0, 0, 1, 1], [], []>} : vector<16x32xf32>, vector<32x8xf32>, vector<16x8xf32> -> vector<16x8xf32>
    %c1_668 = arith.constant 1 : index
    %c0_669 = arith.constant 0 : index
    %c1_670 = arith.constant 1 : index
    %c0_671 = arith.constant 0 : index
    %c0_672 = arith.constant 0 : index
    %732 = vector.load %arg10[%c1_668, %c0_669, %c1_670, %c0_671, %c0_672] : memref<2x3x4x1x8xf32, #tpu.memory_space<vmem>>, vector<1x1x1x1x8xf32>
    %733 = vector.shape_cast %732 : vector<1x1x1x1x8xf32> to vector<1x8xf32>
    %734 = vector.broadcast %733 : vector<1x8xf32> to vector<16x8xf32>
    %735 = arith.addf %731, %734 : vector<16x8xf32>
    %736 = vector.shape_cast %735 : vector<16x8xf32> to vector<2x8x8xf32>
    %c1_673 = arith.constant 1 : index
    %c1_674 = arith.constant 1 : index
    %c1_675 = arith.constant 1 : index
    %c0_676 = arith.constant 0 : index
    %c0_677 = arith.constant 0 : index
    %737 = vector.load %arg9[%c1_673, %c1_674, %c1_675, %c0_676, %c0_677] : memref<2x3x4x32x8xf32, #tpu.memory_space<vmem>>, vector<1x1x1x32x8xf32>
    %738 = vector.shape_cast %737 : vector<1x1x1x32x8xf32> to vector<32x8xf32>
    %cst_678 = arith.constant dense<0.000000e+00> : vector<16x8xf32>
    %739 = tpu.matmul %12, %738, %cst_678 {dimension_numbers = #tpu.dot_dimension_numbers<[1], [0], [0], [1], [0, 0, 1, 1], [], []>} : vector<16x32xf32>, vector<32x8xf32>, vector<16x8xf32> -> vector<16x8xf32>
    %c1_679 = arith.constant 1 : index
    %c1_680 = arith.constant 1 : index
    %c1_681 = arith.constant 1 : index
    %c0_682 = arith.constant 0 : index
    %c0_683 = arith.constant 0 : index
    %740 = vector.load %arg10[%c1_679, %c1_680, %c1_681, %c0_682, %c0_683] : memref<2x3x4x1x8xf32, #tpu.memory_space<vmem>>, vector<1x1x1x1x8xf32>
    %741 = vector.shape_cast %740 : vector<1x1x1x1x8xf32> to vector<1x8xf32>
    %742 = vector.broadcast %741 : vector<1x8xf32> to vector<16x8xf32>
    %743 = arith.addf %739, %742 : vector<16x8xf32>
    %744 = vector.shape_cast %743 : vector<16x8xf32> to vector<2x8x8xf32>
    %c1_684 = arith.constant 1 : index
    %c2_685 = arith.constant 2 : index
    %c1_686 = arith.constant 1 : index
    %c0_687 = arith.constant 0 : index
    %c0_688 = arith.constant 0 : index
    %745 = vector.load %arg9[%c1_684, %c2_685, %c1_686, %c0_687, %c0_688] : memref<2x3x4x32x8xf32, #tpu.memory_space<vmem>>, vector<1x1x1x32x8xf32>
    %746 = vector.shape_cast %745 : vector<1x1x1x32x8xf32> to vector<32x8xf32>
    %cst_689 = arith.constant dense<0.000000e+00> : vector<16x8xf32>
    %747 = tpu.matmul %12, %746, %cst_689 {dimension_numbers = #tpu.dot_dimension_numbers<[1], [0], [0], [1], [0, 0, 1, 1], [], []>} : vector<16x32xf32>, vector<32x8xf32>, vector<16x8xf32> -> vector<16x8xf32>
    %c1_690 = arith.constant 1 : index
    %c2_691 = arith.constant 2 : index
    %c1_692 = arith.constant 1 : index
    %c0_693 = arith.constant 0 : index
    %c0_694 = arith.constant 0 : index
    %748 = vector.load %arg10[%c1_690, %c2_691, %c1_692, %c0_693, %c0_694] : memref<2x3x4x1x8xf32, #tpu.memory_space<vmem>>, vector<1x1x1x1x8xf32>
    %749 = vector.shape_cast %748 : vector<1x1x1x1x8xf32> to vector<1x8xf32>
    %750 = vector.broadcast %749 : vector<1x8xf32> to vector<16x8xf32>
    %751 = arith.addf %747, %750 : vector<16x8xf32>
    %752 = vector.shape_cast %751 : vector<16x8xf32> to vector<2x8x8xf32>
    "tpu.trace_start"() <{level = 10 : i32, message = "bqd,bkd->bqk"}> : () -> ()
    %cst_695 = arith.constant dense<0.000000e+00> : vector<2x8x8xf32>
    %753 = tpu.matmul %736, %744, %cst_695 {dimension_numbers = #tpu.dot_dimension_numbers<[2], [2], [1], [1], [0, 0, 0, 1, 1, 1], [0], [0]>} : vector<2x8x8xf32>, vector<2x8x8xf32>, vector<2x8x8xf32> -> vector<2x8x8xf32>
    "tpu.trace_stop"() : () -> ()
    %cst_696 = arith.constant 0.353553385 : f32
    %754 = vector.broadcast %cst_696 : f32 to vector<2x8x8xf32>
    %755 = arith.mulf %753, %754 : vector<2x8x8xf32>
    %756 = arith.addf %755, %5 : vector<2x8x8xf32>
    %cst_697 = arith.constant dense<0xFF800000> : vector<2x8xf32>
    %757 = vector.multi_reduction <maximumf>, %756, %cst_697 [2] : vector<2x8x8xf32> to vector<2x8xf32>
    %758 = vector.shape_cast %757 : vector<2x8xf32> to vector<2x8x1xf32>
    %759 = vector.broadcast %758 : vector<2x8x1xf32> to vector<2x8x8xf32>
    %760 = arith.subf %756, %759 : vector<2x8x8xf32>
    %761 = math.exp %760 : vector<2x8x8xf32>
    %cst_698 = arith.constant dense<0.000000e+00> : vector<2x8xf32>
    %762 = vector.multi_reduction <add>, %761, %cst_698 [2] : vector<2x8x8xf32> to vector<2x8xf32>
    %763 = vector.shape_cast %762 : vector<2x8xf32> to vector<2x8x1xf32>
    %764 = vector.broadcast %763 : vector<2x8x1xf32> to vector<2x8x8xf32>
    %765 = arith.divf %761, %764 : vector<2x8x8xf32>
    "tpu.trace_start"() <{level = 10 : i32, message = "bqk,bkd->bqd"}> : () -> ()
    %cst_699 = arith.constant dense<0.000000e+00> : vector<2x8x8xf32>
    %766 = tpu.matmul %765, %752, %cst_699 {dimension_numbers = #tpu.dot_dimension_numbers<[2], [1], [1], [2], [0, 0, 0, 1, 1, 2], [0], [0]>} : vector<2x8x8xf32>, vector<2x8x8xf32>, vector<2x8x8xf32> -> vector<2x8x8xf32>
    "tpu.trace_stop"() : () -> ()
    %767 = vector.shape_cast %766 : vector<2x8x8xf32> to vector<16x8xf32>
    %c1_700 = arith.constant 1 : index
    %c1_701 = arith.constant 1 : index
    %c0_702 = arith.constant 0 : index
    %c0_703 = arith.constant 0 : index
    %768 = vector.load %arg11[%c1_700, %c1_701, %c0_702, %c0_703] : memref<2x4x8x32xf32, #tpu.memory_space<vmem>>, vector<1x1x8x32xf32>
    %769 = vector.shape_cast %768 : vector<1x1x8x32xf32> to vector<8x32xf32>
    %cst_704 = arith.constant dense<0.000000e+00> : vector<16x32xf32>
    %770 = tpu.matmul %767, %769, %cst_704 {dimension_numbers = #tpu.dot_dimension_numbers<[1], [0], [0], [1], [0, 0, 1, 1], [], []>} : vector<16x8xf32>, vector<8x32xf32>, vector<16x32xf32> -> vector<16x32xf32>
    %771 = arith.addf %728, %770 : vector<16x32xf32>
    %c1_705 = arith.constant 1 : index
    %c0_706 = arith.constant 0 : index
    %c2_707 = arith.constant 2 : index
    %c0_708 = arith.constant 0 : index
    %c0_709 = arith.constant 0 : index
    %772 = vector.load %arg9[%c1_705, %c0_706, %c2_707, %c0_708, %c0_709] : memref<2x3x4x32x8xf32, #tpu.memory_space<vmem>>, vector<1x1x1x32x8xf32>
    %773 = vector.shape_cast %772 : vector<1x1x1x32x8xf32> to vector<32x8xf32>
    %cst_710 = arith.constant dense<0.000000e+00> : vector<16x8xf32>
    %774 = tpu.matmul %686, %773, %cst_710 {dimension_numbers = #tpu.dot_dimension_numbers<[1], [0], [0], [1], [0, 0, 1, 1], [], []>} : vector<16x32xf32>, vector<32x8xf32>, vector<16x8xf32> -> vector<16x8xf32>
    %c1_711 = arith.constant 1 : index
    %c0_712 = arith.constant 0 : index
    %c2_713 = arith.constant 2 : index
    %c0_714 = arith.constant 0 : index
    %c0_715 = arith.constant 0 : index
    %775 = vector.load %arg10[%c1_711, %c0_712, %c2_713, %c0_714, %c0_715] : memref<2x3x4x1x8xf32, #tpu.memory_space<vmem>>, vector<1x1x1x1x8xf32>
    %776 = vector.shape_cast %775 : vector<1x1x1x1x8xf32> to vector<1x8xf32>
    %777 = vector.broadcast %776 : vector<1x8xf32> to vector<16x8xf32>
    %778 = arith.addf %774, %777 : vector<16x8xf32>
    %779 = vector.shape_cast %778 : vector<16x8xf32> to vector<2x8x8xf32>
    %c1_716 = arith.constant 1 : index
    %c1_717 = arith.constant 1 : index
    %c2_718 = arith.constant 2 : index
    %c0_719 = arith.constant 0 : index
    %c0_720 = arith.constant 0 : index
    %780 = vector.load %arg9[%c1_716, %c1_717, %c2_718, %c0_719, %c0_720] : memref<2x3x4x32x8xf32, #tpu.memory_space<vmem>>, vector<1x1x1x32x8xf32>
    %781 = vector.shape_cast %780 : vector<1x1x1x32x8xf32> to vector<32x8xf32>
    %cst_721 = arith.constant dense<0.000000e+00> : vector<16x8xf32>
    %782 = tpu.matmul %12, %781, %cst_721 {dimension_numbers = #tpu.dot_dimension_numbers<[1], [0], [0], [1], [0, 0, 1, 1], [], []>} : vector<16x32xf32>, vector<32x8xf32>, vector<16x8xf32> -> vector<16x8xf32>
    %c1_722 = arith.constant 1 : index
    %c1_723 = arith.constant 1 : index
    %c2_724 = arith.constant 2 : index
    %c0_725 = arith.constant 0 : index
    %c0_726 = arith.constant 0 : index
    %783 = vector.load %arg10[%c1_722, %c1_723, %c2_724, %c0_725, %c0_726] : memref<2x3x4x1x8xf32, #tpu.memory_space<vmem>>, vector<1x1x1x1x8xf32>
    %784 = vector.shape_cast %783 : vector<1x1x1x1x8xf32> to vector<1x8xf32>
    %785 = vector.broadcast %784 : vector<1x8xf32> to vector<16x8xf32>
    %786 = arith.addf %782, %785 : vector<16x8xf32>
    %787 = vector.shape_cast %786 : vector<16x8xf32> to vector<2x8x8xf32>
    %c1_727 = arith.constant 1 : index
    %c2_728 = arith.constant 2 : index
    %c2_729 = arith.constant 2 : index
    %c0_730 = arith.constant 0 : index
    %c0_731 = arith.constant 0 : index
    %788 = vector.load %arg9[%c1_727, %c2_728, %c2_729, %c0_730, %c0_731] : memref<2x3x4x32x8xf32, #tpu.memory_space<vmem>>, vector<1x1x1x32x8xf32>
    %789 = vector.shape_cast %788 : vector<1x1x1x32x8xf32> to vector<32x8xf32>
    %cst_732 = arith.constant dense<0.000000e+00> : vector<16x8xf32>
    %790 = tpu.matmul %12, %789, %cst_732 {dimension_numbers = #tpu.dot_dimension_numbers<[1], [0], [0], [1], [0, 0, 1, 1], [], []>} : vector<16x32xf32>, vector<32x8xf32>, vector<16x8xf32> -> vector<16x8xf32>
    %c1_733 = arith.constant 1 : index
    %c2_734 = arith.constant 2 : index
    %c2_735 = arith.constant 2 : index
    %c0_736 = arith.constant 0 : index
    %c0_737 = arith.constant 0 : index
    %791 = vector.load %arg10[%c1_733, %c2_734, %c2_735, %c0_736, %c0_737] : memref<2x3x4x1x8xf32, #tpu.memory_space<vmem>>, vector<1x1x1x1x8xf32>
    %792 = vector.shape_cast %791 : vector<1x1x1x1x8xf32> to vector<1x8xf32>
    %793 = vector.broadcast %792 : vector<1x8xf32> to vector<16x8xf32>
    %794 = arith.addf %790, %793 : vector<16x8xf32>
    %795 = vector.shape_cast %794 : vector<16x8xf32> to vector<2x8x8xf32>
    "tpu.trace_start"() <{level = 10 : i32, message = "bqd,bkd->bqk"}> : () -> ()
    %cst_738 = arith.constant dense<0.000000e+00> : vector<2x8x8xf32>
    %796 = tpu.matmul %779, %787, %cst_738 {dimension_numbers = #tpu.dot_dimension_numbers<[2], [2], [1], [1], [0, 0, 0, 1, 1, 1], [0], [0]>} : vector<2x8x8xf32>, vector<2x8x8xf32>, vector<2x8x8xf32> -> vector<2x8x8xf32>
    "tpu.trace_stop"() : () -> ()
    %cst_739 = arith.constant 0.353553385 : f32
    %797 = vector.broadcast %cst_739 : f32 to vector<2x8x8xf32>
    %798 = arith.mulf %796, %797 : vector<2x8x8xf32>
    %799 = arith.addf %798, %5 : vector<2x8x8xf32>
    %cst_740 = arith.constant dense<0xFF800000> : vector<2x8xf32>
    %800 = vector.multi_reduction <maximumf>, %799, %cst_740 [2] : vector<2x8x8xf32> to vector<2x8xf32>
    %801 = vector.shape_cast %800 : vector<2x8xf32> to vector<2x8x1xf32>
    %802 = vector.broadcast %801 : vector<2x8x1xf32> to vector<2x8x8xf32>
    %803 = arith.subf %799, %802 : vector<2x8x8xf32>
    %804 = math.exp %803 : vector<2x8x8xf32>
    %cst_741 = arith.constant dense<0.000000e+00> : vector<2x8xf32>
    %805 = vector.multi_reduction <add>, %804, %cst_741 [2] : vector<2x8x8xf32> to vector<2x8xf32>
    %806 = vector.shape_cast %805 : vector<2x8xf32> to vector<2x8x1xf32>
    %807 = vector.broadcast %806 : vector<2x8x1xf32> to vector<2x8x8xf32>
    %808 = arith.divf %804, %807 : vector<2x8x8xf32>
    "tpu.trace_start"() <{level = 10 : i32, message = "bqk,bkd->bqd"}> : () -> ()
    %cst_742 = arith.constant dense<0.000000e+00> : vector<2x8x8xf32>
    %809 = tpu.matmul %808, %795, %cst_742 {dimension_numbers = #tpu.dot_dimension_numbers<[2], [1], [1], [2], [0, 0, 0, 1, 1, 2], [0], [0]>} : vector<2x8x8xf32>, vector<2x8x8xf32>, vector<2x8x8xf32> -> vector<2x8x8xf32>
    "tpu.trace_stop"() : () -> ()
    %810 = vector.shape_cast %809 : vector<2x8x8xf32> to vector<16x8xf32>
    %c1_743 = arith.constant 1 : index
    %c2_744 = arith.constant 2 : index
    %c0_745 = arith.constant 0 : index
    %c0_746 = arith.constant 0 : index
    %811 = vector.load %arg11[%c1_743, %c2_744, %c0_745, %c0_746] : memref<2x4x8x32xf32, #tpu.memory_space<vmem>>, vector<1x1x8x32xf32>
    %812 = vector.shape_cast %811 : vector<1x1x8x32xf32> to vector<8x32xf32>
    %cst_747 = arith.constant dense<0.000000e+00> : vector<16x32xf32>
    %813 = tpu.matmul %810, %812, %cst_747 {dimension_numbers = #tpu.dot_dimension_numbers<[1], [0], [0], [1], [0, 0, 1, 1], [], []>} : vector<16x8xf32>, vector<8x32xf32>, vector<16x32xf32> -> vector<16x32xf32>
    %814 = arith.addf %771, %813 : vector<16x32xf32>
    %c1_748 = arith.constant 1 : index
    %c0_749 = arith.constant 0 : index
    %c3_750 = arith.constant 3 : index
    %c0_751 = arith.constant 0 : index
    %c0_752 = arith.constant 0 : index
    %815 = vector.load %arg9[%c1_748, %c0_749, %c3_750, %c0_751, %c0_752] : memref<2x3x4x32x8xf32, #tpu.memory_space<vmem>>, vector<1x1x1x32x8xf32>
    %816 = vector.shape_cast %815 : vector<1x1x1x32x8xf32> to vector<32x8xf32>
    %cst_753 = arith.constant dense<0.000000e+00> : vector<16x8xf32>
    %817 = tpu.matmul %686, %816, %cst_753 {dimension_numbers = #tpu.dot_dimension_numbers<[1], [0], [0], [1], [0, 0, 1, 1], [], []>} : vector<16x32xf32>, vector<32x8xf32>, vector<16x8xf32> -> vector<16x8xf32>
    %c1_754 = arith.constant 1 : index
    %c0_755 = arith.constant 0 : index
    %c3_756 = arith.constant 3 : index
    %c0_757 = arith.constant 0 : index
    %c0_758 = arith.constant 0 : index
    %818 = vector.load %arg10[%c1_754, %c0_755, %c3_756, %c0_757, %c0_758] : memref<2x3x4x1x8xf32, #tpu.memory_space<vmem>>, vector<1x1x1x1x8xf32>
    %819 = vector.shape_cast %818 : vector<1x1x1x1x8xf32> to vector<1x8xf32>
    %820 = vector.broadcast %819 : vector<1x8xf32> to vector<16x8xf32>
    %821 = arith.addf %817, %820 : vector<16x8xf32>
    %822 = vector.shape_cast %821 : vector<16x8xf32> to vector<2x8x8xf32>
    %c1_759 = arith.constant 1 : index
    %c1_760 = arith.constant 1 : index
    %c3_761 = arith.constant 3 : index
    %c0_762 = arith.constant 0 : index
    %c0_763 = arith.constant 0 : index
    %823 = vector.load %arg9[%c1_759, %c1_760, %c3_761, %c0_762, %c0_763] : memref<2x3x4x32x8xf32, #tpu.memory_space<vmem>>, vector<1x1x1x32x8xf32>
    %824 = vector.shape_cast %823 : vector<1x1x1x32x8xf32> to vector<32x8xf32>
    %cst_764 = arith.constant dense<0.000000e+00> : vector<16x8xf32>
    %825 = tpu.matmul %12, %824, %cst_764 {dimension_numbers = #tpu.dot_dimension_numbers<[1], [0], [0], [1], [0, 0, 1, 1], [], []>} : vector<16x32xf32>, vector<32x8xf32>, vector<16x8xf32> -> vector<16x8xf32>
    %c1_765 = arith.constant 1 : index
    %c1_766 = arith.constant 1 : index
    %c3_767 = arith.constant 3 : index
    %c0_768 = arith.constant 0 : index
    %c0_769 = arith.constant 0 : index
    %826 = vector.load %arg10[%c1_765, %c1_766, %c3_767, %c0_768, %c0_769] : memref<2x3x4x1x8xf32, #tpu.memory_space<vmem>>, vector<1x1x1x1x8xf32>
    %827 = vector.shape_cast %826 : vector<1x1x1x1x8xf32> to vector<1x8xf32>
    %828 = vector.broadcast %827 : vector<1x8xf32> to vector<16x8xf32>
    %829 = arith.addf %825, %828 : vector<16x8xf32>
    %830 = vector.shape_cast %829 : vector<16x8xf32> to vector<2x8x8xf32>
    %c1_770 = arith.constant 1 : index
    %c2_771 = arith.constant 2 : index
    %c3_772 = arith.constant 3 : index
    %c0_773 = arith.constant 0 : index
    %c0_774 = arith.constant 0 : index
    %831 = vector.load %arg9[%c1_770, %c2_771, %c3_772, %c0_773, %c0_774] : memref<2x3x4x32x8xf32, #tpu.memory_space<vmem>>, vector<1x1x1x32x8xf32>
    %832 = vector.shape_cast %831 : vector<1x1x1x32x8xf32> to vector<32x8xf32>
    %cst_775 = arith.constant dense<0.000000e+00> : vector<16x8xf32>
    %833 = tpu.matmul %12, %832, %cst_775 {dimension_numbers = #tpu.dot_dimension_numbers<[1], [0], [0], [1], [0, 0, 1, 1], [], []>} : vector<16x32xf32>, vector<32x8xf32>, vector<16x8xf32> -> vector<16x8xf32>
    %c1_776 = arith.constant 1 : index
    %c2_777 = arith.constant 2 : index
    %c3_778 = arith.constant 3 : index
    %c0_779 = arith.constant 0 : index
    %c0_780 = arith.constant 0 : index
    %834 = vector.load %arg10[%c1_776, %c2_777, %c3_778, %c0_779, %c0_780] : memref<2x3x4x1x8xf32, #tpu.memory_space<vmem>>, vector<1x1x1x1x8xf32>
    %835 = vector.shape_cast %834 : vector<1x1x1x1x8xf32> to vector<1x8xf32>
    %836 = vector.broadcast %835 : vector<1x8xf32> to vector<16x8xf32>
    %837 = arith.addf %833, %836 : vector<16x8xf32>
    %838 = vector.shape_cast %837 : vector<16x8xf32> to vector<2x8x8xf32>
    "tpu.trace_start"() <{level = 10 : i32, message = "bqd,bkd->bqk"}> : () -> ()
    %cst_781 = arith.constant dense<0.000000e+00> : vector<2x8x8xf32>
    %839 = tpu.matmul %822, %830, %cst_781 {dimension_numbers = #tpu.dot_dimension_numbers<[2], [2], [1], [1], [0, 0, 0, 1, 1, 1], [0], [0]>} : vector<2x8x8xf32>, vector<2x8x8xf32>, vector<2x8x8xf32> -> vector<2x8x8xf32>
    "tpu.trace_stop"() : () -> ()
    %cst_782 = arith.constant 0.353553385 : f32
    %840 = vector.broadcast %cst_782 : f32 to vector<2x8x8xf32>
    %841 = arith.mulf %839, %840 : vector<2x8x8xf32>
    %842 = arith.addf %841, %5 : vector<2x8x8xf32>
    %cst_783 = arith.constant dense<0xFF800000> : vector<2x8xf32>
    %843 = vector.multi_reduction <maximumf>, %842, %cst_783 [2] : vector<2x8x8xf32> to vector<2x8xf32>
    %844 = vector.shape_cast %843 : vector<2x8xf32> to vector<2x8x1xf32>
    %845 = vector.broadcast %844 : vector<2x8x1xf32> to vector<2x8x8xf32>
    %846 = arith.subf %842, %845 : vector<2x8x8xf32>
    %847 = math.exp %846 : vector<2x8x8xf32>
    %cst_784 = arith.constant dense<0.000000e+00> : vector<2x8xf32>
    %848 = vector.multi_reduction <add>, %847, %cst_784 [2] : vector<2x8x8xf32> to vector<2x8xf32>
    %849 = vector.shape_cast %848 : vector<2x8xf32> to vector<2x8x1xf32>
    %850 = vector.broadcast %849 : vector<2x8x1xf32> to vector<2x8x8xf32>
    %851 = arith.divf %847, %850 : vector<2x8x8xf32>
    "tpu.trace_start"() <{level = 10 : i32, message = "bqk,bkd->bqd"}> : () -> ()
    %cst_785 = arith.constant dense<0.000000e+00> : vector<2x8x8xf32>
    %852 = tpu.matmul %851, %838, %cst_785 {dimension_numbers = #tpu.dot_dimension_numbers<[2], [1], [1], [2], [0, 0, 0, 1, 1, 2], [0], [0]>} : vector<2x8x8xf32>, vector<2x8x8xf32>, vector<2x8x8xf32> -> vector<2x8x8xf32>
    "tpu.trace_stop"() : () -> ()
    %853 = vector.shape_cast %852 : vector<2x8x8xf32> to vector<16x8xf32>
    %c1_786 = arith.constant 1 : index
    %c3_787 = arith.constant 3 : index
    %c0_788 = arith.constant 0 : index
    %c0_789 = arith.constant 0 : index
    %854 = vector.load %arg11[%c1_786, %c3_787, %c0_788, %c0_789] : memref<2x4x8x32xf32, #tpu.memory_space<vmem>>, vector<1x1x8x32xf32>
    %855 = vector.shape_cast %854 : vector<1x1x8x32xf32> to vector<8x32xf32>
    %cst_790 = arith.constant dense<0.000000e+00> : vector<16x32xf32>
    %856 = tpu.matmul %853, %855, %cst_790 {dimension_numbers = #tpu.dot_dimension_numbers<[1], [0], [0], [1], [0, 0, 1, 1], [], []>} : vector<16x8xf32>, vector<8x32xf32>, vector<16x32xf32> -> vector<16x32xf32>
    %857 = arith.addf %814, %856 : vector<16x32xf32>
    %c1_791 = arith.constant 1 : index
    %c0_792 = arith.constant 0 : index
    %c0_793 = arith.constant 0 : index
    %858 = vector.load %arg12[%c1_791, %c0_792, %c0_793] : memref<2x1x32xf32, #tpu.memory_space<vmem>>, vector<1x1x32xf32>
    %859 = vector.shape_cast %858 : vector<1x1x32xf32> to vector<1x32xf32>
    %860 = vector.broadcast %859 : vector<1x32xf32> to vector<16x32xf32>
    %861 = arith.addf %857, %860 : vector<16x32xf32>
    %862 = arith.addf %662, %861 : vector<16x32xf32>
    %c1_794 = arith.constant 1 : index
    %c2_795 = arith.constant 2 : index
    %c0_796 = arith.constant 0 : index
    %c0_797 = arith.constant 0 : index
    %863 = vector.load %arg17[%c1_794, %c2_795, %c0_796, %c0_797] : memref<2x3x1x32xf32, #tpu.memory_space<vmem>>, vector<1x1x1x32xf32>
    %864 = vector.shape_cast %863 : vector<1x1x1x32xf32> to vector<1x32xf32>
    %c1_798 = arith.constant 1 : index
    %c2_799 = arith.constant 2 : index
    %c0_800 = arith.constant 0 : index
    %c0_801 = arith.constant 0 : index
    %865 = vector.load %arg18[%c1_798, %c2_799, %c0_800, %c0_801] : memref<2x3x1x32xf32, #tpu.memory_space<vmem>>, vector<1x1x1x32xf32>
    %866 = vector.shape_cast %865 : vector<1x1x1x32xf32> to vector<1x32xf32>
    %cst_802 = arith.constant dense<0.000000e+00> : vector<16xf32>
    %867 = vector.multi_reduction <add>, %862, %cst_802 [1] : vector<16x32xf32> to vector<16xf32>
    %868 = vector.shape_cast %867 : vector<16xf32> to vector<16x1xf32>
    %cst_803 = arith.constant 3.200000e+01 : f32
    %869 = vector.broadcast %cst_803 : f32 to vector<16x1xf32>
    %870 = arith.divf %868, %869 : vector<16x1xf32>
    %871 = vector.broadcast %870 : vector<16x1xf32> to vector<16x32xf32>
    %872 = arith.subf %862, %871 : vector<16x32xf32>
    %873 = arith.mulf %872, %872 : vector<16x32xf32>
    %cst_804 = arith.constant dense<0.000000e+00> : vector<16xf32>
    %874 = vector.multi_reduction <add>, %873, %cst_804 [1] : vector<16x32xf32> to vector<16xf32>
    %875 = vector.shape_cast %874 : vector<16xf32> to vector<16x1xf32>
    %cst_805 = arith.constant 3.100000e+01 : f32
    %876 = vector.broadcast %cst_805 : f32 to vector<16x1xf32>
    %877 = arith.divf %875, %876 : vector<16x1xf32>
    %878 = vector.broadcast %864 : vector<1x32xf32> to vector<16x32xf32>
    %879 = arith.mulf %878, %872 : vector<16x32xf32>
    %880 = math.sqrt %877 : vector<16x1xf32>
    %cst_806 = arith.constant 9.99999997E-7 : f32
    %881 = vector.broadcast %cst_806 : f32 to vector<16x1xf32>
    %882 = arith.addf %880, %881 : vector<16x1xf32>
    %883 = vector.broadcast %882 : vector<16x1xf32> to vector<16x32xf32>
    %884 = arith.divf %879, %883 : vector<16x32xf32>
    %885 = vector.broadcast %866 : vector<1x32xf32> to vector<16x32xf32>
    %886 = arith.addf %884, %885 : vector<16x32xf32>
    %c1_807 = arith.constant 1 : index
    %c0_808 = arith.constant 0 : index
    %c0_809 = arith.constant 0 : index
    %887 = vector.load %arg13[%c1_807, %c0_808, %c0_809] : memref<2x32x64xf32, #tpu.memory_space<vmem>>, vector<1x32x64xf32>
    %888 = vector.shape_cast %887 : vector<1x32x64xf32> to vector<32x64xf32>
    %cst_810 = arith.constant dense<0.000000e+00> : vector<16x64xf32>
    %889 = tpu.matmul %886, %888, %cst_810 {dimension_numbers = #tpu.dot_dimension_numbers<[1], [0], [0], [1], [0, 0, 1, 1], [], []>} : vector<16x32xf32>, vector<32x64xf32>, vector<16x64xf32> -> vector<16x64xf32>
    %c1_811 = arith.constant 1 : index
    %c0_812 = arith.constant 0 : index
    %c0_813 = arith.constant 0 : index
    %890 = vector.load %arg14[%c1_811, %c0_812, %c0_813] : memref<2x1x64xf32, #tpu.memory_space<vmem>>, vector<1x1x64xf32>
    %891 = vector.shape_cast %890 : vector<1x1x64xf32> to vector<1x64xf32>
    %892 = vector.broadcast %891 : vector<1x64xf32> to vector<16x64xf32>
    %893 = arith.addf %889, %892 : vector<16x64xf32>
    %cst_814 = arith.constant 0.000000e+00 : f32
    %894 = vector.broadcast %cst_814 : f32 to vector<16x64xf32>
    %895 = arith.maximumf %893, %894 : vector<16x64xf32>
    %c1_815 = arith.constant 1 : index
    %c0_816 = arith.constant 0 : index
    %c0_817 = arith.constant 0 : index
    %896 = vector.load %arg15[%c1_815, %c0_816, %c0_817] : memref<2x64x32xf32, #tpu.memory_space<vmem>>, vector<1x64x32xf32>
    %897 = vector.shape_cast %896 : vector<1x64x32xf32> to vector<64x32xf32>
    %cst_818 = arith.constant dense<0.000000e+00> : vector<16x32xf32>
    %898 = tpu.matmul %895, %897, %cst_818 {dimension_numbers = #tpu.dot_dimension_numbers<[1], [0], [0], [1], [0, 0, 1, 1], [], []>} : vector<16x64xf32>, vector<64x32xf32>, vector<16x32xf32> -> vector<16x32xf32>
    %c1_819 = arith.constant 1 : index
    %c0_820 = arith.constant 0 : index
    %c0_821 = arith.constant 0 : index
    %899 = vector.load %arg16[%c1_819, %c0_820, %c0_821] : memref<2x1x32xf32, #tpu.memory_space<vmem>>, vector<1x1x32xf32>
    %900 = vector.shape_cast %899 : vector<1x1x32xf32> to vector<1x32xf32>
    %901 = vector.broadcast %900 : vector<1x32xf32> to vector<16x32xf32>
    %902 = arith.addf %898, %901 : vector<16x32xf32>
    %903 = arith.addf %862, %902 : vector<16x32xf32>
    %c0_822 = arith.constant 0 : index
    %c0_823 = arith.constant 0 : index
    %904 = vector.load %arg19[%c0_822, %c0_823] : memref<1x32xf32, #tpu.memory_space<vmem>>, vector<1x32xf32>
    %c0_824 = arith.constant 0 : index
    %c0_825 = arith.constant 0 : index
    %905 = vector.load %arg20[%c0_824, %c0_825] : memref<1x32xf32, #tpu.memory_space<vmem>>, vector<1x32xf32>
    %cst_826 = arith.constant dense<0.000000e+00> : vector<16xf32>
    %906 = vector.multi_reduction <add>, %903, %cst_826 [1] : vector<16x32xf32> to vector<16xf32>
    %907 = vector.shape_cast %906 : vector<16xf32> to vector<16x1xf32>
    %cst_827 = arith.constant 3.200000e+01 : f32
    %908 = vector.broadcast %cst_827 : f32 to vector<16x1xf32>
    %909 = arith.divf %907, %908 : vector<16x1xf32>
    %910 = vector.broadcast %909 : vector<16x1xf32> to vector<16x32xf32>
    %911 = arith.subf %903, %910 : vector<16x32xf32>
    %912 = arith.mulf %911, %911 : vector<16x32xf32>
    %cst_828 = arith.constant dense<0.000000e+00> : vector<16xf32>
    %913 = vector.multi_reduction <add>, %912, %cst_828 [1] : vector<16x32xf32> to vector<16xf32>
    %914 = vector.shape_cast %913 : vector<16xf32> to vector<16x1xf32>
    %cst_829 = arith.constant 3.100000e+01 : f32
    %915 = vector.broadcast %cst_829 : f32 to vector<16x1xf32>
    %916 = arith.divf %914, %915 : vector<16x1xf32>
    %917 = vector.broadcast %904 : vector<1x32xf32> to vector<16x32xf32>
    %918 = arith.mulf %917, %911 : vector<16x32xf32>
    %919 = math.sqrt %916 : vector<16x1xf32>
    %cst_830 = arith.constant 9.99999997E-7 : f32
    %920 = vector.broadcast %cst_830 : f32 to vector<16x1xf32>
    %921 = arith.addf %919, %920 : vector<16x1xf32>
    %922 = vector.broadcast %921 : vector<16x1xf32> to vector<16x32xf32>
    %923 = arith.divf %918, %922 : vector<16x32xf32>
    %924 = vector.broadcast %905 : vector<1x32xf32> to vector<16x32xf32>
    %925 = arith.addf %923, %924 : vector<16x32xf32>
    %c0_831 = arith.constant 0 : index
    %c0_832 = arith.constant 0 : index
    %926 = vector.load %arg21[%c0_831, %c0_832] : memref<16x32xf32, #tpu.memory_space<vmem>>, vector<16x32xf32>
    tpu.vector_store %arg21[%c0_831, %c0_832], %925 {strides = array<i32>} : memref<16x32xf32, #tpu.memory_space<vmem>>, vector<16x32xf32>,
    return
  }
}

</mosaic_0001>

<bundles_post_ra>
// kernel: transformer_forward.2
= control target key start
LH: loop header
LB: loop body
LE: loop exit
PB: predicated region body
PF: predicated region fallthrough
CT: control target
= control target key end

     0   :  { %vm65_vm0 = vcmask 261120   ;;  %v7364_v57 = vmov 0.0   ;;  %vm7365_vm5 = vmmov 0   ;;  %vm392_vm6 = vcmask 64512   ;;  %s8416_s0 = inlined_call_operand.vmem [shape: f32[16,32], index: 0, kind: input, shape index: {}]   ;;  %s8417_s1 = inlined_call_operand.vmem [shape: f32[8,32], index: 1, kind: input, shape index: {}]   ;;  %s8418_s3 = inlined_call_operand.vmem [shape: f32[2,3,4,32,8], index: 3, kind: input, shape index: {}]   ;;  %s8419_s11 = inlined_call_operand.vmem [shape: f32[2,2,1,32], index: 11, kind: input, shape index: {}]   ;;  %s8420_s12 = inlined_call_operand.vmem [shape: f32[2,2,1,32], index: 12, kind: input, shape index: {}]   ;;  %s8421_s4 = inlined_call_operand.vmem [shape: f32[2,3,4,1,8], index: 4, kind: input, shape index: {}]   ;;  %s8422_s2 = inlined_call_operand.vmem [shape: f32[2,8,8], index: 2, kind: input, shape index: {}]   ;;  %s8423_s5 = inlined_call_operand.vmem [shape: f32[2,4,8,32], index: 5, kind: input, shape index: {}]   ;;  %s8424_s6 = inlined_call_operand.vmem [shape: f32[2,1,32], index: 6, kind: input, shape index: {}]   ;;  %s8425_s7 = inlined_call_operand.vmem [shape: f32[2,32,64], index: 7, kind: input, shape index: {}]   ;;  %s8426_s9 = inlined_call_operand.vmem [shape: f32[2,64,32], index: 9, kind: input, shape index: {}]   ;;  %s8427_s8 = inlined_call_operand.vmem [shape: f32[2,1,64], index: 8, kind: input, shape index: {}]   ;;  %s8428_s10 = inlined_call_operand.vmem [shape: f32[2,1,32], index: 10, kind: input, shape index: {}]   ;;  %s8429_s13 = inlined_call_operand.vmem [shape: f32[1,32], index: 13, kind: input, shape index: {}]   ;;  %s8430_s14 = inlined_call_operand.vmem [shape: f32[1,32], index: 14, kind: input, shape index: {}]   ;;  %s8431_s15 = inlined_call_operand.vmem [shape: f32[16,32], index: 15, kind: output, shape index: {}]  }
   0x1   :  { %v56_v0 = vld [vmem:[%s8416_s0] sm:$0xff]  ;;  %v57_v2 = vld [vmem:[%s8416_s0 + $0x8] sm:$0xff]  ;;  %v127_v19 = vld [vmem:[%s8418_s3 + $0x18] sm:$0xff]  ;;  %vm2996_vm13 = vcmask 523264  }
   0x2   :  { %v60_v1 = vld [vmem:[%s8417_s1] sm:$0xff]  ;;  %v58_v3 = vmul.f32 5.656854, %v56_v0  ;;  %v59_v4 = vmul.f32 5.656854, %v57_v2  ;;  %6733 = vmatprep.subr.mxu0 %v127_v19  ;;  %v6174_v20 = vld [vmem:[%s8418_s3 + $0x98] sm:$0xff] }
   0x3   :  { %6734 = vmatpush3.msra.mxu0 %v127_v19  ;;  %6744 = vmatprep.subr.mxu1 %v6174_v20  ;;  %v126_v21 = vld [vmem:[%s8418_s3 + $0x10] sm:$0xff]  ;;  %v125_v23 = vld [vmem:[%s8418_s3 + $0x8] sm:$0xff]  ;;  %v124_v25 = vld [vmem:[%s8418_s3] sm:$0xff] }
   0x4   :  { %v7456_v5 = vadd.f32 %v60_v1, %v58_v3  ;;  %v7458_v6 = vadd.f32 %v60_v1, %v59_v4  ;;  %6735 = vmatprep.subr.mxu0 %v126_v21  ;;  %6745 = vmatpush3.msra.mxu1 %v6174_v20  ;;  %v6173_v22 = vld [vmem:[%s8418_s3 + $0x90] sm:$0xff]  ;;  %v6172_v24 = vld [vmem:[%s8418_s3 + $0x88] sm:$0xff]  ;;  %v6171_v26 = vld [vmem:[%s8418_s3 + $0x80] sm:$0xff] }
   0x5   :  { %6736 = vmatpush3.msra.mxu0 %v126_v21  ;;  %6746 = vmatprep.subr.mxu1 %v6173_v22  ;;  %v6182_v27 = vld [vmem:[%s8418_s3 + $0x118] sm:$0xff]  ;;  %v6166_v44 = vld [vmem:[%s8419_s11] ss:$0 sm:$0xff]  ;;  %v6181_v54 = vld [vmem:[%s8418_s3 + $0x110] sm:$0xff] }
   0x6   :  { %v66_v7 = vsel %vm65_vm0, %v7456_v5, 0.0  ;;  %v69_v8 = vsel %vm65_vm0, %v7458_v6, 0.0  ;;  %6737 = vmatprep.subr.mxu0 %v125_v23  ;;  %6747 = vmatpush3.msra.mxu1 %v6173_v22  ;;  %v6167_v47 = vld [vmem:[%s8420_s12] ss:$0 sm:$0xff]  ;;  %v6180_v55 = vld [vmem:[%s8418_s3 + $0x108] sm:$0xff] }
   0x7   :  { %67 = vadd.xlane.f32.xlu0 %v66_v7  ;;  %6738 = vmatpush3.msra.mxu0 %v125_v23  ;;  %v6179_v56 = vld [vmem:[%s8418_s3 + $0x100] sm:$0xff]  ;;  %v6184_v4 = vld [vmem:[%s8421_s4 + $0x8] ss:$0 sm:$0xff] }
   0x8   :  { %6748 = vmatprep.subr.mxu1 %v6172_v24  ;;  %6739 = vmatprep.subr.mxu0 %v124_v25  ;;  %v6176_v58 = vld [vmem:[%s8421_s4 + $0x4] ss:$0 sm:$0xff]  ;;  %v6168_v61 = vld [vmem:[%s8421_s4] ss:$0 sm:$0xff] }
   0x9   :  { %6749 = vmatpush3.msra.mxu1 %v6172_v24  ;;  %6740 = vmatpush3.msra.mxu0 %v124_v25 }
   0xa   :  { %6750 = vmatprep.subr.mxu1 %v6171_v26  ;;  %6755 = vmatprep.subr.mxu0 %v6182_v27 }
   0xb   :  { %70 = vadd.xlane.f32.xlu0 %v69_v8  ;;  %6751 = vmatpush3.msra.mxu1 %v6171_v26 }
   0xc   :  { %6771 = vmatprep.subr.mxu1 %v7364_v57 }
  0x90   :  { %v68_v9 = vpop.xlane.xlu0 %67 }
  0x91   :  { %v73_v10 = vmul.f32 0.03125, %v68_v9 }
  0x93   :  { %v7465_v11 = vsub.f32 %v7456_v5, %v73_v10 }
  0x94   :  { %v71_v12 = vpop.xlane.xlu0 %70 }
  0x95   :  { %v74_v13 = vmul.f32 0.03125, %v71_v12  ;;  %v77_v14 = vmul.f32 %v7465_v11, %v7465_v11  ;;  %v94_v45 = vmul.f32 %v6166_v44, %v7465_v11  ;;  %v51_v11 = vld [vmem:[%s8422_s2 + $0x8] sm:$0xff]  ;;  %v50_v12 = vld [vmem:[%s8422_s2] sm:$0xff] }
  0x96   :  { %vm53_vm7 = vcmp.ne.f32.partialorder %v51_v11, 0.0  ;;  %vm52_vm8 = vcmp.ne.f32.partialorder %v50_v12, 0.0 }
  0x97   :  { %v7470_v15 = vsub.f32 %v7458_v6, %v74_v13  ;;  %v79_v16 = vsel %vm65_vm0, %v77_v14, 0.0  ;;  %v7366_v14 = vmov -1e+09  }
  0x98   :  { %80 = vadd.xlane.f32.xlu1 %v79_v16  ;;  %v7569_v19 = vsel %vm52_vm8, 0.0, %v7366_v14 }
  0x99   :  { %v78_v17 = vmul.f32 %v7470_v15, %v7470_v15  ;;  %v95_v49 = vmul.f32 %v6166_v44, %v7470_v15  ;;  %v7567_v15 = vsel %vm53_vm7, 0.0, %v7366_v14 }
  0x9b   :  { %v82_v18 = vsel %vm65_vm0, %v78_v17, 0.0 }
  0x9c   :  { %83 = vadd.xlane.f32.xlu1 %v82_v18 }
 0x121   :  { %v81_v28 = vpop.xlane.xlu1 %80 }
 0x122   :  { %v86_v29 = vmul.f32 0.032258064, %v81_v28 }
 0x124   :  { %7260 = vrsqrt.f32 %v86_v29  ;;  %vm98_vm1 = vcmp.eq.f32.partialorder %v86_v29, inf  ;;  %v101_v34 = vand.u32 2147483648, %v86_v29  ;;  %vm100_vm2 = vcmp.eq.f32.partialorder %v86_v29, 0.0 }
 0x125   :  { %v84_v30 = vpop.xlane.xlu1 %83 }
 0x126   :  { %v87_v31 = vmul.f32 0.032258064, %v84_v30 }
 0x128   :  { %7262 = vrsqrt.f32 %v87_v31  ;;  %vm105_vm3 = vcmp.eq.f32.partialorder %v87_v31, inf  ;;  %v108_v40 = vand.u32 2147483648, %v87_v31  ;;  %vm107_vm4 = vcmp.eq.f32.partialorder %v87_v31, 0.0 }
 0x131   :  { %v7261_v32 = vpop.eup %7260 }
 0x132   :  { %v97_v33 = vmul.f32 %v7261_v32, %v86_v29 }
 0x134   :  { %v99_v35 = vsel %vm98_vm1, %v86_v29, %v97_v33 }
 0x135   :  { %v7263_v36 = vpop.eup %7262  ;;  %v102_v37 = vsel %vm100_vm2, %v101_v34, %v99_v35 }
 0x136   :  { %v110_v38 = vadd.f32 1e-06, %v102_v37  ;;  %v104_v39 = vmul.f32 %v7263_v36, %v87_v31  ;;  %v6204_v36 = vld [vmem:[%s8418_s3 + $0xb8] sm:$0xff] }
 0x137   :  { %v6196_v37 = vld [vmem:[%s8418_s3 + $0x38] sm:$0xff] }
 0x138   :  { %7264 = vrcp.f32 %v110_v38  ;;  %v106_v41 = vsel %vm105_vm3, %v87_v31, %v104_v39 }
 0x139   :  { %v109_v42 = vsel %vm107_vm4, %v108_v40, %v106_v41 }
 0x13a   :  { %v111_v43 = vadd.f32 1e-06, %v109_v42 }
 0x13c   :  { %7266 = vrcp.f32 %v111_v43  ;;  %v6203_v43 = vld [vmem:[%s8418_s3 + $0xb0] sm:$0xff] }
 0x145   :  { %v7265_v46 = vpop.eup %7264 }
 0x146   :  { %v113_v48 = vmul.f32 %v7265_v46, %v94_v45  ;;  %v6195_v45 = vld [vmem:[%s8418_s3 + $0x30] sm:$0xff]  ;;  %v6202_v46 = vld [vmem:[%s8418_s3 + $0xa8] sm:$0xff] }
 0x148   :  { %v7511_v50 = vadd.f32 %v6167_v47, %v113_v48  ;;  %v6201_v48 = vld [vmem:[%s8418_s3 + $0xa0] sm:$0xff] }
 0x149   :  { %v7267_v51 = vpop.eup %7266 }
 0x14a   :  { %v115_v52 = vmul.f32 %v7267_v51, %v95_v49  ;;  %6741 = vmatprep.mubr.msk.f32.mxu0 %vm65_vm0, %v7511_v50  ;;  %6752 = vmatprep.mubr.msk.f32.mxu1 %vm65_vm0, %v7511_v50  ;;  %v6193_v49 = vld [vmem:[%s8418_s3 + $0x20] sm:$0xff]  ;;  %v6212_v51 = vld [vmem:[%s8418_s3 + $0x138] sm:$0xff] }
 0x14c   :  { %v7517_v53 = vadd.f32 %v6167_v47, %v115_v52  ;;  %v6194_v47 = vld [vmem:[%s8418_s3 + $0x28] sm:$0xff]  ;;  %v6211_v52 = vld [vmem:[%s8418_s3 + $0x130] sm:$0xff] }
 0x14e   :  { %6742 = vmatmul.mubr.msk.f32.vlgmr.msra.gmra.mxu0 %vm65_vm0, %v7517_v53  ;;  %6753 = vmatmul.mubr.msk.f32.vlgmr.msra.gmra.mxu1 %vm65_vm0, %v7517_v53 }
 0x14f   :  { %6756 = vmatpush3.msra.mxu0 %v6182_v27  ;;  %6763 = vmatprep.mubr.msk.f32.mxu0 %vm65_vm0, %v7511_v50 }
 0x150   :  { %6757 = vmatprep.subr.mxu0 %v6181_v54  ;;  %6773 = vmatprep.mubr.msk.f32.mxu1 %vm7365_vm5, %v7364_v57 }
 0x151   :  { %6758 = vmatpush3.msra.mxu0 %v6181_v54  ;;  %v6210_v54 = vld [vmem:[%s8418_s3 + $0x128] sm:$0xff] }
 0x152   :  { %6759 = vmatprep.subr.mxu0 %v6180_v55 }
 0x153   :  { %6760 = vmatpush3.msra.mxu0 %v6180_v55  ;;  %v6209_v55 = vld [vmem:[%s8418_s3 + $0x120] sm:$0xff] }
 0x154   :  { %6761 = vmatprep.subr.mxu0 %v6179_v56 }
 0x155   :  { %6762 = vmatpush3.msra.mxu0 %v6179_v56 }
 0x156   :  { %6764 = vmatmul.mubr.msk.f32.vlgmr.msra.gmra.mxu0 %vm65_vm0, %v7517_v53  ;;  %6766 = vmatprep.subr.mxu0 %v7364_v57 }
 0x157   :  { %6768 = vmatprep.mubr.msk.f32.mxu0 %vm7365_vm5, %v7364_v57 }
 0x20e   :  { %v6743_v59 = vpop.f32.mrf.mxu0  ;;  %v6754_v60 = vpop.f32.mrf.mxu1 }
 0x20f   :  { %v301_v62 = vadd.f32 %v6754_v60, %v6176_v58  ;;  %v213_v2 = vadd.f32 %v6743_v59, %v6168_v61 }
 0x210   :  { %v295_v63 = vpop.f32.mrf.mxu1  ;;  %v207_v0 = vpop.f32.mrf.mxu0 }
 0x211   :  { %v296_v1 = vadd.f32 %v6176_v58, %v295_v63  ;;  %6772 = vmatpush3.xpose.msk.msra.mxu1 %vm392_vm6, %v301_v62  ;;  %v208_v3 = vadd.f32 %v6168_v61, %v207_v0  ;;  %v6206_v63 = vld [vmem:[%s8421_s4 + $0x5] ss:$0 sm:$0xff] }
 0x212   :  { %6781 = vmatprep.subr.mxu1 %v7364_v57 }
 0x213   :  { %6767 = vmatpush3.xpose.msk.msra.mxu0 %vm392_vm6, %v296_v1  ;;  %v6198_v1 = vld [vmem:[%s8421_s4 + $0x1] ss:$0 sm:$0xff] }
 0x214   :  { %6774 = vmatmul.mubr.msk.f32.vlgmr.msra.gmra.mxu1 %vm392_vm6, %v213_v2  ;;  %6776 = vmatprep.subr.mxu0 %v7364_v57 }
 0x215   :  { %6783 = vmatprep.mubr.msk.f32.mxu1 %vm7365_vm5, %v7364_v57 }
 0x216   :  { %v6765_v7 = vpop.f32.mrf.mxu0  ;;  %6769 = vmatmul.mubr.msk.f32.vlgmr.msra.gmra.mxu0 %vm392_vm6, %v208_v3 }
 0x217   :  { %v389_v8 = vadd.f32 %v6765_v7, %v6184_v4  ;;  %6778 = vmatprep.mubr.msk.f32.mxu0 %vm7365_vm5, %v7364_v57 }
 0x218   :  { %v383_v9 = vpop.f32.mrf.mxu0 }
 0x219   :  { %v384_v10 = vadd.f32 %v6184_v4, %v383_v9  ;;  %6782 = vmatpush3.msra.mxu1 %v389_v8  ;;  %v6214_v8 = vld [vmem:[%s8421_s4 + $0x9] ss:$0 sm:$0xff] }
 0x21a   :  { %6797 = vmatprep.subr.mxu1 %v6204_v36 }
 0x21b   :  { %6777 = vmatpush3.msra.mxu0 %v384_v10 }
 0x21c   :  { %6786 = vmatprep.subr.mxu0 %v6196_v37 }
 0x2d4   :  { %v541_v13 = vpop.f32.mrf.mxu1 }
 0x2d5   :  { %v546_v16 = vmul.f32 0.35355338, %v541_v13 }
 0x2d6   :  { %v465_v17 = vpop.f32.mrf.mxu0  ;;  %v6775_v18 = vpop.f32.mrf.mxu1 }
 0x2d7   :  { %v545_v20 = vmul.f32 0.35355338, %v465_v17  ;;  %v548_v21 = vadd.f32 %v546_v16, %v7567_v15 }
 0x2d8   :  { %v6770_v22 = vpop.f32.mrf.mxu0 }
 0x2d9   :  { %v552_v23 = vsel %vm392_vm6, %v548_v21, -inf  ;;  %v547_v24 = vadd.f32 %v545_v20, %v7569_v19 }
 0x2da   :  { %553 = vmax.xlane.f32.xlu0 %v552_v23 }
 0x2db   :  { %v549_v25 = vsel %vm392_vm6, %v547_v24, -inf }
 0x2dc   :  { %550 = vmax.xlane.f32.xlu1 %v549_v25 }
 0x363   :  { %v554_v26 = vpop.xlane.xlu0 %553 }
 0x364   :  { %v556_v27 = vsub.f32 %v548_v21, %v554_v26 }
 0x365   :  { %v551_v28 = vpop.xlane.xlu1 %550 }
 0x366   :  { %v559_v29 = vmul.f32 1.442695, %v556_v27  ;;  %v555_v30 = vsub.f32 %v547_v24, %v551_v28 }
 0x368   :  { %7268 = vpow2.f32 %v559_v29  ;;  %v557_v31 = vmul.f32 1.442695, %v555_v30 }
 0x36a   :  { %7270 = vpow2.f32 %v557_v31 }
 0x375   :  { %v7269_v32 = vpop.eup %7268 }
 0x376   :  { %v564_v33 = vsel %vm392_vm6, %v7269_v32, 0.0 }
 0x377   :  { %v7271_v34 = vpop.eup %7270  ;;  %565 = vadd.xlane.f32.xlu0 %v564_v33 }
 0x378   :  { %v561_v35 = vsel %vm392_vm6, %v7271_v34, 0.0 }
 0x379   :  { %562 = vadd.xlane.f32.xlu1 %v561_v35 }
 0x400   :  { %v566_v38 = vpop.xlane.xlu0 %565 }
 0x401   :  { %7272 = vrcp.f32 %v566_v38 }
 0x402   :  { %v563_v39 = vpop.xlane.xlu1 %562 }
 0x403   :  { %7274 = vrcp.f32 %v563_v39 }
 0x40e   :  { %v7273_v40 = vpop.eup %7272 }
 0x40f   :  { %v570_v41 = vmul.f32 %v7273_v40, %v7269_v32 }
 0x410   :  { %v7275_v42 = vpop.eup %7274 }
 0x411   :  { %6784 = vmatmul.mubr.msk.f32.vlgmr.msra.gmra.mxu1 %vm392_vm6, %v570_v41  ;;  %v568_v44 = vmul.f32 %v7275_v42, %v7271_v34 }
 0x412   :  { %6798 = vmatpush3.msra.mxu1 %v6204_v36  ;;  %6805 = vmatprep.mubr.msk.f32.mxu1 %vm65_vm0, %v7511_v50  ;;  %v717_v36 = vld [vmem:[%s8423_s5] sm:$0xff] }
 0x413   :  { %6799 = vmatprep.subr.mxu1 %v6203_v43  ;;  %6779 = vmatmul.mubr.msk.f32.vlgmr.msra.gmra.mxu0 %vm392_vm6, %v568_v44  ;;  %v6238_v44 = vld [vmem:[%s8418_s3 + $0xd0] sm:$0xff] }
 0x414   :  { %6787 = vmatpush3.msra.mxu0 %v6196_v37  ;;  %6800 = vmatpush3.msra.mxu1 %v6203_v43  ;;  %v6239_v43 = vld [vmem:[%s8418_s3 + $0xd8] sm:$0xff] }
 0x415   :  { %6788 = vmatprep.subr.mxu0 %v6195_v45  ;;  %6794 = vmatprep.mubr.msk.f32.mxu0 %vm65_vm0, %v7511_v50 }
 0x416   :  { %6801 = vmatprep.subr.mxu1 %v6202_v46  ;;  %6789 = vmatpush3.msra.mxu0 %v6195_v45  ;;  %v6237_v45 = vld [vmem:[%s8418_s3 + $0xc8] sm:$0xff] }
 0x417   :  { %6802 = vmatpush3.msra.mxu1 %v6202_v46  ;;  %6790 = vmatprep.subr.mxu0 %v6194_v47  ;;  %v6236_v46 = vld [vmem:[%s8418_s3 + $0xc0] sm:$0xff] }
 0x418   :  { %6803 = vmatprep.subr.mxu1 %v6201_v48  ;;  %6791 = vmatpush3.msra.mxu0 %v6194_v47  ;;  %v6223_v47 = vld [vmem:[%s8423_s5 + $0x8] sm:$0xff] }
 0x419   :  { %6804 = vmatpush3.msra.mxu1 %v6201_v48  ;;  %6792 = vmatprep.subr.mxu0 %v6193_v49  ;;  %v6231_v48 = vld [vmem:[%s8418_s3 + $0x58] sm:$0xff] }
 0x41a   :  { %6806 = vmatmul.mubr.msk.f32.vlgmr.msra.gmra.mxu1 %vm65_vm0, %v7517_v53  ;;  %6793 = vmatpush3.msra.mxu0 %v6193_v49 }
 0x41b   :  { %6795 = vmatmul.mubr.msk.f32.vlgmr.msra.gmra.mxu0 %vm65_vm0, %v7517_v53  ;;  %6808 = vmatprep.subr.mxu0 %v6212_v51 }
 0x41c   :  { %6809 = vmatpush3.msra.mxu0 %v6212_v51  ;;  %6816 = vmatprep.mubr.msk.f32.mxu0 %vm65_vm0, %v7511_v50 }
 0x41d   :  { %6810 = vmatprep.subr.mxu0 %v6211_v52  ;;  %6819 = vmatprep.subr.mxu1 %v7364_v57 }
 0x41e   :  { %6811 = vmatpush3.msra.mxu0 %v6211_v52  ;;  %6821 = vmatprep.mubr.msk.f32.mxu1 %vm7365_vm5, %v7364_v57 }
 0x41f   :  { %6812 = vmatprep.subr.mxu0 %v6210_v54 }
 0x420   :  { %6813 = vmatpush3.msra.mxu0 %v6210_v54  ;;  %v6230_v54 = vld [vmem:[%s8418_s3 + $0x50] sm:$0xff] }
 0x421   :  { %6814 = vmatprep.subr.mxu0 %v6209_v55 }
 0x422   :  { %6815 = vmatpush3.msra.mxu0 %v6209_v55 }
 0x423   :  { %6817 = vmatmul.mubr.msk.f32.vlgmr.msra.gmra.mxu0 %vm65_vm0, %v7517_v53  ;;  %6829 = vmatprep.subr.mxu0 %v7364_v57 }
 0x424   :  { %6831 = vmatprep.mubr.msk.f32.mxu0 %vm7365_vm5, %v7364_v57 }
 0x4d1   :  { %v7633_v56 = vpop.f32.mrf.mxu1 }
 0x4d3   :  { %v7635_v58 = vpop.f32.mrf.mxu0  ;;  %v6785_v59 = vpop.f32.mrf.mxu1 }
 0x4d5   :  { %v6780_v60 = vpop.f32.mrf.mxu0 }
 0x4d6   :  { %v6247_v60 = vld [vmem:[%s8418_s3 + $0x158] sm:$0xff] }
 0x4da   :  { %v6807_v61 = vpop.f32.mrf.mxu1 }
 0x4db   :  { %v6796_v62 = vpop.f32.mrf.mxu0  ;;  %v891_v7 = vadd.f32 %v6807_v61, %v6206_v63  ;;  %v6246_v61 = vld [vmem:[%s8418_s3 + $0x150] sm:$0xff] }
 0x4dc   :  { %v885_v0 = vpop.f32.mrf.mxu1  ;;  %v803_v10 = vadd.f32 %v6796_v62, %v6198_v1 }
 0x4dd   :  { %v886_v2 = vadd.f32 %v6206_v63, %v885_v0  ;;  %v797_v3 = vpop.f32.mrf.mxu0  ;;  %v6241_v63 = vld [vmem:[%s8421_s4 + $0x6] ss:$0 sm:$0xff]  ;;  %v6245_v0 = vld [vmem:[%s8418_s3 + $0x148] sm:$0xff] }
 0x4de   :  { %v798_v4 = vadd.f32 %v6198_v1, %v797_v3 }
 0x4df   :  { %6820 = vmatpush3.xpose.msk.msra.mxu1 %vm392_vm6, %v886_v2  ;;  %v6244_v2 = vld [vmem:[%s8418_s3 + $0x140] sm:$0xff] }
 0x4e0   :  { %6824 = vmatprep.subr.mxu1 %v7364_v57 }
 0x4e2   :  { %6822 = vmatmul.mubr.msk.f32.vlgmr.msra.gmra.mxu1 %vm392_vm6, %v798_v4 }
 0x4e3   :  { %6825 = vmatpush3.xpose.msk.msra.mxu1 %vm392_vm6, %v891_v7  ;;  %v6818_v9 = vpop.f32.mrf.mxu0  ;;  %6826 = vmatprep.mubr.msk.f32.mxu1 %vm7365_vm5, %v7364_v57 }
 0x4e4   :  { %v979_v11 = vadd.f32 %v6818_v9, %v6214_v8  ;;  %6834 = vmatprep.subr.mxu1 %v7364_v57 }
 0x4e5   :  { %v973_v12 = vpop.f32.mrf.mxu0 }
 0x4e6   :  { %v974_v13 = vadd.f32 %v6214_v8, %v973_v12  ;;  %6827 = vmatmul.mubr.msk.f32.vlgmr.msra.gmra.mxu1 %vm392_vm6, %v803_v10 }
 0x4e7   :  { %6835 = vmatpush3.msra.mxu1 %v979_v11  ;;  %6836 = vmatprep.mubr.msk.f32.mxu1 %vm7365_vm5, %v7364_v57  ;;  %v6233_v11 = vld [vmem:[%s8421_s4 + $0x2] ss:$0 sm:$0xff] }
 0x4e8   :  { %6830 = vmatpush3.msra.mxu0 %v974_v13  ;;  %6844 = vmatprep.subr.mxu1 %v717_v36 }
 0x4e9   :  { %6839 = vmatprep.subr.mxu0 %v6223_v47 }
 0x5a2   :  { %v1054_v14 = vpop.f32.mrf.mxu1 }
 0x5a3   :  { %v1134_v16 = vmul.f32 0.35355338, %v1054_v14  ;;  %v6249_v14 = vld [vmem:[%s8421_s4 + $0xa] ss:$0 sm:$0xff] }
 0x5a4   :  { %v6823_v17 = vpop.f32.mrf.mxu1 }
 0x5a5   :  { %v1136_v18 = vadd.f32 %v1134_v16, %v7569_v19 }
 0x5a6   :  { %v1130_v20 = vpop.f32.mrf.mxu1 }
 0x5a7   :  { %v1135_v21 = vmul.f32 0.35355338, %v1130_v20  ;;  %v1138_v22 = vsel %vm392_vm6, %v1136_v18, -inf }
 0x5a8   :  { %1139 = vmax.xlane.f32.xlu0 %v1138_v22  ;;  %v6828_v23 = vpop.f32.mrf.mxu1 }
 0x5a9   :  { %v1137_v24 = vadd.f32 %v1135_v21, %v7567_v15 }
 0x5ab   :  { %v1141_v25 = vsel %vm392_vm6, %v1137_v24, -inf }
 0x5ac   :  { %1142 = vmax.xlane.f32.xlu1 %v1141_v25 }
 0x631   :  { %v1140_v26 = vpop.xlane.xlu0 %1139 }
 0x632   :  { %v1144_v27 = vsub.f32 %v1136_v18, %v1140_v26 }
 0x634   :  { %v1146_v28 = vmul.f32 1.442695, %v1144_v27 }
 0x635   :  { %v1143_v29 = vpop.xlane.xlu1 %1142 }
 0x636   :  { %7276 = vpow2.f32 %v1146_v28  ;;  %v1145_v30 = vsub.f32 %v1137_v24, %v1143_v29 }
 0x638   :  { %v1148_v31 = vmul.f32 1.442695, %v1145_v30 }
 0x63a   :  { %7278 = vpow2.f32 %v1148_v31 }
 0x643   :  { %v7277_v32 = vpop.eup %7276 }
 0x644   :  { %v1150_v33 = vsel %vm392_vm6, %v7277_v32, 0.0 }
 0x645   :  { %1151 = vadd.xlane.f32.xlu0 %v1150_v33 }
 0x647   :  { %v7279_v34 = vpop.eup %7278 }
 0x648   :  { %v1153_v35 = vsel %vm392_vm6, %v7279_v34, 0.0 }
 0x649   :  { %1154 = vadd.xlane.f32.xlu1 %v1153_v35 }
 0x6ce   :  { %v1152_v37 = vpop.xlane.xlu0 %1151 }
 0x6cf   :  { %7280 = vrcp.f32 %v1152_v37 }
 0x6d2   :  { %v1155_v38 = vpop.xlane.xlu1 %1154 }
 0x6d3   :  { %7282 = vrcp.f32 %v1155_v38 }
 0x6dc   :  { %v7281_v39 = vpop.eup %7280 }
 0x6dd   :  { %v1157_v40 = vmul.f32 %v7281_v39, %v7277_v32 }
 0x6df   :  { %6832 = vmatmul.mubr.msk.f32.vlgmr.msra.gmra.mxu0 %vm392_vm6, %v1157_v40 }
 0x6e0   :  { %v7283_v41 = vpop.eup %7282  ;;  %6840 = vmatpush3.msra.mxu0 %v6223_v47 }
 0x6e1   :  { %v1159_v42 = vmul.f32 %v7283_v41, %v7279_v34  ;;  %6849 = vmatprep.subr.mxu0 %v6231_v48 }
 0x6e3   :  { %6837 = vmatmul.mubr.msk.f32.vlgmr.msra.gmra.mxu1 %vm392_vm6, %v1159_v42  ;;  %v6264_v42 = vld [vmem:[%s8418_s3 + $0x78] sm:$0xff] }
 0x6e4   :  { %6846 = vmatprep.mubr.msk.f32.mxu1 %vm392_vm6, %v7635_v58  ;;  %6845 = vmatpush3.msra.mxu1 %v717_v36  ;;  %v6228_v58 = vld [vmem:[%s8418_s3 + $0x40] sm:$0xff] }
 0x6e5   :  { %6860 = vmatprep.subr.mxu1 %v6239_v43 }
 0x6e7   :  { %6847 = vmatmul.mubr.msk.f32.vlgmr.msra.gmra.mxu1 %vm392_vm6, %v7633_v56  ;;  %v6229_v56 = vld [vmem:[%s8418_s3 + $0x48] sm:$0xff] }
 0x6e8   :  { %6861 = vmatpush3.msra.mxu1 %v6239_v43  ;;  %6868 = vmatprep.mubr.msk.f32.mxu1 %vm65_vm0, %v7511_v50 }
 0x6e9   :  { %6862 = vmatprep.subr.mxu1 %v6238_v44 }
 0x6ea   :  { %6863 = vmatpush3.msra.mxu1 %v6238_v44 }
 0x6eb   :  { %6864 = vmatprep.subr.mxu1 %v6237_v45 }
 0x6ec   :  { %6865 = vmatpush3.msra.mxu1 %v6237_v45 }
 0x6ed   :  { %6866 = vmatprep.subr.mxu1 %v6236_v46 }
 0x6ee   :  { %6867 = vmatpush3.msra.mxu1 %v6236_v46 }
 0x6ef   :  { %6869 = vmatmul.mubr.msk.f32.vlgmr.msra.gmra.mxu1 %vm65_vm0, %v7517_v53  ;;  %6882 = vmatprep.subr.mxu1 %v7364_v57 }
 0x6f0   :  { %6884 = vmatprep.mubr.msk.f32.mxu1 %vm7365_vm5, %v7364_v57 }
 0x79f   :  { %v1229_v49 = vpop.f32.mrf.mxu0 }
 0x7a0   :  { %6841 = vmatprep.mubr.msk.f32.mxu0 %vm392_vm6, %v1229_v49  ;;  %v6263_v49 = vld [vmem:[%s8418_s3 + $0x70] sm:$0xff] }
 0x7a1   :  { %v6833_v51 = vpop.f32.mrf.mxu0 }
 0x7a2   :  { %v6262_v51 = vld [vmem:[%s8418_s3 + $0x68] sm:$0xff] }
 0x7a3   :  { %v1302_v52 = vpop.f32.mrf.mxu1 }
 0x7a4   :  { %6842 = vmatmul.mubr.msk.f32.vlgmr.msra.gmra.mxu0 %vm392_vm6, %v1302_v52  ;;  %v6261_v52 = vld [vmem:[%s8418_s3 + $0x60] sm:$0xff] }
 0x7a5   :  { %6850 = vmatpush3.msra.mxu0 %v6231_v48  ;;  %v6838_v55 = vpop.f32.mrf.mxu1  ;;  %6857 = vmatprep.mubr.msk.f32.mxu0 %vm65_vm0, %v7511_v50 }
 0x7a6   :  { %6851 = vmatprep.subr.mxu0 %v6230_v54  ;;  %v6279_v55 = vld [vmem:[%s8418_s3 + $0x170] sm:$0xff] }
 0x7a7   :  { %6852 = vmatpush3.msra.mxu0 %v6230_v54  ;;  %v7709_v59 = vpop.f32.mrf.mxu1  ;;  %v6280_v54 = vld [vmem:[%s8418_s3 + $0x178] sm:$0xff] }
 0x7a8   :  { %6853 = vmatprep.subr.mxu0 %v6229_v56 }
 0x7a9   :  { %6854 = vmatpush3.msra.mxu0 %v6229_v56  ;;  %v7719_v62 = vpop.f32.mrf.mxu1  ;;  %v6278_v56 = vld [vmem:[%s8418_s3 + $0x168] sm:$0xff] }
 0x7aa   :  { %6855 = vmatprep.subr.mxu0 %v6228_v58 }
 0x7ab   :  { %6856 = vmatpush3.msra.mxu0 %v6228_v58  ;;  %v6277_v58 = vld [vmem:[%s8418_s3 + $0x160] sm:$0xff] }
 0x7ac   :  { %6858 = vmatmul.mubr.msk.f32.vlgmr.msra.gmra.mxu0 %vm65_vm0, %v7517_v53  ;;  %6871 = vmatprep.subr.mxu0 %v6247_v60 }
 0x7ad   :  { %6872 = vmatpush3.msra.mxu0 %v6247_v60  ;;  %6879 = vmatprep.mubr.msk.f32.mxu0 %vm65_vm0, %v7511_v50  ;;  %v6258_v60 = vld [vmem:[%s8423_s5 + $0x10] sm:$0xff] }
 0x7ae   :  { %6873 = vmatprep.subr.mxu0 %v6246_v61 }
 0x7af   :  { %v6870_v1 = vpop.f32.mrf.mxu1  ;;  %6874 = vmatpush3.msra.mxu0 %v6246_v61  ;;  %v6272_v61 = vld [vmem:[%s8418_s3 + $0xf8] sm:$0xff] }
 0x7b0   :  { %v1643_v3 = vadd.f32 %v6870_v1, %v6241_v63  ;;  %6875 = vmatprep.subr.mxu0 %v6245_v0 }
 0x7b1   :  { %v1637_v4 = vpop.f32.mrf.mxu1  ;;  %6876 = vmatpush3.msra.mxu0 %v6245_v0 }
 0x7b2   :  { %v1638_v7 = vadd.f32 %v6241_v63, %v1637_v4  ;;  %6877 = vmatprep.subr.mxu0 %v6244_v2  ;;  %v6270_v4 = vld [vmem:[%s8418_s3 + $0xe8] sm:$0xff] }
 0x7b3   :  { %6878 = vmatpush3.msra.mxu0 %v6244_v2  ;;  %v6271_v2 = vld [vmem:[%s8418_s3 + $0xf0] sm:$0xff] }
 0x7b4   :  { %6880 = vmatmul.mubr.msk.f32.vlgmr.msra.gmra.mxu0 %vm65_vm0, %v7517_v53  ;;  %6883 = vmatpush3.xpose.msk.msra.mxu1 %vm392_vm6, %v1638_v7  ;;  %v6269_v7 = vld [vmem:[%s8418_s3 + $0xe0] sm:$0xff] }
 0x7b5   :  { %6887 = vmatprep.subr.mxu1 %v7364_v57  ;;  %6892 = vmatprep.subr.mxu0 %v7364_v57 }
 0x7b6   :  { %6894 = vmatprep.mubr.msk.f32.mxu0 %vm7365_vm5, %v7364_v57 }
 0x864   :  { %v7739_v8 = vpop.f32.mrf.mxu0 }
 0x866   :  { %v7741_v9 = vpop.f32.mrf.mxu0 }
 0x86c   :  { %v6859_v10 = vpop.f32.mrf.mxu0 }
 0x86d   :  { %v1555_v16 = vadd.f32 %v6859_v10, %v6233_v11 }
 0x86e   :  { %v1549_v12 = vpop.f32.mrf.mxu0 }
 0x86f   :  { %v1550_v13 = vadd.f32 %v6233_v11, %v1549_v12  ;;  %v6282_v11 = vld [vmem:[%s8421_s4 + $0xb] ss:$0 sm:$0xff] }
 0x871   :  { %6885 = vmatmul.mubr.msk.f32.vlgmr.msra.gmra.mxu1 %vm392_vm6, %v1550_v13 }
 0x872   :  { %6888 = vmatpush3.xpose.msk.msra.mxu1 %vm392_vm6, %v1643_v3  ;;  %6889 = vmatprep.mubr.msk.f32.mxu1 %vm7365_vm5, %v7364_v57 }
 0x873   :  { %6897 = vmatprep.subr.mxu1 %v7364_v57 }
 0x874   :  { %v6881_v17 = vpop.f32.mrf.mxu0 }
 0x875   :  { %v1731_v18 = vadd.f32 %v6881_v17, %v6249_v14  ;;  %6890 = vmatmul.mubr.msk.f32.vlgmr.msra.gmra.mxu1 %vm392_vm6, %v1555_v16  ;;  %v1467_v17 = vadd.f32 %v7709_v59, %v7739_v8  ;;  %v6266_v59 = vld [vmem:[%s8421_s4 + $0x3] ss:$0 sm:$0xff] }
 0x876   :  { %v1725_v20 = vpop.f32.mrf.mxu0  ;;  %6899 = vmatprep.mubr.msk.f32.mxu1 %vm7365_vm5, %v7364_v57 }
 0x877   :  { %v1726_v21 = vadd.f32 %v6249_v14, %v1725_v20  ;;  %6898 = vmatpush3.msra.mxu1 %v1731_v18  ;;  %v1462_v18 = vadd.f32 %v7719_v62, %v7741_v9 }
 0x878   :  { %6907 = vmatprep.subr.mxu1 %v6264_v42 }
 0x879   :  { %6893 = vmatpush3.msra.mxu0 %v1726_v21 }
 0x87a   :  { %6902 = vmatprep.subr.mxu0 %v6258_v60 }
 0x931   :  { %v1806_v22 = vpop.f32.mrf.mxu1 }
 0x932   :  { %v1886_v23 = vmul.f32 0.35355338, %v1806_v22 }
 0x933   :  { %v6886_v24 = vpop.f32.mrf.mxu1 }
 0x934   :  { %v1888_v25 = vadd.f32 %v1886_v23, %v7569_v19  ;;  %v6274_v24 = vld [vmem:[%s8421_s4 + $0x7] ss:$0 sm:$0xff] }
 0x935   :  { %v1882_v26 = vpop.f32.mrf.mxu1 }
 0x936   :  { %v1887_v27 = vmul.f32 0.35355338, %v1882_v26  ;;  %v1890_v28 = vsel %vm392_vm6, %v1888_v25, -inf }
 0x937   :  { %1891 = vmax.xlane.f32.xlu0 %v1890_v28  ;;  %v6891_v29 = vpop.f32.mrf.mxu1 }
 0x938   :  { %v1889_v30 = vadd.f32 %v1887_v27, %v7567_v15 }
 0x93a   :  { %v1893_v31 = vsel %vm392_vm6, %v1889_v30, -inf }
 0x93b   :  { %1894 = vmax.xlane.f32.xlu1 %v1893_v31 }
 0x9c0   :  { %v1892_v32 = vpop.xlane.xlu0 %1891 }
 0x9c1   :  { %v1896_v33 = vsub.f32 %v1888_v25, %v1892_v32 }
 0x9c3   :  { %v1898_v34 = vmul.f32 1.442695, %v1896_v33 }
 0x9c4   :  { %v1895_v35 = vpop.xlane.xlu1 %1894 }
 0x9c5   :  { %7284 = vpow2.f32 %v1898_v34  ;;  %v1897_v36 = vsub.f32 %v1889_v30, %v1895_v35 }
 0x9c7   :  { %v1900_v37 = vmul.f32 1.442695, %v1897_v36 }
 0x9c9   :  { %7286 = vpow2.f32 %v1900_v37 }
 0x9d2   :  { %v7285_v38 = vpop.eup %7284 }
 0x9d3   :  { %v1902_v39 = vsel %vm392_vm6, %v7285_v38, 0.0 }
 0x9d4   :  { %1903 = vadd.xlane.f32.xlu0 %v1902_v39 }
 0x9d6   :  { %v7287_v40 = vpop.eup %7286 }
 0x9d7   :  { %v1905_v41 = vsel %vm392_vm6, %v7287_v40, 0.0 }
 0x9d8   :  { %1906 = vadd.xlane.f32.xlu1 %v1905_v41 }
 0xa5d   :  { %v1904_v43 = vpop.xlane.xlu0 %1903 }
 0xa5e   :  { %7288 = vrcp.f32 %v1904_v43 }
 0xa61   :  { %v1907_v44 = vpop.xlane.xlu1 %1906 }
 0xa62   :  { %7290 = vrcp.f32 %v1907_v44 }
 0xa6b   :  { %v7289_v45 = vpop.eup %7288 }
 0xa6c   :  { %v1909_v46 = vmul.f32 %v7289_v45, %v7285_v38 }
 0xa6e   :  { %6895 = vmatmul.mubr.msk.f32.vlgmr.msra.gmra.mxu0 %vm392_vm6, %v1909_v46 }
 0xa6f   :  { %v7291_v47 = vpop.eup %7290  ;;  %6903 = vmatpush3.msra.mxu0 %v6258_v60 }
 0xa70   :  { %v1911_v48 = vmul.f32 %v7291_v47, %v7287_v40  ;;  %6918 = vmatprep.subr.mxu0 %v6272_v61 }
 0xa72   :  { %6900 = vmatmul.mubr.msk.f32.vlgmr.msra.gmra.mxu1 %vm392_vm6, %v1911_v48 }
 0xa73   :  { %6908 = vmatpush3.msra.mxu1 %v6264_v42  ;;  %6915 = vmatprep.mubr.msk.f32.mxu1 %vm65_vm0, %v7511_v50 }
 0xa74   :  { %6909 = vmatprep.subr.mxu1 %v6263_v49 }
 0xa75   :  { %6910 = vmatpush3.msra.mxu1 %v6263_v49 }
 0xa76   :  { %6911 = vmatprep.subr.mxu1 %v6262_v51 }
 0xa77   :  { %6912 = vmatpush3.msra.mxu1 %v6262_v51 }
 0xa78   :  { %6913 = vmatprep.subr.mxu1 %v6261_v52 }
 0xa79   :  { %6914 = vmatpush3.msra.mxu1 %v6261_v52 }
 0xa7a   :  { %6916 = vmatmul.mubr.msk.f32.vlgmr.msra.gmra.mxu1 %vm65_vm0, %v7517_v53  ;;  %6929 = vmatprep.subr.mxu1 %v6280_v54 }
 0xa7b   :  { %6930 = vmatpush3.msra.mxu1 %v6280_v54  ;;  %6937 = vmatprep.mubr.msk.f32.mxu1 %vm65_vm0, %v7511_v50 }
 0xa7c   :  { %6931 = vmatprep.subr.mxu1 %v6279_v55 }
 0xa7d   :  { %6932 = vmatpush3.msra.mxu1 %v6279_v55  ;;  %v6291_v55 = vld [vmem:[%s8423_s5 + $0x18] sm:$0xff] }
 0xa7e   :  { %6933 = vmatprep.subr.mxu1 %v6278_v56 }
 0xa7f   :  { %6934 = vmatpush3.msra.mxu1 %v6278_v56 }
 0xa80   :  { %6935 = vmatprep.subr.mxu1 %v6277_v58 }
 0xa81   :  { %6936 = vmatpush3.msra.mxu1 %v6277_v58 }
 0xa82   :  { %6938 = vmatmul.mubr.msk.f32.vlgmr.msra.gmra.mxu1 %vm65_vm0, %v7517_v53  ;;  %6950 = vmatprep.subr.mxu1 %v7364_v57 }
 0xa83   :  { %6952 = vmatprep.mubr.msk.f32.mxu1 %vm7365_vm5, %v7364_v57 }
 0xb2e   :  { %v1981_v63 = vpop.f32.mrf.mxu0 }
 0xb2f   :  { %6904 = vmatprep.mubr.msk.f32.mxu0 %vm392_vm6, %v1981_v63 }
 0xb30   :  { %v6896_v0 = vpop.f32.mrf.mxu0 }
 0xb31   :  { %v6294_v0 = vld [vmem:[%s8424_s6] ss:$0 sm:$0xff] }
 0xb32   :  { %v2054_v1 = vpop.f32.mrf.mxu1 }
 0xb33   :  { %6905 = vmatmul.mubr.msk.f32.vlgmr.msra.gmra.mxu0 %vm392_vm6, %v2054_v1 }
 0xb34   :  { %6919 = vmatpush3.msra.mxu0 %v6272_v61  ;;  %v6901_v3 = vpop.f32.mrf.mxu1  ;;  %6926 = vmatprep.mubr.msk.f32.mxu0 %vm65_vm0, %v7511_v50 }
 0xb35   :  { %6920 = vmatprep.subr.mxu0 %v6271_v2 }
 0xb36   :  { %6921 = vmatpush3.msra.mxu0 %v6271_v2 }
 0xb37   :  { %6922 = vmatprep.subr.mxu0 %v6270_v4 }
 0xb38   :  { %6923 = vmatpush3.msra.mxu0 %v6270_v4 }
 0xb39   :  { %6924 = vmatprep.subr.mxu0 %v6269_v7 }
 0xb3a   :  { %6925 = vmatpush3.msra.mxu0 %v6269_v7  ;;  %v6917_v50 = vpop.f32.mrf.mxu1 }
 0xb3b   :  { %6927 = vmatmul.mubr.msk.f32.vlgmr.msra.gmra.mxu0 %vm65_vm0, %v7517_v53  ;;  %6940 = vmatprep.subr.mxu0 %v7364_v57  ;;  %v2228_v9 = vadd.f32 %v6917_v50, %v6266_v59 }
 0xb3c   :  { %6942 = vmatprep.mubr.msk.f32.mxu0 %vm7365_vm5, %v7364_v57  ;;  %v2222_v10 = vpop.f32.mrf.mxu1 }
 0xb3d   :  { %v2223_v8 = vadd.f32 %v6266_v59, %v2222_v10  ;;  %v2987_v59 = vld [vmem:[%s8426_s9 + $0x30] sm:$0xff] }
 0xb42   :  { %v6939_v12 = vpop.f32.mrf.mxu1 }
 0xb43   :  { %v2404_v13 = vadd.f32 %v6939_v12, %v6282_v11 }
 0xb44   :  { %v2398_v14 = vpop.f32.mrf.mxu1 }
 0xb45   :  { %v2399_v16 = vadd.f32 %v6282_v11, %v2398_v14 }
 0xb47   :  { %6951 = vmatpush3.msra.mxu1 %v2399_v16 }
 0xb48   :  { %6960 = vmatprep.subr.mxu1 %v6291_v55 }
 0xbf3   :  { %v6906_v53 = vpop.f32.mrf.mxu0 }
 0xbf4   :  { %v7831_v20 = vadd.f32 %v6906_v53, %v1467_v17 }
 0xbf5   :  { %v2132_v21 = vpop.f32.mrf.mxu0 }
 0xbf6   :  { %v7833_v22 = vadd.f32 %v2132_v21, %v1462_v18 }
 0xbfb   :  { %v6928_v23 = vpop.f32.mrf.mxu0 }
 0xbfc   :  { %v2316_v62 = vadd.f32 %v6928_v23, %v6274_v24  ;;  %v2889_v23 = vld [vmem:[%s8425_s7 + $0x10] sm:$0xff] }
 0xbfd   :  { %v2310_v25 = vpop.f32.mrf.mxu0 }
 0xbfe   :  { %v2311_v26 = vadd.f32 %v6274_v24, %v2310_v25  ;;  %v2888_v24 = vld [vmem:[%s8425_s7 + $0x8] sm:$0xff]  ;;  %v2887_v25 = vld [vmem:[%s8425_s7] sm:$0xff] }
 0xc00   :  { %6941 = vmatpush3.xpose.msk.msra.mxu0 %vm392_vm6, %v2311_v26  ;;  %v2988_v26 = vld [vmem:[%s8426_s9 + $0x38] sm:$0xff] }
 0xc01   :  { %6945 = vmatprep.subr.mxu0 %v7364_v57 }
 0xc03   :  { %6943 = vmatmul.mubr.msk.f32.vlgmr.msra.gmra.mxu0 %vm392_vm6, %v2223_v8  ;;  %v2986_v8 = vld [vmem:[%s8426_s9 + $0x28] sm:$0xff] }
 0xc04   :  { %6946 = vmatpush3.xpose.msk.msra.mxu0 %vm392_vm6, %v2316_v62  ;;  %6947 = vmatprep.mubr.msk.f32.mxu0 %vm7365_vm5, %v7364_v57  ;;  %v2985_v62 = vld [vmem:[%s8426_s9 + $0x20] sm:$0xff] }
 0xc05   :  { %6955 = vmatprep.subr.mxu0 %v7364_v57 }
 0xc07   :  { %6948 = vmatmul.mubr.msk.f32.vlgmr.msra.gmra.mxu0 %vm392_vm6, %v2228_v9 }
 0xc08   :  { %6956 = vmatpush3.msra.mxu0 %v2404_v13  ;;  %6957 = vmatprep.mubr.msk.f32.mxu0 %vm7365_vm5, %v7364_v57 }
 0xcc3   :  { %v2479_v27 = vpop.f32.mrf.mxu0 }
 0xcc4   :  { %v2559_v28 = vmul.f32 0.35355338, %v2479_v27 }
 0xcc5   :  { %v6944_v29 = vpop.f32.mrf.mxu0 }
 0xcc6   :  { %v2561_v30 = vadd.f32 %v2559_v28, %v7569_v19 }
 0xcc7   :  { %v2555_v31 = vpop.f32.mrf.mxu0 }
 0xcc8   :  { %v2560_v32 = vmul.f32 0.35355338, %v2555_v31  ;;  %v2563_v33 = vsel %vm392_vm6, %v2561_v30, -inf }
 0xcc9   :  { %2564 = vmax.xlane.f32.xlu0 %v2563_v33  ;;  %v6949_v34 = vpop.f32.mrf.mxu0 }
 0xcca   :  { %v2562_v35 = vadd.f32 %v2560_v32, %v7567_v15 }
 0xccc   :  { %v2566_v36 = vsel %vm392_vm6, %v2562_v35, -inf }
 0xccd   :  { %2567 = vmax.xlane.f32.xlu1 %v2566_v36 }
 0xd52   :  { %v2565_v37 = vpop.xlane.xlu0 %2564 }
 0xd53   :  { %v2569_v38 = vsub.f32 %v2561_v30, %v2565_v37 }
 0xd55   :  { %v2571_v39 = vmul.f32 1.442695, %v2569_v38 }
 0xd56   :  { %v2568_v40 = vpop.xlane.xlu1 %2567 }
 0xd57   :  { %7292 = vpow2.f32 %v2571_v39  ;;  %v2570_v41 = vsub.f32 %v2562_v35, %v2568_v40 }
 0xd59   :  { %v2573_v42 = vmul.f32 1.442695, %v2570_v41 }
 0xd5b   :  { %7294 = vpow2.f32 %v2573_v42  ;;  %v6297_v42 = vld [vmem:[%s8419_s11 + $0x1] ss:$0 sm:$0xff] }
 0xd64   :  { %v7293_v43 = vpop.eup %7292 }
 0xd65   :  { %v2575_v44 = vsel %vm392_vm6, %v7293_v43, 0.0 }
 0xd66   :  { %2576 = vadd.xlane.f32.xlu0 %v2575_v44 }
 0xd68   :  { %v7295_v45 = vpop.eup %7294 }
 0xd69   :  { %v2578_v46 = vsel %vm392_vm6, %v7295_v45, 0.0 }
 0xd6a   :  { %2579 = vadd.xlane.f32.xlu1 %v2578_v46 }
 0xdef   :  { %v2577_v47 = vpop.xlane.xlu0 %2576 }
 0xdf0   :  { %7296 = vrcp.f32 %v2577_v47 }
 0xdf3   :  { %v2580_v48 = vpop.xlane.xlu1 %2579 }
 0xdf4   :  { %7298 = vrcp.f32 %v2580_v48  ;;  %v6298_v48 = vld [vmem:[%s8420_s12 + $0x1] ss:$0 sm:$0xff] }
 0xdfd   :  { %v7297_v49 = vpop.eup %7296 }
 0xdfe   :  { %v2582_v51 = vmul.f32 %v7297_v49, %v7293_v43 }
 0xe00   :  { %6953 = vmatmul.mubr.msk.f32.vlgmr.msra.gmra.mxu1 %vm392_vm6, %v2582_v51 }
 0xe01   :  { %v7299_v52 = vpop.eup %7298  ;;  %6961 = vmatpush3.msra.mxu1 %v6291_v55  ;;  %v2983_v55 = vld [vmem:[%s8426_s9 + $0x10] sm:$0xff] }
 0xe02   :  { %v2584_v54 = vmul.f32 %v7299_v52, %v7295_v45  ;;  %6976 = vmatprep.subr.mxu1 %v2988_v26 }
 0xe04   :  { %6958 = vmatmul.mubr.msk.f32.vlgmr.msra.gmra.mxu0 %vm392_vm6, %v2584_v54  ;;  %v2984_v54 = vld [vmem:[%s8426_s9 + $0x18] sm:$0xff] }
 0xec0   :  { %v2654_v56 = vpop.f32.mrf.mxu1 }
 0xec1   :  { %6962 = vmatprep.mubr.msk.f32.mxu1 %vm392_vm6, %v2654_v56  ;;  %v2982_v56 = vld [vmem:[%s8426_s9 + $0x8] sm:$0xff] }
 0xec2   :  { %v6954_v58 = vpop.f32.mrf.mxu1 }
 0xec3   :  { %v2981_v58 = vld [vmem:[%s8426_s9] sm:$0xff] }
 0xec4   :  { %v2727_v60 = vpop.f32.mrf.mxu0 }
 0xec5   :  { %6963 = vmatmul.mubr.msk.f32.vlgmr.msra.gmra.mxu1 %vm392_vm6, %v2727_v60  ;;  %v6299_v60 = vld [vmem:[%s8427_s8] ss:$0 sm:$0xff] }
 0xec6   :  { %v6959_v61 = vpop.f32.mrf.mxu0  ;;  %6977 = vmatpush3.msra.mxu1 %v2988_v26  ;;  %v6328_v26 = vld [vmem:[%s8418_s3 + $0x298] sm:$0xff] }
 0xec7   :  { %6978 = vmatprep.subr.mxu1 %v2987_v59 }
 0xec8   :  { %6979 = vmatpush3.msra.mxu1 %v2987_v59  ;;  %v6311_v59 = vld [vmem:[%s8418_s3 + $0x190] sm:$0xff] }
 0xec9   :  { %6980 = vmatprep.subr.mxu1 %v2986_v8 }
 0xeca   :  { %6981 = vmatpush3.msra.mxu1 %v2986_v8  ;;  %v6327_v8 = vld [vmem:[%s8418_s3 + $0x290] sm:$0xff] }
 0xecb   :  { %6982 = vmatprep.subr.mxu1 %v2985_v62 }
 0xecc   :  { %6983 = vmatpush3.msra.mxu1 %v2985_v62  ;;  %v6310_v62 = vld [vmem:[%s8418_s3 + $0x188] sm:$0xff] }
 0xecd   :  { %6984 = vmatprep.subr.mxu1 %v2984_v54 }
 0xece   :  { %6985 = vmatpush3.msra.mxu1 %v2984_v54  ;;  %v6308_v54 = vld [vmem:[%s8420_s12 + $0x2] ss:$0 sm:$0xff] }
 0xecf   :  { %6986 = vmatprep.subr.mxu1 %v2983_v55 }
 0xed0   :  { %6987 = vmatpush3.msra.mxu1 %v2983_v55 }
 0xed1   :  { %6988 = vmatprep.subr.mxu1 %v2982_v56 }
 0xed2   :  { %6989 = vmatpush3.msra.mxu1 %v2982_v56 }
 0xed3   :  { %6990 = vmatprep.subr.mxu1 %v2981_v58 }
 0xed4   :  { %6991 = vmatpush3.msra.mxu1 %v2981_v58 }
 0xed5   :  { %7017 = vmatprep.subr.mxu1 %v6328_v26 }
 0xf85   :  { %v6964_v63 = vpop.f32.mrf.mxu1 }
 0xf86   :  { %v2815_v1 = vadd.f32 %v6964_v63, %v7831_v20 }
 0xf87   :  { %v2805_v2 = vpop.f32.mrf.mxu1 }
 0xf88   :  { %v2824_v3 = vadd.f32 %v6294_v0, %v2815_v1  ;;  %v2814_v4 = vadd.f32 %v2805_v2, %v7833_v22  ;;  %v2890_v22 = vld [vmem:[%s8425_s7 + $0x18] sm:$0xff] }
 0xf89   :  { %6965 = vmatprep.subr.mxu0 %v2890_v22 }
 0xf8a   :  { %v7870_v7 = vadd.f32 %v2824_v3, %v7458_v6  ;;  %v2823_v50 = vadd.f32 %v6294_v0, %v2814_v4  ;;  %6966 = vmatpush3.msra.mxu0 %v2890_v22  ;;  %v6302_v4 = vld [vmem:[%s8428_s10] ss:$0 sm:$0xff] }
 0xf8b   :  { %6967 = vmatprep.subr.mxu0 %v2889_v23 }
 0xf8c   :  { %v7873_v10 = vadd.f32 %v2823_v50, %v7456_v5  ;;  %v2834_v11 = vsel %vm65_vm0, %v7870_v7, 0.0  ;;  %6968 = vmatpush3.msra.mxu0 %v2889_v23 }
 0xf8d   :  { %2835 = vadd.xlane.f32.xlu1 %v2834_v11  ;;  %6969 = vmatprep.subr.mxu0 %v2888_v24 }
 0xf8e   :  { %v2831_v12 = vsel %vm65_vm0, %v7873_v10, 0.0  ;;  %6970 = vmatpush3.msra.mxu0 %v2888_v24 }
 0xf8f   :  { %2832 = vadd.xlane.f32.xlu0 %v2831_v12  ;;  %6971 = vmatprep.subr.mxu0 %v2887_v25 }
 0xf90   :  { %6972 = vmatpush3.msra.mxu0 %v2887_v25  ;;  %v6312_v25 = vld [vmem:[%s8418_s3 + $0x198] sm:$0xff] }
 0xf91   :  { %6995 = vmatprep.subr.mxu0 %v6312_v25 }
0x1016   :  { %v2836_v13 = vpop.xlane.xlu1 %2835 }
0x1017   :  { %v2838_v14 = vmul.f32 0.03125, %v2836_v13 }
0x1018   :  { %v2833_v16 = vpop.xlane.xlu0 %2832 }
0x1019   :  { %v2840_v17 = vsub.f32 %v7870_v7, %v2838_v14  ;;  %v2837_v53 = vmul.f32 0.03125, %v2833_v16 }
0x101b   :  { %v2839_v6 = vsub.f32 %v7873_v10, %v2837_v53  ;;  %v2842_v18 = vmul.f32 %v2840_v17, %v2840_v17  ;;  %v2858_v44 = vmul.f32 %v6297_v42, %v2840_v17 }
0x101d   :  { %v2846_v5 = vsel %vm65_vm0, %v2842_v18, 0.0  ;;  %v2841_v20 = vmul.f32 %v2839_v6, %v2839_v6  ;;  %v2857_v45 = vmul.f32 %v6297_v42, %v2839_v6 }
0x101e   :  { %2847 = vadd.xlane.f32.xlu1 %v2846_v5 }
0x101f   :  { %v2843_v21 = vsel %vm65_vm0, %v2841_v20, 0.0 }
0x1020   :  { %2844 = vadd.xlane.f32.xlu0 %v2843_v21 }
0x10a7   :  { %v2848_v9 = vpop.xlane.xlu1 %2847 }
0x10a8   :  { %v2850_v27 = vmul.f32 0.032258064, %v2848_v9  ;;  %v6326_v9 = vld [vmem:[%s8418_s3 + $0x288] sm:$0xff] }
0x10a9   :  { %v2845_v28 = vpop.xlane.xlu0 %2844 }
0x10aa   :  { %7300 = vrsqrt.f32 %v2850_v27  ;;  %v2849_v29 = vmul.f32 0.032258064, %v2845_v28  ;;  %vm2868_vm9 = vcmp.eq.f32.partialorder %v2850_v27, inf  ;;  %v2871_v32 = vand.u32 2147483648, %v2850_v27  ;;  %v6325_v28 = vld [vmem:[%s8418_s3 + $0x280] sm:$0xff] }
0x10ab   :  { %vm2870_vm10 = vcmp.eq.f32.partialorder %v2850_v27, 0.0 }
0x10ac   :  { %7302 = vrsqrt.f32 %v2849_v29  ;;  %vm2861_vm11 = vcmp.eq.f32.partialorder %v2849_v29, inf  ;;  %v2864_v38 = vand.u32 2147483648, %v2849_v29  ;;  %vm2863_vm12 = vcmp.eq.f32.partialorder %v2849_v29, 0.0 }
0x10b7   :  { %v7301_v30 = vpop.eup %7300 }
0x10b8   :  { %v2867_v31 = vmul.f32 %v7301_v30, %v2850_v27 }
0x10b9   :  { %v7303_v33 = vpop.eup %7302 }
0x10ba   :  { %v2869_v34 = vsel %vm2868_vm9, %v2850_v27, %v2867_v31  ;;  %v2860_v36 = vmul.f32 %v7303_v33, %v2849_v29  ;;  %v6309_v27 = vld [vmem:[%s8418_s3 + $0x180] sm:$0xff] }
0x10bb   :  { %v2872_v35 = vsel %vm2870_vm10, %v2871_v32, %v2869_v34 }
0x10bc   :  { %v2874_v37 = vadd.f32 1e-06, %v2872_v35  ;;  %v2862_v39 = vsel %vm2861_vm11, %v2849_v29, %v2860_v36  ;;  %v6320_v29 = vld [vmem:[%s8418_s3 + $0x218] sm:$0xff] }
0x10bd   :  { %v2865_v40 = vsel %vm2863_vm12, %v2864_v38, %v2862_v39 }
0x10be   :  { %7304 = vrcp.f32 %v2874_v37  ;;  %v2873_v41 = vadd.f32 1e-06, %v2865_v40 }
0x10c0   :  { %7306 = vrcp.f32 %v2873_v41 }
0x10cb   :  { %v7305_v43 = vpop.eup %7304 }
0x10cc   :  { %v2878_v47 = vmul.f32 %v7305_v43, %v2858_v44 }
0x10cd   :  { %v7307_v46 = vpop.eup %7306 }
0x10ce   :  { %v2876_v49 = vmul.f32 %v7307_v46, %v2857_v45  ;;  %v2886_v52 = vadd.f32 %v6298_v48, %v2878_v47  ;;  %v6307_v46 = vld [vmem:[%s8419_s11 + $0x2] ss:$0 sm:$0xff] }
0x10d0   :  { %v2885_v51 = vadd.f32 %v6298_v48, %v2876_v49 }
0x10d2   :  { %6973 = vmatprep.mubr.msk.f32.mxu0 %vm65_vm0, %v2885_v51 }
0x10d3   :  { %6974 = vmatmul.mubr.msk.f32.vlgmr.msra.gmra.mxu0 %vm65_vm0, %v2886_v52 }
0x10d4   :  { %6996 = vmatpush3.msra.mxu0 %v6312_v25 }
0x10d5   :  { %6997 = vmatprep.subr.mxu0 %v6311_v59 }
0x10d6   :  { %6998 = vmatpush3.msra.mxu0 %v6311_v59 }
0x10d7   :  { %6999 = vmatprep.subr.mxu0 %v6310_v62 }
0x10d8   :  { %7000 = vmatpush3.msra.mxu0 %v6310_v62 }
0x10d9   :  { %7001 = vmatprep.subr.mxu0 %v6309_v27 }
0x10da   :  { %7002 = vmatpush3.msra.mxu0 %v6309_v27 }
0x10db   :  { %7006 = vmatprep.subr.mxu0 %v6320_v29 }
0x1193   :  { %v6975_v61 = vpop.f32.mrf.mxu0 }
0x1194   :  { %v2976_v63 = vadd.f32 %v6975_v61, %v6299_v60  ;;  %v6318_v61 = vld [vmem:[%s8418_s3 + $0x208] sm:$0xff] }
0x1195   :  { %v2970_v0 = vpop.f32.mrf.mxu0 }
0x1196   :  { %v2971_v1 = vadd.f32 %v6299_v60, %v2970_v0  ;;  %v2980_v3 = vmax.f32 %v2976_v63, 0.0  ;;  %v6319_v60 = vld [vmem:[%s8418_s3 + $0x210] sm:$0xff]  ;;  %v6317_v63 = vld [vmem:[%s8418_s3 + $0x200] sm:$0xff] }
0x1198   :  { %v2979_v2 = vmax.f32 %v2971_v1, 0.0 }
0x119a   :  { %6992 = vmatprep.mubr.msk.f32.mxu1 %vm2996_vm13, %v2979_v2  ;;  %v6322_v2 = vld [vmem:[%s8421_s4 + $0x10] ss:$0 sm:$0xff] }
0x119b   :  { %6993 = vmatmul.mubr.msk.f32.vlgmr.msra.gmra.mxu1 %vm2996_vm13, %v2980_v3 }
0x119c   :  { %7018 = vmatpush3.msra.mxu1 %v6328_v26 }
0x119d   :  { %7019 = vmatprep.subr.mxu1 %v6327_v8 }
0x119e   :  { %7020 = vmatpush3.msra.mxu1 %v6327_v8 }
0x119f   :  { %7021 = vmatprep.subr.mxu1 %v6326_v9 }
0x11a0   :  { %7022 = vmatpush3.msra.mxu1 %v6326_v9 }
0x11a1   :  { %7023 = vmatprep.subr.mxu1 %v6325_v28 }
0x11a2   :  { %7024 = vmatpush3.msra.mxu1 %v6325_v28 }
0x11a3   :  { %7033 = vmatprep.subr.mxu1 %v7364_v57 }
0x125b   :  { %v6994_v50 = vpop.f32.mrf.mxu1 }
0x125c   :  { %v3075_v11 = vadd.f32 %v6994_v50, %v6302_v4  ;;  %v6314_v50 = vld [vmem:[%s8421_s4 + $0xc] ss:$0 sm:$0xff] }
0x125d   :  { %v3069_v12 = vpop.f32.mrf.mxu1 }
0x125e   :  { %v7936_v13 = vadd.f32 %v3075_v11, %v7870_v7  ;;  %v3070_v14 = vadd.f32 %v6302_v4, %v3069_v12  ;;  %v6330_v12 = vld [vmem:[%s8421_s4 + $0x14] ss:$0 sm:$0xff] }
0x1260   :  { %v7939_v16 = vadd.f32 %v3070_v14, %v7873_v10  ;;  %v3087_v17 = vsel %vm65_vm0, %v7936_v13, 0.0 }
0x1261   :  { %3088 = vadd.xlane.f32.xlu1 %v3087_v17 }
0x1262   :  { %v3084_v53 = vsel %vm65_vm0, %v7939_v16, 0.0 }
0x1263   :  { %3085 = vadd.xlane.f32.xlu0 %v3084_v53 }
0x12ea   :  { %v3089_v6 = vpop.xlane.xlu1 %3088 }
0x12eb   :  { %v3091_v18 = vmul.f32 0.03125, %v3089_v6 }
0x12ec   :  { %v3086_v5 = vpop.xlane.xlu0 %3085 }
0x12ed   :  { %v3093_v20 = vsub.f32 %v7936_v13, %v3091_v18  ;;  %v3090_v21 = vmul.f32 0.03125, %v3086_v5 }
0x12ef   :  { %v3092_v7 = vsub.f32 %v7939_v16, %v3090_v21  ;;  %v3095_v22 = vmul.f32 %v3093_v20, %v3093_v20  ;;  %v3111_v48 = vmul.f32 %v6307_v46, %v3093_v20 }
0x12f1   :  { %v3099_v10 = vsel %vm65_vm0, %v3095_v22, 0.0  ;;  %v3094_v23 = vmul.f32 %v3092_v7, %v3092_v7  ;;  %v3110_v49 = vmul.f32 %v6307_v46, %v3092_v7  ;;  %v6341_v46 = vld [vmem:[%s8418_s3 + $0x1a8] sm:$0xff] }
0x12f2   :  { %3100 = vadd.xlane.f32.xlu1 %v3099_v10 }
0x12f3   :  { %v3096_v24 = vsel %vm65_vm0, %v3094_v23, 0.0 }
0x12f4   :  { %3097 = vadd.xlane.f32.xlu0 %v3096_v24 }
0x137b   :  { %v3101_v30 = vpop.xlane.xlu1 %3100 }
0x137c   :  { %v3103_v31 = vmul.f32 0.032258064, %v3101_v30 }
0x137d   :  { %v3098_v32 = vpop.xlane.xlu0 %3097 }
0x137e   :  { %7308 = vrsqrt.f32 %v3103_v31  ;;  %v3102_v33 = vmul.f32 0.032258064, %v3098_v32  ;;  %vm3121_vm14 = vcmp.eq.f32.partialorder %v3103_v31, inf  ;;  %v3124_v36 = vand.u32 2147483648, %v3103_v31 }
0x137f   :  { %vm3123_vm15 = vcmp.eq.f32.partialorder %v3103_v31, 0.0 }
0x1380   :  { %7310 = vrsqrt.f32 %v3102_v33  ;;  %vm3114_vm1 = vcmp.eq.f32.partialorder %v3102_v33, inf  ;;  %v3117_v42 = vand.u32 2147483648, %v3102_v33  ;;  %vm3116_vm2 = vcmp.eq.f32.partialorder %v3102_v33, 0.0 }
0x138b   :  { %v7309_v34 = vpop.eup %7308 }
0x138c   :  { %v3120_v35 = vmul.f32 %v7309_v34, %v3103_v31 }
0x138d   :  { %v7311_v37 = vpop.eup %7310 }
0x138e   :  { %v3122_v38 = vsel %vm3121_vm14, %v3103_v31, %v3120_v35  ;;  %v3113_v40 = vmul.f32 %v7311_v37, %v3102_v33  ;;  %v6351_v35 = vld [vmem:[%s8418_s3 + $0x238] sm:$0xff] }
0x138f   :  { %v3125_v39 = vsel %vm3123_vm15, %v3124_v36, %v3122_v38  ;;  %v6343_v36 = vld [vmem:[%s8418_s3 + $0x1b8] sm:$0xff] }
0x1390   :  { %v3127_v41 = vadd.f32 1e-06, %v3125_v39  ;;  %v3115_v43 = vsel %vm3114_vm1, %v3102_v33, %v3113_v40 }
0x1391   :  { %v3118_v44 = vsel %vm3116_vm2, %v3117_v42, %v3115_v43  ;;  %v6350_v42 = vld [vmem:[%s8418_s3 + $0x230] sm:$0xff] }
0x1392   :  { %7312 = vrcp.f32 %v3127_v41  ;;  %v3126_v45 = vadd.f32 1e-06, %v3118_v44  ;;  %v6342_v44 = vld [vmem:[%s8418_s3 + $0x1b0] sm:$0xff] }
0x1394   :  { %7314 = vrcp.f32 %v3126_v45  ;;  %v6349_v45 = vld [vmem:[%s8418_s3 + $0x228] sm:$0xff] }
0x139f   :  { %v7313_v47 = vpop.eup %7312 }
0x13a0   :  { %v3131_v52 = vmul.f32 %v7313_v47, %v3111_v48  ;;  %v6348_v47 = vld [vmem:[%s8418_s3 + $0x220] sm:$0xff] }
0x13a1   :  { %v7315_v51 = vpop.eup %7314  ;;  %v6340_v48 = vld [vmem:[%s8418_s3 + $0x1a0] sm:$0xff] }
0x13a2   :  { %v3129_v55 = vmul.f32 %v7315_v51, %v3110_v49  ;;  %v7985_v58 = vadd.f32 %v6308_v54, %v3131_v52  ;;  %v6359_v49 = vld [vmem:[%s8418_s3 + $0x2b8] sm:$0xff]  ;;  %v6358_v51 = vld [vmem:[%s8418_s3 + $0x2b0] sm:$0xff]  ;;  %v6357_v52 = vld [vmem:[%s8418_s3 + $0x2a8] sm:$0xff] }
0x13a4   :  { %v7983_v56 = vadd.f32 %v6308_v54, %v3129_v55  ;;  %v6356_v54 = vld [vmem:[%s8418_s3 + $0x2a0] sm:$0xff] }
0x13a6   :  { %7003 = vmatprep.mubr.msk.f32.mxu0 %vm65_vm0, %v7983_v56  ;;  %7025 = vmatprep.mubr.msk.f32.mxu1 %vm65_vm0, %v7983_v56 }
0x13a7   :  { %7004 = vmatmul.mubr.msk.f32.vlgmr.msra.gmra.mxu0 %vm65_vm0, %v7985_v58  ;;  %7026 = vmatmul.mubr.msk.f32.vlgmr.msra.gmra.mxu1 %vm65_vm0, %v7985_v58 }
0x13a8   :  { %7007 = vmatpush3.msra.mxu0 %v6320_v29  ;;  %7014 = vmatprep.mubr.msk.f32.mxu0 %vm65_vm0, %v7983_v56 }
0x13a9   :  { %7008 = vmatprep.subr.mxu0 %v6319_v60  ;;  %7035 = vmatprep.mubr.msk.f32.mxu1 %vm7365_vm5, %v7364_v57 }
0x13aa   :  { %7009 = vmatpush3.msra.mxu0 %v6319_v60 }
0x13ab   :  { %7010 = vmatprep.subr.mxu0 %v6318_v61 }
0x13ac   :  { %7011 = vmatpush3.msra.mxu0 %v6318_v61 }
0x13ad   :  { %7012 = vmatprep.subr.mxu0 %v6317_v63 }
0x13ae   :  { %7013 = vmatpush3.msra.mxu0 %v6317_v63 }
0x13af   :  { %7015 = vmatmul.mubr.msk.f32.vlgmr.msra.gmra.mxu0 %vm65_vm0, %v7985_v58  ;;  %7028 = vmatprep.subr.mxu0 %v7364_v57 }
0x13b0   :  { %7030 = vmatprep.mubr.msk.f32.mxu0 %vm7365_vm5, %v7364_v57 }
0x1467   :  { %v7005_v0 = vpop.f32.mrf.mxu0  ;;  %v7027_v3 = vpop.f32.mrf.mxu1 }
0x1468   :  { %v3231_v53 = vadd.f32 %v7005_v0, %v6314_v50  ;;  %v3407_v18 = vadd.f32 %v7027_v3, %v6330_v12 }
0x1469   :  { %v3225_v1 = vpop.f32.mrf.mxu0  ;;  %v3401_v6 = vpop.f32.mrf.mxu1 }
0x146a   :  { %v3226_v5 = vadd.f32 %v6314_v50, %v3225_v1  ;;  %v3402_v20 = vadd.f32 %v6330_v12, %v3401_v6 }
0x146f   :  { %v7016_v4 = vpop.f32.mrf.mxu0 }
0x1470   :  { %v3319_v11 = vadd.f32 %v7016_v4, %v6322_v2  ;;  %v6345_v4 = vld [vmem:[%s8421_s4 + $0xd] ss:$0 sm:$0xff] }
0x1471   :  { %v3313_v14 = vpop.f32.mrf.mxu0 }
0x1472   :  { %v3314_v17 = vadd.f32 %v6322_v2, %v3313_v14  ;;  %7034 = vmatpush3.xpose.msk.msra.mxu1 %vm392_vm6, %v3319_v11  ;;  %v6353_v2 = vld [vmem:[%s8421_s4 + $0x11] ss:$0 sm:$0xff] }
0x1473   :  { %7043 = vmatprep.subr.mxu1 %v7364_v57 }
0x1474   :  { %7029 = vmatpush3.xpose.msk.msra.mxu0 %vm392_vm6, %v3314_v17  ;;  %v6361_v17 = vld [vmem:[%s8421_s4 + $0x15] ss:$0 sm:$0xff] }
0x1475   :  { %7036 = vmatmul.mubr.msk.f32.vlgmr.msra.gmra.mxu1 %vm392_vm6, %v3231_v53  ;;  %7038 = vmatprep.subr.mxu0 %v7364_v57 }
0x1476   :  { %7044 = vmatpush3.msra.mxu1 %v3407_v18  ;;  %7045 = vmatprep.mubr.msk.f32.mxu1 %vm7365_vm5, %v7364_v57 }
0x1477   :  { %7031 = vmatmul.mubr.msk.f32.vlgmr.msra.gmra.mxu0 %vm392_vm6, %v3226_v5  ;;  %7059 = vmatprep.subr.mxu1 %v6351_v35 }
0x1478   :  { %7039 = vmatpush3.msra.mxu0 %v3402_v20  ;;  %7040 = vmatprep.mubr.msk.f32.mxu0 %vm7365_vm5, %v7364_v57 }
0x1479   :  { %7048 = vmatprep.subr.mxu0 %v6343_v36 }
0x1535   :  { %v3558_v21 = vpop.f32.mrf.mxu1 }
0x1536   :  { %v3563_v7 = vmul.f32 0.35355338, %v3558_v21 }
0x1537   :  { %v3482_v22 = vpop.f32.mrf.mxu0  ;;  %v7037_v10 = vpop.f32.mrf.mxu1 }
0x1538   :  { %v3562_v23 = vmul.f32 0.35355338, %v3482_v22  ;;  %v3565_v24 = vadd.f32 %v3563_v7, %v7567_v15 }
0x1539   :  { %v7032_v25 = vpop.f32.mrf.mxu0 }
0x153a   :  { %v3569_v26 = vsel %vm392_vm6, %v3565_v24, -inf  ;;  %v3564_v59 = vadd.f32 %v3562_v23, %v7569_v19 }
0x153b   :  { %3570 = vmax.xlane.f32.xlu0 %v3569_v26 }
0x153c   :  { %v3566_v8 = vsel %vm392_vm6, %v3564_v59, -inf }
0x153d   :  { %3567 = vmax.xlane.f32.xlu1 %v3566_v8 }
0x15c4   :  { %v3571_v62 = vpop.xlane.xlu0 %3570 }
0x15c5   :  { %v3573_v9 = vsub.f32 %v3565_v24, %v3571_v62 }
0x15c6   :  { %v3568_v27 = vpop.xlane.xlu1 %3567 }
0x15c7   :  { %v3576_v28 = vmul.f32 1.442695, %v3573_v9  ;;  %v3572_v29 = vsub.f32 %v3564_v59, %v3568_v27 }
0x15c9   :  { %7316 = vpow2.f32 %v3576_v28  ;;  %v3574_v30 = vmul.f32 1.442695, %v3572_v29 }
0x15cb   :  { %7318 = vpow2.f32 %v3574_v30 }
0x15d6   :  { %v7317_v31 = vpop.eup %7316 }
0x15d7   :  { %v3581_v32 = vsel %vm392_vm6, %v7317_v31, 0.0 }
0x15d8   :  { %v7319_v33 = vpop.eup %7318  ;;  %3582 = vadd.xlane.f32.xlu0 %v3581_v32 }
0x15d9   :  { %v3578_v34 = vsel %vm392_vm6, %v7319_v33, 0.0 }
0x15da   :  { %3579 = vadd.xlane.f32.xlu1 %v3578_v34 }
0x1661   :  { %v3583_v37 = vpop.xlane.xlu0 %3582 }
0x1662   :  { %7320 = vrcp.f32 %v3583_v37 }
0x1663   :  { %v3580_v38 = vpop.xlane.xlu1 %3579 }
0x1664   :  { %7322 = vrcp.f32 %v3580_v38 }
0x166f   :  { %v7321_v39 = vpop.eup %7320 }
0x1670   :  { %v3587_v40 = vmul.f32 %v7321_v39, %v7317_v31 }
0x1671   :  { %v7323_v41 = vpop.eup %7322 }
0x1672   :  { %7046 = vmatmul.mubr.msk.f32.vlgmr.msra.gmra.mxu1 %vm392_vm6, %v3587_v40  ;;  %v3585_v43 = vmul.f32 %v7323_v41, %v7319_v33 }
0x1673   :  { %7060 = vmatpush3.msra.mxu1 %v6351_v35  ;;  %7067 = vmatprep.mubr.msk.f32.mxu1 %vm65_vm0, %v7983_v56  ;;  %v6339_v35 = vld [vmem:[%s8423_s5 + $0x20] sm:$0xff] }
0x1674   :  { %7061 = vmatprep.subr.mxu1 %v6350_v42  ;;  %7041 = vmatmul.mubr.msk.f32.vlgmr.msra.gmra.mxu0 %vm392_vm6, %v3585_v43  ;;  %v6385_v43 = vld [vmem:[%s8418_s3 + $0x250] sm:$0xff] }
0x1675   :  { %7049 = vmatpush3.msra.mxu0 %v6343_v36  ;;  %7062 = vmatpush3.msra.mxu1 %v6350_v42  ;;  %v6386_v42 = vld [vmem:[%s8418_s3 + $0x258] sm:$0xff] }
0x1676   :  { %7050 = vmatprep.subr.mxu0 %v6342_v44  ;;  %7056 = vmatprep.mubr.msk.f32.mxu0 %vm65_vm0, %v7983_v56 }
0x1677   :  { %7063 = vmatprep.subr.mxu1 %v6349_v45  ;;  %7051 = vmatpush3.msra.mxu0 %v6342_v44  ;;  %v6384_v44 = vld [vmem:[%s8418_s3 + $0x248] sm:$0xff] }
0x1678   :  { %7064 = vmatpush3.msra.mxu1 %v6349_v45  ;;  %7052 = vmatprep.subr.mxu0 %v6341_v46  ;;  %v6383_v45 = vld [vmem:[%s8418_s3 + $0x240] sm:$0xff] }
0x1679   :  { %7065 = vmatprep.subr.mxu1 %v6348_v47  ;;  %7053 = vmatpush3.msra.mxu0 %v6341_v46  ;;  %v6370_v46 = vld [vmem:[%s8423_s5 + $0x28] sm:$0xff] }
0x167a   :  { %7066 = vmatpush3.msra.mxu1 %v6348_v47  ;;  %7054 = vmatprep.subr.mxu0 %v6340_v48  ;;  %v6378_v47 = vld [vmem:[%s8418_s3 + $0x1d8] sm:$0xff] }
0x167b   :  { %7068 = vmatmul.mubr.msk.f32.vlgmr.msra.gmra.mxu1 %vm65_vm0, %v7985_v58  ;;  %7055 = vmatpush3.msra.mxu0 %v6340_v48 }
0x167c   :  { %7057 = vmatmul.mubr.msk.f32.vlgmr.msra.gmra.mxu0 %vm65_vm0, %v7985_v58  ;;  %7070 = vmatprep.subr.mxu0 %v6359_v49 }
0x167d   :  { %7071 = vmatpush3.msra.mxu0 %v6359_v49  ;;  %7078 = vmatprep.mubr.msk.f32.mxu0 %vm65_vm0, %v7983_v56 }
0x167e   :  { %7072 = vmatprep.subr.mxu0 %v6358_v51  ;;  %7081 = vmatprep.subr.mxu1 %v7364_v57 }
0x167f   :  { %7073 = vmatpush3.msra.mxu0 %v6358_v51  ;;  %7083 = vmatprep.mubr.msk.f32.mxu1 %vm7365_vm5, %v7364_v57 }
0x1680   :  { %7074 = vmatprep.subr.mxu0 %v6357_v52 }
0x1681   :  { %7075 = vmatpush3.msra.mxu0 %v6357_v52  ;;  %v6377_v52 = vld [vmem:[%s8418_s3 + $0x1d0] sm:$0xff] }
0x1682   :  { %7076 = vmatprep.subr.mxu0 %v6356_v54 }
0x1683   :  { %7077 = vmatpush3.msra.mxu0 %v6356_v54 }
0x1684   :  { %7079 = vmatmul.mubr.msk.f32.vlgmr.msra.gmra.mxu0 %vm65_vm0, %v7985_v58  ;;  %7091 = vmatprep.subr.mxu0 %v7364_v57 }
0x1685   :  { %7093 = vmatprep.mubr.msk.f32.mxu0 %vm7365_vm5, %v7364_v57 }
0x1732   :  { %v8094_v55 = vpop.f32.mrf.mxu1 }
0x1734   :  { %v8096_v60 = vpop.f32.mrf.mxu0  ;;  %v7047_v61 = vpop.f32.mrf.mxu1 }
0x1736   :  { %v7042_v63 = vpop.f32.mrf.mxu0 }
0x1737   :  { %v6394_v63 = vld [vmem:[%s8418_s3 + $0x2d8] sm:$0xff] }
0x173b   :  { %v7069_v0 = vpop.f32.mrf.mxu1 }
0x173c   :  { %v7058_v1 = vpop.f32.mrf.mxu0  ;;  %v3909_v14 = vadd.f32 %v7069_v0, %v6353_v2  ;;  %v6393_v0 = vld [vmem:[%s8418_s3 + $0x2d0] sm:$0xff] }
0x173d   :  { %v3903_v3 = vpop.f32.mrf.mxu1  ;;  %v3821_v6 = vadd.f32 %v7058_v1, %v6345_v4 }
0x173e   :  { %v3904_v50 = vadd.f32 %v6353_v2, %v3903_v3  ;;  %v3815_v11 = vpop.f32.mrf.mxu0  ;;  %v6388_v2 = vld [vmem:[%s8421_s4 + $0x12] ss:$0 sm:$0xff]  ;;  %v6392_v3 = vld [vmem:[%s8418_s3 + $0x2c8] sm:$0xff] }
0x173f   :  { %v3816_v12 = vadd.f32 %v6345_v4, %v3815_v11 }
0x1740   :  { %7082 = vmatpush3.xpose.msk.msra.mxu1 %vm392_vm6, %v3904_v50  ;;  %v6391_v50 = vld [vmem:[%s8418_s3 + $0x2c0] sm:$0xff] }
0x1741   :  { %7086 = vmatprep.subr.mxu1 %v7364_v57 }
0x1743   :  { %7084 = vmatmul.mubr.msk.f32.vlgmr.msra.gmra.mxu1 %vm392_vm6, %v3816_v12 }
0x1744   :  { %7087 = vmatpush3.xpose.msk.msra.mxu1 %vm392_vm6, %v3909_v14  ;;  %v7080_v53 = vpop.f32.mrf.mxu0  ;;  %7088 = vmatprep.mubr.msk.f32.mxu1 %vm7365_vm5, %v7364_v57 }
0x1745   :  { %v3997_v18 = vadd.f32 %v7080_v53, %v6361_v17  ;;  %7096 = vmatprep.subr.mxu1 %v7364_v57 }
0x1746   :  { %v3991_v5 = vpop.f32.mrf.mxu0 }
0x1747   :  { %v3992_v20 = vadd.f32 %v6361_v17, %v3991_v5  ;;  %7089 = vmatmul.mubr.msk.f32.vlgmr.msra.gmra.mxu1 %vm392_vm6, %v3821_v6 }
0x1748   :  { %7097 = vmatpush3.msra.mxu1 %v3997_v18  ;;  %7098 = vmatprep.mubr.msk.f32.mxu1 %vm7365_vm5, %v7364_v57  ;;  %v6380_v18 = vld [vmem:[%s8421_s4 + $0xe] ss:$0 sm:$0xff] }
0x1749   :  { %7092 = vmatpush3.msra.mxu0 %v3992_v20  ;;  %7106 = vmatprep.subr.mxu1 %v6339_v35 }
0x174a   :  { %7101 = vmatprep.subr.mxu0 %v6370_v46 }
0x1803   :  { %v4072_v21 = vpop.f32.mrf.mxu1 }
0x1804   :  { %v4152_v7 = vmul.f32 0.35355338, %v4072_v21  ;;  %v6396_v21 = vld [vmem:[%s8421_s4 + $0x16] ss:$0 sm:$0xff] }
0x1805   :  { %v7085_v22 = vpop.f32.mrf.mxu1 }
0x1806   :  { %v4154_v10 = vadd.f32 %v4152_v7, %v7569_v19 }
0x1807   :  { %v4148_v23 = vpop.f32.mrf.mxu1 }
0x1808   :  { %v4153_v24 = vmul.f32 0.35355338, %v4148_v23  ;;  %v4156_v25 = vsel %vm392_vm6, %v4154_v10, -inf }
0x1809   :  { %4157 = vmax.xlane.f32.xlu0 %v4156_v25  ;;  %v7090_v26 = vpop.f32.mrf.mxu1 }
0x180a   :  { %v4155_v59 = vadd.f32 %v4153_v24, %v7567_v15 }
0x180c   :  { %v4159_v8 = vsel %vm392_vm6, %v4155_v59, -inf }
0x180d   :  { %4160 = vmax.xlane.f32.xlu1 %v4159_v8 }
0x1892   :  { %v4158_v62 = vpop.xlane.xlu0 %4157 }
0x1893   :  { %v4162_v9 = vsub.f32 %v4154_v10, %v4158_v62 }
0x1895   :  { %v4164_v27 = vmul.f32 1.442695, %v4162_v9 }
0x1896   :  { %v4161_v28 = vpop.xlane.xlu1 %4160 }
0x1897   :  { %7324 = vpow2.f32 %v4164_v27  ;;  %v4163_v29 = vsub.f32 %v4155_v59, %v4161_v28 }
0x1899   :  { %v4166_v30 = vmul.f32 1.442695, %v4163_v29 }
0x189b   :  { %7326 = vpow2.f32 %v4166_v30 }
0x18a4   :  { %v7325_v31 = vpop.eup %7324 }
0x18a5   :  { %v4168_v32 = vsel %vm392_vm6, %v7325_v31, 0.0 }
0x18a6   :  { %4169 = vadd.xlane.f32.xlu0 %v4168_v32 }
0x18a8   :  { %v7327_v33 = vpop.eup %7326 }
0x18a9   :  { %v4171_v34 = vsel %vm392_vm6, %v7327_v33, 0.0 }
0x18aa   :  { %4172 = vadd.xlane.f32.xlu1 %v4171_v34 }
0x192f   :  { %v4170_v36 = vpop.xlane.xlu0 %4169 }
0x1930   :  { %7328 = vrcp.f32 %v4170_v36 }
0x1933   :  { %v4173_v37 = vpop.xlane.xlu1 %4172 }
0x1934   :  { %7330 = vrcp.f32 %v4173_v37 }
0x193d   :  { %v7329_v38 = vpop.eup %7328 }
0x193e   :  { %v4175_v39 = vmul.f32 %v7329_v38, %v7325_v31 }
0x1940   :  { %7094 = vmatmul.mubr.msk.f32.vlgmr.msra.gmra.mxu0 %vm392_vm6, %v4175_v39 }
0x1941   :  { %v7331_v40 = vpop.eup %7330  ;;  %7102 = vmatpush3.msra.mxu0 %v6370_v46 }
0x1942   :  { %v4177_v41 = vmul.f32 %v7331_v40, %v7327_v33  ;;  %7111 = vmatprep.subr.mxu0 %v6378_v47 }
0x1944   :  { %7099 = vmatmul.mubr.msk.f32.vlgmr.msra.gmra.mxu1 %vm392_vm6, %v4177_v41  ;;  %v6411_v41 = vld [vmem:[%s8418_s3 + $0x1f8] sm:$0xff] }
0x1945   :  { %7108 = vmatprep.mubr.msk.f32.mxu1 %vm392_vm6, %v8096_v60  ;;  %7107 = vmatpush3.msra.mxu1 %v6339_v35  ;;  %v6375_v60 = vld [vmem:[%s8418_s3 + $0x1c0] sm:$0xff] }
0x1946   :  { %7122 = vmatprep.subr.mxu1 %v6386_v42 }
0x1948   :  { %7109 = vmatmul.mubr.msk.f32.vlgmr.msra.gmra.mxu1 %vm392_vm6, %v8094_v55  ;;  %v6376_v55 = vld [vmem:[%s8418_s3 + $0x1c8] sm:$0xff] }
0x1949   :  { %7123 = vmatpush3.msra.mxu1 %v6386_v42  ;;  %7130 = vmatprep.mubr.msk.f32.mxu1 %vm65_vm0, %v7983_v56 }
0x194a   :  { %7124 = vmatprep.subr.mxu1 %v6385_v43 }
0x194b   :  { %7125 = vmatpush3.msra.mxu1 %v6385_v43 }
0x194c   :  { %7126 = vmatprep.subr.mxu1 %v6384_v44 }
0x194d   :  { %7127 = vmatpush3.msra.mxu1 %v6384_v44 }
0x194e   :  { %7128 = vmatprep.subr.mxu1 %v6383_v45 }
0x194f   :  { %7129 = vmatpush3.msra.mxu1 %v6383_v45 }
0x1950   :  { %7131 = vmatmul.mubr.msk.f32.vlgmr.msra.gmra.mxu1 %vm65_vm0, %v7985_v58  ;;  %7144 = vmatprep.subr.mxu1 %v7364_v57 }
0x1951   :  { %7146 = vmatprep.mubr.msk.f32.mxu1 %vm7365_vm5, %v7364_v57 }
0x1a00   :  { %v4247_v48 = vpop.f32.mrf.mxu0 }
0x1a01   :  { %7103 = vmatprep.mubr.msk.f32.mxu0 %vm392_vm6, %v4247_v48  ;;  %v6410_v48 = vld [vmem:[%s8418_s3 + $0x1f0] sm:$0xff] }
0x1a02   :  { %v7095_v49 = vpop.f32.mrf.mxu0 }
0x1a03   :  { %v6409_v49 = vld [vmem:[%s8418_s3 + $0x1e8] sm:$0xff] }
0x1a04   :  { %v4320_v51 = vpop.f32.mrf.mxu1 }
0x1a05   :  { %7104 = vmatmul.mubr.msk.f32.vlgmr.msra.gmra.mxu0 %vm392_vm6, %v4320_v51  ;;  %v6408_v51 = vld [vmem:[%s8418_s3 + $0x1e0] sm:$0xff] }
0x1a06   :  { %7112 = vmatpush3.msra.mxu0 %v6378_v47  ;;  %v7100_v54 = vpop.f32.mrf.mxu1  ;;  %7119 = vmatprep.mubr.msk.f32.mxu0 %vm65_vm0, %v7983_v56 }
0x1a07   :  { %7113 = vmatprep.subr.mxu0 %v6377_v52  ;;  %v6426_v54 = vld [vmem:[%s8418_s3 + $0x2f0] sm:$0xff] }
0x1a08   :  { %7114 = vmatpush3.msra.mxu0 %v6377_v52  ;;  %v8170_v61 = vpop.f32.mrf.mxu1  ;;  %v6427_v52 = vld [vmem:[%s8418_s3 + $0x2f8] sm:$0xff] }
0x1a09   :  { %7115 = vmatprep.subr.mxu0 %v6376_v55 }
0x1a0a   :  { %7116 = vmatpush3.msra.mxu0 %v6376_v55  ;;  %v8180_v1 = vpop.f32.mrf.mxu1  ;;  %v6425_v55 = vld [vmem:[%s8418_s3 + $0x2e8] sm:$0xff] }
0x1a0b   :  { %7117 = vmatprep.subr.mxu0 %v6375_v60 }
0x1a0c   :  { %7118 = vmatpush3.msra.mxu0 %v6375_v60  ;;  %v6424_v60 = vld [vmem:[%s8418_s3 + $0x2e0] sm:$0xff] }
0x1a0d   :  { %7120 = vmatmul.mubr.msk.f32.vlgmr.msra.gmra.mxu0 %vm65_vm0, %v7985_v58  ;;  %7133 = vmatprep.subr.mxu0 %v6394_v63 }
0x1a0e   :  { %7134 = vmatpush3.msra.mxu0 %v6394_v63  ;;  %7141 = vmatprep.mubr.msk.f32.mxu0 %vm65_vm0, %v7983_v56  ;;  %v6405_v63 = vld [vmem:[%s8423_s5 + $0x30] sm:$0xff] }
0x1a0f   :  { %7135 = vmatprep.subr.mxu0 %v6393_v0 }
0x1a10   :  { %v7132_v4 = vpop.f32.mrf.mxu1  ;;  %7136 = vmatpush3.msra.mxu0 %v6393_v0  ;;  %v6419_v0 = vld [vmem:[%s8418_s3 + $0x278] sm:$0xff] }
0x1a11   :  { %v4661_v11 = vadd.f32 %v7132_v4, %v6388_v2  ;;  %7137 = vmatprep.subr.mxu0 %v6392_v3 }
0x1a12   :  { %v4655_v12 = vpop.f32.mrf.mxu1  ;;  %7138 = vmatpush3.msra.mxu0 %v6392_v3 }
0x1a13   :  { %v4656_v14 = vadd.f32 %v6388_v2, %v4655_v12  ;;  %7139 = vmatprep.subr.mxu0 %v6391_v50  ;;  %v6417_v12 = vld [vmem:[%s8418_s3 + $0x268] sm:$0xff] }
0x1a14   :  { %7140 = vmatpush3.msra.mxu0 %v6391_v50  ;;  %v6418_v50 = vld [vmem:[%s8418_s3 + $0x270] sm:$0xff] }
0x1a15   :  { %7142 = vmatmul.mubr.msk.f32.vlgmr.msra.gmra.mxu0 %vm65_vm0, %v7985_v58  ;;  %7145 = vmatpush3.xpose.msk.msra.mxu1 %vm392_vm6, %v4656_v14  ;;  %v6416_v14 = vld [vmem:[%s8418_s3 + $0x260] sm:$0xff] }
0x1a16   :  { %7149 = vmatprep.subr.mxu1 %v7364_v57  ;;  %7154 = vmatprep.subr.mxu0 %v7364_v57 }
0x1a17   :  { %7156 = vmatprep.mubr.msk.f32.mxu0 %vm7365_vm5, %v7364_v57 }
0x1ac5   :  { %v8200_v17 = vpop.f32.mrf.mxu0 }
0x1ac7   :  { %v8202_v53 = vpop.f32.mrf.mxu0 }
0x1acd   :  { %v7121_v6 = vpop.f32.mrf.mxu0 }
0x1ace   :  { %v4573_v7 = vadd.f32 %v7121_v6, %v6380_v18 }
0x1acf   :  { %v4567_v5 = vpop.f32.mrf.mxu0 }
0x1ad0   :  { %v4568_v20 = vadd.f32 %v6380_v18, %v4567_v5  ;;  %v6429_v18 = vld [vmem:[%s8421_s4 + $0x17] ss:$0 sm:$0xff] }
0x1ad2   :  { %7147 = vmatmul.mubr.msk.f32.vlgmr.msra.gmra.mxu1 %vm392_vm6, %v4568_v20 }
0x1ad3   :  { %7150 = vmatpush3.xpose.msk.msra.mxu1 %vm392_vm6, %v4661_v11  ;;  %7151 = vmatprep.mubr.msk.f32.mxu1 %vm7365_vm5, %v7364_v57 }
0x1ad4   :  { %7159 = vmatprep.subr.mxu1 %v7364_v57 }
0x1ad5   :  { %v7143_v22 = vpop.f32.mrf.mxu0 }
0x1ad6   :  { %v4749_v10 = vadd.f32 %v7143_v22, %v6396_v21  ;;  %7152 = vmatmul.mubr.msk.f32.vlgmr.msra.gmra.mxu1 %vm392_vm6, %v4573_v7  ;;  %v4485_v22 = vadd.f32 %v8170_v61, %v8200_v17  ;;  %v6413_v61 = vld [vmem:[%s8421_s4 + $0xf] ss:$0 sm:$0xff] }
0x1ad7   :  { %v4743_v23 = vpop.f32.mrf.mxu0  ;;  %7161 = vmatprep.mubr.msk.f32.mxu1 %vm7365_vm5, %v7364_v57 }
0x1ad8   :  { %v4744_v24 = vadd.f32 %v6396_v21, %v4743_v23  ;;  %7160 = vmatpush3.msra.mxu1 %v4749_v10  ;;  %v4480_v10 = vadd.f32 %v8180_v1, %v8202_v53 }
0x1ad9   :  { %7169 = vmatprep.subr.mxu1 %v6411_v41 }
0x1ada   :  { %7155 = vmatpush3.msra.mxu0 %v4744_v24 }
0x1adb   :  { %7164 = vmatprep.subr.mxu0 %v6405_v63 }
0x1b92   :  { %v4824_v25 = vpop.f32.mrf.mxu1 }
0x1b93   :  { %v4904_v26 = vmul.f32 0.35355338, %v4824_v25 }
0x1b94   :  { %v7148_v59 = vpop.f32.mrf.mxu1 }
0x1b95   :  { %v4906_v8 = vadd.f32 %v4904_v26, %v7569_v19  ;;  %v6421_v59 = vld [vmem:[%s8421_s4 + $0x13] ss:$0 sm:$0xff] }
0x1b96   :  { %v4900_v62 = vpop.f32.mrf.mxu1 }
0x1b97   :  { %v4905_v9 = vmul.f32 0.35355338, %v4900_v62  ;;  %v4908_v27 = vsel %vm392_vm6, %v4906_v8, -inf }
0x1b98   :  { %4909 = vmax.xlane.f32.xlu0 %v4908_v27  ;;  %v7153_v28 = vpop.f32.mrf.mxu1 }
0x1b99   :  { %v4907_v29 = vadd.f32 %v4905_v9, %v7567_v15 }
0x1b9b   :  { %v4911_v30 = vsel %vm392_vm6, %v4907_v29, -inf }
0x1b9c   :  { %4912 = vmax.xlane.f32.xlu1 %v4911_v30 }
0x1c21   :  { %v4910_v31 = vpop.xlane.xlu0 %4909 }
0x1c22   :  { %v4914_v32 = vsub.f32 %v4906_v8, %v4910_v31 }
0x1c24   :  { %v4916_v33 = vmul.f32 1.442695, %v4914_v32 }
0x1c25   :  { %v4913_v34 = vpop.xlane.xlu1 %4912 }
0x1c26   :  { %7332 = vpow2.f32 %v4916_v33  ;;  %v4915_v35 = vsub.f32 %v4907_v29, %v4913_v34 }
0x1c28   :  { %v4918_v36 = vmul.f32 1.442695, %v4915_v35 }
0x1c2a   :  { %7334 = vpow2.f32 %v4918_v36 }
0x1c33   :  { %v7333_v37 = vpop.eup %7332 }
0x1c34   :  { %v4920_v38 = vsel %vm392_vm6, %v7333_v37, 0.0 }
0x1c35   :  { %4921 = vadd.xlane.f32.xlu0 %v4920_v38 }
0x1c37   :  { %v7335_v39 = vpop.eup %7334 }
0x1c38   :  { %v4923_v40 = vsel %vm392_vm6, %v7335_v39, 0.0 }
0x1c39   :  { %4924 = vadd.xlane.f32.xlu1 %v4923_v40 }
0x1cbe   :  { %v4922_v42 = vpop.xlane.xlu0 %4921 }
0x1cbf   :  { %7336 = vrcp.f32 %v4922_v42 }
0x1cc2   :  { %v4925_v43 = vpop.xlane.xlu1 %4924 }
0x1cc3   :  { %7338 = vrcp.f32 %v4925_v43 }
0x1ccc   :  { %v7337_v44 = vpop.eup %7336 }
0x1ccd   :  { %v4927_v45 = vmul.f32 %v7337_v44, %v7333_v37 }
0x1ccf   :  { %7157 = vmatmul.mubr.msk.f32.vlgmr.msra.gmra.mxu0 %vm392_vm6, %v4927_v45 }
0x1cd0   :  { %v7339_v46 = vpop.eup %7338  ;;  %7165 = vmatpush3.msra.mxu0 %v6405_v63  ;;  %v6442_v63 = vld [vmem:[%s8424_s6 + $0x1] ss:$0 sm:$0xff] }
0x1cd1   :  { %v4929_v47 = vmul.f32 %v7339_v46, %v7335_v39  ;;  %7180 = vmatprep.subr.mxu0 %v6419_v0 }
0x1cd3   :  { %7162 = vmatmul.mubr.msk.f32.vlgmr.msra.gmra.mxu1 %vm392_vm6, %v4929_v47 }
0x1cd4   :  { %7170 = vmatpush3.msra.mxu1 %v6411_v41  ;;  %7177 = vmatprep.mubr.msk.f32.mxu1 %vm65_vm0, %v7983_v56 }
0x1cd5   :  { %7171 = vmatprep.subr.mxu1 %v6410_v48 }
0x1cd6   :  { %7172 = vmatpush3.msra.mxu1 %v6410_v48 }
0x1cd7   :  { %7173 = vmatprep.subr.mxu1 %v6409_v49 }
0x1cd8   :  { %7174 = vmatpush3.msra.mxu1 %v6409_v49  ;;  %v6438_v49 = vld [vmem:[%s8423_s5 + $0x38] sm:$0xff] }
0x1cd9   :  { %7175 = vmatprep.subr.mxu1 %v6408_v51 }
0x1cda   :  { %7176 = vmatpush3.msra.mxu1 %v6408_v51 }
0x1cdb   :  { %7178 = vmatmul.mubr.msk.f32.vlgmr.msra.gmra.mxu1 %vm65_vm0, %v7985_v58  ;;  %7191 = vmatprep.subr.mxu1 %v6427_v52 }
0x1cdc   :  { %7192 = vmatpush3.msra.mxu1 %v6427_v52  ;;  %7199 = vmatprep.mubr.msk.f32.mxu1 %vm65_vm0, %v7983_v56 }
0x1cdd   :  { %7193 = vmatprep.subr.mxu1 %v6426_v54 }
0x1cde   :  { %7194 = vmatpush3.msra.mxu1 %v6426_v54 }
0x1cdf   :  { %7195 = vmatprep.subr.mxu1 %v6425_v55 }
0x1ce0   :  { %7196 = vmatpush3.msra.mxu1 %v6425_v55 }
0x1ce1   :  { %7197 = vmatprep.subr.mxu1 %v6424_v60 }
0x1ce2   :  { %7198 = vmatpush3.msra.mxu1 %v6424_v60 }
0x1ce3   :  { %7200 = vmatmul.mubr.msk.f32.vlgmr.msra.gmra.mxu1 %vm65_vm0, %v7985_v58  ;;  %7212 = vmatprep.subr.mxu1 %v7364_v57 }
0x1ce4   :  { %7214 = vmatprep.mubr.msk.f32.mxu1 %vm7365_vm5, %v7364_v57 }
0x1d8f   :  { %v4999_v2 = vpop.f32.mrf.mxu0 }
0x1d90   :  { %7166 = vmatprep.mubr.msk.f32.mxu0 %vm392_vm6, %v4999_v2 }
0x1d91   :  { %v7158_v3 = vpop.f32.mrf.mxu0 }
0x1d93   :  { %v5072_v4 = vpop.f32.mrf.mxu1 }
0x1d94   :  { %7167 = vmatmul.mubr.msk.f32.vlgmr.msra.gmra.mxu0 %vm392_vm6, %v5072_v4 }
0x1d95   :  { %7181 = vmatpush3.msra.mxu0 %v6419_v0  ;;  %v7163_v11 = vpop.f32.mrf.mxu1  ;;  %7188 = vmatprep.mubr.msk.f32.mxu0 %vm65_vm0, %v7983_v56 }
0x1d96   :  { %7182 = vmatprep.subr.mxu0 %v6418_v50 }
0x1d97   :  { %7183 = vmatpush3.msra.mxu0 %v6418_v50 }
0x1d98   :  { %7184 = vmatprep.subr.mxu0 %v6417_v12 }
0x1d99   :  { %7185 = vmatpush3.msra.mxu0 %v6417_v12 }
0x1d9a   :  { %7186 = vmatprep.subr.mxu0 %v6416_v14 }
0x1d9b   :  { %7187 = vmatpush3.msra.mxu0 %v6416_v14  ;;  %v7179_v56 = vpop.f32.mrf.mxu1 }
0x1d9c   :  { %7189 = vmatmul.mubr.msk.f32.vlgmr.msra.gmra.mxu0 %vm65_vm0, %v7985_v58  ;;  %7202 = vmatprep.subr.mxu0 %v7364_v57  ;;  %v5246_v53 = vadd.f32 %v7179_v56, %v6413_v61 }
0x1d9d   :  { %7204 = vmatprep.mubr.msk.f32.mxu0 %vm7365_vm5, %v7364_v57  ;;  %v5240_v6 = vpop.f32.mrf.mxu1 }
0x1d9e   :  { %v5241_v17 = vadd.f32 %v6413_v61, %v5240_v6 }
0x1da3   :  { %v7201_v5 = vpop.f32.mrf.mxu1 }
0x1da4   :  { %v5422_v20 = vadd.f32 %v7201_v5, %v6429_v18 }
0x1da5   :  { %v5416_v21 = vpop.f32.mrf.mxu1 }
0x1da6   :  { %v5417_v7 = vadd.f32 %v6429_v18, %v5416_v21 }
0x1da8   :  { %7213 = vmatpush3.msra.mxu1 %v5417_v7 }
0x1da9   :  { %7222 = vmatprep.subr.mxu1 %v6438_v49 }
0x1e54   :  { %v7168_v58 = vpop.f32.mrf.mxu0 }
0x1e55   :  { %v8292_v23 = vadd.f32 %v7168_v58, %v4485_v22 }
0x1e56   :  { %v5150_v24 = vpop.f32.mrf.mxu0 }
0x1e57   :  { %v8294_v25 = vadd.f32 %v5150_v24, %v4480_v10  ;;  %v6450_v10 = vld [vmem:[%s8425_s7 + $0x38] sm:$0xff]  ;;  %v6448_v24 = vld [vmem:[%s8425_s7 + $0x28] sm:$0xff] }
0x1e5c   :  { %v7190_v26 = vpop.f32.mrf.mxu0 }
0x1e5d   :  { %v5334_v1 = vadd.f32 %v7190_v26, %v6421_v59  ;;  %v6462_v26 = vld [vmem:[%s8426_s9 + $0x78] sm:$0xff] }
0x1e5e   :  { %v5328_v8 = vpop.f32.mrf.mxu0 }
0x1e5f   :  { %v5329_v62 = vadd.f32 %v6421_v59, %v5328_v8  ;;  %v6461_v59 = vld [vmem:[%s8426_s9 + $0x70] sm:$0xff]  ;;  %v6460_v8 = vld [vmem:[%s8426_s9 + $0x68] sm:$0xff] }
0x1e61   :  { %7203 = vmatpush3.xpose.msk.msra.mxu0 %vm392_vm6, %v5329_v62  ;;  %v6459_v62 = vld [vmem:[%s8426_s9 + $0x60] sm:$0xff] }
0x1e62   :  { %7207 = vmatprep.subr.mxu0 %v7364_v57 }
0x1e64   :  { %7205 = vmatmul.mubr.msk.f32.vlgmr.msra.gmra.mxu0 %vm392_vm6, %v5241_v17 }
0x1e65   :  { %7208 = vmatpush3.xpose.msk.msra.mxu0 %vm392_vm6, %v5334_v1  ;;  %7209 = vmatprep.mubr.msk.f32.mxu0 %vm7365_vm5, %v7364_v57 }
0x1e66   :  { %7217 = vmatprep.subr.mxu0 %v7364_v57 }
0x1e68   :  { %7210 = vmatmul.mubr.msk.f32.vlgmr.msra.gmra.mxu0 %vm392_vm6, %v5246_v53 }
0x1e69   :  { %7218 = vmatpush3.msra.mxu0 %v5422_v20  ;;  %7219 = vmatprep.mubr.msk.f32.mxu0 %vm7365_vm5, %v7364_v57 }
0x1e6a   :  { %7227 = vmatprep.subr.mxu0 %v6450_v10 }
0x1f24   :  { %v5497_v9 = vpop.f32.mrf.mxu0 }
0x1f25   :  { %v5577_v27 = vmul.f32 0.35355338, %v5497_v9 }
0x1f26   :  { %v7206_v28 = vpop.f32.mrf.mxu0 }
0x1f27   :  { %v5579_v29 = vadd.f32 %v5577_v27, %v7569_v19 }
0x1f28   :  { %v5573_v30 = vpop.f32.mrf.mxu0 }
0x1f29   :  { %v5578_v31 = vmul.f32 0.35355338, %v5573_v30  ;;  %v5581_v32 = vsel %vm392_vm6, %v5579_v29, -inf }
0x1f2a   :  { %5582 = vmax.xlane.f32.xlu0 %v5581_v32  ;;  %v7211_v33 = vpop.f32.mrf.mxu0 }
0x1f2b   :  { %v5580_v34 = vadd.f32 %v5578_v31, %v7567_v15 }
0x1f2d   :  { %v5584_v35 = vsel %vm392_vm6, %v5580_v34, -inf }
0x1f2e   :  { %5585 = vmax.xlane.f32.xlu1 %v5584_v35 }
0x1fb3   :  { %v5583_v36 = vpop.xlane.xlu0 %5582 }
0x1fb4   :  { %v5587_v37 = vsub.f32 %v5579_v29, %v5583_v36 }
0x1fb6   :  { %v5589_v38 = vmul.f32 1.442695, %v5587_v37 }
0x1fb7   :  { %v5586_v57 = vpop.xlane.xlu1 %5585 }
0x1fb8   :  { %7340 = vpow2.f32 %v5589_v38  ;;  %v5588_v39 = vsub.f32 %v5580_v34, %v5586_v57  ;;  %v6445_v38 = vld [vmem:[%s8419_s11 + $0x3] ss:$0 sm:$0xff] }
0x1fba   :  { %v5591_v40 = vmul.f32 1.442695, %v5588_v39 }
0x1fbc   :  { %7342 = vpow2.f32 %v5591_v40 }
0x1fc5   :  { %v7341_v19 = vpop.eup %7340 }
0x1fc6   :  { %v5593_v41 = vsel %vm392_vm6, %v7341_v19, 0.0 }
0x1fc7   :  { %5594 = vadd.xlane.f32.xlu0 %v5593_v41 }
0x1fc9   :  { %v7343_v42 = vpop.eup %7342 }
0x1fca   :  { %v5596_v43 = vsel %vm392_vm6, %v7343_v42, 0.0 }
0x1fcb   :  { %5597 = vadd.xlane.f32.xlu1 %v5596_v43 }
0x2050   :  { %v5595_v15 = vpop.xlane.xlu0 %5594 }
0x2051   :  { %7344 = vrcp.f32 %v5595_v15 }
0x2054   :  { %v5598_v44 = vpop.xlane.xlu1 %5597 }
0x2055   :  { %7346 = vrcp.f32 %v5598_v44 }
0x205e   :  { %v7345_v45 = vpop.eup %7344 }
0x205f   :  { %v5600_v46 = vmul.f32 %v7345_v45, %v7341_v19  ;;  %v6458_v45 = vld [vmem:[%s8426_s9 + $0x58] sm:$0xff] }
0x2061   :  { %7215 = vmatmul.mubr.msk.f32.vlgmr.msra.gmra.mxu1 %vm392_vm6, %v5600_v46  ;;  %v6457_v46 = vld [vmem:[%s8426_s9 + $0x50] sm:$0xff] }
0x2062   :  { %v7347_v47 = vpop.eup %7346  ;;  %7223 = vmatpush3.msra.mxu1 %v6438_v49  ;;  %v6452_v49 = vld [vmem:[%s8427_s8 + $0x1] ss:$0 sm:$0xff] }
0x2063   :  { %v5602_v48 = vmul.f32 %v7347_v47, %v7343_v42  ;;  %7238 = vmatprep.subr.mxu1 %v6462_v26  ;;  %v6446_v42 = vld [vmem:[%s8420_s12 + $0x3] ss:$0 sm:$0xff]  ;;  %v6456_v47 = vld [vmem:[%s8426_s9 + $0x48] sm:$0xff] }
0x2065   :  { %7220 = vmatmul.mubr.msk.f32.vlgmr.msra.gmra.mxu0 %vm392_vm6, %v5602_v48  ;;  %v6455_v48 = vld [vmem:[%s8426_s9 + $0x40] sm:$0xff] }
0x2066   :  { %7228 = vmatpush3.msra.mxu0 %v6450_v10 }
0x2121   :  { %v5672_v51 = vpop.f32.mrf.mxu1 }
0x2122   :  { %7224 = vmatprep.mubr.msk.f32.mxu1 %vm392_vm6, %v5672_v51 }
0x2123   :  { %v7216_v52 = vpop.f32.mrf.mxu1 }
0x2125   :  { %v5745_v54 = vpop.f32.mrf.mxu0 }
0x2126   :  { %7225 = vmatmul.mubr.msk.f32.vlgmr.msra.gmra.mxu1 %vm392_vm6, %v5745_v54 }
0x2127   :  { %v7221_v55 = vpop.f32.mrf.mxu0  ;;  %7239 = vmatpush3.msra.mxu1 %v6462_v26 }
0x2128   :  { %7240 = vmatprep.subr.mxu1 %v6461_v59 }
0x2129   :  { %7241 = vmatpush3.msra.mxu1 %v6461_v59 }
0x212a   :  { %7242 = vmatprep.subr.mxu1 %v6460_v8 }
0x212b   :  { %7243 = vmatpush3.msra.mxu1 %v6460_v8 }
0x212c   :  { %7244 = vmatprep.subr.mxu1 %v6459_v62 }
0x212d   :  { %7245 = vmatpush3.msra.mxu1 %v6459_v62 }
0x212e   :  { %7246 = vmatprep.subr.mxu1 %v6458_v45 }
0x212f   :  { %7247 = vmatpush3.msra.mxu1 %v6458_v45 }
0x2130   :  { %7248 = vmatprep.subr.mxu1 %v6457_v46 }
0x2131   :  { %7249 = vmatpush3.msra.mxu1 %v6457_v46 }
0x2132   :  { %7250 = vmatprep.subr.mxu1 %v6456_v47 }
0x2133   :  { %7251 = vmatpush3.msra.mxu1 %v6456_v47 }
0x2134   :  { %7252 = vmatprep.subr.mxu1 %v6455_v48 }
0x2135   :  { %7253 = vmatpush3.msra.mxu1 %v6455_v48 }
0x21e6   :  { %v7226_v60 = vpop.f32.mrf.mxu1 }
0x21e7   :  { %v5833_v0 = vadd.f32 %v7226_v60, %v8292_v23  ;;  %v6449_v23 = vld [vmem:[%s8425_s7 + $0x30] sm:$0xff] }
0x21e8   :  { %v5823_v2 = vpop.f32.mrf.mxu1  ;;  %7229 = vmatprep.subr.mxu0 %v6449_v23 }
0x21e9   :  { %v5843_v3 = vadd.f32 %v6442_v63, %v5833_v0  ;;  %v5832_v4 = vadd.f32 %v5823_v2, %v8294_v25  ;;  %7230 = vmatpush3.msra.mxu0 %v6449_v23  ;;  %v6447_v25 = vld [vmem:[%s8425_s7 + $0x20] sm:$0xff] }
0x21ea   :  { %7231 = vmatprep.subr.mxu0 %v6448_v24  ;;  %v6464_v0 = vld [vmem:[%s8428_s10 + $0x1] ss:$0 sm:$0xff] }
0x21eb   :  { %v8331_v50 = vadd.f32 %v5843_v3, %v7936_v13  ;;  %v5842_v11 = vadd.f32 %v6442_v63, %v5832_v4  ;;  %7232 = vmatpush3.msra.mxu0 %v6448_v24 }
0x21ec   :  { %7233 = vmatprep.subr.mxu0 %v6447_v25 }
0x21ed   :  { %v8334_v12 = vadd.f32 %v5842_v11, %v7939_v16  ;;  %v5853_v14 = vsel %vm65_vm0, %v8331_v50, 0.0  ;;  %7234 = vmatpush3.msra.mxu0 %v6447_v25 }
0x21ee   :  { %5854 = vadd.xlane.f32.xlu1 %v5853_v14 }
0x21ef   :  { %v5850_v56 = vsel %vm65_vm0, %v8334_v12, 0.0 }
0x21f0   :  { %5851 = vadd.xlane.f32.xlu0 %v5850_v56 }
0x2277   :  { %v5855_v6 = vpop.xlane.xlu1 %5854 }
0x2278   :  { %v5857_v18 = vmul.f32 0.03125, %v5855_v6 }
0x2279   :  { %v5852_v5 = vpop.xlane.xlu0 %5851 }
0x227a   :  { %v5859_v20 = vsub.f32 %v8331_v50, %v5857_v18  ;;  %v5856_v21 = vmul.f32 0.03125, %v5852_v5 }
0x227c   :  { %v5858_v13 = vsub.f32 %v8334_v12, %v5856_v21  ;;  %v5861_v7 = vmul.f32 %v5859_v20, %v5859_v20  ;;  %v5877_v39 = vmul.f32 %v6445_v38, %v5859_v20 }
0x227e   :  { %v5865_v16 = vsel %vm65_vm0, %v5861_v7, 0.0  ;;  %v5860_v22 = vmul.f32 %v5858_v13, %v5858_v13  ;;  %v5876_v40 = vmul.f32 %v6445_v38, %v5858_v13 }
0x227f   :  { %5866 = vadd.xlane.f32.xlu1 %v5865_v16 }
0x2280   :  { %v5862_v58 = vsel %vm65_vm0, %v5860_v22, 0.0 }
0x2281   :  { %5863 = vadd.xlane.f32.xlu0 %v5862_v58 }
0x2308   :  { %v5867_v61 = vpop.xlane.xlu1 %5866 }
0x2309   :  { %v5869_v17 = vmul.f32 0.032258064, %v5867_v61 }
0x230a   :  { %v5864_v1 = vpop.xlane.xlu0 %5863 }
0x230b   :  { %7348 = vrsqrt.f32 %v5869_v17  ;;  %v5868_v53 = vmul.f32 0.032258064, %v5864_v1  ;;  %vm5887_vm3 = vcmp.eq.f32.partialorder %v5869_v17, inf  ;;  %v5890_v28 = vand.u32 2147483648, %v5869_v17 }
0x230c   :  { %vm5889_vm4 = vcmp.eq.f32.partialorder %v5869_v17, 0.0 }
0x230d   :  { %7350 = vrsqrt.f32 %v5868_v53  ;;  %vm5880_vm5 = vcmp.eq.f32.partialorder %v5868_v53, inf  ;;  %v5883_v34 = vand.u32 2147483648, %v5868_v53  ;;  %vm5882_vm6 = vcmp.eq.f32.partialorder %v5868_v53, 0.0 }
0x2318   :  { %v7349_v9 = vpop.eup %7348 }
0x2319   :  { %v5886_v27 = vmul.f32 %v7349_v9, %v5869_v17 }
0x231a   :  { %v7351_v29 = vpop.eup %7350 }
0x231b   :  { %v5888_v30 = vsel %vm5887_vm3, %v5869_v17, %v5886_v27  ;;  %v5879_v32 = vmul.f32 %v7351_v29, %v5868_v53 }
0x231c   :  { %v5891_v31 = vsel %vm5889_vm4, %v5890_v28, %v5888_v30  ;;  %v6467_v30 = vld [vmem:[%s8429_s13] ss:$0 sm:$0xff] }
0x231d   :  { %v5893_v33 = vadd.f32 1e-06, %v5891_v31  ;;  %v5881_v35 = vsel %vm5880_vm5, %v5868_v53, %v5879_v32 }
0x231e   :  { %v5884_v36 = vsel %vm5882_vm6, %v5883_v34, %v5881_v35 }
0x231f   :  { %7352 = vrcp.f32 %v5893_v33  ;;  %v5892_v37 = vadd.f32 1e-06, %v5884_v36  ;;  %v6468_v33 = vld [vmem:[%s8430_s14] ss:$0 sm:$0xff] }
0x2321   :  { %7354 = vrcp.f32 %v5892_v37 }
0x232c   :  { %v7353_v57 = vpop.eup %7352 }
0x232d   :  { %v5897_v41 = vmul.f32 %v7353_v57, %v5877_v39 }
0x232e   :  { %v7355_v19 = vpop.eup %7354 }
0x232f   :  { %v5895_v43 = vmul.f32 %v7355_v19, %v5876_v40  ;;  %v5905_v44 = vadd.f32 %v6446_v42, %v5897_v41 }
0x2331   :  { %v5904_v15 = vadd.f32 %v6446_v42, %v5895_v43 }
0x2333   :  { %7235 = vmatprep.mubr.msk.f32.mxu0 %vm65_vm0, %v5904_v15 }
0x2334   :  { %7236 = vmatmul.mubr.msk.f32.vlgmr.msra.gmra.mxu0 %vm65_vm0, %v5905_v44 }
0x23f4   :  { %v7237_v51 = vpop.f32.mrf.mxu0 }
0x23f5   :  { %v5997_v52 = vadd.f32 %v7237_v51, %v6452_v49 }
0x23f6   :  { %v5991_v54 = vpop.f32.mrf.mxu0 }
0x23f7   :  { %v5992_v55 = vadd.f32 %v6452_v49, %v5991_v54  ;;  %v6001_v63 = vmax.f32 %v5997_v52, 0.0 }
0x23f9   :  { %v6000_v60 = vmax.f32 %v5992_v55, 0.0 }
0x23fb   :  { %7254 = vmatprep.mubr.msk.f32.mxu1 %vm2996_vm13, %v6000_v60 }
0x23fc   :  { %7255 = vmatmul.mubr.msk.f32.vlgmr.msra.gmra.mxu1 %vm2996_vm13, %v6001_v63 }
0x24bc   :  { %v7256_v2 = vpop.f32.mrf.mxu1 }
0x24bd   :  { %v6097_v3 = vadd.f32 %v7256_v2, %v6464_v0 }
0x24be   :  { %v6091_v4 = vpop.f32.mrf.mxu1 }
0x24bf   :  { %v6092_v11 = vadd.f32 %v6464_v0, %v6091_v4  ;;  %v6101_v14 = vadd.f32 %v6097_v3, %v8331_v50 }
0x24c1   :  { %v6107_v56 = vsel %vm65_vm0, %v6101_v14, 0.0  ;;  %v6100_v6 = vadd.f32 %v6092_v11, %v8334_v12 }
0x24c2   :  { %6108 = vadd.xlane.f32.xlu1 %v6107_v56 }
0x24c3   :  { %v6104_v18 = vsel %vm65_vm0, %v6100_v6, 0.0 }
0x24c4   :  { %6105 = vadd.xlane.f32.xlu0 %v6104_v18 }
0x254b   :  { %v6109_v5 = vpop.xlane.xlu1 %6108 }
0x254c   :  { %v6111_v20 = vmul.f32 0.03125, %v6109_v5 }
0x254d   :  { %v6106_v21 = vpop.xlane.xlu0 %6105 }
0x254e   :  { %v6113_v13 = vsub.f32 %v6101_v14, %v6111_v20  ;;  %v6110_v7 = vmul.f32 0.03125, %v6106_v21 }
0x2550   :  { %v6112_v16 = vsub.f32 %v6100_v6, %v6110_v7  ;;  %v6115_v22 = vmul.f32 %v6113_v13, %v6113_v13  ;;  %v6131_v31 = vmul.f32 %v6467_v30, %v6113_v13 }
0x2552   :  { %v6119_v58 = vsel %vm65_vm0, %v6115_v22, 0.0  ;;  %v6114_v10 = vmul.f32 %v6112_v16, %v6112_v16  ;;  %v6130_v35 = vmul.f32 %v6467_v30, %v6112_v16 }
0x2553   :  { %6120 = vadd.xlane.f32.xlu1 %v6119_v58 }
0x2554   :  { %v6116_v50 = vsel %vm65_vm0, %v6114_v10, 0.0 }
0x2555   :  { %6117 = vadd.xlane.f32.xlu0 %v6116_v50 }
0x25dc   :  { %v6121_v23 = vpop.xlane.xlu1 %6120 }
0x25dd   :  { %v6123_v12 = vmul.f32 0.032258064, %v6121_v23 }
0x25de   :  { %v6118_v24 = vpop.xlane.xlu0 %6117 }
0x25df   :  { %7356 = vrsqrt.f32 %v6123_v12  ;;  %v6122_v25 = vmul.f32 0.032258064, %v6118_v24  ;;  %vm6141_vm7 = vcmp.eq.f32.partialorder %v6123_v12, inf  ;;  %v6144_v8 = vand.u32 2147483648, %v6123_v12 }
0x25e0   :  { %vm6143_vm8 = vcmp.eq.f32.partialorder %v6123_v12, 0.0 }
0x25e1   :  { %7358 = vrsqrt.f32 %v6122_v25  ;;  %vm6134_vm9 = vcmp.eq.f32.partialorder %v6122_v25, inf  ;;  %v6137_v9 = vand.u32 2147483648, %v6122_v25  ;;  %vm6136_vm10 = vcmp.eq.f32.partialorder %v6122_v25, 0.0 }
0x25ec   :  { %v7357_v26 = vpop.eup %7356 }
0x25ed   :  { %v6140_v59 = vmul.f32 %v7357_v26, %v6123_v12 }
0x25ee   :  { %v7359_v62 = vpop.eup %7358 }
0x25ef   :  { %v6142_v61 = vsel %vm6141_vm7, %v6123_v12, %v6140_v59  ;;  %v6133_v1 = vmul.f32 %v7359_v62, %v6122_v25 }
0x25f0   :  { %v6145_v17 = vsel %vm6143_vm8, %v6144_v8, %v6142_v61 }
0x25f1   :  { %v6147_v53 = vadd.f32 1e-06, %v6145_v17  ;;  %v6135_v27 = vsel %vm6134_vm9, %v6122_v25, %v6133_v1 }
0x25f2   :  { %v6138_v28 = vsel %vm6136_vm10, %v6137_v9, %v6135_v27 }
0x25f3   :  { %7360 = vrcp.f32 %v6147_v53  ;;  %v6146_v29 = vadd.f32 1e-06, %v6138_v28 }
0x25f5   :  { %7362 = vrcp.f32 %v6146_v29 }
0x2600   :  { %v7361_v32 = vpop.eup %7360 }
0x2601   :  { %v6151_v34 = vmul.f32 %v7361_v32, %v6131_v31 }
0x2602   :  { %v7363_v36 = vpop.eup %7362 }
0x2603   :  { %v6159_v37 = vadd.f32 %v6468_v33, %v6151_v34  ;;  %v6149_v38 = vmul.f32 %v7363_v36, %v6130_v35 }
0x2605   :  { %6161 = vst.msk [vmem:[%s8431_s15 + $0x8] sm:$0xff] %vm65_vm0, %v6159_v37  ;;  %v6158_v57 = vadd.f32 %v6468_v33, %v6149_v38 }
0x2607   :  { %6160 = vst.msk [vmem:[%s8431_s15] sm:$0xff] %vm65_vm0, %v6158_v57 }

// kernel: transformer_forward.3
= control target key start
LH: loop header
LB: loop body
LE: loop exit
PB: predicated region body
PF: predicated region fallthrough
CT: control target
= control target key end

     0   :  { %s15920_s0 = inlined_call_operand.vmem [shape: f32[16,32], index: 0, kind: input, shape index: {}]   ;;  %s15921_s1 = inlined_call_operand.vmem [shape: f32[8,32], index: 1, kind: input, shape index: {}]   ;;  %s15922_s2 = inlined_call_operand.vmem [shape: f32[16,32], index: 2, kind: input, shape index: {}]   ;;  %s15923_s3 = inlined_call_operand.vmem [shape: f32[2,8,8], index: 3, kind: input, shape index: {}]   ;;  %s15924_s4 = inlined_call_operand.vmem [shape: f32[2,8,8], index: 4, kind: input, shape index: {}]   ;;  %s15925_s5 = inlined_call_operand.vmem [shape: f32[2,3,4,32,8], index: 5, kind: input, shape index: {}]   ;;  %s15926_s6 = inlined_call_operand.vmem [shape: f32[2,3,4,1,8], index: 6, kind: input, shape index: {}]   ;;  %s15927_s7 = inlined_call_operand.vmem [shape: f32[2,4,8,32], index: 7, kind: input, shape index: {}]   ;;  %s15928_s8 = inlined_call_operand.vmem [shape: f32[2,1,32], index: 8, kind: input, shape index: {}]   ;;  %s15929_s9 = inlined_call_operand.vmem [shape: f32[2,3,4,32,8], index: 9, kind: input, shape index: {}]   ;;  %s15930_s10 = inlined_call_operand.vmem [shape: f32[2,3,4,1,8], index: 10, kind: input, shape index: {}]   ;;  %s15931_s11 = inlined_call_operand.vmem [shape: f32[2,4,8,32], index: 11, kind: input, shape index: {}]   ;;  %s15932_s12 = inlined_call_operand.vmem [shape: f32[2,1,32], index: 12, kind: input, shape index: {}]   ;;  %s15933_s13 = inlined_call_operand.vmem [shape: f32[2,32,64], index: 13, kind: input, shape index: {}]   ;;  %s15934_s14 = inlined_call_operand.vmem [shape: f32[2,1,64], index: 14, kind: input, shape index: {}]   ;;  %s15935_s15 = inlined_call_operand.vmem [shape: f32[2,64,32], index: 15, kind: input, shape index: {}]   ;;  %s15936_s16 = inlined_call_operand.vmem [shape: f32[2,1,32], index: 16, kind: input, shape index: {}]   ;;  %s15937_s17 = inlined_call_operand.vmem [shape: f32[2,3,1,32], index: 17, kind: input, shape index: {}]   ;;  %s15938_s18 = inlined_call_operand.vmem [shape: f32[2,3,1,32], index: 18, kind: input, shape index: {}]   ;;  %s15939_s19 = inlined_call_operand.vmem [shape: f32[1,32], index: 19, kind: input, shape index: {}]   ;;  %s15940_s20 = inlined_call_operand.vmem [shape: f32[1,32], index: 20, kind: input, shape index: {}]   ;;  %s15941_s21 = inlined_call_operand.hbm [shape: f32[16,32], index: 21, kind: output, shape index: {}]  }
   0x1   :  { %15948 = sst [smem:[#allocation5_spill]] %s15920_s0 }
   0x2   :  { %15949 = sst [smem:[#allocation6_spill]] %s15921_s1 }
   0x3   :  { %15950 = sst [smem:[#allocation7_spill]] %s15922_s2 }
   0x4   :  { %15951 = sst [smem:[#allocation8_spill]] %s15923_s3 }
   0x5   :  { %15952 = sst [smem:[#allocation9_spill]] %s15924_s4 }
   0x6   :  { %15953 = sst [smem:[#allocation10_spill]] %s15925_s5 }
   0x7   :  { %15954 = sst [smem:[#allocation11_spill]] %s15936_s16 }
   0x8   :  { %s15955_s26 = sld [smem:[#allocation5_spill]]  ;;  %vm92_vm0 = vcmask 261120  }
   0x9   :  { %s15956_s16 = sld [smem:[#allocation6_spill]] }
   0xe   :  { %v83_v0 = vld [vmem:[%s15955_s26] sm:$0xff]  ;;  %v84_v2 = vld [vmem:[%s15955_s26 + $0x8] sm:$0xff] }
   0xf   :  { %v87_v1 = vld [vmem:[%s15956_s16] sm:$0xff]  ;;  %v85_v3 = vmul.f32 5.656854, %v83_v0  ;;  %v86_v4 = vmul.f32 5.656854, %v84_v2 }
  0x10   :  { %26 = vsyncpa [#allocation3], 0  ;;  %s15957_s4 = sld [smem:[#allocation10_spill]]  ;;  %v11739_v44 = vld [vmem:[%s15937_s17] ss:$0 sm:$0xff]  ;;  %v14009_v57 = vmov 0.0  }
  0x11   :  { %v14134_v5 = vadd.f32 %v87_v1, %v85_v3  ;;  %v14136_v6 = vadd.f32 %v87_v1, %v86_v4  ;;  %v11740_v47 = vld [vmem:[%s15938_s18] ss:$0 sm:$0xff]  ;;  %vm14010_vm5 = vmmov 0   ;;  %v11749_v58 = vld [vmem:[%s15926_s6 + $0x4] ss:$0 sm:$0xff]  ;;  %vm419_vm6 = vcmask 64512  }
  0x12   :  { %v11741_v61 = vld [vmem:[%s15926_s6] ss:$0 sm:$0xff]  ;;  %v11757_v4 = vld [vmem:[%s15926_s6 + $0x8] ss:$0 sm:$0xff]  ;;  %s15958_s1 = sld [smem:[#allocation9_spill]]  ;;  %s14012_s28 = smov [#allocation2]  }
  0x13   :  { %v93_v7 = vsel %vm92_vm0, %v14134_v5, 0.0  ;;  %v96_v8 = vsel %vm92_vm0, %v14136_v6, 0.0  ;;  %s15959_s0 = sld [smem:[#allocation7_spill]] }
  0x14   :  { %94 = vadd.xlane.f32.xlu0 %v93_v7  ;;  %s15960_s29 = sld [smem:[#allocation8_spill]] }
  0x15   :  { %s15961_s27 = sld [smem:[#allocation11_spill]] }
  0x16   :  { %v154_v19 = vld [vmem:[%s15957_s4 + $0x18] sm:$0xff]  ;;  %v153_v21 = vld [vmem:[%s15957_s4 + $0x10] sm:$0xff]  ;;  %v152_v23 = vld [vmem:[%s15957_s4 + $0x8] sm:$0xff] }
  0x17   :  { %12807 = vmatprep.subr.mxu0 %v154_v19  ;;  %v11747_v20 = vld [vmem:[%s15957_s4 + $0x98] sm:$0xff]  ;;  %v11746_v22 = vld [vmem:[%s15957_s4 + $0x90] sm:$0xff]  ;;  %v11745_v24 = vld [vmem:[%s15957_s4 + $0x88] sm:$0xff] }
  0x18   :  { %97 = vadd.xlane.f32.xlu0 %v96_v8  ;;  %12808 = vmatpush3.msra.mxu0 %v154_v19  ;;  %v151_v25 = vld [vmem:[%s15957_s4] sm:$0xff]  ;;  %v11755_v27 = vld [vmem:[%s15957_s4 + $0x118] sm:$0xff]  ;;  %v11754_v54 = vld [vmem:[%s15957_s4 + $0x110] sm:$0xff] }
  0x19   :  { %12818 = vmatprep.subr.mxu1 %v11747_v20  ;;  %12809 = vmatprep.subr.mxu0 %v153_v21  ;;  %v11744_v26 = vld [vmem:[%s15957_s4 + $0x80] sm:$0xff]  ;;  %v11753_v55 = vld [vmem:[%s15957_s4 + $0x108] sm:$0xff] }
  0x1a   :  { %12819 = vmatpush3.msra.mxu1 %v11747_v20  ;;  %12810 = vmatpush3.msra.mxu0 %v153_v21  ;;  %v11752_v56 = vld [vmem:[%s15957_s4 + $0x100] sm:$0xff] }
  0x1b   :  { %12820 = vmatprep.subr.mxu1 %v11746_v22  ;;  %12811 = vmatprep.subr.mxu0 %v152_v23 }
  0x1c   :  { %12821 = vmatpush3.msra.mxu1 %v11746_v22  ;;  %12812 = vmatpush3.msra.mxu0 %v152_v23 }
  0x1d   :  { %12822 = vmatprep.subr.mxu1 %v11745_v24  ;;  %12813 = vmatprep.subr.mxu0 %v151_v25 }
  0x1e   :  { %12823 = vmatpush3.msra.mxu1 %v11745_v24  ;;  %12814 = vmatpush3.msra.mxu0 %v151_v25 }
  0x1f   :  { %12824 = vmatprep.subr.mxu1 %v11744_v26  ;;  %12829 = vmatprep.subr.mxu0 %v11755_v27 }
  0x20   :  { %12825 = vmatpush3.msra.mxu1 %v11744_v26 }
  0x21   :  { %12845 = vmatprep.subr.mxu1 %v14009_v57 }
  0x9d   :  { %v95_v9 = vpop.xlane.xlu0 %94 }
  0x9e   :  { %v100_v10 = vmul.f32 0.03125, %v95_v9 }
  0xa0   :  { %v102_v11 = vsub.f32 %v14134_v5, %v100_v10 }
  0xa1   :  { %v98_v12 = vpop.xlane.xlu0 %97 }
  0xa2   :  { %v101_v13 = vmul.f32 0.03125, %v98_v12  ;;  %v104_v14 = vmul.f32 %v102_v11, %v102_v11  ;;  %v121_v45 = vmul.f32 %v11739_v44, %v102_v11  ;;  %v76_v11 = vld [vmem:[%s15958_s1 + $0x8] sm:$0xff]  ;;  %v75_v12 = vld [vmem:[%s15958_s1] sm:$0xff] }
  0xa3   :  { %vm78_vm7 = vcmp.ne.f32.partialorder %v76_v11, 0.0  ;;  %vm77_vm8 = vcmp.ne.f32.partialorder %v75_v12, 0.0 }
  0xa4   :  { %v103_v15 = vsub.f32 %v14136_v6, %v101_v13  ;;  %v106_v16 = vsel %vm92_vm0, %v104_v14, 0.0  ;;  %v14011_v14 = vmov -1e+09  }
  0xa5   :  { %107 = vadd.xlane.f32.xlu1 %v106_v16  ;;  %v14239_v19 = vsel %vm77_vm8, 0.0, %v14011_v14 }
  0xa6   :  { %v105_v17 = vmul.f32 %v103_v15, %v103_v15  ;;  %v122_v49 = vmul.f32 %v11739_v44, %v103_v15  ;;  %v14236_v15 = vsel %vm78_vm7, 0.0, %v14011_v14 }
  0xa8   :  { %v109_v18 = vsel %vm92_vm0, %v105_v17, 0.0 }
  0xa9   :  { %110 = vadd.xlane.f32.xlu1 %v109_v18 }
 0x12e   :  { %v108_v28 = vpop.xlane.xlu1 %107 }
 0x12f   :  { %v113_v29 = vmul.f32 0.032258064, %v108_v28 }
 0x131   :  { %13801 = vrsqrt.f32 %v113_v29  ;;  %vm125_vm1 = vcmp.eq.f32.partialorder %v113_v29, inf  ;;  %v128_v34 = vand.u32 2147483648, %v113_v29  ;;  %vm127_vm2 = vcmp.eq.f32.partialorder %v113_v29, 0.0 }
 0x132   :  { %v111_v30 = vpop.xlane.xlu1 %110 }
 0x133   :  { %v114_v31 = vmul.f32 0.032258064, %v111_v30 }
 0x135   :  { %13803 = vrsqrt.f32 %v114_v31  ;;  %vm132_vm3 = vcmp.eq.f32.partialorder %v114_v31, inf  ;;  %v135_v40 = vand.u32 2147483648, %v114_v31  ;;  %vm134_vm4 = vcmp.eq.f32.partialorder %v114_v31, 0.0 }
 0x13e   :  { %v13802_v32 = vpop.eup %13801 }
 0x13f   :  { %v124_v33 = vmul.f32 %v13802_v32, %v113_v29 }
 0x141   :  { %v126_v35 = vsel %vm125_vm1, %v113_v29, %v124_v33 }
 0x142   :  { %v13804_v36 = vpop.eup %13803  ;;  %v129_v37 = vsel %vm127_vm2, %v128_v34, %v126_v35 }
 0x143   :  { %v137_v38 = vadd.f32 1e-06, %v129_v37  ;;  %v131_v39 = vmul.f32 %v13804_v36, %v114_v31  ;;  %v11777_v36 = vld [vmem:[%s15957_s4 + $0xb8] sm:$0xff] }
 0x144   :  { %v11769_v37 = vld [vmem:[%s15957_s4 + $0x38] sm:$0xff] }
 0x145   :  { %13805 = vrcp.f32 %v137_v38  ;;  %v133_v41 = vsel %vm132_vm3, %v114_v31, %v131_v39 }
 0x146   :  { %v136_v42 = vsel %vm134_vm4, %v135_v40, %v133_v41  ;;  %vm5791_vm4 = vcmask 523264  }
 0x147   :  { %v138_v43 = vadd.f32 1e-06, %v136_v42 }
 0x149   :  { %13807 = vrcp.f32 %v138_v43  ;;  %v11776_v43 = vld [vmem:[%s15957_s4 + $0xb0] sm:$0xff] }
 0x152   :  { %v13806_v46 = vpop.eup %13805 }
 0x153   :  { %v140_v48 = vmul.f32 %v13806_v46, %v121_v45  ;;  %v11768_v45 = vld [vmem:[%s15957_s4 + $0x30] sm:$0xff]  ;;  %v11775_v46 = vld [vmem:[%s15957_s4 + $0xa8] sm:$0xff] }
 0x155   :  { %v14179_v50 = vadd.f32 %v11740_v47, %v140_v48  ;;  %v11774_v48 = vld [vmem:[%s15957_s4 + $0xa0] sm:$0xff] }
 0x156   :  { %v13808_v51 = vpop.eup %13807 }
 0x157   :  { %v142_v52 = vmul.f32 %v13808_v51, %v122_v49  ;;  %12815 = vmatprep.mubr.msk.f32.mxu0 %vm92_vm0, %v14179_v50  ;;  %12826 = vmatprep.mubr.msk.f32.mxu1 %vm92_vm0, %v14179_v50  ;;  %v11766_v49 = vld [vmem:[%s15957_s4 + $0x20] sm:$0xff]  ;;  %v11785_v51 = vld [vmem:[%s15957_s4 + $0x138] sm:$0xff] }
 0x159   :  { %v14185_v53 = vadd.f32 %v11740_v47, %v142_v52  ;;  %v11767_v47 = vld [vmem:[%s15957_s4 + $0x28] sm:$0xff]  ;;  %v11784_v52 = vld [vmem:[%s15957_s4 + $0x130] sm:$0xff] }
 0x15b   :  { %12816 = vmatmul.mubr.msk.f32.vlgmr.msra.gmra.mxu0 %vm92_vm0, %v14185_v53  ;;  %12827 = vmatmul.mubr.msk.f32.vlgmr.msra.gmra.mxu1 %vm92_vm0, %v14185_v53 }
 0x15c   :  { %12830 = vmatpush3.msra.mxu0 %v11755_v27  ;;  %12837 = vmatprep.mubr.msk.f32.mxu0 %vm92_vm0, %v14179_v50 }
 0x15d   :  { %12831 = vmatprep.subr.mxu0 %v11754_v54  ;;  %12847 = vmatprep.mubr.msk.f32.mxu1 %vm14010_vm5, %v14009_v57 }
 0x15e   :  { %12832 = vmatpush3.msra.mxu0 %v11754_v54  ;;  %v11783_v54 = vld [vmem:[%s15957_s4 + $0x128] sm:$0xff] }
 0x15f   :  { %12833 = vmatprep.subr.mxu0 %v11753_v55 }
 0x160   :  { %12834 = vmatpush3.msra.mxu0 %v11753_v55  ;;  %v11782_v55 = vld [vmem:[%s15957_s4 + $0x120] sm:$0xff] }
 0x161   :  { %12835 = vmatprep.subr.mxu0 %v11752_v56 }
 0x162   :  { %12836 = vmatpush3.msra.mxu0 %v11752_v56 }
 0x163   :  { %12838 = vmatmul.mubr.msk.f32.vlgmr.msra.gmra.mxu0 %vm92_vm0, %v14185_v53  ;;  %12840 = vmatprep.subr.mxu0 %v14009_v57 }
 0x164   :  { %12842 = vmatprep.mubr.msk.f32.mxu0 %vm14010_vm5, %v14009_v57 }
 0x21b   :  { %v12817_v59 = vpop.f32.mrf.mxu0  ;;  %v12828_v60 = vpop.f32.mrf.mxu1 }
 0x21c   :  { %v328_v62 = vadd.f32 %v12828_v60, %v11749_v58  ;;  %v240_v2 = vadd.f32 %v12817_v59, %v11741_v61 }
 0x21d   :  { %v322_v63 = vpop.f32.mrf.mxu1  ;;  %v234_v0 = vpop.f32.mrf.mxu0 }
 0x21e   :  { %v323_v1 = vadd.f32 %v11749_v58, %v322_v63  ;;  %12846 = vmatpush3.xpose.msk.msra.mxu1 %vm419_vm6, %v328_v62  ;;  %v235_v3 = vadd.f32 %v11741_v61, %v234_v0  ;;  %v11779_v63 = vld [vmem:[%s15926_s6 + $0x5] ss:$0 sm:$0xff] }
 0x21f   :  { %12855 = vmatprep.subr.mxu1 %v14009_v57 }
 0x220   :  { %12841 = vmatpush3.xpose.msk.msra.mxu0 %vm419_vm6, %v323_v1  ;;  %v11771_v1 = vld [vmem:[%s15926_s6 + $0x1] ss:$0 sm:$0xff] }
 0x221   :  { %12848 = vmatmul.mubr.msk.f32.vlgmr.msra.gmra.mxu1 %vm419_vm6, %v240_v2  ;;  %12850 = vmatprep.subr.mxu0 %v14009_v57 }
 0x222   :  { %12857 = vmatprep.mubr.msk.f32.mxu1 %vm14010_vm5, %v14009_v57 }
 0x223   :  { %v12839_v7 = vpop.f32.mrf.mxu0  ;;  %12843 = vmatmul.mubr.msk.f32.vlgmr.msra.gmra.mxu0 %vm419_vm6, %v235_v3 }
 0x224   :  { %v416_v8 = vadd.f32 %v12839_v7, %v11757_v4  ;;  %12852 = vmatprep.mubr.msk.f32.mxu0 %vm14010_vm5, %v14009_v57 }
 0x225   :  { %v410_v9 = vpop.f32.mrf.mxu0 }
 0x226   :  { %v411_v10 = vadd.f32 %v11757_v4, %v410_v9  ;;  %12856 = vmatpush3.msra.mxu1 %v416_v8  ;;  %v11787_v8 = vld [vmem:[%s15926_s6 + $0x9] ss:$0 sm:$0xff] }
 0x227   :  { %12871 = vmatprep.subr.mxu1 %v11777_v36 }
 0x228   :  { %12851 = vmatpush3.msra.mxu0 %v411_v10 }
 0x229   :  { %12860 = vmatprep.subr.mxu0 %v11769_v37 }
 0x2e1   :  { %v568_v13 = vpop.f32.mrf.mxu1 }
 0x2e2   :  { %v573_v16 = vmul.f32 0.35355338, %v568_v13 }
 0x2e3   :  { %v492_v17 = vpop.f32.mrf.mxu0  ;;  %v12849_v18 = vpop.f32.mrf.mxu1 }
 0x2e4   :  { %v572_v20 = vmul.f32 0.35355338, %v492_v17  ;;  %v575_v21 = vadd.f32 %v573_v16, %v14236_v15 }
 0x2e5   :  { %v12844_v22 = vpop.f32.mrf.mxu0 }
 0x2e6   :  { %v579_v23 = vsel %vm419_vm6, %v575_v21, -inf  ;;  %v574_v24 = vadd.f32 %v572_v20, %v14239_v19 }
 0x2e7   :  { %580 = vmax.xlane.f32.xlu0 %v579_v23 }
 0x2e8   :  { %v576_v25 = vsel %vm419_vm6, %v574_v24, -inf }
 0x2e9   :  { %577 = vmax.xlane.f32.xlu1 %v576_v25 }
 0x370   :  { %v581_v26 = vpop.xlane.xlu0 %580 }
 0x371   :  { %v583_v27 = vsub.f32 %v575_v21, %v581_v26 }
 0x372   :  { %v578_v28 = vpop.xlane.xlu1 %577 }
 0x373   :  { %v586_v29 = vmul.f32 1.442695, %v583_v27  ;;  %v582_v30 = vsub.f32 %v574_v24, %v578_v28 }
 0x375   :  { %13809 = vpow2.f32 %v586_v29  ;;  %v584_v31 = vmul.f32 1.442695, %v582_v30 }
 0x377   :  { %13811 = vpow2.f32 %v584_v31 }
 0x382   :  { %v13810_v32 = vpop.eup %13809 }
 0x383   :  { %v591_v33 = vsel %vm419_vm6, %v13810_v32, 0.0 }
 0x384   :  { %v13812_v34 = vpop.eup %13811  ;;  %592 = vadd.xlane.f32.xlu0 %v591_v33 }
 0x385   :  { %v588_v35 = vsel %vm419_vm6, %v13812_v34, 0.0 }
 0x386   :  { %589 = vadd.xlane.f32.xlu1 %v588_v35 }
 0x40d   :  { %v593_v38 = vpop.xlane.xlu0 %592 }
 0x40e   :  { %13813 = vrcp.f32 %v593_v38 }
 0x40f   :  { %v590_v39 = vpop.xlane.xlu1 %589 }
 0x410   :  { %13815 = vrcp.f32 %v590_v39 }
 0x41b   :  { %v13814_v40 = vpop.eup %13813 }
 0x41c   :  { %v597_v41 = vmul.f32 %v13814_v40, %v13810_v32 }
 0x41d   :  { %v13816_v42 = vpop.eup %13815 }
 0x41e   :  { %12858 = vmatmul.mubr.msk.f32.vlgmr.msra.gmra.mxu1 %vm419_vm6, %v597_v41  ;;  %v595_v44 = vmul.f32 %v13816_v42, %v13812_v34 }
 0x41f   :  { %12872 = vmatpush3.msra.mxu1 %v11777_v36  ;;  %12879 = vmatprep.mubr.msk.f32.mxu1 %vm92_vm0, %v14179_v50 }
 0x420   :  { %12873 = vmatprep.subr.mxu1 %v11776_v43  ;;  %12853 = vmatmul.mubr.msk.f32.vlgmr.msra.gmra.mxu0 %vm419_vm6, %v595_v44  ;;  %v11812_v44 = vld [vmem:[%s15957_s4 + $0xd8] sm:$0xff] }
 0x421   :  { %12861 = vmatpush3.msra.mxu0 %v11769_v37  ;;  %12874 = vmatpush3.msra.mxu1 %v11776_v43  ;;  %v744_v37 = vld [vmem:[%s15927_s7] sm:$0xff] }
 0x422   :  { %12862 = vmatprep.subr.mxu0 %v11768_v45  ;;  %12868 = vmatprep.mubr.msk.f32.mxu0 %vm92_vm0, %v14179_v50 }
 0x423   :  { %12875 = vmatprep.subr.mxu1 %v11775_v46  ;;  %12863 = vmatpush3.msra.mxu0 %v11768_v45  ;;  %v11811_v45 = vld [vmem:[%s15957_s4 + $0xd0] sm:$0xff] }
 0x424   :  { %12876 = vmatpush3.msra.mxu1 %v11775_v46  ;;  %12864 = vmatprep.subr.mxu0 %v11767_v47  ;;  %v11810_v46 = vld [vmem:[%s15957_s4 + $0xc8] sm:$0xff] }
 0x425   :  { %12877 = vmatprep.subr.mxu1 %v11774_v48  ;;  %12865 = vmatpush3.msra.mxu0 %v11767_v47  ;;  %v11809_v47 = vld [vmem:[%s15957_s4 + $0xc0] sm:$0xff] }
 0x426   :  { %12878 = vmatpush3.msra.mxu1 %v11774_v48  ;;  %12866 = vmatprep.subr.mxu0 %v11766_v49  ;;  %v11796_v48 = vld [vmem:[%s15927_s7 + $0x8] sm:$0xff] }
 0x427   :  { %12880 = vmatmul.mubr.msk.f32.vlgmr.msra.gmra.mxu1 %vm92_vm0, %v14185_v53  ;;  %12867 = vmatpush3.msra.mxu0 %v11766_v49  ;;  %v11804_v49 = vld [vmem:[%s15957_s4 + $0x58] sm:$0xff] }
 0x428   :  { %12869 = vmatmul.mubr.msk.f32.vlgmr.msra.gmra.mxu0 %vm92_vm0, %v14185_v53  ;;  %12882 = vmatprep.subr.mxu0 %v11785_v51 }
 0x429   :  { %12883 = vmatpush3.msra.mxu0 %v11785_v51  ;;  %12890 = vmatprep.mubr.msk.f32.mxu0 %vm92_vm0, %v14179_v50 }
 0x42a   :  { %12884 = vmatprep.subr.mxu0 %v11784_v52  ;;  %12893 = vmatprep.subr.mxu1 %v14009_v57 }
 0x42b   :  { %12885 = vmatpush3.msra.mxu0 %v11784_v52  ;;  %12895 = vmatprep.mubr.msk.f32.mxu1 %vm14010_vm5, %v14009_v57 }
 0x42c   :  { %12886 = vmatprep.subr.mxu0 %v11783_v54 }
 0x42d   :  { %12887 = vmatpush3.msra.mxu0 %v11783_v54 }
 0x42e   :  { %12888 = vmatprep.subr.mxu0 %v11782_v55 }
 0x42f   :  { %12889 = vmatpush3.msra.mxu0 %v11782_v55  ;;  %v11803_v55 = vld [vmem:[%s15957_s4 + $0x50] sm:$0xff] }
 0x430   :  { %12891 = vmatmul.mubr.msk.f32.vlgmr.msra.gmra.mxu0 %vm92_vm0, %v14185_v53  ;;  %12903 = vmatprep.subr.mxu0 %v14009_v57 }
 0x431   :  { %12905 = vmatprep.mubr.msk.f32.mxu0 %vm14010_vm5, %v14009_v57 }
 0x4de   :  { %v14303_v56 = vpop.f32.mrf.mxu1 }
 0x4e0   :  { %v14305_v58 = vpop.f32.mrf.mxu0  ;;  %v12859_v59 = vpop.f32.mrf.mxu1 }
 0x4e1   :  { %v11801_v59 = vld [vmem:[%s15957_s4 + $0x40] sm:$0xff] }
 0x4e2   :  { %v12854_v60 = vpop.f32.mrf.mxu0 }
 0x4e7   :  { %v12881_v61 = vpop.f32.mrf.mxu1 }
 0x4e8   :  { %v12870_v62 = vpop.f32.mrf.mxu0  ;;  %v918_v7 = vadd.f32 %v12881_v61, %v11779_v63  ;;  %v11820_v61 = vld [vmem:[%s15957_s4 + $0x158] sm:$0xff] }
 0x4e9   :  { %v912_v0 = vpop.f32.mrf.mxu1  ;;  %v830_v10 = vadd.f32 %v12870_v62, %v11771_v1  ;;  %v11819_v62 = vld [vmem:[%s15957_s4 + $0x150] sm:$0xff] }
 0x4ea   :  { %v913_v2 = vadd.f32 %v11779_v63, %v912_v0  ;;  %v824_v3 = vpop.f32.mrf.mxu0  ;;  %v11814_v0 = vld [vmem:[%s15926_s6 + $0x6] ss:$0 sm:$0xff] }
 0x4eb   :  { %v825_v4 = vadd.f32 %v11771_v1, %v824_v3  ;;  %v11818_v1 = vld [vmem:[%s15957_s4 + $0x148] sm:$0xff]  ;;  %v11817_v3 = vld [vmem:[%s15957_s4 + $0x140] sm:$0xff] }
 0x4ec   :  { %12894 = vmatpush3.xpose.msk.msra.mxu1 %vm419_vm6, %v913_v2 }
 0x4ed   :  { %12898 = vmatprep.subr.mxu1 %v14009_v57 }
 0x4ef   :  { %12896 = vmatmul.mubr.msk.f32.vlgmr.msra.gmra.mxu1 %vm419_vm6, %v825_v4 }
 0x4f0   :  { %12899 = vmatpush3.xpose.msk.msra.mxu1 %vm419_vm6, %v918_v7  ;;  %v12892_v9 = vpop.f32.mrf.mxu0  ;;  %12900 = vmatprep.mubr.msk.f32.mxu1 %vm14010_vm5, %v14009_v57 }
 0x4f1   :  { %v1006_v11 = vadd.f32 %v12892_v9, %v11787_v8  ;;  %12908 = vmatprep.subr.mxu1 %v14009_v57 }
 0x4f2   :  { %v1000_v12 = vpop.f32.mrf.mxu0 }
 0x4f3   :  { %v1001_v13 = vadd.f32 %v11787_v8, %v1000_v12  ;;  %12901 = vmatmul.mubr.msk.f32.vlgmr.msra.gmra.mxu1 %vm419_vm6, %v830_v10  ;;  %v11806_v12 = vld [vmem:[%s15926_s6 + $0x2] ss:$0 sm:$0xff] }
 0x4f4   :  { %12909 = vmatpush3.msra.mxu1 %v1006_v11  ;;  %12910 = vmatprep.mubr.msk.f32.mxu1 %vm14010_vm5, %v14009_v57 }
 0x4f5   :  { %12904 = vmatpush3.msra.mxu0 %v1001_v13  ;;  %12918 = vmatprep.subr.mxu1 %v744_v37 }
 0x4f6   :  { %12913 = vmatprep.subr.mxu0 %v11796_v48 }
 0x5af   :  { %v1081_v16 = vpop.f32.mrf.mxu1 }
 0x5b0   :  { %v1161_v17 = vmul.f32 0.35355338, %v1081_v16 }
 0x5b1   :  { %v12897_v18 = vpop.f32.mrf.mxu1 }
 0x5b2   :  { %v1163_v20 = vadd.f32 %v1161_v17, %v14239_v19  ;;  %v11822_v17 = vld [vmem:[%s15926_s6 + $0xa] ss:$0 sm:$0xff] }
 0x5b3   :  { %v1157_v21 = vpop.f32.mrf.mxu1 }
 0x5b4   :  { %v1162_v22 = vmul.f32 0.35355338, %v1157_v21  ;;  %v1165_v23 = vsel %vm419_vm6, %v1163_v20, -inf }
 0x5b5   :  { %1166 = vmax.xlane.f32.xlu0 %v1165_v23  ;;  %v12902_v24 = vpop.f32.mrf.mxu1 }
 0x5b6   :  { %v1164_v25 = vadd.f32 %v1162_v22, %v14236_v15 }
 0x5b8   :  { %v1168_v26 = vsel %vm419_vm6, %v1164_v25, -inf }
 0x5b9   :  { %1169 = vmax.xlane.f32.xlu1 %v1168_v26 }
 0x63e   :  { %v1167_v27 = vpop.xlane.xlu0 %1166 }
 0x63f   :  { %v1171_v28 = vsub.f32 %v1163_v20, %v1167_v27 }
 0x641   :  { %v1173_v29 = vmul.f32 1.442695, %v1171_v28 }
 0x642   :  { %v1170_v30 = vpop.xlane.xlu1 %1169 }
 0x643   :  { %13817 = vpow2.f32 %v1173_v29  ;;  %v1172_v31 = vsub.f32 %v1164_v25, %v1170_v30 }
 0x645   :  { %v1175_v32 = vmul.f32 1.442695, %v1172_v31 }
 0x647   :  { %13819 = vpow2.f32 %v1175_v32 }
 0x650   :  { %v13818_v33 = vpop.eup %13817 }
 0x651   :  { %v1177_v34 = vsel %vm419_vm6, %v13818_v33, 0.0 }
 0x652   :  { %1178 = vadd.xlane.f32.xlu0 %v1177_v34 }
 0x654   :  { %v13820_v35 = vpop.eup %13819 }
 0x655   :  { %v1180_v36 = vsel %vm419_vm6, %v13820_v35, 0.0 }
 0x656   :  { %1181 = vadd.xlane.f32.xlu1 %v1180_v36 }
 0x6db   :  { %v1179_v38 = vpop.xlane.xlu0 %1178 }
 0x6dc   :  { %13821 = vrcp.f32 %v1179_v38 }
 0x6df   :  { %v1182_v39 = vpop.xlane.xlu1 %1181 }
 0x6e0   :  { %13823 = vrcp.f32 %v1182_v39 }
 0x6e9   :  { %v13822_v40 = vpop.eup %13821 }
 0x6ea   :  { %v1184_v41 = vmul.f32 %v13822_v40, %v13818_v33 }
 0x6ec   :  { %12906 = vmatmul.mubr.msk.f32.vlgmr.msra.gmra.mxu0 %vm419_vm6, %v1184_v41 }
 0x6ed   :  { %v13824_v42 = vpop.eup %13823  ;;  %12914 = vmatpush3.msra.mxu0 %v11796_v48 }
 0x6ee   :  { %v1186_v43 = vmul.f32 %v13824_v42, %v13820_v35  ;;  %12923 = vmatprep.subr.mxu0 %v11804_v49 }
 0x6f0   :  { %12911 = vmatmul.mubr.msk.f32.vlgmr.msra.gmra.mxu1 %vm419_vm6, %v1186_v43 }
 0x6f1   :  { %12920 = vmatprep.mubr.msk.f32.mxu1 %vm419_vm6, %v14305_v58  ;;  %12919 = vmatpush3.msra.mxu1 %v744_v37  ;;  %v11802_v58 = vld [vmem:[%s15957_s4 + $0x48] sm:$0xff] }
 0x6f2   :  { %12934 = vmatprep.subr.mxu1 %v11812_v44 }
 0x6f4   :  { %12921 = vmatmul.mubr.msk.f32.vlgmr.msra.gmra.mxu1 %vm419_vm6, %v14303_v56 }
 0x6f5   :  { %12935 = vmatpush3.msra.mxu1 %v11812_v44  ;;  %12942 = vmatprep.mubr.msk.f32.mxu1 %vm92_vm0, %v14179_v50  ;;  %v11837_v44 = vld [vmem:[%s15957_s4 + $0x78] sm:$0xff] }
 0x6f6   :  { %12936 = vmatprep.subr.mxu1 %v11811_v45 }
 0x6f7   :  { %12937 = vmatpush3.msra.mxu1 %v11811_v45 }
 0x6f8   :  { %12938 = vmatprep.subr.mxu1 %v11810_v46 }
 0x6f9   :  { %12939 = vmatpush3.msra.mxu1 %v11810_v46 }
 0x6fa   :  { %12940 = vmatprep.subr.mxu1 %v11809_v47 }
 0x6fb   :  { %12941 = vmatpush3.msra.mxu1 %v11809_v47 }
 0x6fc   :  { %12943 = vmatmul.mubr.msk.f32.vlgmr.msra.gmra.mxu1 %vm92_vm0, %v14185_v53  ;;  %12956 = vmatprep.subr.mxu1 %v14009_v57 }
 0x6fd   :  { %12958 = vmatprep.mubr.msk.f32.mxu1 %vm14010_vm5, %v14009_v57 }
 0x7ac   :  { %v1256_v51 = vpop.f32.mrf.mxu0 }
 0x7ad   :  { %12915 = vmatprep.mubr.msk.f32.mxu0 %vm419_vm6, %v1256_v51 }
 0x7ae   :  { %v12907_v52 = vpop.f32.mrf.mxu0 }
 0x7af   :  { %v11836_v52 = vld [vmem:[%s15957_s4 + $0x70] sm:$0xff] }
 0x7b0   :  { %v1329_v54 = vpop.f32.mrf.mxu1 }
 0x7b1   :  { %12916 = vmatmul.mubr.msk.f32.vlgmr.msra.gmra.mxu0 %vm419_vm6, %v1329_v54  ;;  %v11835_v54 = vld [vmem:[%s15957_s4 + $0x68] sm:$0xff] }
 0x7b2   :  { %12924 = vmatpush3.msra.mxu0 %v11804_v49  ;;  %v12912_v56 = vpop.f32.mrf.mxu1  ;;  %12931 = vmatprep.mubr.msk.f32.mxu0 %vm92_vm0, %v14179_v50 }
 0x7b3   :  { %12925 = vmatprep.subr.mxu0 %v11803_v55  ;;  %v11853_v56 = vld [vmem:[%s15957_s4 + $0x178] sm:$0xff] }
 0x7b4   :  { %12926 = vmatpush3.msra.mxu0 %v11803_v55  ;;  %v14379_v60 = vpop.f32.mrf.mxu1  ;;  %v11834_v55 = vld [vmem:[%s15957_s4 + $0x60] sm:$0xff] }
 0x7b5   :  { %12927 = vmatprep.subr.mxu0 %v11802_v58 }
 0x7b6   :  { %12928 = vmatpush3.msra.mxu0 %v11802_v58  ;;  %v14389_v63 = vpop.f32.mrf.mxu1  ;;  %v11852_v58 = vld [vmem:[%s15957_s4 + $0x170] sm:$0xff] }
 0x7b7   :  { %12929 = vmatprep.subr.mxu0 %v11801_v59 }
 0x7b8   :  { %12930 = vmatpush3.msra.mxu0 %v11801_v59  ;;  %v11851_v59 = vld [vmem:[%s15957_s4 + $0x168] sm:$0xff] }
 0x7b9   :  { %12932 = vmatmul.mubr.msk.f32.vlgmr.msra.gmra.mxu0 %vm92_vm0, %v14185_v53  ;;  %12945 = vmatprep.subr.mxu0 %v11820_v61 }
 0x7ba   :  { %12946 = vmatpush3.msra.mxu0 %v11820_v61  ;;  %12953 = vmatprep.mubr.msk.f32.mxu0 %vm92_vm0, %v14179_v50  ;;  %v11850_v61 = vld [vmem:[%s15957_s4 + $0x160] sm:$0xff] }
 0x7bb   :  { %12947 = vmatprep.subr.mxu0 %v11819_v62 }
 0x7bc   :  { %v12944_v2 = vpop.f32.mrf.mxu1  ;;  %12948 = vmatpush3.msra.mxu0 %v11819_v62  ;;  %v11831_v62 = vld [vmem:[%s15927_s7 + $0x10] sm:$0xff] }
 0x7bd   :  { %v1670_v4 = vadd.f32 %v12944_v2, %v11814_v0  ;;  %12949 = vmatprep.subr.mxu0 %v11818_v1 }
 0x7be   :  { %v1664_v7 = vpop.f32.mrf.mxu1  ;;  %12950 = vmatpush3.msra.mxu0 %v11818_v1 }
 0x7bf   :  { %v1665_v8 = vadd.f32 %v11814_v0, %v1664_v7  ;;  %12951 = vmatprep.subr.mxu0 %v11817_v3  ;;  %v11845_v0 = vld [vmem:[%s15957_s4 + $0xf8] sm:$0xff] }
 0x7c0   :  { %12952 = vmatpush3.msra.mxu0 %v11817_v3 }
 0x7c1   :  { %12954 = vmatmul.mubr.msk.f32.vlgmr.msra.gmra.mxu0 %vm92_vm0, %v14185_v53  ;;  %12957 = vmatpush3.xpose.msk.msra.mxu1 %vm419_vm6, %v1665_v8  ;;  %v11843_v8 = vld [vmem:[%s15957_s4 + $0xe8] sm:$0xff] }
 0x7c2   :  { %12961 = vmatprep.subr.mxu1 %v14009_v57  ;;  %12966 = vmatprep.subr.mxu0 %v14009_v57 }
 0x7c3   :  { %12968 = vmatprep.mubr.msk.f32.mxu0 %vm14010_vm5, %v14009_v57 }
 0x871   :  { %v14409_v9 = vpop.f32.mrf.mxu0 }
 0x873   :  { %v14411_v10 = vpop.f32.mrf.mxu0 }
 0x879   :  { %v12933_v11 = vpop.f32.mrf.mxu0 }
 0x87a   :  { %v1582_v18 = vadd.f32 %v12933_v11, %v11806_v12  ;;  %v11842_v11 = vld [vmem:[%s15957_s4 + $0xe0] sm:$0xff] }
 0x87b   :  { %v1576_v13 = vpop.f32.mrf.mxu0 }
 0x87c   :  { %v1577_v16 = vadd.f32 %v11806_v12, %v1576_v13  ;;  %v11855_v13 = vld [vmem:[%s15926_s6 + $0xb] ss:$0 sm:$0xff] }
 0x87e   :  { %12959 = vmatmul.mubr.msk.f32.vlgmr.msra.gmra.mxu1 %vm419_vm6, %v1577_v16 }
 0x87f   :  { %12962 = vmatpush3.xpose.msk.msra.mxu1 %vm419_vm6, %v1670_v4  ;;  %12963 = vmatprep.mubr.msk.f32.mxu1 %vm14010_vm5, %v14009_v57  ;;  %v11844_v4 = vld [vmem:[%s15957_s4 + $0xf0] sm:$0xff] }
 0x880   :  { %12971 = vmatprep.subr.mxu1 %v14009_v57 }
 0x881   :  { %v12955_v20 = vpop.f32.mrf.mxu0 }
 0x882   :  { %v1758_v21 = vadd.f32 %v12955_v20, %v11822_v17  ;;  %12964 = vmatmul.mubr.msk.f32.vlgmr.msra.gmra.mxu1 %vm419_vm6, %v1582_v18 }
 0x883   :  { %v1752_v22 = vpop.f32.mrf.mxu0  ;;  %12973 = vmatprep.mubr.msk.f32.mxu1 %vm14010_vm5, %v14009_v57 }
 0x884   :  { %v1753_v23 = vadd.f32 %v11822_v17, %v1752_v22  ;;  %12972 = vmatpush3.msra.mxu1 %v1758_v21  ;;  %v1494_v21 = vadd.f32 %v14379_v60, %v14409_v9 }
 0x885   :  { %12981 = vmatprep.subr.mxu1 %v11837_v44 }
 0x886   :  { %12967 = vmatpush3.msra.mxu0 %v1753_v23 }
 0x887   :  { %12976 = vmatprep.subr.mxu0 %v11831_v62 }
 0x93e   :  { %v1833_v24 = vpop.f32.mrf.mxu1 }
 0x93f   :  { %v1913_v25 = vmul.f32 0.35355338, %v1833_v24 }
 0x940   :  { %v12960_v26 = vpop.f32.mrf.mxu1 }
 0x941   :  { %v1915_v27 = vadd.f32 %v1913_v25, %v14239_v19  ;;  %v11847_v25 = vld [vmem:[%s15926_s6 + $0x7] ss:$0 sm:$0xff] }
 0x942   :  { %v1909_v28 = vpop.f32.mrf.mxu1 }
 0x943   :  { %v1914_v29 = vmul.f32 0.35355338, %v1909_v28  ;;  %v1917_v30 = vsel %vm419_vm6, %v1915_v27, -inf  ;;  %v11839_v28 = vld [vmem:[%s15926_s6 + $0x3] ss:$0 sm:$0xff] }
 0x944   :  { %1918 = vmax.xlane.f32.xlu0 %v1917_v30  ;;  %v12965_v31 = vpop.f32.mrf.mxu1 }
 0x945   :  { %v1916_v32 = vadd.f32 %v1914_v29, %v14236_v15 }
 0x947   :  { %v1920_v33 = vsel %vm419_vm6, %v1916_v32, -inf }
 0x948   :  { %1921 = vmax.xlane.f32.xlu1 %v1920_v33 }
 0x9cd   :  { %v1919_v34 = vpop.xlane.xlu0 %1918 }
 0x9ce   :  { %v1923_v35 = vsub.f32 %v1915_v27, %v1919_v34 }
 0x9d0   :  { %v1925_v36 = vmul.f32 1.442695, %v1923_v35 }
 0x9d1   :  { %v1922_v37 = vpop.xlane.xlu1 %1921 }
 0x9d2   :  { %13825 = vpow2.f32 %v1925_v36  ;;  %v1924_v38 = vsub.f32 %v1916_v32, %v1922_v37 }
 0x9d4   :  { %v1927_v39 = vmul.f32 1.442695, %v1924_v38 }
 0x9d6   :  { %13827 = vpow2.f32 %v1927_v39 }
 0x9df   :  { %v13826_v40 = vpop.eup %13825 }
 0x9e0   :  { %v1929_v41 = vsel %vm419_vm6, %v13826_v40, 0.0 }
 0x9e1   :  { %1930 = vadd.xlane.f32.xlu0 %v1929_v41 }
 0x9e3   :  { %v13828_v42 = vpop.eup %13827 }
 0x9e4   :  { %v1932_v43 = vsel %vm419_vm6, %v13828_v42, 0.0 }
 0x9e5   :  { %1933 = vadd.xlane.f32.xlu1 %v1932_v43 }
 0xa6a   :  { %v1931_v45 = vpop.xlane.xlu0 %1930 }
 0xa6b   :  { %13829 = vrcp.f32 %v1931_v45 }
 0xa6e   :  { %v1934_v46 = vpop.xlane.xlu1 %1933 }
 0xa6f   :  { %13831 = vrcp.f32 %v1934_v46 }
 0xa78   :  { %v13830_v47 = vpop.eup %13829 }
 0xa79   :  { %v1936_v48 = vmul.f32 %v13830_v47, %v13826_v40 }
 0xa7b   :  { %12969 = vmatmul.mubr.msk.f32.vlgmr.msra.gmra.mxu0 %vm419_vm6, %v1936_v48 }
 0xa7c   :  { %v13832_v49 = vpop.eup %13831  ;;  %12977 = vmatpush3.msra.mxu0 %v11831_v62 }
 0xa7d   :  { %v1938_v51 = vmul.f32 %v13832_v49, %v13828_v42  ;;  %12992 = vmatprep.subr.mxu0 %v11845_v0 }
 0xa7f   :  { %12974 = vmatmul.mubr.msk.f32.vlgmr.msra.gmra.mxu1 %vm419_vm6, %v1938_v51 }
 0xa80   :  { %12982 = vmatpush3.msra.mxu1 %v11837_v44  ;;  %12989 = vmatprep.mubr.msk.f32.mxu1 %vm92_vm0, %v14179_v50 }
 0xa81   :  { %12983 = vmatprep.subr.mxu1 %v11836_v52 }
 0xa82   :  { %12984 = vmatpush3.msra.mxu1 %v11836_v52 }
 0xa83   :  { %12985 = vmatprep.subr.mxu1 %v11835_v54 }
 0xa84   :  { %12986 = vmatpush3.msra.mxu1 %v11835_v54 }
 0xa85   :  { %12987 = vmatprep.subr.mxu1 %v11834_v55 }
 0xa86   :  { %12988 = vmatpush3.msra.mxu1 %v11834_v55 }
 0xa87   :  { %12990 = vmatmul.mubr.msk.f32.vlgmr.msra.gmra.mxu1 %vm92_vm0, %v14185_v53  ;;  %13003 = vmatprep.subr.mxu1 %v11853_v56 }
 0xa88   :  { %13004 = vmatpush3.msra.mxu1 %v11853_v56  ;;  %13011 = vmatprep.mubr.msk.f32.mxu1 %vm92_vm0, %v14179_v50 }
 0xa89   :  { %13005 = vmatprep.subr.mxu1 %v11852_v58 }
 0xa8a   :  { %13006 = vmatpush3.msra.mxu1 %v11852_v58 }
 0xa8b   :  { %13007 = vmatprep.subr.mxu1 %v11851_v59 }
 0xa8c   :  { %13008 = vmatpush3.msra.mxu1 %v11851_v59  ;;  %v11864_v59 = vld [vmem:[%s15927_s7 + $0x18] sm:$0xff] }
 0xa8d   :  { %13009 = vmatprep.subr.mxu1 %v11850_v61 }
 0xa8e   :  { %13010 = vmatpush3.msra.mxu1 %v11850_v61 }
 0xa8f   :  { %13012 = vmatmul.mubr.msk.f32.vlgmr.msra.gmra.mxu1 %vm92_vm0, %v14185_v53  ;;  %13024 = vmatprep.subr.mxu1 %v14009_v57 }
 0xa90   :  { %13026 = vmatprep.mubr.msk.f32.mxu1 %vm14010_vm5, %v14009_v57 }
 0xb3b   :  { %v2008_v1 = vpop.f32.mrf.mxu0 }
 0xb3c   :  { %12978 = vmatprep.mubr.msk.f32.mxu0 %vm419_vm6, %v2008_v1 }
 0xb3d   :  { %v12970_v2 = vpop.f32.mrf.mxu0 }
 0xb3e   :  { %v1489_v2 = vadd.f32 %v14389_v63, %v14411_v10 }
 0xb3f   :  { %v2081_v3 = vpop.f32.mrf.mxu1 }
 0xb40   :  { %12979 = vmatmul.mubr.msk.f32.vlgmr.msra.gmra.mxu0 %vm419_vm6, %v2081_v3 }
 0xb41   :  { %12993 = vmatpush3.msra.mxu0 %v11845_v0  ;;  %v12975_v7 = vpop.f32.mrf.mxu1  ;;  %13000 = vmatprep.mubr.msk.f32.mxu0 %vm92_vm0, %v14179_v50 }
 0xb42   :  { %12994 = vmatprep.subr.mxu0 %v11844_v4 }
 0xb43   :  { %12995 = vmatpush3.msra.mxu0 %v11844_v4  ;;  %v11867_v4 = vld [vmem:[%s15928_s8] ss:$0 sm:$0xff] }
 0xb44   :  { %12996 = vmatprep.subr.mxu0 %v11843_v8 }
 0xb45   :  { %12997 = vmatpush3.msra.mxu0 %v11843_v8 }
 0xb46   :  { %12998 = vmatprep.subr.mxu0 %v11842_v11 }
 0xb47   :  { %12999 = vmatpush3.msra.mxu0 %v11842_v11  ;;  %v12991_v50 = vpop.f32.mrf.mxu1 }
 0xb48   :  { %13001 = vmatmul.mubr.msk.f32.vlgmr.msra.gmra.mxu0 %vm92_vm0, %v14185_v53  ;;  %13014 = vmatprep.subr.mxu0 %v14009_v57  ;;  %v2255_v9 = vadd.f32 %v12991_v50, %v11839_v28 }
 0xb49   :  { %13016 = vmatprep.mubr.msk.f32.mxu0 %vm14010_vm5, %v14009_v57  ;;  %v2249_v12 = vpop.f32.mrf.mxu1 }
 0xb4a   :  { %v2250_v29 = vadd.f32 %v11839_v28, %v2249_v12  ;;  %v2917_v28 = vld [vmem:[%s15929_s9 + $0x18] sm:$0xff] }
 0xb4f   :  { %v13013_v16 = vpop.f32.mrf.mxu1 }
 0xb50   :  { %v2431_v17 = vadd.f32 %v13013_v16, %v11855_v13 }
 0xb51   :  { %v2425_v18 = vpop.f32.mrf.mxu1 }
 0xb52   :  { %v2426_v20 = vadd.f32 %v11855_v13, %v2425_v18 }
 0xb54   :  { %13025 = vmatpush3.msra.mxu1 %v2426_v20 }
 0xb55   :  { %13034 = vmatprep.subr.mxu1 %v11864_v59 }
 0xc00   :  { %v12980_v53 = vpop.f32.mrf.mxu0 }
 0xc01   :  { %v14499_v22 = vadd.f32 %v12980_v53, %v1494_v21 }
 0xc02   :  { %v14501_v23 = vpop.f32.mrf.mxu0 }
 0xc03   :  { %v2168_v7 = vadd.f32 %v14501_v23, %v1489_v2 }
 0xc08   :  { %v13002_v24 = vpop.f32.mrf.mxu0 }
 0xc09   :  { %v2343_v60 = vadd.f32 %v13002_v24, %v11847_v25 }
 0xc0a   :  { %v2337_v26 = vpop.f32.mrf.mxu0 }
 0xc0b   :  { %v2338_v27 = vadd.f32 %v11847_v25, %v2337_v26  ;;  %v11878_v26 = vld [vmem:[%s15929_s9 + $0x98] sm:$0xff] }
 0xc0d   :  { %13015 = vmatpush3.xpose.msk.msra.mxu0 %vm419_vm6, %v2338_v27  ;;  %v11877_v27 = vld [vmem:[%s15929_s9 + $0x90] sm:$0xff] }
 0xc0e   :  { %13019 = vmatprep.subr.mxu0 %v14009_v57 }
 0xc10   :  { %13017 = vmatmul.mubr.msk.f32.vlgmr.msra.gmra.mxu0 %vm419_vm6, %v2250_v29  ;;  %v2916_v29 = vld [vmem:[%s15929_s9 + $0x10] sm:$0xff] }
 0xc11   :  { %13020 = vmatpush3.xpose.msk.msra.mxu0 %vm419_vm6, %v2343_v60  ;;  %13021 = vmatprep.mubr.msk.f32.mxu0 %vm14010_vm5, %v14009_v57  ;;  %v11876_v60 = vld [vmem:[%s15929_s9 + $0x88] sm:$0xff] }
 0xc12   :  { %13029 = vmatprep.subr.mxu0 %v14009_v57 }
 0xc14   :  { %13022 = vmatmul.mubr.msk.f32.vlgmr.msra.gmra.mxu0 %vm419_vm6, %v2255_v9  ;;  %v14579_v9 = vld [vmem:[%s15959_s0] sm:$0xff] }
 0xc15   :  { %13030 = vmatpush3.msra.mxu0 %v2431_v17  ;;  %13031 = vmatprep.mubr.msk.f32.mxu0 %vm14010_vm5, %v14009_v57 }
 0xc16   :  { %13039 = vmatprep.subr.mxu0 %v2917_v28 }
 0xcd0   :  { %v2506_v30 = vpop.f32.mrf.mxu0 }
 0xcd1   :  { %v2586_v31 = vmul.f32 0.35355338, %v2506_v30  ;;  %v11875_v30 = vld [vmem:[%s15929_s9 + $0x80] sm:$0xff] }
 0xcd2   :  { %v13018_v32 = vpop.f32.mrf.mxu0 }
 0xcd3   :  { %v2588_v33 = vadd.f32 %v2586_v31, %v14239_v19  ;;  %v2915_v31 = vld [vmem:[%s15929_s9 + $0x8] sm:$0xff] }
 0xcd4   :  { %v2582_v34 = vpop.f32.mrf.mxu0  ;;  %v14592_v32 = vld [vmem:[%s15959_s0 + $0x8] sm:$0xff] }
 0xcd5   :  { %v2587_v35 = vmul.f32 0.35355338, %v2582_v34  ;;  %v2590_v36 = vsel %vm419_vm6, %v2588_v33, -inf }
 0xcd6   :  { %2591 = vmax.xlane.f32.xlu0 %v2590_v36  ;;  %v13023_v37 = vpop.f32.mrf.mxu0 }
 0xcd7   :  { %v2589_v38 = vadd.f32 %v2587_v35, %v14236_v15 }
 0xcd9   :  { %v2593_v39 = vsel %vm419_vm6, %v2589_v38, -inf }
 0xcda   :  { %2594 = vmax.xlane.f32.xlu1 %v2593_v39 }
 0xd5f   :  { %v2592_v40 = vpop.xlane.xlu0 %2591 }
 0xd60   :  { %v2596_v41 = vsub.f32 %v2588_v33, %v2592_v40  ;;  %v2914_v33 = vld [vmem:[%s15929_s9] sm:$0xff] }
 0xd62   :  { %v2598_v42 = vmul.f32 1.442695, %v2596_v41 }
 0xd63   :  { %v2595_v43 = vpop.xlane.xlu1 %2594 }
 0xd64   :  { %13833 = vpow2.f32 %v2598_v42  ;;  %v2597_v44 = vsub.f32 %v2589_v38, %v2595_v43 }
 0xd66   :  { %v2600_v45 = vmul.f32 1.442695, %v2597_v44 }
 0xd68   :  { %13835 = vpow2.f32 %v2600_v45 }
 0xd71   :  { %v13834_v46 = vpop.eup %13833 }
 0xd72   :  { %v2602_v47 = vsel %vm419_vm6, %v13834_v46, 0.0 }
 0xd73   :  { %2603 = vadd.xlane.f32.xlu0 %v2602_v47 }
 0xd75   :  { %v13836_v48 = vpop.eup %13835 }
 0xd76   :  { %v2605_v49 = vsel %vm419_vm6, %v13836_v48, 0.0 }
 0xd77   :  { %2606 = vadd.xlane.f32.xlu1 %v2605_v49 }
 0xdfc   :  { %v2604_v51 = vpop.xlane.xlu0 %2603 }
 0xdfd   :  { %13837 = vrcp.f32 %v2604_v51  ;;  %v11870_v51 = vld [vmem:[%s15937_s17 + $0x1] ss:$0 sm:$0xff] }
 0xe00   :  { %v2607_v52 = vpop.xlane.xlu1 %2606 }
 0xe01   :  { %13839 = vrcp.f32 %v2607_v52 }
 0xe0a   :  { %v13838_v54 = vpop.eup %13837 }
 0xe0b   :  { %v2609_v55 = vmul.f32 %v13838_v54, %v13834_v46 }
 0xe0d   :  { %13027 = vmatmul.mubr.msk.f32.vlgmr.msra.gmra.mxu1 %vm419_vm6, %v2609_v55 }
 0xe0e   :  { %v13840_v56 = vpop.eup %13839  ;;  %13035 = vmatpush3.msra.mxu1 %v11864_v59  ;;  %v11871_v59 = vld [vmem:[%s15938_s18 + $0x1] ss:$0 sm:$0xff] }
 0xe0f   :  { %v2611_v58 = vmul.f32 %v13840_v56, %v13836_v48  ;;  %13050 = vmatprep.subr.mxu1 %v11878_v26 }
 0xe11   :  { %13032 = vmatmul.mubr.msk.f32.vlgmr.msra.gmra.mxu0 %vm419_vm6, %v2611_v58 }
 0xe12   :  { %13040 = vmatpush3.msra.mxu0 %v2917_v28 }
 0xe13   :  { %13041 = vmatprep.subr.mxu0 %v2916_v29 }
 0xe14   :  { %13042 = vmatpush3.msra.mxu0 %v2916_v29 }
 0xe15   :  { %13043 = vmatprep.subr.mxu0 %v2915_v31 }
 0xe16   :  { %13044 = vmatpush3.msra.mxu0 %v2915_v31 }
 0xe17   :  { %13045 = vmatprep.subr.mxu0 %v2914_v33 }
 0xe18   :  { %13046 = vmatpush3.msra.mxu0 %v2914_v33 }
 0xecd   :  { %v2681_v61 = vpop.f32.mrf.mxu1 }
 0xece   :  { %13036 = vmatprep.mubr.msk.f32.mxu1 %vm419_vm6, %v2681_v61 }
 0xecf   :  { %v13028_v62 = vpop.f32.mrf.mxu1 }
 0xed1   :  { %v2754_v0 = vpop.f32.mrf.mxu0 }
 0xed2   :  { %13037 = vmatmul.mubr.msk.f32.vlgmr.msra.gmra.mxu1 %vm419_vm6, %v2754_v0 }
 0xed3   :  { %v13033_v1 = vpop.f32.mrf.mxu0  ;;  %13051 = vmatpush3.msra.mxu1 %v11878_v26  ;;  %13058 = vmatprep.mubr.msk.f32.mxu1 %vm92_vm0, %v14579_v9 }
 0xed4   :  { %13052 = vmatprep.subr.mxu1 %v11877_v27  ;;  %v11880_v1 = vld [vmem:[%s15930_s10 + $0x4] ss:$0 sm:$0xff] }
 0xed5   :  { %13053 = vmatpush3.msra.mxu1 %v11877_v27 }
 0xed6   :  { %13054 = vmatprep.subr.mxu1 %v11876_v60 }
 0xed7   :  { %13055 = vmatpush3.msra.mxu1 %v11876_v60 }
 0xed8   :  { %13056 = vmatprep.subr.mxu1 %v11875_v30 }
 0xed9   :  { %13057 = vmatpush3.msra.mxu1 %v11875_v30 }
 0xeda   :  { %13059 = vmatmul.mubr.msk.f32.vlgmr.msra.gmra.mxu1 %vm92_vm0, %v14592_v32  ;;  %13072 = vmatprep.subr.mxu1 %v14009_v57 }
 0xedb   :  { %13074 = vmatprep.mubr.msk.f32.mxu1 %vm14010_vm5, %v14009_v57 }
 0xf92   :  { %v13038_v3 = vpop.f32.mrf.mxu1 }
 0xf93   :  { %v2842_v8 = vadd.f32 %v13038_v3, %v14499_v22 }
 0xf94   :  { %v2832_v11 = vpop.f32.mrf.mxu1 }
 0xf95   :  { %v2851_v50 = vadd.f32 %v11867_v4, %v2842_v8  ;;  %v2841_v12 = vadd.f32 %v2832_v11, %v2168_v7  ;;  %v11872_v11 = vld [vmem:[%s15930_s10] ss:$0 sm:$0xff] }
 0xf97   :  { %v14540_v13 = vadd.f32 %v2851_v50, %v14136_v6  ;;  %v2850_v16 = vadd.f32 %v11867_v4, %v2841_v12 }
 0xf99   :  { %v14543_v17 = vadd.f32 %v2850_v16, %v14134_v5  ;;  %v2861_v63 = vsel %vm92_vm0, %v14540_v13, 0.0 }
 0xf9a   :  { %2862 = vadd.xlane.f32.xlu1 %v2861_v63  ;;  %v13060_v2 = vpop.f32.mrf.mxu1  ;;  %v11886_v63 = vld [vmem:[%s15929_s9 + $0x118] sm:$0xff] }
 0xf9b   :  { %v2858_v10 = vsel %vm92_vm0, %v14543_v17, 0.0  ;;  %v3097_v3 = vadd.f32 %v13060_v2, %v11880_v1  ;;  %13061 = vmatprep.subr.mxu0 %v11886_v63  ;;  %v11905_v2 = vld [vmem:[%s15929_s9 + $0xa0] sm:$0xff] }
 0xf9c   :  { %2859 = vadd.xlane.f32.xlu0 %v2858_v10  ;;  %v3091_v4 = vpop.f32.mrf.mxu1  ;;  %v11885_v10 = vld [vmem:[%s15929_s9 + $0x110] sm:$0xff] }
 0xf9d   :  { %v3092_v7 = vadd.f32 %v11880_v1, %v3091_v4  ;;  %v11906_v1 = vld [vmem:[%s15929_s9 + $0xa8] sm:$0xff] }
 0xf9f   :  { %13073 = vmatpush3.xpose.msk.msra.mxu1 %vm419_vm6, %v3092_v7 }
 0xfa0   :  { %13077 = vmatprep.subr.mxu1 %v14009_v57 }
0x1023   :  { %v2863_v18 = vpop.xlane.xlu1 %2862 }
0x1024   :  { %v2865_v20 = vmul.f32 0.03125, %v2863_v18  ;;  %v11884_v18 = vld [vmem:[%s15929_s9 + $0x108] sm:$0xff] }
0x1025   :  { %v2860_v21 = vpop.xlane.xlu0 %2859 }
0x1026   :  { %v14550_v53 = vsub.f32 %v14540_v13, %v2865_v20  ;;  %v2864_v6 = vmul.f32 0.03125, %v2860_v21  ;;  %v11883_v20 = vld [vmem:[%s15929_s9 + $0x100] sm:$0xff] }
0x1027   :  { %v69_v21 = vld [vmem:[%s15960_s29] sm:$0xff] }
0x1028   :  { %v14553_v22 = vsub.f32 %v14543_v17, %v2864_v6  ;;  %v2869_v5 = vmul.f32 %v14550_v53, %v14550_v53  ;;  %v2885_v54 = vmul.f32 %v11870_v51, %v14550_v53  ;;  %vm71_vm13 = vcmp.ne.f32.partialorder %v69_v21, 0.0  ;;  %v70_v53 = vld [vmem:[%s15960_s29 + $0x8] sm:$0xff] }
0x1029   :  { %vm72_vm14 = vcmp.ne.f32.partialorder %v70_v53, 0.0 }
0x102a   :  { %v2873_v23 = vsel %vm92_vm0, %v2869_v5, 0.0  ;;  %v2868_v24 = vmul.f32 %v14553_v22, %v14553_v22  ;;  %v2884_v55 = vmul.f32 %v11870_v51, %v14553_v22  ;;  %v14660_v22 = vsel %vm71_vm13, 0.0, %v14011_v14 }
0x102b   :  { %2874 = vadd.xlane.f32.xlu1 %v2873_v23  ;;  %v14664_v26 = vsel %vm72_vm14, 0.0, %v14011_v14 }
0x102c   :  { %v2870_v25 = vsel %vm92_vm0, %v2868_v24, 0.0 }
0x102d   :  { %2871 = vadd.xlane.f32.xlu0 %v2870_v25 }
0x10b4   :  { %v2875_v34 = vpop.xlane.xlu1 %2874 }
0x10b5   :  { %v2877_v35 = vmul.f32 0.032258064, %v2875_v34 }
0x10b6   :  { %v2872_v36 = vpop.xlane.xlu0 %2871 }
0x10b7   :  { %13841 = vrsqrt.f32 %v2877_v35  ;;  %v2876_v37 = vmul.f32 0.032258064, %v2872_v36  ;;  %vm2895_vm9 = vcmp.eq.f32.partialorder %v2877_v35, inf  ;;  %v2898_v40 = vand.u32 2147483648, %v2877_v35 }
0x10b8   :  { %vm2897_vm10 = vcmp.eq.f32.partialorder %v2877_v35, 0.0 }
0x10b9   :  { %13843 = vrsqrt.f32 %v2876_v37  ;;  %vm2888_vm11 = vcmp.eq.f32.partialorder %v2876_v37, inf  ;;  %v2891_v46 = vand.u32 2147483648, %v2876_v37  ;;  %vm2890_vm12 = vcmp.eq.f32.partialorder %v2876_v37, 0.0 }
0x10c4   :  { %v13842_v38 = vpop.eup %13841 }
0x10c5   :  { %v2894_v39 = vmul.f32 %v13842_v38, %v2877_v35 }
0x10c6   :  { %v13844_v41 = vpop.eup %13843 }
0x10c7   :  { %v2896_v42 = vsel %vm2895_vm9, %v2877_v35, %v2894_v39  ;;  %v2887_v44 = vmul.f32 %v13844_v41, %v2876_v37 }
0x10c8   :  { %v2899_v43 = vsel %vm2897_vm10, %v2898_v40, %v2896_v42  ;;  %v11888_v42 = vld [vmem:[%s15930_s10 + $0x8] ss:$0 sm:$0xff] }
0x10c9   :  { %v2901_v45 = vadd.f32 1e-06, %v2899_v43  ;;  %v2889_v47 = vsel %vm2888_vm11, %v2876_v37, %v2887_v44 }
0x10ca   :  { %v2892_v48 = vsel %vm2890_vm12, %v2891_v46, %v2889_v47  ;;  %v11900_v46 = vld [vmem:[%s15929_s9 + $0x38] sm:$0xff] }
0x10cb   :  { %13845 = vrcp.f32 %v2901_v45  ;;  %v2900_v49 = vadd.f32 1e-06, %v2892_v48  ;;  %v11908_v47 = vld [vmem:[%s15929_s9 + $0xb8] sm:$0xff] }
0x10cd   :  { %13847 = vrcp.f32 %v2900_v49 }
0x10d8   :  { %v13846_v52 = vpop.eup %13845 }
0x10d9   :  { %v2905_v58 = vmul.f32 %v13846_v52, %v2885_v54  ;;  %v11899_v54 = vld [vmem:[%s15929_s9 + $0x30] sm:$0xff] }
0x10da   :  { %v13848_v56 = vpop.eup %13847 }
0x10db   :  { %v2903_v61 = vmul.f32 %v13848_v56, %v2884_v55  ;;  %v14612_v0 = vadd.f32 %v11871_v59, %v2905_v58  ;;  %v11898_v56 = vld [vmem:[%s15929_s9 + $0x28] sm:$0xff] }
0x10dd   :  { %v14610_v62 = vadd.f32 %v11871_v59, %v2903_v61  ;;  %v11897_v59 = vld [vmem:[%s15929_s9 + $0x20] sm:$0xff]  ;;  %v11907_v61 = vld [vmem:[%s15929_s9 + $0xb0] sm:$0xff] }
0x10df   :  { %13047 = vmatprep.mubr.msk.f32.mxu0 %vm92_vm0, %v14610_v62 }
0x10e0   :  { %13048 = vmatmul.mubr.msk.f32.vlgmr.msra.gmra.mxu0 %vm92_vm0, %v14612_v0 }
0x10e1   :  { %13069 = vmatprep.mubr.msk.f32.mxu0 %vm92_vm0, %v14579_v9  ;;  %13062 = vmatpush3.msra.mxu0 %v11886_v63 }
0x10e2   :  { %13063 = vmatprep.subr.mxu0 %v11885_v10 }
0x10e3   :  { %13064 = vmatpush3.msra.mxu0 %v11885_v10 }
0x10e4   :  { %13065 = vmatprep.subr.mxu0 %v11884_v18 }
0x10e5   :  { %13066 = vmatpush3.msra.mxu0 %v11884_v18  ;;  %v11902_v18 = vld [vmem:[%s15930_s10 + $0x1] ss:$0 sm:$0xff] }
0x10e6   :  { %13067 = vmatprep.subr.mxu0 %v11883_v20 }
0x10e7   :  { %13068 = vmatpush3.msra.mxu0 %v11883_v20 }
0x10e8   :  { %13070 = vmatmul.mubr.msk.f32.vlgmr.msra.gmra.mxu0 %vm92_vm0, %v14592_v32  ;;  %13082 = vmatprep.subr.mxu0 %v14009_v57 }
0x10e9   :  { %13084 = vmatprep.mubr.msk.f32.mxu0 %vm14010_vm5, %v14009_v57 }
0x11a0   :  { %v13049_v8 = vpop.f32.mrf.mxu0 }
0x11a1   :  { %v3003_v16 = vadd.f32 %v13049_v8, %v11872_v11 }
0x11a2   :  { %v2997_v50 = vpop.f32.mrf.mxu0 }
0x11a3   :  { %v2998_v12 = vadd.f32 %v11872_v11, %v2997_v50 }
0x11a5   :  { %13075 = vmatmul.mubr.msk.f32.vlgmr.msra.gmra.mxu1 %vm419_vm6, %v2998_v12  ;;  %v11910_v12 = vld [vmem:[%s15930_s10 + $0x5] ss:$0 sm:$0xff] }
0x11a6   :  { %13078 = vmatpush3.xpose.msk.msra.mxu1 %vm419_vm6, %v3097_v3  ;;  %13079 = vmatprep.mubr.msk.f32.mxu1 %vm14010_vm5, %v14009_v57 }
0x11a7   :  { %13087 = vmatprep.subr.mxu1 %v14009_v57 }
0x11a8   :  { %v13071_v41 = vpop.f32.mrf.mxu0 }
0x11a9   :  { %13080 = vmatmul.mubr.msk.f32.vlgmr.msra.gmra.mxu1 %vm419_vm6, %v3003_v16  ;;  %v3185_v43 = vadd.f32 %v13071_v41, %v11888_v42 }
0x11aa   :  { %13089 = vmatprep.mubr.msk.f32.mxu1 %vm14010_vm5, %v14009_v57  ;;  %v3179_v44 = vpop.f32.mrf.mxu0 }
0x11ab   :  { %v3180_v45 = vadd.f32 %v11888_v42, %v3179_v44  ;;  %13088 = vmatpush3.msra.mxu1 %v3185_v43 }
0x11ac   :  { %13103 = vmatprep.subr.mxu1 %v11908_v47 }
0x11ad   :  { %13083 = vmatpush3.msra.mxu0 %v3180_v45 }
0x11ae   :  { %13092 = vmatprep.subr.mxu0 %v11900_v46 }
0x1265   :  { %v3260_v6 = vpop.f32.mrf.mxu1 }
0x1266   :  { %v3340_v5 = vmul.f32 0.35355338, %v3260_v6  ;;  %v11916_v6 = vld [vmem:[%s15929_s9 + $0x138] sm:$0xff] }
0x1267   :  { %v13076_v23 = vpop.f32.mrf.mxu1 }
0x1268   :  { %v3342_v24 = vadd.f32 %v3340_v5, %v14660_v22  ;;  %v11915_v5 = vld [vmem:[%s15929_s9 + $0x130] sm:$0xff]  ;;  %v11914_v23 = vld [vmem:[%s15929_s9 + $0x128] sm:$0xff] }
0x1269   :  { %v3336_v25 = vpop.f32.mrf.mxu1 }
0x126a   :  { %v3341_v27 = vmul.f32 0.35355338, %v3336_v25  ;;  %v3344_v28 = vsel %vm419_vm6, %v3342_v24, -inf }
0x126b   :  { %v13081_v29 = vpop.f32.mrf.mxu1  ;;  %3345 = vmax.xlane.f32.xlu1 %v3344_v28 }
0x126c   :  { %v3343_v60 = vadd.f32 %v3341_v27, %v14664_v26 }
0x126e   :  { %v3347_v30 = vsel %vm419_vm6, %v3343_v60, -inf }
0x126f   :  { %3348 = vmax.xlane.f32.xlu0 %v3347_v30 }
0x12f4   :  { %v3346_v31 = vpop.xlane.xlu1 %3345 }
0x12f5   :  { %v3350_v33 = vsub.f32 %v3342_v24, %v3346_v31  ;;  %v11913_v24 = vld [vmem:[%s15929_s9 + $0x120] sm:$0xff] }
0x12f7   :  { %v3352_v34 = vmul.f32 1.442695, %v3350_v33 }
0x12f8   :  { %v3349_v35 = vpop.xlane.xlu0 %3348 }
0x12f9   :  { %13849 = vpow2.f32 %v3352_v34  ;;  %v3351_v36 = vsub.f32 %v3343_v60, %v3349_v35 }
0x12fb   :  { %v3354_v37 = vmul.f32 1.442695, %v3351_v36 }
0x12fd   :  { %13851 = vpow2.f32 %v3354_v37 }
0x1306   :  { %v13850_v14 = vpop.eup %13849 }
0x1307   :  { %v3356_v38 = vsel %vm419_vm6, %v13850_v14, 0.0 }
0x1308   :  { %3357 = vadd.xlane.f32.xlu1 %v3356_v38 }
0x130a   :  { %v13852_v39 = vpop.eup %13851 }
0x130b   :  { %v3359_v40 = vsel %vm419_vm6, %v13852_v39, 0.0 }
0x130c   :  { %3360 = vadd.xlane.f32.xlu0 %v3359_v40 }
0x1391   :  { %v3358_v48 = vpop.xlane.xlu1 %3357 }
0x1392   :  { %13853 = vrcp.f32 %v3358_v48 }
0x1395   :  { %v3361_v49 = vpop.xlane.xlu0 %3360 }
0x1396   :  { %13855 = vrcp.f32 %v3361_v49 }
0x139f   :  { %v13854_v51 = vpop.eup %13853 }
0x13a0   :  { %v3363_v52 = vmul.f32 %v13854_v51, %v13850_v14  ;;  %v3512_v51 = vld [vmem:[%s15931_s11] sm:$0xff] }
0x13a2   :  { %13085 = vmatmul.mubr.msk.f32.vlgmr.msra.gmra.mxu0 %vm419_vm6, %v3363_v52 }
0x13a3   :  { %v13856_v55 = vpop.eup %13855  ;;  %13093 = vmatpush3.msra.mxu0 %v11900_v46  ;;  %13100 = vmatprep.mubr.msk.f32.mxu0 %vm92_vm0, %v14610_v62  ;;  %v11918_v46 = vld [vmem:[%s15930_s10 + $0x9] ss:$0 sm:$0xff] }
0x13a4   :  { %13094 = vmatprep.subr.mxu0 %v11899_v54  ;;  %v3365_v58 = vmul.f32 %v13856_v55, %v13852_v39 }
0x13a5   :  { %13095 = vmatpush3.msra.mxu0 %v11899_v54 }
0x13a6   :  { %13096 = vmatprep.subr.mxu0 %v11898_v56  ;;  %13090 = vmatmul.mubr.msk.f32.vlgmr.msra.gmra.mxu1 %vm419_vm6, %v3365_v58 }
0x13a7   :  { %13097 = vmatpush3.msra.mxu0 %v11898_v56  ;;  %13104 = vmatpush3.msra.mxu1 %v11908_v47 }
0x13a8   :  { %13098 = vmatprep.subr.mxu0 %v11897_v59  ;;  %13105 = vmatprep.subr.mxu1 %v11907_v61 }
0x13a9   :  { %13099 = vmatpush3.msra.mxu0 %v11897_v59  ;;  %13106 = vmatpush3.msra.mxu1 %v11907_v61  ;;  %v11943_v61 = vld [vmem:[%s15929_s9 + $0xd8] sm:$0xff] }
0x13aa   :  { %13101 = vmatmul.mubr.msk.f32.vlgmr.msra.gmra.mxu0 %vm92_vm0, %v14612_v0  ;;  %13107 = vmatprep.subr.mxu1 %v11906_v1 }
0x13ab   :  { %13108 = vmatpush3.msra.mxu1 %v11906_v1  ;;  %13111 = vmatprep.mubr.msk.f32.mxu1 %vm92_vm0, %v14579_v9  ;;  %v11927_v1 = vld [vmem:[%s15931_s11 + $0x8] sm:$0xff] }
0x13ac   :  { %13109 = vmatprep.subr.mxu1 %v11905_v2  ;;  %13122 = vmatprep.mubr.msk.f32.mxu0 %vm92_vm0, %v14579_v9 }
0x13ad   :  { %13110 = vmatpush3.msra.mxu1 %v11905_v2  ;;  %13114 = vmatprep.subr.mxu0 %v11916_v6  ;;  %v11942_v2 = vld [vmem:[%s15929_s9 + $0xd0] sm:$0xff] }
0x13ae   :  { %13112 = vmatmul.mubr.msk.f32.vlgmr.msra.gmra.mxu1 %vm92_vm0, %v14592_v32  ;;  %13125 = vmatprep.subr.mxu1 %v14009_v57 }
0x13af   :  { %13127 = vmatprep.mubr.msk.f32.mxu1 %vm14010_vm5, %v14009_v57  ;;  %13115 = vmatpush3.msra.mxu0 %v11916_v6 }
0x13b0   :  { %13116 = vmatprep.subr.mxu0 %v11915_v5 }
0x13b1   :  { %13117 = vmatpush3.msra.mxu0 %v11915_v5 }
0x13b2   :  { %13118 = vmatprep.subr.mxu0 %v11914_v23 }
0x13b3   :  { %13119 = vmatpush3.msra.mxu0 %v11914_v23 }
0x13b4   :  { %13120 = vmatprep.subr.mxu0 %v11913_v24 }
0x13b5   :  { %13121 = vmatpush3.msra.mxu0 %v11913_v24 }
0x13b6   :  { %13123 = vmatmul.mubr.msk.f32.vlgmr.msra.gmra.mxu0 %vm92_vm0, %v14592_v32  ;;  %13135 = vmatprep.subr.mxu0 %v14009_v57 }
0x13b7   :  { %13137 = vmatprep.mubr.msk.f32.mxu0 %vm14010_vm5, %v14009_v57 }
0x1462   :  { %v14713_v3 = vpop.f32.mrf.mxu0 }
0x1464   :  { %v13086_v4 = vpop.f32.mrf.mxu0 }
0x1465   :  { %v11935_v4 = vld [vmem:[%s15929_s9 + $0x58] sm:$0xff] }
0x1466   :  { %v14715_v7 = vpop.f32.mrf.mxu1 }
0x1468   :  { %v13091_v8 = vpop.f32.mrf.mxu1 }
0x146a   :  { %v13102_v11 = vpop.f32.mrf.mxu0 }
0x146b   :  { %v3598_v53 = vadd.f32 %v13102_v11, %v11902_v18 }
0x146c   :  { %v3592_v63 = vpop.f32.mrf.mxu0 }
0x146d   :  { %v3593_v20 = vadd.f32 %v11902_v18, %v3592_v63  ;;  %v11933_v63 = vld [vmem:[%s15929_s9 + $0x48] sm:$0xff] }
0x146e   :  { %v13113_v50 = vpop.f32.mrf.mxu1 }
0x146f   :  { %v3686_v21 = vadd.f32 %v13113_v50, %v11910_v12 }
0x1470   :  { %v3680_v16 = vpop.f32.mrf.mxu1 }
0x1471   :  { %v3681_v10 = vadd.f32 %v11910_v12, %v3680_v16  ;;  %v11934_v12 = vld [vmem:[%s15929_s9 + $0x50] sm:$0xff] }
0x1473   :  { %13126 = vmatpush3.xpose.msk.msra.mxu1 %vm419_vm6, %v3681_v10  ;;  %v11932_v10 = vld [vmem:[%s15929_s9 + $0x40] sm:$0xff] }
0x1474   :  { %13130 = vmatprep.subr.mxu1 %v14009_v57 }
0x1476   :  { %13128 = vmatmul.mubr.msk.f32.vlgmr.msra.gmra.mxu1 %vm419_vm6, %v3593_v20  ;;  %v13124_v45 = vpop.f32.mrf.mxu0 }
0x1477   :  { %13131 = vmatpush3.xpose.msk.msra.mxu1 %vm419_vm6, %v3686_v21  ;;  %13132 = vmatprep.mubr.msk.f32.mxu1 %vm14010_vm5, %v14009_v57  ;;  %v3774_v47 = vadd.f32 %v13124_v45, %v11918_v46 }
0x1478   :  { %13140 = vmatprep.subr.mxu1 %v14009_v57  ;;  %v3768_v48 = vpop.f32.mrf.mxu0 }
0x1479   :  { %v3769_v49 = vadd.f32 %v11918_v46, %v3768_v48 }
0x147a   :  { %13133 = vmatmul.mubr.msk.f32.vlgmr.msra.gmra.mxu1 %vm419_vm6, %v3598_v53  ;;  %v11945_v53 = vld [vmem:[%s15930_s10 + $0x6] ss:$0 sm:$0xff] }
0x147b   :  { %13142 = vmatprep.mubr.msk.f32.mxu1 %vm14010_vm5, %v14009_v57  ;;  %13141 = vmatpush3.msra.mxu1 %v3774_v47 }
0x147c   :  { %13136 = vmatpush3.msra.mxu0 %v3769_v49  ;;  %13150 = vmatprep.subr.mxu1 %v3512_v51 }
0x147d   :  { %13145 = vmatprep.subr.mxu0 %v11927_v1 }
0x1536   :  { %v3849_v25 = vpop.f32.mrf.mxu1 }
0x1537   :  { %v3929_v27 = vmul.f32 0.35355338, %v3849_v25 }
0x1538   :  { %v13129_v28 = vpop.f32.mrf.mxu1 }
0x1539   :  { %v3931_v29 = vadd.f32 %v3929_v27, %v14660_v22  ;;  %v11937_v28 = vld [vmem:[%s15930_s10 + $0x2] ss:$0 sm:$0xff] }
0x153a   :  { %v3925_v60 = vpop.f32.mrf.mxu1 }
0x153b   :  { %v3930_v30 = vmul.f32 0.35355338, %v3925_v60  ;;  %v3933_v31 = vsel %vm419_vm6, %v3931_v29, -inf }
0x153c   :  { %3934 = vmax.xlane.f32.xlu0 %v3933_v31  ;;  %v13134_v33 = vpop.f32.mrf.mxu1  ;;  %v11951_v31 = vld [vmem:[%s15929_s9 + $0x158] sm:$0xff] }
0x153d   :  { %v3932_v34 = vadd.f32 %v3930_v30, %v14664_v26  ;;  %v11950_v33 = vld [vmem:[%s15929_s9 + $0x150] sm:$0xff] }
0x153f   :  { %v3936_v35 = vsel %vm419_vm6, %v3932_v34, -inf }
0x1540   :  { %3937 = vmax.xlane.f32.xlu1 %v3936_v35  ;;  %v11948_v35 = vld [vmem:[%s15929_s9 + $0x140] sm:$0xff] }
0x15c5   :  { %v3935_v36 = vpop.xlane.xlu0 %3934 }
0x15c6   :  { %v3939_v37 = vsub.f32 %v3931_v29, %v3935_v36 }
0x15c8   :  { %v3941_v14 = vmul.f32 1.442695, %v3939_v37 }
0x15c9   :  { %v3938_v38 = vpop.xlane.xlu1 %3937 }
0x15ca   :  { %13857 = vpow2.f32 %v3941_v14  ;;  %v3940_v39 = vsub.f32 %v3932_v34, %v3938_v38  ;;  %v11949_v34 = vld [vmem:[%s15929_s9 + $0x148] sm:$0xff] }
0x15cc   :  { %v3943_v40 = vmul.f32 1.442695, %v3940_v39 }
0x15ce   :  { %13859 = vpow2.f32 %v3943_v40 }
0x15d7   :  { %v13858_v41 = vpop.eup %13857 }
0x15d8   :  { %v3945_v42 = vsel %vm419_vm6, %v13858_v41, 0.0 }
0x15d9   :  { %3946 = vadd.xlane.f32.xlu0 %v3945_v42 }
0x15db   :  { %v13860_v43 = vpop.eup %13859 }
0x15dc   :  { %v3948_v44 = vsel %vm419_vm6, %v13860_v43, 0.0 }
0x15dd   :  { %3949 = vadd.xlane.f32.xlu1 %v3948_v44 }
0x1662   :  { %v3947_v52 = vpop.xlane.xlu0 %3946 }
0x1663   :  { %13861 = vrcp.f32 %v3947_v52 }
0x1666   :  { %v3950_v54 = vpop.xlane.xlu1 %3949 }
0x1667   :  { %13863 = vrcp.f32 %v3950_v54 }
0x1670   :  { %v13862_v55 = vpop.eup %13861 }
0x1671   :  { %v3952_v56 = vmul.f32 %v13862_v55, %v13858_v41 }
0x1673   :  { %13138 = vmatmul.mubr.msk.f32.vlgmr.msra.gmra.mxu0 %vm419_vm6, %v3952_v56 }
0x1674   :  { %v13864_v58 = vpop.eup %13863  ;;  %13146 = vmatpush3.msra.mxu0 %v11927_v1 }
0x1675   :  { %v3954_v59 = vmul.f32 %v13864_v58, %v13860_v43  ;;  %13155 = vmatprep.subr.mxu0 %v11935_v4 }
0x1677   :  { %13143 = vmatmul.mubr.msk.f32.vlgmr.msra.gmra.mxu1 %vm419_vm6, %v3954_v59  ;;  %v11953_v59 = vld [vmem:[%s15930_s10 + $0xa] ss:$0 sm:$0xff] }
0x1678   :  { %13152 = vmatprep.mubr.msk.f32.mxu1 %vm419_vm6, %v14713_v3  ;;  %13151 = vmatpush3.msra.mxu1 %v3512_v51  ;;  %v11941_v3 = vld [vmem:[%s15929_s9 + $0xc8] sm:$0xff] }
0x1679   :  { %13166 = vmatprep.subr.mxu1 %v11943_v61 }
0x167b   :  { %13153 = vmatmul.mubr.msk.f32.vlgmr.msra.gmra.mxu1 %vm419_vm6, %v14715_v7  ;;  %v11940_v7 = vld [vmem:[%s15929_s9 + $0xc0] sm:$0xff] }
0x167c   :  { %13167 = vmatpush3.msra.mxu1 %v11943_v61  ;;  %13174 = vmatprep.mubr.msk.f32.mxu1 %vm92_vm0, %v14579_v9 }
0x167d   :  { %13168 = vmatprep.subr.mxu1 %v11942_v2 }
0x167e   :  { %13169 = vmatpush3.msra.mxu1 %v11942_v2 }
0x167f   :  { %13170 = vmatprep.subr.mxu1 %v11941_v3 }
0x1680   :  { %13171 = vmatpush3.msra.mxu1 %v11941_v3  ;;  %v11968_v3 = vld [vmem:[%s15929_s9 + $0x78] sm:$0xff] }
0x1681   :  { %13172 = vmatprep.subr.mxu1 %v11940_v7 }
0x1682   :  { %13173 = vmatpush3.msra.mxu1 %v11940_v7 }
0x1683   :  { %13175 = vmatmul.mubr.msk.f32.vlgmr.msra.gmra.mxu1 %vm92_vm0, %v14592_v32  ;;  %13188 = vmatprep.subr.mxu1 %v14009_v57 }
0x1684   :  { %13190 = vmatprep.mubr.msk.f32.mxu1 %vm14010_vm5, %v14009_v57 }
0x1733   :  { %v4024_v8 = vpop.f32.mrf.mxu0 }
0x1734   :  { %13147 = vmatprep.mubr.msk.f32.mxu0 %vm419_vm6, %v4024_v8 }
0x1735   :  { %v13139_v11 = vpop.f32.mrf.mxu0 }
0x1737   :  { %v4097_v50 = vpop.f32.mrf.mxu1 }
0x1738   :  { %13148 = vmatmul.mubr.msk.f32.vlgmr.msra.gmra.mxu0 %vm419_vm6, %v4097_v50 }
0x1739   :  { %13156 = vmatpush3.msra.mxu0 %v11935_v4  ;;  %v13144_v16 = vpop.f32.mrf.mxu1  ;;  %13163 = vmatprep.mubr.msk.f32.mxu0 %vm92_vm0, %v14610_v62 }
0x173a   :  { %13157 = vmatprep.subr.mxu0 %v11934_v12  ;;  %v11967_v16 = vld [vmem:[%s15929_s9 + $0x70] sm:$0xff] }
0x173b   :  { %13158 = vmatpush3.msra.mxu0 %v11934_v12  ;;  %v14810_v18 = vpop.f32.mrf.mxu1 }
0x173c   :  { %13159 = vmatprep.subr.mxu0 %v11933_v63 }
0x173d   :  { %13160 = vmatpush3.msra.mxu0 %v11933_v63  ;;  %v14812_v20 = vpop.f32.mrf.mxu1  ;;  %v11966_v63 = vld [vmem:[%s15929_s9 + $0x68] sm:$0xff] }
0x173e   :  { %13161 = vmatprep.subr.mxu0 %v11932_v10 }
0x173f   :  { %13162 = vmatpush3.msra.mxu0 %v11932_v10  ;;  %v11965_v10 = vld [vmem:[%s15929_s9 + $0x60] sm:$0xff] }
0x1740   :  { %13164 = vmatmul.mubr.msk.f32.vlgmr.msra.gmra.mxu0 %vm92_vm0, %v14612_v0  ;;  %13177 = vmatprep.subr.mxu0 %v11951_v31 }
0x1741   :  { %13185 = vmatprep.mubr.msk.f32.mxu0 %vm92_vm0, %v14579_v9  ;;  %13178 = vmatpush3.msra.mxu0 %v11951_v31 }
0x1742   :  { %13179 = vmatprep.subr.mxu0 %v11950_v33 }
0x1743   :  { %v13176_v21 = vpop.f32.mrf.mxu1  ;;  %13180 = vmatpush3.msra.mxu0 %v11950_v33 }
0x1744   :  { %v4438_v6 = vadd.f32 %v13176_v21, %v11945_v53  ;;  %13181 = vmatprep.subr.mxu0 %v11949_v34  ;;  %v11976_v21 = vld [vmem:[%s15929_s9 + $0xf8] sm:$0xff] }
0x1745   :  { %v4432_v5 = vpop.f32.mrf.mxu1  ;;  %13182 = vmatpush3.msra.mxu0 %v11949_v34 }
0x1746   :  { %v4433_v23 = vadd.f32 %v11945_v53, %v4432_v5  ;;  %13183 = vmatprep.subr.mxu0 %v11948_v35 }
0x1747   :  { %13184 = vmatpush3.msra.mxu0 %v11948_v35 }
0x1748   :  { %13189 = vmatpush3.xpose.msk.msra.mxu1 %vm419_vm6, %v4433_v23  ;;  %13186 = vmatmul.mubr.msk.f32.vlgmr.msra.gmra.mxu0 %vm92_vm0, %v14592_v32 }
0x1749   :  { %13193 = vmatprep.subr.mxu1 %v14009_v57  ;;  %13198 = vmatprep.subr.mxu0 %v14009_v57 }
0x174a   :  { %13200 = vmatprep.mubr.msk.f32.mxu0 %vm14010_vm5, %v14009_v57 }
0x17f8   :  { %v14819_v24 = vpop.f32.mrf.mxu0 }
0x17fa   :  { %v14821_v25 = vpop.f32.mrf.mxu0 }
0x1800   :  { %v13165_v27 = vpop.f32.mrf.mxu0 }
0x1801   :  { %v4350_v30 = vadd.f32 %v13165_v27, %v11937_v28  ;;  %v11974_v27 = vld [vmem:[%s15929_s9 + $0xe8] sm:$0xff] }
0x1802   :  { %v4344_v29 = vpop.f32.mrf.mxu0 }
0x1803   :  { %v4345_v60 = vadd.f32 %v11937_v28, %v4344_v29  ;;  %v11973_v28 = vld [vmem:[%s15929_s9 + $0xe0] sm:$0xff] }
0x1805   :  { %13191 = vmatmul.mubr.msk.f32.vlgmr.msra.gmra.mxu1 %vm419_vm6, %v4345_v60  ;;  %v4257_v60 = vadd.f32 %v14812_v20, %v14821_v25 }
0x1806   :  { %13194 = vmatpush3.xpose.msk.msra.mxu1 %vm419_vm6, %v4438_v6  ;;  %13195 = vmatprep.mubr.msk.f32.mxu1 %vm14010_vm5, %v14009_v57 }
0x1807   :  { %13203 = vmatprep.subr.mxu1 %v14009_v57 }
0x1808   :  { %v13187_v58 = vpop.f32.mrf.mxu0 }
0x1809   :  { %13196 = vmatmul.mubr.msk.f32.vlgmr.msra.gmra.mxu1 %vm419_vm6, %v4350_v30  ;;  %v4526_v61 = vadd.f32 %v13187_v58, %v11953_v59 }
0x180a   :  { %13205 = vmatprep.mubr.msk.f32.mxu1 %vm14010_vm5, %v14009_v57  ;;  %v4520_v1 = vpop.f32.mrf.mxu0 }
0x180b   :  { %v4521_v2 = vadd.f32 %v11953_v59, %v4520_v1  ;;  %13204 = vmatpush3.msra.mxu1 %v4526_v61 }
0x180c   :  { %13213 = vmatprep.subr.mxu1 %v11968_v3 }
0x180d   :  { %13199 = vmatpush3.msra.mxu0 %v4521_v2 }
0x18c5   :  { %v4601_v36 = vpop.f32.mrf.mxu1 }
0x18c6   :  { %v4681_v37 = vmul.f32 0.35355338, %v4601_v36  ;;  %v11978_v36 = vld [vmem:[%s15930_s10 + $0x7] ss:$0 sm:$0xff] }
0x18c7   :  { %v13192_v14 = vpop.f32.mrf.mxu1 }
0x18c8   :  { %v4683_v38 = vadd.f32 %v4681_v37, %v14660_v22 }
0x18c9   :  { %v4677_v39 = vpop.f32.mrf.mxu1 }
0x18ca   :  { %v4682_v40 = vmul.f32 0.35355338, %v4677_v39  ;;  %v4685_v41 = vsel %vm419_vm6, %v4683_v38, -inf  ;;  %v11984_v39 = vld [vmem:[%s15929_s9 + $0x178] sm:$0xff] }
0x18cb   :  { %4686 = vmax.xlane.f32.xlu0 %v4685_v41  ;;  %v13197_v42 = vpop.f32.mrf.mxu1  ;;  %v11982_v41 = vld [vmem:[%s15929_s9 + $0x168] sm:$0xff] }
0x18cc   :  { %v4684_v43 = vadd.f32 %v4682_v40, %v14664_v26  ;;  %v11983_v40 = vld [vmem:[%s15929_s9 + $0x170] sm:$0xff]  ;;  %v11981_v42 = vld [vmem:[%s15929_s9 + $0x160] sm:$0xff] }
0x18ce   :  { %v4688_v44 = vsel %vm419_vm6, %v4684_v43, -inf }
0x18cf   :  { %4689 = vmax.xlane.f32.xlu1 %v4688_v44 }
0x1954   :  { %v4687_v45 = vpop.xlane.xlu0 %4686 }
0x1955   :  { %v4691_v46 = vsub.f32 %v4683_v38, %v4687_v45 }
0x1957   :  { %v4693_v47 = vmul.f32 1.442695, %v4691_v46 }
0x1958   :  { %v4690_v48 = vpop.xlane.xlu1 %4689 }
0x1959   :  { %13865 = vpow2.f32 %v4693_v47  ;;  %v4692_v49 = vsub.f32 %v4684_v43, %v4690_v48 }
0x195b   :  { %v4695_v51 = vmul.f32 1.442695, %v4692_v49 }
0x195d   :  { %13867 = vpow2.f32 %v4695_v51 }
0x1966   :  { %v13866_v52 = vpop.eup %13865 }
0x1967   :  { %v4697_v54 = vsel %vm419_vm6, %v13866_v52, 0.0 }
0x1968   :  { %4698 = vadd.xlane.f32.xlu0 %v4697_v54 }
0x196a   :  { %v13868_v55 = vpop.eup %13867 }
0x196b   :  { %v4700_v56 = vsel %vm419_vm6, %v13868_v55, 0.0 }
0x196c   :  { %4701 = vadd.xlane.f32.xlu1 %v4700_v56 }
0x19f1   :  { %v4699_v4 = vpop.xlane.xlu0 %4698 }
0x19f2   :  { %13869 = vrcp.f32 %v4699_v4 }
0x19f5   :  { %v4702_v7 = vpop.xlane.xlu1 %4701 }
0x19f6   :  { %13871 = vrcp.f32 %v4702_v7 }
0x19ff   :  { %v13870_v8 = vpop.eup %13869 }
0x1a00   :  { %v4704_v11 = vmul.f32 %v13870_v8, %v13866_v52  ;;  %v11986_v8 = vld [vmem:[%s15930_s10 + $0xb] ss:$0 sm:$0xff] }
0x1a02   :  { %13201 = vmatmul.mubr.msk.f32.vlgmr.msra.gmra.mxu0 %vm419_vm6, %v4704_v11 }
0x1a03   :  { %v13872_v50 = vpop.eup %13871 }
0x1a04   :  { %v4706_v12 = vmul.f32 %v13872_v50, %v13868_v55 }
0x1a06   :  { %13206 = vmatmul.mubr.msk.f32.vlgmr.msra.gmra.mxu1 %vm419_vm6, %v4706_v12 }
0x1a07   :  { %13214 = vmatpush3.msra.mxu1 %v11968_v3  ;;  %13221 = vmatprep.mubr.msk.f32.mxu1 %vm92_vm0, %v14610_v62  ;;  %v11962_v62 = vld [vmem:[%s15931_s11 + $0x10] sm:$0xff] }
0x1a08   :  { %13215 = vmatprep.subr.mxu1 %v11967_v16  ;;  %13208 = vmatprep.subr.mxu0 %v11962_v62 }
0x1a09   :  { %13216 = vmatpush3.msra.mxu1 %v11967_v16  ;;  %13209 = vmatpush3.msra.mxu0 %v11962_v62 }
0x1a0a   :  { %13217 = vmatprep.subr.mxu1 %v11966_v63  ;;  %13224 = vmatprep.subr.mxu0 %v11976_v21 }
0x1a0b   :  { %13218 = vmatpush3.msra.mxu1 %v11966_v63 }
0x1a0c   :  { %13219 = vmatprep.subr.mxu1 %v11965_v10 }
0x1a0d   :  { %13220 = vmatpush3.msra.mxu1 %v11965_v10 }
0x1a0e   :  { %13222 = vmatmul.mubr.msk.f32.vlgmr.msra.gmra.mxu1 %vm92_vm0, %v14612_v0  ;;  %v11975_v0 = vld [vmem:[%s15929_s9 + $0xf0] sm:$0xff]  ;;  %13235 = vmatprep.subr.mxu1 %v11984_v39 }
0x1a0f   :  { %13243 = vmatprep.mubr.msk.f32.mxu1 %vm92_vm0, %v14579_v9  ;;  %13236 = vmatpush3.msra.mxu1 %v11984_v39 }
0x1a10   :  { %13237 = vmatprep.subr.mxu1 %v11983_v40 }
0x1a11   :  { %13238 = vmatpush3.msra.mxu1 %v11983_v40 }
0x1a12   :  { %13239 = vmatprep.subr.mxu1 %v11982_v41 }
0x1a13   :  { %13240 = vmatpush3.msra.mxu1 %v11982_v41  ;;  %v5685_v41 = vld [vmem:[%s15933_s13 + $0x18] sm:$0xff] }
0x1a14   :  { %13241 = vmatprep.subr.mxu1 %v11981_v42 }
0x1a15   :  { %13242 = vmatpush3.msra.mxu1 %v11981_v42  ;;  %v5684_v42 = vld [vmem:[%s15933_s13 + $0x10] sm:$0xff] }
0x1a16   :  { %13244 = vmatmul.mubr.msk.f32.vlgmr.msra.gmra.mxu1 %vm92_vm0, %v14592_v32  ;;  %13256 = vmatprep.subr.mxu1 %v14009_v57 }
0x1a17   :  { %13258 = vmatprep.mubr.msk.f32.mxu1 %vm14010_vm5, %v14009_v57 }
0x1ac2   :  { %v4776_v53 = vpop.f32.mrf.mxu0 }
0x1ac3   :  { %13210 = vmatprep.mubr.msk.f32.mxu0 %vm419_vm6, %v4776_v53 }
0x1ac4   :  { %v13202_v6 = vpop.f32.mrf.mxu0 }
0x1ac5   :  { %v11995_v6 = vld [vmem:[%s15931_s11 + $0x18] sm:$0xff] }
0x1ac6   :  { %v4849_v5 = vpop.f32.mrf.mxu1 }
0x1ac7   :  { %13211 = vmatmul.mubr.msk.f32.vlgmr.msra.gmra.mxu0 %vm419_vm6, %v4849_v5 }
0x1ac8   :  { %13225 = vmatpush3.msra.mxu0 %v11976_v21  ;;  %v13207_v23 = vpop.f32.mrf.mxu1  ;;  %13232 = vmatprep.mubr.msk.f32.mxu0 %vm92_vm0, %v14579_v9  ;;  %v4262_v9 = vadd.f32 %v14810_v18, %v14819_v24  ;;  %v11970_v18 = vld [vmem:[%s15930_s10 + $0x3] ss:$0 sm:$0xff] }
0x1ac9   :  { %13226 = vmatprep.subr.mxu0 %v11975_v0 }
0x1aca   :  { %13227 = vmatpush3.msra.mxu0 %v11975_v0 }
0x1acb   :  { %13228 = vmatprep.subr.mxu0 %v11974_v27 }
0x1acc   :  { %13229 = vmatpush3.msra.mxu0 %v11974_v27 }
0x1acd   :  { %13230 = vmatprep.subr.mxu0 %v11973_v28 }
0x1ace   :  { %13231 = vmatpush3.msra.mxu0 %v11973_v28  ;;  %v13223_v34 = vpop.f32.mrf.mxu1 }
0x1acf   :  { %13233 = vmatmul.mubr.msk.f32.vlgmr.msra.gmra.mxu0 %vm92_vm0, %v14592_v32  ;;  %13246 = vmatprep.subr.mxu0 %v14009_v57  ;;  %v5023_v25 = vadd.f32 %v13223_v34, %v11970_v18 }
0x1ad0   :  { %13248 = vmatprep.mubr.msk.f32.mxu0 %vm14010_vm5, %v14009_v57  ;;  %v5017_v14 = vpop.f32.mrf.mxu1 }
0x1ad1   :  { %v5018_v20 = vadd.f32 %v11970_v18, %v5017_v14 }
0x1ad6   :  { %v13245_v7 = vpop.f32.mrf.mxu1 }
0x1ad7   :  { %v5199_v11 = vadd.f32 %v13245_v7, %v11986_v8 }
0x1ad8   :  { %v5193_v50 = vpop.f32.mrf.mxu1 }
0x1ad9   :  { %v5194_v12 = vadd.f32 %v11986_v8, %v5193_v50 }
0x1adb   :  { %13257 = vmatpush3.msra.mxu1 %v5194_v12 }
0x1adc   :  { %13266 = vmatprep.subr.mxu1 %v11995_v6 }
0x1b87   :  { %v13212_v29 = vpop.f32.mrf.mxu0 }
0x1b88   :  { %v14908_v30 = vadd.f32 %v13212_v29, %v4262_v9  ;;  %v11998_v9 = vld [vmem:[%s15932_s12] ss:$0 sm:$0xff] }
0x1b89   :  { %v4927_v31 = vpop.f32.mrf.mxu0 }
0x1b8a   :  { %v14910_v33 = vadd.f32 %v4927_v31, %v4257_v60 }
0x1b8f   :  { %v13234_v35 = vpop.f32.mrf.mxu0 }
0x1b90   :  { %v5111_v24 = vadd.f32 %v13234_v35, %v11978_v36 }
0x1b91   :  { %v5105_v37 = vpop.f32.mrf.mxu0 }
0x1b92   :  { %v5106_v38 = vadd.f32 %v11978_v36, %v5105_v37 }
0x1b94   :  { %13247 = vmatpush3.xpose.msk.msra.mxu0 %vm419_vm6, %v5106_v38 }
0x1b95   :  { %13251 = vmatprep.subr.mxu0 %v14009_v57 }
0x1b97   :  { %13249 = vmatmul.mubr.msk.f32.vlgmr.msra.gmra.mxu0 %vm419_vm6, %v5018_v20 }
0x1b98   :  { %13252 = vmatpush3.xpose.msk.msra.mxu0 %vm419_vm6, %v5111_v24  ;;  %13253 = vmatprep.mubr.msk.f32.mxu0 %vm14010_vm5, %v14009_v57 }
0x1b99   :  { %13261 = vmatprep.subr.mxu0 %v14009_v57 }
0x1b9b   :  { %13254 = vmatmul.mubr.msk.f32.vlgmr.msra.gmra.mxu0 %vm419_vm6, %v5023_v25 }
0x1b9c   :  { %13263 = vmatprep.mubr.msk.f32.mxu0 %vm14010_vm5, %v14009_v57  ;;  %13262 = vmatpush3.msra.mxu0 %v5199_v11  ;;  %v12001_v11 = vld [vmem:[%s15937_s17 + $0x2] ss:$0 sm:$0xff] }
0x1b9d   :  { %13271 = vmatprep.subr.mxu0 %v5685_v41 }
0x1c57   :  { %v5274_v43 = vpop.f32.mrf.mxu0 }
0x1c58   :  { %v5354_v44 = vmul.f32 0.35355338, %v5274_v43  ;;  %v5683_v43 = vld [vmem:[%s15933_s13 + $0x8] sm:$0xff] }
0x1c59   :  { %v13250_v45 = vpop.f32.mrf.mxu0 }
0x1c5a   :  { %v5356_v46 = vadd.f32 %v5354_v44, %v14660_v22  ;;  %v5682_v44 = vld [vmem:[%s15933_s13] sm:$0xff]  ;;  %v5783_v45 = vld [vmem:[%s15935_s15 + $0x38] sm:$0xff] }
0x1c5b   :  { %v5350_v47 = vpop.f32.mrf.mxu0 }
0x1c5c   :  { %v5355_v48 = vmul.f32 0.35355338, %v5350_v47  ;;  %v5358_v49 = vsel %vm419_vm6, %v5356_v46, -inf  ;;  %v5781_v47 = vld [vmem:[%s15935_s15 + $0x28] sm:$0xff] }
0x1c5d   :  { %5359 = vmax.xlane.f32.xlu0 %v5358_v49  ;;  %v13255_v51 = vpop.f32.mrf.mxu0 }
0x1c5e   :  { %v5357_v52 = vadd.f32 %v5355_v48, %v14664_v26  ;;  %v5780_v48 = vld [vmem:[%s15935_s15 + $0x20] sm:$0xff] }
0x1c60   :  { %v5361_v32 = vsel %vm419_vm6, %v5357_v52, -inf }
0x1c61   :  { %5362 = vmax.xlane.f32.xlu1 %v5361_v32 }
0x1ce6   :  { %v5360_v54 = vpop.xlane.xlu0 %5359 }
0x1ce7   :  { %v5364_v55 = vsub.f32 %v5356_v46, %v5360_v54  ;;  %v5782_v46 = vld [vmem:[%s15935_s15 + $0x30] sm:$0xff] }
0x1ce9   :  { %v5366_v56 = vmul.f32 1.442695, %v5364_v55 }
0x1cea   :  { %v5363_v58 = vpop.xlane.xlu1 %5362 }
0x1ceb   :  { %13873 = vpow2.f32 %v5366_v56  ;;  %v5365_v59 = vsub.f32 %v5357_v52, %v5363_v58 }
0x1ced   :  { %v5368_v61 = vmul.f32 1.442695, %v5365_v59 }
0x1cef   :  { %13875 = vpow2.f32 %v5368_v61 }
0x1cf8   :  { %v13874_v1 = vpop.eup %13873 }
0x1cf9   :  { %v5370_v2 = vsel %vm419_vm6, %v13874_v1, 0.0 }
0x1cfa   :  { %5371 = vadd.xlane.f32.xlu0 %v5370_v2 }
0x1cfc   :  { %v13876_v3 = vpop.eup %13875 }
0x1cfd   :  { %v5373_v4 = vsel %vm419_vm6, %v13876_v3, 0.0 }
0x1cfe   :  { %5374 = vadd.xlane.f32.xlu1 %v5373_v4 }
0x1d83   :  { %v5372_v16 = vpop.xlane.xlu0 %5371 }
0x1d84   :  { %13877 = vrcp.f32 %v5372_v16 }
0x1d87   :  { %v5375_v63 = vpop.xlane.xlu1 %5374 }
0x1d88   :  { %13879 = vrcp.f32 %v5375_v63 }
0x1d91   :  { %v13878_v10 = vpop.eup %13877 }
0x1d92   :  { %v5377_v62 = vmul.f32 %v13878_v10, %v13874_v1 }
0x1d94   :  { %13259 = vmatmul.mubr.msk.f32.vlgmr.msra.gmra.mxu1 %vm419_vm6, %v5377_v62  ;;  %v12002_v62 = vld [vmem:[%s15938_s18 + $0x2] ss:$0 sm:$0xff] }
0x1d95   :  { %v13880_v21 = vpop.eup %13879  ;;  %13267 = vmatpush3.msra.mxu1 %v11995_v6 }
0x1d96   :  { %v5379_v53 = vmul.f32 %v13880_v21, %v13876_v3  ;;  %13282 = vmatprep.subr.mxu1 %v5783_v45 }
0x1d98   :  { %13264 = vmatmul.mubr.msk.f32.vlgmr.msra.gmra.mxu0 %vm419_vm6, %v5379_v53 }
0x1d99   :  { %13272 = vmatpush3.msra.mxu0 %v5685_v41 }
0x1d9a   :  { %13273 = vmatprep.subr.mxu0 %v5684_v42 }
0x1d9b   :  { %13274 = vmatpush3.msra.mxu0 %v5684_v42 }
0x1d9c   :  { %13275 = vmatprep.subr.mxu0 %v5683_v43 }
0x1d9d   :  { %13276 = vmatpush3.msra.mxu0 %v5683_v43 }
0x1d9e   :  { %13277 = vmatprep.subr.mxu0 %v5682_v44 }
0x1d9f   :  { %13278 = vmatpush3.msra.mxu0 %v5682_v44 }
0x1e54   :  { %v5449_v5 = vpop.f32.mrf.mxu1 }
0x1e55   :  { %13268 = vmatprep.mubr.msk.f32.mxu1 %vm419_vm6, %v5449_v5  ;;  %v5779_v5 = vld [vmem:[%s15935_s15 + $0x18] sm:$0xff] }
0x1e56   :  { %v13260_v0 = vpop.f32.mrf.mxu1 }
0x1e57   :  { %v5778_v0 = vld [vmem:[%s15935_s15 + $0x10] sm:$0xff] }
0x1e58   :  { %v5522_v23 = vpop.f32.mrf.mxu0 }
0x1e59   :  { %13269 = vmatmul.mubr.msk.f32.vlgmr.msra.gmra.mxu1 %vm419_vm6, %v5522_v23  ;;  %v5777_v23 = vld [vmem:[%s15935_s15 + $0x8] sm:$0xff] }
0x1e5a   :  { %v13265_v27 = vpop.f32.mrf.mxu0  ;;  %13283 = vmatpush3.msra.mxu1 %v5783_v45 }
0x1e5b   :  { %13284 = vmatprep.subr.mxu1 %v5782_v46  ;;  %v5776_v27 = vld [vmem:[%s15935_s15] sm:$0xff] }
0x1e5c   :  { %13285 = vmatpush3.msra.mxu1 %v5782_v46  ;;  %v12016_v46 = vld [vmem:[%s15957_s4 + $0x198] sm:$0xff] }
0x1e5d   :  { %13286 = vmatprep.subr.mxu1 %v5781_v47  ;;  %13301 = vmatprep.subr.mxu0 %v12016_v46 }
0x1e5e   :  { %13287 = vmatpush3.msra.mxu1 %v5781_v47  ;;  %v12032_v47 = vld [vmem:[%s15957_s4 + $0x298] sm:$0xff] }
0x1e5f   :  { %13288 = vmatprep.subr.mxu1 %v5780_v48 }
0x1e60   :  { %13289 = vmatpush3.msra.mxu1 %v5780_v48  ;;  %v12015_v48 = vld [vmem:[%s15957_s4 + $0x190] sm:$0xff] }
0x1e61   :  { %13290 = vmatprep.subr.mxu1 %v5779_v5 }
0x1e62   :  { %13291 = vmatpush3.msra.mxu1 %v5779_v5 }
0x1e63   :  { %13292 = vmatprep.subr.mxu1 %v5778_v0 }
0x1e64   :  { %13293 = vmatpush3.msra.mxu1 %v5778_v0 }
0x1e65   :  { %13294 = vmatprep.subr.mxu1 %v5777_v23 }
0x1e66   :  { %13295 = vmatpush3.msra.mxu1 %v5777_v23  ;;  %v12012_v23 = vld [vmem:[%s15938_s18 + $0x3] ss:$0 sm:$0xff] }
0x1e67   :  { %13296 = vmatprep.subr.mxu1 %v5776_v27 }
0x1e68   :  { %13297 = vmatpush3.msra.mxu1 %v5776_v27 }
0x1e69   :  { %13323 = vmatprep.subr.mxu1 %v12032_v47 }
0x1f19   :  { %v13270_v28 = vpop.f32.mrf.mxu1 }
0x1f1a   :  { %v5610_v29 = vadd.f32 %v13270_v28, %v14908_v30  ;;  %v12003_v28 = vld [vmem:[%s15934_s14] ss:$0 sm:$0xff] }
0x1f1b   :  { %v5600_v60 = vpop.f32.mrf.mxu1 }
0x1f1c   :  { %v5619_v31 = vadd.f32 %v11998_v9, %v5610_v29  ;;  %v5609_v34 = vadd.f32 %v5600_v60, %v14910_v33 }
0x1f1e   :  { %v14967_v35 = vadd.f32 %v5619_v31, %v14540_v13  ;;  %v5618_v36 = vadd.f32 %v11998_v9, %v5609_v34 }
0x1f20   :  { %v14970_v37 = vadd.f32 %v5618_v36, %v14543_v17  ;;  %v5629_v14 = vsel %vm92_vm0, %v14967_v35, 0.0 }
0x1f21   :  { %5630 = vadd.xlane.f32.xlu1 %v5629_v14  ;;  %v12006_v14 = vld [vmem:[%s15961_s27] ss:$0 sm:$0xff] }
0x1f22   :  { %v5626_v38 = vsel %vm92_vm0, %v14970_v37, 0.0 }
0x1f23   :  { %5627 = vadd.xlane.f32.xlu0 %v5626_v38 }
0x1faa   :  { %v5631_v30 = vpop.xlane.xlu1 %5630 }
0x1fab   :  { %v5633_v18 = vmul.f32 0.03125, %v5631_v30 }
0x1fac   :  { %v5628_v20 = vpop.xlane.xlu0 %5627 }
0x1fad   :  { %v5635_v33 = vsub.f32 %v14967_v35, %v5633_v18  ;;  %v5632_v24 = vmul.f32 0.03125, %v5628_v20 }
0x1faf   :  { %v5634_v13 = vsub.f32 %v14970_v37, %v5632_v24  ;;  %v5637_v25 = vmul.f32 %v5635_v33, %v5635_v33  ;;  %v5653_v12 = vmul.f32 %v12001_v11, %v5635_v33 }
0x1fb1   :  { %v5641_v17 = vsel %vm92_vm0, %v5637_v25, 0.0  ;;  %v5636_v39 = vmul.f32 %v5634_v13, %v5634_v13  ;;  %v5652_v16 = vmul.f32 %v12001_v11, %v5634_v13 }
0x1fb2   :  { %5642 = vadd.xlane.f32.xlu1 %v5641_v17 }
0x1fb3   :  { %v5638_v40 = vsel %vm92_vm0, %v5636_v39, 0.0 }
0x1fb4   :  { %5639 = vadd.xlane.f32.xlu0 %v5638_v40 }
0x203b   :  { %v5643_v49 = vpop.xlane.xlu1 %5642 }
0x203c   :  { %v5645_v51 = vmul.f32 0.032258064, %v5643_v49  ;;  %v12031_v49 = vld [vmem:[%s15957_s4 + $0x290] sm:$0xff] }
0x203d   :  { %v5640_v52 = vpop.xlane.xlu0 %5639 }
0x203e   :  { %13881 = vrsqrt.f32 %v5645_v51  ;;  %v5644_v32 = vmul.f32 0.032258064, %v5640_v52  ;;  %vm5663_vm15 = vcmp.eq.f32.partialorder %v5645_v51, inf  ;;  %v5666_v56 = vand.u32 2147483648, %v5645_v51  ;;  %v12030_v52 = vld [vmem:[%s15957_s4 + $0x288] sm:$0xff] }
0x203f   :  { %vm5665_vm1 = vcmp.eq.f32.partialorder %v5645_v51, 0.0 }
0x2040   :  { %13883 = vrsqrt.f32 %v5644_v32  ;;  %vm5656_vm2 = vcmp.eq.f32.partialorder %v5644_v32, inf  ;;  %v5659_v3 = vand.u32 2147483648, %v5644_v32  ;;  %vm5658_vm3 = vcmp.eq.f32.partialorder %v5644_v32, 0.0 }
0x204b   :  { %v13882_v54 = vpop.eup %13881 }
0x204c   :  { %v5662_v55 = vmul.f32 %v13882_v54, %v5645_v51  ;;  %v12029_v54 = vld [vmem:[%s15957_s4 + $0x280] sm:$0xff] }
0x204d   :  { %v13884_v58 = vpop.eup %13883 }
0x204e   :  { %v5664_v59 = vsel %vm5663_vm15, %v5645_v51, %v5662_v55  ;;  %v5655_v1 = vmul.f32 %v13884_v58, %v5644_v32  ;;  %v12014_v51 = vld [vmem:[%s15957_s4 + $0x188] sm:$0xff]  ;;  %v12024_v55 = vld [vmem:[%s15957_s4 + $0x218] sm:$0xff] }
0x204f   :  { %v5667_v61 = vsel %vm5665_vm1, %v5666_v56, %v5664_v59 }
0x2050   :  { %v5669_v2 = vadd.f32 1e-06, %v5667_v61  ;;  %v5657_v4 = vsel %vm5656_vm2, %v5644_v32, %v5655_v1  ;;  %v12013_v32 = vld [vmem:[%s15957_s4 + $0x180] sm:$0xff] }
0x2051   :  { %v5660_v7 = vsel %vm5658_vm3, %v5659_v3, %v5657_v4 }
0x2052   :  { %13885 = vrcp.f32 %v5669_v2  ;;  %v5668_v8 = vadd.f32 1e-06, %v5660_v7 }
0x2054   :  { %13887 = vrcp.f32 %v5668_v8 }
0x205f   :  { %v13886_v50 = vpop.eup %13885 }
0x2060   :  { %v5673_v10 = vmul.f32 %v13886_v50, %v5653_v12 }
0x2061   :  { %v13888_v63 = vpop.eup %13887 }
0x2062   :  { %v5671_v21 = vmul.f32 %v13888_v63, %v5652_v16  ;;  %v5681_v6 = vadd.f32 %v12002_v62, %v5673_v10 }
0x2064   :  { %v5680_v53 = vadd.f32 %v12002_v62, %v5671_v21  ;;  %v12011_v62 = vld [vmem:[%s15937_s17 + $0x3] ss:$0 sm:$0xff] }
0x2066   :  { %13279 = vmatprep.mubr.msk.f32.mxu0 %vm92_vm0, %v5680_v53 }
0x2067   :  { %13280 = vmatmul.mubr.msk.f32.vlgmr.msra.gmra.mxu0 %vm92_vm0, %v5681_v6 }
0x2068   :  { %13302 = vmatpush3.msra.mxu0 %v12016_v46 }
0x2069   :  { %13303 = vmatprep.subr.mxu0 %v12015_v48 }
0x206a   :  { %13304 = vmatpush3.msra.mxu0 %v12015_v48 }
0x206b   :  { %13305 = vmatprep.subr.mxu0 %v12014_v51 }
0x206c   :  { %13306 = vmatpush3.msra.mxu0 %v12014_v51 }
0x206d   :  { %13307 = vmatprep.subr.mxu0 %v12013_v32 }
0x206e   :  { %13308 = vmatpush3.msra.mxu0 %v12013_v32 }
0x206f   :  { %13312 = vmatprep.subr.mxu0 %v12024_v55 }
0x2127   :  { %v13281_v9 = vpop.f32.mrf.mxu0 }
0x2128   :  { %v5771_v29 = vadd.f32 %v13281_v9, %v12003_v28 }
0x2129   :  { %v5765_v60 = vpop.f32.mrf.mxu0 }
0x212a   :  { %v5766_v31 = vadd.f32 %v12003_v28, %v5765_v60  ;;  %v5775_v36 = vmax.f32 %v5771_v29, 0.0  ;;  %v12023_v29 = vld [vmem:[%s15957_s4 + $0x210] sm:$0xff]  ;;  %v12022_v60 = vld [vmem:[%s15957_s4 + $0x208] sm:$0xff] }
0x212c   :  { %v5774_v34 = vmax.f32 %v5766_v31, 0.0  ;;  %v12021_v31 = vld [vmem:[%s15957_s4 + $0x200] sm:$0xff] }
0x212e   :  { %13298 = vmatprep.mubr.msk.f32.mxu1 %vm5791_vm4, %v5774_v34 }
0x212f   :  { %13299 = vmatmul.mubr.msk.f32.vlgmr.msra.gmra.mxu1 %vm5791_vm4, %v5775_v36 }
0x2130   :  { %13324 = vmatpush3.msra.mxu1 %v12032_v47 }
0x2131   :  { %13325 = vmatprep.subr.mxu1 %v12031_v49 }
0x2132   :  { %13326 = vmatpush3.msra.mxu1 %v12031_v49 }
0x2133   :  { %13327 = vmatprep.subr.mxu1 %v12030_v52 }
0x2134   :  { %13328 = vmatpush3.msra.mxu1 %v12030_v52 }
0x2135   :  { %13329 = vmatprep.subr.mxu1 %v12029_v54 }
0x2136   :  { %13330 = vmatpush3.msra.mxu1 %v12029_v54 }
0x2137   :  { %13339 = vmatprep.subr.mxu1 %v14009_v57 }
0x21ef   :  { %v13300_v38 = vpop.f32.mrf.mxu1 }
0x21f0   :  { %v5870_v30 = vadd.f32 %v13300_v38, %v12006_v14 }
0x21f1   :  { %v5864_v18 = vpop.f32.mrf.mxu1 }
0x21f2   :  { %v15033_v20 = vadd.f32 %v5870_v30, %v14967_v35  ;;  %v5865_v33 = vadd.f32 %v12006_v14, %v5864_v18  ;;  %v12026_v14 = vld [vmem:[%s15926_s6 + $0x10] ss:$0 sm:$0xff]  ;;  %v12018_v18 = vld [vmem:[%s15926_s6 + $0xc] ss:$0 sm:$0xff] }
0x21f4   :  { %v15036_v24 = vadd.f32 %v5865_v33, %v14970_v37  ;;  %v5882_v13 = vsel %vm92_vm0, %v15033_v20, 0.0 }
0x21f5   :  { %5883 = vadd.xlane.f32.xlu1 %v5882_v13  ;;  %v12034_v13 = vld [vmem:[%s15926_s6 + $0x14] ss:$0 sm:$0xff] }
0x21f6   :  { %v5879_v25 = vsel %vm92_vm0, %v15036_v24, 0.0 }
0x21f7   :  { %5880 = vadd.xlane.f32.xlu0 %v5879_v25 }
0x227e   :  { %v5884_v17 = vpop.xlane.xlu1 %5883 }
0x227f   :  { %v5886_v39 = vmul.f32 0.03125, %v5884_v17 }
0x2280   :  { %v5881_v40 = vpop.xlane.xlu0 %5880 }
0x2281   :  { %v5888_v41 = vsub.f32 %v15033_v20, %v5886_v39  ;;  %v5885_v42 = vmul.f32 0.03125, %v5881_v40 }
0x2283   :  { %v5887_v35 = vsub.f32 %v15036_v24, %v5885_v42  ;;  %v5890_v43 = vmul.f32 %v5888_v41, %v5888_v41  ;;  %v5906_v53 = vmul.f32 %v12011_v62, %v5888_v41 }
0x2285   :  { %v5894_v37 = vsel %vm92_vm0, %v5890_v43, 0.0  ;;  %v5889_v44 = vmul.f32 %v5887_v35, %v5887_v35  ;;  %v5905_v6 = vmul.f32 %v12011_v62, %v5887_v35  ;;  %v12046_v62 = vld [vmem:[%s15957_s4 + $0x1b0] sm:$0xff] }
0x2286   :  { %5895 = vadd.xlane.f32.xlu1 %v5894_v37 }
0x2287   :  { %v5891_v45 = vsel %vm92_vm0, %v5889_v44, 0.0 }
0x2288   :  { %5892 = vadd.xlane.f32.xlu0 %v5891_v45 }
0x230f   :  { %v5896_v56 = vpop.xlane.xlu1 %5895 }
0x2310   :  { %v5898_v58 = vmul.f32 0.032258064, %v5896_v56 }
0x2311   :  { %v5893_v59 = vpop.xlane.xlu0 %5892 }
0x2312   :  { %13889 = vrsqrt.f32 %v5898_v58  ;;  %v5897_v61 = vmul.f32 0.032258064, %v5893_v59  ;;  %vm5916_vm7 = vcmp.eq.f32.partialorder %v5898_v58, inf  ;;  %v5919_v3 = vand.u32 2147483648, %v5898_v58 }
0x2313   :  { %vm5918_vm8 = vcmp.eq.f32.partialorder %v5898_v58, 0.0 }
0x2314   :  { %13891 = vrsqrt.f32 %v5897_v61  ;;  %vm5909_vm9 = vcmp.eq.f32.partialorder %v5897_v61, inf  ;;  %v5912_v12 = vand.u32 2147483648, %v5897_v61  ;;  %vm5911_vm10 = vcmp.eq.f32.partialorder %v5897_v61, 0.0 }
0x231f   :  { %v13890_v1 = vpop.eup %13889 }
0x2320   :  { %v5915_v2 = vmul.f32 %v13890_v1, %v5898_v58 }
0x2321   :  { %v13892_v4 = vpop.eup %13891 }
0x2322   :  { %v5917_v7 = vsel %vm5916_vm7, %v5898_v58, %v5915_v2  ;;  %v5908_v11 = vmul.f32 %v13892_v4, %v5897_v61  ;;  %v12055_v4 = vld [vmem:[%s15957_s4 + $0x238] sm:$0xff] }
0x2323   :  { %v5920_v8 = vsel %vm5918_vm8, %v5919_v3, %v5917_v7  ;;  %v12047_v7 = vld [vmem:[%s15957_s4 + $0x1b8] sm:$0xff] }
0x2324   :  { %v5922_v50 = vadd.f32 1e-06, %v5920_v8  ;;  %v5910_v16 = vsel %vm5909_vm9, %v5897_v61, %v5908_v11 }
0x2325   :  { %v5913_v63 = vsel %vm5911_vm10, %v5912_v12, %v5910_v16 }
0x2326   :  { %13893 = vrcp.f32 %v5922_v50  ;;  %v5921_v10 = vadd.f32 1e-06, %v5913_v63  ;;  %v12054_v63 = vld [vmem:[%s15957_s4 + $0x230] sm:$0xff] }
0x2328   :  { %13895 = vrcp.f32 %v5921_v10 }
0x2333   :  { %v13894_v21 = vpop.eup %13893 }
0x2334   :  { %v5926_v0 = vmul.f32 %v13894_v21, %v5906_v53  ;;  %v12053_v21 = vld [vmem:[%s15957_s4 + $0x228] sm:$0xff] }
0x2335   :  { %v13896_v5 = vpop.eup %13895  ;;  %v12045_v53 = vld [vmem:[%s15957_s4 + $0x1a8] sm:$0xff] }
0x2336   :  { %v5924_v27 = vmul.f32 %v13896_v5, %v5905_v6  ;;  %v15082_v9 = vadd.f32 %v12012_v23, %v5926_v0  ;;  %v12052_v6 = vld [vmem:[%s15957_s4 + $0x220] sm:$0xff]  ;;  %v12063_v0 = vld [vmem:[%s15957_s4 + $0x2b8] sm:$0xff] }
0x2337   :  { %v12044_v5 = vld [vmem:[%s15957_s4 + $0x1a0] sm:$0xff] }
0x2338   :  { %v15080_v28 = vadd.f32 %v12012_v23, %v5924_v27  ;;  %v12062_v23 = vld [vmem:[%s15957_s4 + $0x2b0] sm:$0xff]  ;;  %v12061_v27 = vld [vmem:[%s15957_s4 + $0x2a8] sm:$0xff] }
0x233a   :  { %13309 = vmatprep.mubr.msk.f32.mxu0 %vm92_vm0, %v15080_v28  ;;  %13331 = vmatprep.mubr.msk.f32.mxu1 %vm92_vm0, %v15080_v28 }
0x233b   :  { %13310 = vmatmul.mubr.msk.f32.vlgmr.msra.gmra.mxu0 %vm92_vm0, %v15082_v9  ;;  %13332 = vmatmul.mubr.msk.f32.vlgmr.msra.gmra.mxu1 %vm92_vm0, %v15082_v9 }
0x233c   :  { %13313 = vmatpush3.msra.mxu0 %v12024_v55  ;;  %13320 = vmatprep.mubr.msk.f32.mxu0 %vm92_vm0, %v15080_v28 }
0x233d   :  { %13314 = vmatprep.subr.mxu0 %v12023_v29  ;;  %13341 = vmatprep.mubr.msk.f32.mxu1 %vm14010_vm5, %v14009_v57 }
0x233e   :  { %13315 = vmatpush3.msra.mxu0 %v12023_v29  ;;  %v12060_v29 = vld [vmem:[%s15957_s4 + $0x2a0] sm:$0xff] }
0x233f   :  { %13316 = vmatprep.subr.mxu0 %v12022_v60 }
0x2340   :  { %13317 = vmatpush3.msra.mxu0 %v12022_v60 }
0x2341   :  { %13318 = vmatprep.subr.mxu0 %v12021_v31 }
0x2342   :  { %13319 = vmatpush3.msra.mxu0 %v12021_v31 }
0x2343   :  { %13321 = vmatmul.mubr.msk.f32.vlgmr.msra.gmra.mxu0 %vm92_vm0, %v15082_v9  ;;  %13334 = vmatprep.subr.mxu0 %v14009_v57 }
0x2344   :  { %13336 = vmatprep.mubr.msk.f32.mxu0 %vm14010_vm5, %v14009_v57 }
0x23fb   :  { %v13311_v34 = vpop.f32.mrf.mxu0  ;;  %v13333_v38 = vpop.f32.mrf.mxu1 }
0x23fc   :  { %v6026_v39 = vadd.f32 %v13311_v34, %v12018_v18  ;;  %v6202_v41 = vadd.f32 %v13333_v38, %v12034_v13 }
0x23fd   :  { %v6020_v36 = vpop.f32.mrf.mxu0  ;;  %v6196_v40 = vpop.f32.mrf.mxu1 }
0x23fe   :  { %v6021_v42 = vadd.f32 %v12018_v18, %v6020_v36  ;;  %v6197_v35 = vadd.f32 %v12034_v13, %v6196_v40  ;;  %v12065_v40 = vld [vmem:[%s15926_s6 + $0x15] ss:$0 sm:$0xff] }
0x2403   :  { %v13322_v30 = vpop.f32.mrf.mxu0 }
0x2404   :  { %v6114_v33 = vadd.f32 %v13322_v30, %v12026_v14  ;;  %v12057_v30 = vld [vmem:[%s15926_s6 + $0x11] ss:$0 sm:$0xff] }
0x2405   :  { %v6108_v25 = vpop.f32.mrf.mxu0 }
0x2406   :  { %v6109_v17 = vadd.f32 %v12026_v14, %v6108_v25  ;;  %13340 = vmatpush3.xpose.msk.msra.mxu1 %vm419_vm6, %v6114_v33  ;;  %v12049_v33 = vld [vmem:[%s15926_s6 + $0xd] ss:$0 sm:$0xff] }
0x2407   :  { %13349 = vmatprep.subr.mxu1 %v14009_v57 }
0x2408   :  { %13335 = vmatpush3.xpose.msk.msra.mxu0 %vm419_vm6, %v6109_v17 }
0x2409   :  { %13342 = vmatmul.mubr.msk.f32.vlgmr.msra.gmra.mxu1 %vm419_vm6, %v6026_v39  ;;  %13344 = vmatprep.subr.mxu0 %v14009_v57 }
0x240a   :  { %13350 = vmatpush3.msra.mxu1 %v6202_v41  ;;  %13351 = vmatprep.mubr.msk.f32.mxu1 %vm14010_vm5, %v14009_v57 }
0x240b   :  { %13337 = vmatmul.mubr.msk.f32.vlgmr.msra.gmra.mxu0 %vm419_vm6, %v6021_v42  ;;  %13365 = vmatprep.subr.mxu1 %v12055_v4 }
0x240c   :  { %13345 = vmatpush3.msra.mxu0 %v6197_v35  ;;  %13346 = vmatprep.mubr.msk.f32.mxu0 %vm14010_vm5, %v14009_v57 }
0x240d   :  { %13354 = vmatprep.subr.mxu0 %v12047_v7 }
0x24c9   :  { %v6353_v43 = vpop.f32.mrf.mxu1 }
0x24ca   :  { %v6358_v37 = vmul.f32 0.35355338, %v6353_v43 }
0x24cb   :  { %v6277_v44 = vpop.f32.mrf.mxu0  ;;  %v13343_v45 = vpop.f32.mrf.mxu1 }
0x24cc   :  { %v6357_v46 = vmul.f32 0.35355338, %v6277_v44  ;;  %v6360_v47 = vadd.f32 %v6358_v37, %v14236_v15 }
0x24cd   :  { %v13338_v48 = vpop.f32.mrf.mxu0 }
0x24ce   :  { %v6364_v49 = vsel %vm419_vm6, %v6360_v47, -inf  ;;  %v6359_v51 = vadd.f32 %v6357_v46, %v14239_v19 }
0x24cf   :  { %6365 = vmax.xlane.f32.xlu0 %v6364_v49 }
0x24d0   :  { %v6361_v52 = vsel %vm419_vm6, %v6359_v51, -inf }
0x24d1   :  { %6362 = vmax.xlane.f32.xlu1 %v6361_v52 }
0x2558   :  { %v6366_v32 = vpop.xlane.xlu0 %6365 }
0x2559   :  { %v6368_v54 = vsub.f32 %v6360_v47, %v6366_v32 }
0x255a   :  { %v6363_v55 = vpop.xlane.xlu1 %6362 }
0x255b   :  { %v6371_v56 = vmul.f32 1.442695, %v6368_v54  ;;  %v6367_v58 = vsub.f32 %v6359_v51, %v6363_v55 }
0x255d   :  { %13897 = vpow2.f32 %v6371_v56  ;;  %v6369_v59 = vmul.f32 1.442695, %v6367_v58 }
0x255f   :  { %13899 = vpow2.f32 %v6369_v59 }
0x256a   :  { %v13898_v61 = vpop.eup %13897 }
0x256b   :  { %v6376_v1 = vsel %vm419_vm6, %v13898_v61, 0.0 }
0x256c   :  { %v13900_v2 = vpop.eup %13899  ;;  %6377 = vadd.xlane.f32.xlu0 %v6376_v1 }
0x256d   :  { %v6373_v3 = vsel %vm419_vm6, %v13900_v2, 0.0 }
0x256e   :  { %6374 = vadd.xlane.f32.xlu1 %v6373_v3 }
0x25f5   :  { %v6378_v8 = vpop.xlane.xlu0 %6377 }
0x25f6   :  { %13901 = vrcp.f32 %v6378_v8  ;;  %v12043_v8 = vld [vmem:[%s15927_s7 + $0x20] sm:$0xff] }
0x25f7   :  { %v6375_v11 = vpop.xlane.xlu1 %6374 }
0x25f8   :  { %13903 = vrcp.f32 %v6375_v11 }
0x2603   :  { %v13902_v50 = vpop.eup %13901 }
0x2604   :  { %v6382_v12 = vmul.f32 %v13902_v50, %v13898_v61 }
0x2605   :  { %v13904_v16 = vpop.eup %13903 }
0x2606   :  { %13352 = vmatmul.mubr.msk.f32.vlgmr.msra.gmra.mxu1 %vm419_vm6, %v6382_v12  ;;  %v6380_v10 = vmul.f32 %v13904_v16, %v13900_v2 }
0x2607   :  { %13366 = vmatpush3.msra.mxu1 %v12055_v4  ;;  %13373 = vmatprep.mubr.msk.f32.mxu1 %vm92_vm0, %v15080_v28 }
0x2608   :  { %13367 = vmatprep.subr.mxu1 %v12054_v63  ;;  %13347 = vmatmul.mubr.msk.f32.vlgmr.msra.gmra.mxu0 %vm419_vm6, %v6380_v10 }
0x2609   :  { %13355 = vmatpush3.msra.mxu0 %v12047_v7  ;;  %13368 = vmatpush3.msra.mxu1 %v12054_v63 }
0x260a   :  { %13356 = vmatprep.subr.mxu0 %v12046_v62  ;;  %13362 = vmatprep.mubr.msk.f32.mxu0 %vm92_vm0, %v15080_v28 }
0x260b   :  { %13369 = vmatprep.subr.mxu1 %v12053_v21  ;;  %13357 = vmatpush3.msra.mxu0 %v12046_v62  ;;  %v12090_v62 = vld [vmem:[%s15957_s4 + $0x258] sm:$0xff] }
0x260c   :  { %13370 = vmatpush3.msra.mxu1 %v12053_v21  ;;  %13358 = vmatprep.subr.mxu0 %v12045_v53  ;;  %v12089_v21 = vld [vmem:[%s15957_s4 + $0x250] sm:$0xff] }
0x260d   :  { %13371 = vmatprep.subr.mxu1 %v12052_v6  ;;  %13359 = vmatpush3.msra.mxu0 %v12045_v53  ;;  %v12088_v53 = vld [vmem:[%s15957_s4 + $0x248] sm:$0xff] }
0x260e   :  { %13372 = vmatpush3.msra.mxu1 %v12052_v6  ;;  %13360 = vmatprep.subr.mxu0 %v12044_v5  ;;  %v12087_v6 = vld [vmem:[%s15957_s4 + $0x240] sm:$0xff] }
0x260f   :  { %13374 = vmatmul.mubr.msk.f32.vlgmr.msra.gmra.mxu1 %vm92_vm0, %v15082_v9  ;;  %13361 = vmatpush3.msra.mxu0 %v12044_v5  ;;  %v12074_v5 = vld [vmem:[%s15927_s7 + $0x28] sm:$0xff] }
0x2610   :  { %13363 = vmatmul.mubr.msk.f32.vlgmr.msra.gmra.mxu0 %vm92_vm0, %v15082_v9  ;;  %13376 = vmatprep.subr.mxu0 %v12063_v0 }
0x2611   :  { %13377 = vmatpush3.msra.mxu0 %v12063_v0  ;;  %13384 = vmatprep.mubr.msk.f32.mxu0 %vm92_vm0, %v15080_v28  ;;  %v12082_v0 = vld [vmem:[%s15957_s4 + $0x1d8] sm:$0xff] }
0x2612   :  { %13378 = vmatprep.subr.mxu0 %v12062_v23  ;;  %13387 = vmatprep.subr.mxu1 %v14009_v57 }
0x2613   :  { %13379 = vmatpush3.msra.mxu0 %v12062_v23  ;;  %13389 = vmatprep.mubr.msk.f32.mxu1 %vm14010_vm5, %v14009_v57 }
0x2614   :  { %13380 = vmatprep.subr.mxu0 %v12061_v27 }
0x2615   :  { %13381 = vmatpush3.msra.mxu0 %v12061_v27 }
0x2616   :  { %13382 = vmatprep.subr.mxu0 %v12060_v29 }
0x2617   :  { %13383 = vmatpush3.msra.mxu0 %v12060_v29 }
0x2618   :  { %13385 = vmatmul.mubr.msk.f32.vlgmr.msra.gmra.mxu0 %vm92_vm0, %v15082_v9  ;;  %13397 = vmatprep.subr.mxu0 %v14009_v57 }
0x2619   :  { %13399 = vmatprep.mubr.msk.f32.mxu0 %vm14010_vm5, %v14009_v57 }
0x26c6   :  { %v15191_v60 = vpop.f32.mrf.mxu1 }
0x26c8   :  { %v15193_v31 = vpop.f32.mrf.mxu0  ;;  %v13353_v34 = vpop.f32.mrf.mxu1 }
0x26c9   :  { %v12080_v34 = vld [vmem:[%s15957_s4 + $0x1c8] sm:$0xff] }
0x26ca   :  { %v13348_v36 = vpop.f32.mrf.mxu0 }
0x26cb   :  { %v12079_v36 = vld [vmem:[%s15957_s4 + $0x1c0] sm:$0xff] }
0x26cf   :  { %v13375_v14 = vpop.f32.mrf.mxu1 }
0x26d0   :  { %v13364_v38 = vpop.f32.mrf.mxu0  ;;  %v6704_v39 = vadd.f32 %v13375_v14, %v12057_v30 }
0x26d1   :  { %v6698_v18 = vpop.f32.mrf.mxu1  ;;  %v6616_v42 = vadd.f32 %v13364_v38, %v12049_v33  ;;  %v12098_v38 = vld [vmem:[%s15957_s4 + $0x2d8] sm:$0xff] }
0x26d2   :  { %v6699_v13 = vadd.f32 %v12057_v30, %v6698_v18  ;;  %v6610_v25 = vpop.f32.mrf.mxu0  ;;  %v12097_v30 = vld [vmem:[%s15957_s4 + $0x2d0] sm:$0xff] }
0x26d3   :  { %v6611_v17 = vadd.f32 %v12049_v33, %v6610_v25  ;;  %v12092_v33 = vld [vmem:[%s15926_s6 + $0x12] ss:$0 sm:$0xff] }
0x26d4   :  { %13388 = vmatpush3.xpose.msk.msra.mxu1 %vm419_vm6, %v6699_v13  ;;  %v12096_v13 = vld [vmem:[%s15957_s4 + $0x2c8] sm:$0xff] }
0x26d5   :  { %13392 = vmatprep.subr.mxu1 %v14009_v57 }
0x26d7   :  { %13390 = vmatmul.mubr.msk.f32.vlgmr.msra.gmra.mxu1 %vm419_vm6, %v6611_v17  ;;  %v12095_v17 = vld [vmem:[%s15957_s4 + $0x2c0] sm:$0xff] }
0x26d8   :  { %13393 = vmatpush3.xpose.msk.msra.mxu1 %vm419_vm6, %v6704_v39  ;;  %v13386_v41 = vpop.f32.mrf.mxu0  ;;  %13394 = vmatprep.mubr.msk.f32.mxu1 %vm14010_vm5, %v14009_v57 }
0x26d9   :  { %v6792_v35 = vadd.f32 %v13386_v41, %v12065_v40  ;;  %13402 = vmatprep.subr.mxu1 %v14009_v57 }
0x26da   :  { %v6786_v43 = vpop.f32.mrf.mxu0 }
0x26db   :  { %v6787_v37 = vadd.f32 %v12065_v40, %v6786_v43  ;;  %13395 = vmatmul.mubr.msk.f32.vlgmr.msra.gmra.mxu1 %vm419_vm6, %v6616_v42 }
0x26dc   :  { %13403 = vmatpush3.msra.mxu1 %v6792_v35  ;;  %13404 = vmatprep.mubr.msk.f32.mxu1 %vm14010_vm5, %v14009_v57 }
0x26dd   :  { %13398 = vmatpush3.msra.mxu0 %v6787_v37  ;;  %13412 = vmatprep.subr.mxu1 %v12043_v8  ;;  %v12084_v37 = vld [vmem:[%s15926_s6 + $0xe] ss:$0 sm:$0xff] }
0x26de   :  { %13407 = vmatprep.subr.mxu0 %v12074_v5 }
0x2797   :  { %v6867_v44 = vpop.f32.mrf.mxu1 }
0x2798   :  { %v6947_v45 = vmul.f32 0.35355338, %v6867_v44 }
0x2799   :  { %v13391_v46 = vpop.f32.mrf.mxu1 }
0x279a   :  { %v6949_v47 = vadd.f32 %v6947_v45, %v14239_v19  ;;  %v12100_v46 = vld [vmem:[%s15926_s6 + $0x16] ss:$0 sm:$0xff] }
0x279b   :  { %v6943_v48 = vpop.f32.mrf.mxu1 }
0x279c   :  { %v6948_v49 = vmul.f32 0.35355338, %v6943_v48  ;;  %v6951_v51 = vsel %vm419_vm6, %v6949_v47, -inf }
0x279d   :  { %6952 = vmax.xlane.f32.xlu0 %v6951_v51  ;;  %v13396_v52 = vpop.f32.mrf.mxu1 }
0x279e   :  { %v6950_v32 = vadd.f32 %v6948_v49, %v14236_v15 }
0x27a0   :  { %v6954_v54 = vsel %vm419_vm6, %v6950_v32, -inf }
0x27a1   :  { %6955 = vmax.xlane.f32.xlu1 %v6954_v54 }
0x2826   :  { %v6953_v55 = vpop.xlane.xlu0 %6952 }
0x2827   :  { %v6957_v56 = vsub.f32 %v6949_v47, %v6953_v55 }
0x2829   :  { %v6959_v58 = vmul.f32 1.442695, %v6957_v56 }
0x282a   :  { %v6956_v59 = vpop.xlane.xlu1 %6955 }
0x282b   :  { %13905 = vpow2.f32 %v6959_v58  ;;  %v6958_v61 = vsub.f32 %v6950_v32, %v6956_v59 }
0x282d   :  { %v6961_v1 = vmul.f32 1.442695, %v6958_v61 }
0x282f   :  { %13907 = vpow2.f32 %v6961_v1 }
0x2838   :  { %v13906_v2 = vpop.eup %13905 }
0x2839   :  { %v6963_v3 = vsel %vm419_vm6, %v13906_v2, 0.0 }
0x283a   :  { %6964 = vadd.xlane.f32.xlu0 %v6963_v3 }
0x283c   :  { %v13908_v4 = vpop.eup %13907 }
0x283d   :  { %v6966_v7 = vsel %vm419_vm6, %v13908_v4, 0.0 }
0x283e   :  { %6967 = vadd.xlane.f32.xlu1 %v6966_v7 }
0x28c3   :  { %v6965_v11 = vpop.xlane.xlu0 %6964 }
0x28c4   :  { %13909 = vrcp.f32 %v6965_v11 }
0x28c7   :  { %v6968_v50 = vpop.xlane.xlu1 %6967 }
0x28c8   :  { %13911 = vrcp.f32 %v6968_v50 }
0x28d1   :  { %v13910_v12 = vpop.eup %13909 }
0x28d2   :  { %v6970_v16 = vmul.f32 %v13910_v12, %v13906_v2 }
0x28d4   :  { %13400 = vmatmul.mubr.msk.f32.vlgmr.msra.gmra.mxu0 %vm419_vm6, %v6970_v16 }
0x28d5   :  { %v13912_v63 = vpop.eup %13911  ;;  %13408 = vmatpush3.msra.mxu0 %v12074_v5 }
0x28d6   :  { %v6972_v10 = vmul.f32 %v13912_v63, %v13908_v4  ;;  %13417 = vmatprep.subr.mxu0 %v12082_v0 }
0x28d8   :  { %13405 = vmatmul.mubr.msk.f32.vlgmr.msra.gmra.mxu1 %vm419_vm6, %v6972_v10 }
0x28d9   :  { %13414 = vmatprep.mubr.msk.f32.mxu1 %vm419_vm6, %v15193_v31  ;;  %13413 = vmatpush3.msra.mxu1 %v12043_v8 }
0x28da   :  { %13428 = vmatprep.subr.mxu1 %v12090_v62 }
0x28dc   :  { %13415 = vmatmul.mubr.msk.f32.vlgmr.msra.gmra.mxu1 %vm419_vm6, %v15191_v60  ;;  %v12081_v60 = vld [vmem:[%s15957_s4 + $0x1d0] sm:$0xff] }
0x28dd   :  { %13429 = vmatpush3.msra.mxu1 %v12090_v62  ;;  %13436 = vmatprep.mubr.msk.f32.mxu1 %vm92_vm0, %v15080_v28 }
0x28de   :  { %13430 = vmatprep.subr.mxu1 %v12089_v21 }
0x28df   :  { %13431 = vmatpush3.msra.mxu1 %v12089_v21  ;;  %v12115_v21 = vld [vmem:[%s15957_s4 + $0x1f8] sm:$0xff] }
0x28e0   :  { %13432 = vmatprep.subr.mxu1 %v12088_v53 }
0x28e1   :  { %13433 = vmatpush3.msra.mxu1 %v12088_v53 }
0x28e2   :  { %13434 = vmatprep.subr.mxu1 %v12087_v6 }
0x28e3   :  { %13435 = vmatpush3.msra.mxu1 %v12087_v6 }
0x28e4   :  { %13437 = vmatmul.mubr.msk.f32.vlgmr.msra.gmra.mxu1 %vm92_vm0, %v15082_v9  ;;  %13450 = vmatprep.subr.mxu1 %v14009_v57 }
0x28e5   :  { %13452 = vmatprep.mubr.msk.f32.mxu1 %vm14010_vm5, %v14009_v57 }
0x2994   :  { %v7042_v23 = vpop.f32.mrf.mxu0 }
0x2995   :  { %13409 = vmatprep.mubr.msk.f32.mxu0 %vm419_vm6, %v7042_v23 }
0x2996   :  { %v13401_v27 = vpop.f32.mrf.mxu0 }
0x2998   :  { %v7115_v29 = vpop.f32.mrf.mxu1 }
0x2999   :  { %13410 = vmatmul.mubr.msk.f32.vlgmr.msra.gmra.mxu0 %vm419_vm6, %v7115_v29  ;;  %v12114_v29 = vld [vmem:[%s15957_s4 + $0x1f0] sm:$0xff] }
0x299a   :  { %13418 = vmatpush3.msra.mxu0 %v12082_v0  ;;  %v13406_v31 = vpop.f32.mrf.mxu1  ;;  %13425 = vmatprep.mubr.msk.f32.mxu0 %vm92_vm0, %v15080_v28 }
0x299b   :  { %13419 = vmatprep.subr.mxu0 %v12081_v60  ;;  %v12112_v31 = vld [vmem:[%s15957_s4 + $0x1e0] sm:$0xff] }
0x299c   :  { %13420 = vmatpush3.msra.mxu0 %v12081_v60  ;;  %v15267_v14 = vpop.f32.mrf.mxu1  ;;  %v12113_v60 = vld [vmem:[%s15957_s4 + $0x1e8] sm:$0xff] }
0x299d   :  { %13421 = vmatprep.subr.mxu0 %v12080_v34 }
0x299e   :  { %13422 = vmatpush3.msra.mxu0 %v12080_v34  ;;  %v15277_v18 = vpop.f32.mrf.mxu1  ;;  %v12131_v34 = vld [vmem:[%s15957_s4 + $0x2f8] sm:$0xff] }
0x299f   :  { %13423 = vmatprep.subr.mxu0 %v12079_v36 }
0x29a0   :  { %13424 = vmatpush3.msra.mxu0 %v12079_v36  ;;  %v12130_v36 = vld [vmem:[%s15957_s4 + $0x2f0] sm:$0xff] }
0x29a1   :  { %13426 = vmatmul.mubr.msk.f32.vlgmr.msra.gmra.mxu0 %vm92_vm0, %v15082_v9  ;;  %13439 = vmatprep.subr.mxu0 %v12098_v38 }
0x29a2   :  { %13440 = vmatpush3.msra.mxu0 %v12098_v38  ;;  %13447 = vmatprep.mubr.msk.f32.mxu0 %vm92_vm0, %v15080_v28  ;;  %v12129_v38 = vld [vmem:[%s15957_s4 + $0x2e8] sm:$0xff] }
0x29a3   :  { %13441 = vmatprep.subr.mxu0 %v12097_v30 }
0x29a4   :  { %v13438_v25 = vpop.f32.mrf.mxu1  ;;  %13442 = vmatpush3.msra.mxu0 %v12097_v30  ;;  %v12128_v30 = vld [vmem:[%s15957_s4 + $0x2e0] sm:$0xff] }
0x29a5   :  { %v7456_v39 = vadd.f32 %v13438_v25, %v12092_v33  ;;  %13443 = vmatprep.subr.mxu0 %v12096_v13 }
0x29a6   :  { %v7450_v40 = vpop.f32.mrf.mxu1  ;;  %13444 = vmatpush3.msra.mxu0 %v12096_v13  ;;  %v12123_v13 = vld [vmem:[%s15957_s4 + $0x278] sm:$0xff] }
0x29a7   :  { %v7451_v41 = vadd.f32 %v12092_v33, %v7450_v40  ;;  %13445 = vmatprep.subr.mxu0 %v12095_v17  ;;  %v12109_v33 = vld [vmem:[%s15927_s7 + $0x30] sm:$0xff] }
0x29a8   :  { %13446 = vmatpush3.msra.mxu0 %v12095_v17  ;;  %v12122_v40 = vld [vmem:[%s15957_s4 + $0x270] sm:$0xff] }
0x29a9   :  { %13448 = vmatmul.mubr.msk.f32.vlgmr.msra.gmra.mxu0 %vm92_vm0, %v15082_v9  ;;  %13451 = vmatpush3.xpose.msk.msra.mxu1 %vm419_vm6, %v7451_v41 }
0x29aa   :  { %13455 = vmatprep.subr.mxu1 %v14009_v57  ;;  %13460 = vmatprep.subr.mxu0 %v14009_v57 }
0x29ab   :  { %13462 = vmatprep.mubr.msk.f32.mxu0 %vm14010_vm5, %v14009_v57 }
0x2a59   :  { %v15297_v42 = vpop.f32.mrf.mxu0 }
0x2a5b   :  { %v15299_v35 = vpop.f32.mrf.mxu0 }
0x2a61   :  { %v13427_v43 = vpop.f32.mrf.mxu0 }
0x2a62   :  { %v7368_v47 = vadd.f32 %v13427_v43, %v12084_v37  ;;  %v12121_v43 = vld [vmem:[%s15957_s4 + $0x268] sm:$0xff] }
0x2a63   :  { %v7362_v44 = vpop.f32.mrf.mxu0 }
0x2a64   :  { %v7363_v45 = vadd.f32 %v12084_v37, %v7362_v44  ;;  %v12120_v37 = vld [vmem:[%s15957_s4 + $0x260] sm:$0xff] }
0x2a66   :  { %13453 = vmatmul.mubr.msk.f32.vlgmr.msra.gmra.mxu1 %vm419_vm6, %v7363_v45  ;;  %v12133_v45 = vld [vmem:[%s15926_s6 + $0x17] ss:$0 sm:$0xff] }
0x2a67   :  { %13456 = vmatpush3.xpose.msk.msra.mxu1 %vm419_vm6, %v7456_v39  ;;  %13457 = vmatprep.mubr.msk.f32.mxu1 %vm14010_vm5, %v14009_v57 }
0x2a68   :  { %13465 = vmatprep.subr.mxu1 %v14009_v57 }
0x2a69   :  { %v13449_v48 = vpop.f32.mrf.mxu0 }
0x2a6a   :  { %v7544_v49 = vadd.f32 %v13449_v48, %v12100_v46  ;;  %13458 = vmatmul.mubr.msk.f32.vlgmr.msra.gmra.mxu1 %vm419_vm6, %v7368_v47 }
0x2a6b   :  { %v7538_v51 = vpop.f32.mrf.mxu0  ;;  %13467 = vmatprep.mubr.msk.f32.mxu1 %vm14010_vm5, %v14009_v57 }
0x2a6c   :  { %v7539_v52 = vadd.f32 %v12100_v46, %v7538_v51  ;;  %13466 = vmatpush3.msra.mxu1 %v7544_v49  ;;  %v7280_v51 = vadd.f32 %v15267_v14, %v15297_v42  ;;  %v12117_v14 = vld [vmem:[%s15926_s6 + $0xf] ss:$0 sm:$0xff] }
0x2a6d   :  { %13475 = vmatprep.subr.mxu1 %v12115_v21 }
0x2a6e   :  { %13461 = vmatpush3.msra.mxu0 %v7539_v52  ;;  %v7275_v52 = vadd.f32 %v15277_v18, %v15299_v35 }
0x2a6f   :  { %13470 = vmatprep.subr.mxu0 %v12109_v33 }
0x2b26   :  { %v7619_v32 = vpop.f32.mrf.mxu1 }
0x2b27   :  { %v7699_v54 = vmul.f32 0.35355338, %v7619_v32 }
0x2b28   :  { %v13454_v55 = vpop.f32.mrf.mxu1 }
0x2b29   :  { %v7701_v56 = vadd.f32 %v7699_v54, %v14239_v19 }
0x2b2a   :  { %v7695_v58 = vpop.f32.mrf.mxu1 }
0x2b2b   :  { %v7700_v59 = vmul.f32 0.35355338, %v7695_v58  ;;  %v7703_v61 = vsel %vm419_vm6, %v7701_v56, -inf  ;;  %v12125_v58 = vld [vmem:[%s15926_s6 + $0x13] ss:$0 sm:$0xff] }
0x2b2c   :  { %7704 = vmax.xlane.f32.xlu0 %v7703_v61  ;;  %v13459_v1 = vpop.f32.mrf.mxu1 }
0x2b2d   :  { %v7702_v2 = vadd.f32 %v7700_v59, %v14236_v15 }
0x2b2f   :  { %v7706_v3 = vsel %vm419_vm6, %v7702_v2, -inf }
0x2b30   :  { %7707 = vmax.xlane.f32.xlu1 %v7706_v3 }
0x2bb5   :  { %v7705_v4 = vpop.xlane.xlu0 %7704 }
0x2bb6   :  { %v7709_v7 = vsub.f32 %v7701_v56, %v7705_v4 }
0x2bb8   :  { %v7711_v8 = vmul.f32 1.442695, %v7709_v7 }
0x2bb9   :  { %v7708_v11 = vpop.xlane.xlu1 %7707 }
0x2bba   :  { %13913 = vpow2.f32 %v7711_v8  ;;  %v7710_v50 = vsub.f32 %v7702_v2, %v7708_v11 }
0x2bbc   :  { %v7713_v12 = vmul.f32 1.442695, %v7710_v50 }
0x2bbe   :  { %13915 = vpow2.f32 %v7713_v12 }
0x2bc7   :  { %v13914_v16 = vpop.eup %13913 }
0x2bc8   :  { %v7715_v63 = vsel %vm419_vm6, %v13914_v16, 0.0 }
0x2bc9   :  { %7716 = vadd.xlane.f32.xlu0 %v7715_v63 }
0x2bcb   :  { %v13916_v10 = vpop.eup %13915 }
0x2bcc   :  { %v7718_v62 = vsel %vm419_vm6, %v13916_v10, 0.0 }
0x2bcd   :  { %7719 = vadd.xlane.f32.xlu1 %v7718_v62 }
0x2c52   :  { %v7717_v53 = vpop.xlane.xlu0 %7716 }
0x2c53   :  { %13917 = vrcp.f32 %v7717_v53 }
0x2c56   :  { %v7720_v6 = vpop.xlane.xlu1 %7719 }
0x2c57   :  { %13919 = vrcp.f32 %v7720_v6 }
0x2c60   :  { %v13918_v5 = vpop.eup %13917 }
0x2c61   :  { %v7722_v0 = vmul.f32 %v13918_v5, %v13914_v16 }
0x2c63   :  { %13463 = vmatmul.mubr.msk.f32.vlgmr.msra.gmra.mxu0 %vm419_vm6, %v7722_v0 }
0x2c64   :  { %v13920_v23 = vpop.eup %13919  ;;  %13471 = vmatpush3.msra.mxu0 %v12109_v33 }
0x2c65   :  { %v7724_v27 = vmul.f32 %v13920_v23, %v13916_v10  ;;  %13486 = vmatprep.subr.mxu0 %v12123_v13 }
0x2c67   :  { %13468 = vmatmul.mubr.msk.f32.vlgmr.msra.gmra.mxu1 %vm419_vm6, %v7724_v27 }
0x2c68   :  { %13476 = vmatpush3.msra.mxu1 %v12115_v21  ;;  %13483 = vmatprep.mubr.msk.f32.mxu1 %vm92_vm0, %v15080_v28 }
0x2c69   :  { %13477 = vmatprep.subr.mxu1 %v12114_v29 }
0x2c6a   :  { %13478 = vmatpush3.msra.mxu1 %v12114_v29 }
0x2c6b   :  { %13479 = vmatprep.subr.mxu1 %v12113_v60 }
0x2c6c   :  { %13480 = vmatpush3.msra.mxu1 %v12113_v60 }
0x2c6d   :  { %13481 = vmatprep.subr.mxu1 %v12112_v31 }
0x2c6e   :  { %13482 = vmatpush3.msra.mxu1 %v12112_v31 }
0x2c6f   :  { %13484 = vmatmul.mubr.msk.f32.vlgmr.msra.gmra.mxu1 %vm92_vm0, %v15082_v9  ;;  %13497 = vmatprep.subr.mxu1 %v12131_v34 }
0x2c70   :  { %13498 = vmatpush3.msra.mxu1 %v12131_v34  ;;  %13505 = vmatprep.mubr.msk.f32.mxu1 %vm92_vm0, %v15080_v28 }
0x2c71   :  { %13499 = vmatprep.subr.mxu1 %v12130_v36 }
0x2c72   :  { %13500 = vmatpush3.msra.mxu1 %v12130_v36  ;;  %v12142_v36 = vld [vmem:[%s15927_s7 + $0x38] sm:$0xff]  ;;  %s11728_s7 = sshll.u32 %s14012_s28, 4  ;;  %s11729_s7 = int_to_ptr.vmem [resolvable:$true] %s11728_s7 }
0x2c73   :  { %13501 = vmatprep.subr.mxu1 %v12129_v38  ;;  %p13992_p1 = scmp.lt.s32.totalorder %s11729_s7, %s11729_s7 }
0x2c74   :  { %13502 = vmatpush3.msra.mxu1 %v12129_v38 }
0x2c75   :  { %13503 = vmatprep.subr.mxu1 %v12128_v30 }
0x2c76   :  { %13504 = vmatpush3.msra.mxu1 %v12128_v30 }
0x2c77   :  { %13506 = vmatmul.mubr.msk.f32.vlgmr.msra.gmra.mxu1 %vm92_vm0, %v15082_v9  ;;  %13518 = vmatprep.subr.mxu1 %v14009_v57 }
0x2c78   :  { %13520 = vmatprep.mubr.msk.f32.mxu1 %vm14010_vm5, %v14009_v57 }
0x2d23   :  { %v7794_v25 = vpop.f32.mrf.mxu0 }
0x2d24   :  { %13472 = vmatprep.mubr.msk.f32.mxu0 %vm419_vm6, %v7794_v25  ;;  %v15425_v25 = vld [vmem:[%s15959_s0] sm:$0xff] }
0x2d25   :  { %v13464_v17 = vpop.f32.mrf.mxu0 }
0x2d27   :  { %v7867_v39 = vpop.f32.mrf.mxu1 }
0x2d28   :  { %13473 = vmatmul.mubr.msk.f32.vlgmr.msra.gmra.mxu0 %vm419_vm6, %v7867_v39  ;;  %v12146_v39 = vld [vmem:[%s15928_s8 + $0x1] ss:$0 sm:$0xff] }
0x2d29   :  { %13487 = vmatpush3.msra.mxu0 %v12123_v13  ;;  %v13469_v41 = vpop.f32.mrf.mxu1  ;;  %13494 = vmatprep.mubr.msk.f32.mxu0 %vm92_vm0, %v15080_v28 }
0x2d2a   :  { %13488 = vmatprep.subr.mxu0 %v12122_v40 }
0x2d2b   :  { %13489 = vmatpush3.msra.mxu0 %v12122_v40 }
0x2d2c   :  { %13490 = vmatprep.subr.mxu0 %v12121_v43 }
0x2d2d   :  { %13491 = vmatpush3.msra.mxu0 %v12121_v43 }
0x2d2e   :  { %13492 = vmatprep.subr.mxu0 %v12120_v37 }
0x2d2f   :  { %13493 = vmatpush3.msra.mxu0 %v12120_v37  ;;  %v13485_v28 = vpop.f32.mrf.mxu1 }
0x2d30   :  { %13495 = vmatmul.mubr.msk.f32.vlgmr.msra.gmra.mxu0 %vm92_vm0, %v15082_v9  ;;  %13508 = vmatprep.subr.mxu0 %v14009_v57  ;;  %v8041_v35 = vadd.f32 %v13485_v28, %v12117_v14 }
0x2d31   :  { %13510 = vmatprep.mubr.msk.f32.mxu0 %vm14010_vm5, %v14009_v57  ;;  %v8035_v44 = vpop.f32.mrf.mxu1 }
0x2d32   :  { %v8036_v42 = vadd.f32 %v12117_v14, %v8035_v44  ;;  %v12160_v14 = vld [vmem:[%s15929_s9 + $0x208] sm:$0xff] }
0x2d37   :  { %v13507_v46 = vpop.f32.mrf.mxu1 }
0x2d38   :  { %v8217_v47 = vadd.f32 %v13507_v46, %v12133_v45 }
0x2d39   :  { %v8211_v48 = vpop.f32.mrf.mxu1 }
0x2d3a   :  { %v8212_v49 = vadd.f32 %v12133_v45, %v8211_v48 }
0x2d3c   :  { %13519 = vmatpush3.msra.mxu1 %v8212_v49 }
0x2d3d   :  { %13528 = vmatprep.subr.mxu1 %v12142_v36 }
0x2de8   :  { %v13474_v9 = vpop.f32.mrf.mxu0 }
0x2de9   :  { %v15389_v32 = vadd.f32 %v13474_v9, %v7280_v51 }
0x2dea   :  { %v7945_v54 = vpop.f32.mrf.mxu0 }
0x2deb   :  { %v15391_v55 = vadd.f32 %v7945_v54, %v7275_v52 }
0x2df0   :  { %v13496_v56 = vpop.f32.mrf.mxu0 }
0x2df1   :  { %v8129_v18 = vadd.f32 %v13496_v56, %v12125_v58  ;;  %v12162_v56 = vld [vmem:[%s15929_s9 + $0x218] sm:$0xff] }
0x2df2   :  { %v8123_v59 = vpop.f32.mrf.mxu0 }
0x2df3   :  { %v8124_v61 = vadd.f32 %v12125_v58, %v8123_v59  ;;  %v12161_v58 = vld [vmem:[%s15929_s9 + $0x210] sm:$0xff]  ;;  %v12154_v59 = vld [vmem:[%s15929_s9 + $0x198] sm:$0xff] }
0x2df5   :  { %13509 = vmatpush3.xpose.msk.msra.mxu0 %vm419_vm6, %v8124_v61  ;;  %v12153_v61 = vld [vmem:[%s15929_s9 + $0x190] sm:$0xff] }
0x2df6   :  { %13513 = vmatprep.subr.mxu0 %v14009_v57 }
0x2df8   :  { %13511 = vmatmul.mubr.msk.f32.vlgmr.msra.gmra.mxu0 %vm419_vm6, %v8036_v42  ;;  %v12152_v42 = vld [vmem:[%s15929_s9 + $0x188] sm:$0xff] }
0x2df9   :  { %13514 = vmatpush3.xpose.msk.msra.mxu0 %vm419_vm6, %v8129_v18  ;;  %13515 = vmatprep.mubr.msk.f32.mxu0 %vm14010_vm5, %v14009_v57  ;;  %v12159_v18 = vld [vmem:[%s15929_s9 + $0x200] sm:$0xff] }
0x2dfa   :  { %13523 = vmatprep.subr.mxu0 %v14009_v57 }
0x2dfc   :  { %13516 = vmatmul.mubr.msk.f32.vlgmr.msra.gmra.mxu0 %vm419_vm6, %v8041_v35  ;;  %v12151_v35 = vld [vmem:[%s15929_s9 + $0x180] sm:$0xff] }
0x2dfd   :  { %13524 = vmatpush3.msra.mxu0 %v8217_v47  ;;  %13525 = vmatprep.mubr.msk.f32.mxu0 %vm14010_vm5, %v14009_v57 }
0x2dfe   :  { %13533 = vmatprep.subr.mxu0 %v12154_v59 }
0x2eb8   :  { %v8292_v1 = vpop.f32.mrf.mxu0 }
0x2eb9   :  { %v8372_v2 = vmul.f32 0.35355338, %v8292_v1  ;;  %v15479_v1 = vld [vmem:[%s15959_s0 + $0x8] sm:$0xff] }
0x2eba   :  { %v13512_v3 = vpop.f32.mrf.mxu0 }
0x2ebb   :  { %v8374_v4 = vadd.f32 %v8372_v2, %v14239_v19 }
0x2ebc   :  { %v8368_v7 = vpop.f32.mrf.mxu0 }
0x2ebd   :  { %v8373_v8 = vmul.f32 0.35355338, %v8368_v7  ;;  %v8376_v11 = vsel %vm419_vm6, %v8374_v4, -inf }
0x2ebe   :  { %8377 = vmax.xlane.f32.xlu0 %v8376_v11  ;;  %v13517_v50 = vpop.f32.mrf.mxu0 }
0x2ebf   :  { %v8375_v12 = vadd.f32 %v8373_v8, %v14236_v15 }
0x2ec1   :  { %v8379_v16 = vsel %vm419_vm6, %v8375_v12, -inf }
0x2ec2   :  { %8380 = vmax.xlane.f32.xlu1 %v8379_v16 }
0x2f47   :  { %v8378_v63 = vpop.xlane.xlu0 %8377 }
0x2f48   :  { %v8382_v10 = vsub.f32 %v8374_v4, %v8378_v63 }
0x2f4a   :  { %v8384_v62 = vmul.f32 1.442695, %v8382_v10 }
0x2f4b   :  { %v8381_v21 = vpop.xlane.xlu1 %8380 }
0x2f4c   :  { %13921 = vpow2.f32 %v8384_v62  ;;  %v8383_v53 = vsub.f32 %v8375_v12, %v8381_v21 }
0x2f4e   :  { %v8386_v6 = vmul.f32 1.442695, %v8383_v53 }
0x2f50   :  { %13923 = vpow2.f32 %v8386_v6 }
0x2f59   :  { %v13922_v19 = vpop.eup %13921 }
0x2f5a   :  { %v8388_v5 = vsel %vm419_vm6, %v13922_v19, 0.0 }
0x2f5b   :  { %8389 = vadd.xlane.f32.xlu0 %v8388_v5  ;;  %v12149_v5 = vld [vmem:[%s15937_s17 + $0x4] ss:$0 sm:$0xff] }
0x2f5d   :  { %v13924_v0 = vpop.eup %13923 }
0x2f5e   :  { %v8391_v23 = vsel %vm419_vm6, %v13924_v0, 0.0 }
0x2f5f   :  { %8392 = vadd.xlane.f32.xlu1 %v8391_v23 }
0x2fe4   :  { %v8390_v15 = vpop.xlane.xlu0 %8389 }
0x2fe5   :  { %13925 = vrcp.f32 %v8390_v15 }
0x2fe8   :  { %v8393_v27 = vpop.xlane.xlu1 %8392 }
0x2fe9   :  { %13927 = vrcp.f32 %v8393_v27 }
0x2ff2   :  { %v13926_v29 = vpop.eup %13925 }
0x2ff3   :  { %v8395_v60 = vmul.f32 %v13926_v29, %v13922_v19 }
0x2ff5   :  { %13521 = vmatmul.mubr.msk.f32.vlgmr.msra.gmra.mxu1 %vm419_vm6, %v8395_v60  ;;  %v12150_v60 = vld [vmem:[%s15938_s18 + $0x4] ss:$0 sm:$0xff] }
0x2ff6   :  { %v13928_v31 = vpop.eup %13927  ;;  %13529 = vmatpush3.msra.mxu1 %v12142_v36 }
0x2ff7   :  { %v8397_v34 = vmul.f32 %v13928_v31, %v13924_v0  ;;  %13544 = vmatprep.subr.mxu1 %v12162_v56 }
0x2ff9   :  { %13526 = vmatmul.mubr.msk.f32.vlgmr.msra.gmra.mxu0 %vm419_vm6, %v8397_v34 }
0x2ffa   :  { %13534 = vmatpush3.msra.mxu0 %v12154_v59 }
0x2ffb   :  { %13535 = vmatprep.subr.mxu0 %v12153_v61 }
0x2ffc   :  { %13536 = vmatpush3.msra.mxu0 %v12153_v61 }
0x2ffd   :  { %13537 = vmatprep.subr.mxu0 %v12152_v42 }
0x2ffe   :  { %13538 = vmatpush3.msra.mxu0 %v12152_v42 }
0x2fff   :  { %13539 = vmatprep.subr.mxu0 %v12151_v35 }
0x3000   :  { %13540 = vmatpush3.msra.mxu0 %v12151_v35 }
0x30b5   :  { %v8467_v38 = vpop.f32.mrf.mxu1 }
0x30b6   :  { %13530 = vmatprep.mubr.msk.f32.mxu1 %vm419_vm6, %v8467_v38  ;;  %v12164_v38 = vld [vmem:[%s15930_s10 + $0x10] ss:$0 sm:$0xff] }
0x30b7   :  { %v13522_v30 = vpop.f32.mrf.mxu1 }
0x30b9   :  { %v8540_v33 = vpop.f32.mrf.mxu0 }
0x30ba   :  { %13531 = vmatmul.mubr.msk.f32.vlgmr.msra.gmra.mxu1 %vm419_vm6, %v8540_v33 }
0x30bb   :  { %v13527_v13 = vpop.f32.mrf.mxu0  ;;  %13552 = vmatprep.mubr.msk.f32.mxu1 %vm92_vm0, %v15425_v25  ;;  %13545 = vmatpush3.msra.mxu1 %v12162_v56 }
0x30bc   :  { %13546 = vmatprep.subr.mxu1 %v12161_v58 }
0x30bd   :  { %13547 = vmatpush3.msra.mxu1 %v12161_v58 }
0x30be   :  { %13548 = vmatprep.subr.mxu1 %v12160_v14 }
0x30bf   :  { %13549 = vmatpush3.msra.mxu1 %v12160_v14 }
0x30c0   :  { %13550 = vmatprep.subr.mxu1 %v12159_v18 }
0x30c1   :  { %13551 = vmatpush3.msra.mxu1 %v12159_v18 }
0x30c2   :  { %13553 = vmatmul.mubr.msk.f32.vlgmr.msra.gmra.mxu1 %vm92_vm0, %v15479_v1  ;;  %13566 = vmatprep.subr.mxu1 %v14009_v57 }
0x30c3   :  { %13568 = vmatprep.mubr.msk.f32.mxu1 %vm14010_vm5, %v14009_v57 }
0x317a   :  { %v13532_v17 = vpop.f32.mrf.mxu1 }
0x317b   :  { %v8628_v40 = vadd.f32 %v13532_v17, %v15389_v32 }
0x317c   :  { %v8618_v41 = vpop.f32.mrf.mxu1 }
0x317d   :  { %v8638_v43 = vadd.f32 %v12146_v39, %v8628_v40  ;;  %v8627_v37 = vadd.f32 %v8618_v41, %v15391_v55  ;;  %v12156_v40 = vld [vmem:[%s15930_s10 + $0xc] ss:$0 sm:$0xff] }
0x317f   :  { %v15435_v28 = vadd.f32 %v8638_v43, %v15033_v20  ;;  %v8637_v44 = vadd.f32 %v12146_v39, %v8627_v37 }
0x3181   :  { %v15438_v45 = vadd.f32 %v8637_v44, %v15036_v24  ;;  %v8648_v46 = vsel %vm92_vm0, %v15435_v28, 0.0  ;;  %v12170_v44 = vld [vmem:[%s15929_s9 + $0x298] sm:$0xff] }
0x3182   :  { %8649 = vadd.xlane.f32.xlu1 %v8648_v46  ;;  %v13554_v30 = vpop.f32.mrf.mxu1  ;;  %v12169_v46 = vld [vmem:[%s15929_s9 + $0x290] sm:$0xff]  ;;  %13555 = vmatprep.subr.mxu0 %v12170_v44 }
0x3183   :  { %v8645_v47 = vsel %vm92_vm0, %v15438_v45, 0.0  ;;  %v8880_v33 = vadd.f32 %v13554_v30, %v12164_v38 }
0x3184   :  { %8646 = vadd.xlane.f32.xlu0 %v8645_v47  ;;  %v8874_v13 = vpop.f32.mrf.mxu1  ;;  %v12168_v47 = vld [vmem:[%s15929_s9 + $0x288] sm:$0xff] }
0x3185   :  { %v8875_v17 = vadd.f32 %v12164_v38, %v8874_v13 }
0x3187   :  { %13567 = vmatpush3.xpose.msk.msra.mxu1 %vm419_vm6, %v8875_v17  ;;  %v12195_v17 = vld [vmem:[%s15930_s10 + $0x11] ss:$0 sm:$0xff] }
0x3188   :  { %13571 = vmatprep.subr.mxu1 %v14009_v57 }
0x320b   :  { %v8650_v48 = vpop.xlane.xlu1 %8649 }
0x320c   :  { %v8652_v49 = vmul.f32 0.03125, %v8650_v48  ;;  %v12167_v48 = vld [vmem:[%s15929_s9 + $0x280] sm:$0xff] }
0x320d   :  { %v8647_v51 = vpop.xlane.xlu0 %8646 }
0x320e   :  { %v15445_v9 = vsub.f32 %v15435_v28, %v8652_v49  ;;  %v8651_v20 = vmul.f32 0.03125, %v8647_v51 }
0x3210   :  { %v8653_v52 = vsub.f32 %v15438_v45, %v8651_v20  ;;  %v8656_v24 = vmul.f32 %v15445_v9, %v15445_v9  ;;  %v8672_v23 = vmul.f32 %v12149_v5, %v15445_v9 }
0x3212   :  { %v8660_v32 = vsel %vm92_vm0, %v8656_v24, 0.0  ;;  %v8655_v54 = vmul.f32 %v8653_v52, %v8653_v52  ;;  %v8671_v15 = vmul.f32 %v12149_v5, %v8653_v52  ;;  %v12183_v5 = vld [vmem:[%s15929_s9 + $0x1a8] sm:$0xff] }
0x3213   :  { %8661 = vadd.xlane.f32.xlu1 %v8660_v32 }
0x3214   :  { %v8657_v55 = vsel %vm92_vm0, %v8655_v54, 0.0 }
0x3215   :  { %8658 = vadd.xlane.f32.xlu0 %v8657_v55 }
0x329c   :  { %v8662_v2 = vpop.xlane.xlu1 %8661 }
0x329d   :  { %v8664_v3 = vmul.f32 0.032258064, %v8662_v2 }
0x329e   :  { %v8659_v4 = vpop.xlane.xlu0 %8658 }
0x329f   :  { %13929 = vrsqrt.f32 %v8664_v3  ;;  %v8663_v7 = vmul.f32 0.032258064, %v8659_v4  ;;  %vm8682_vm11 = vcmp.eq.f32.partialorder %v8664_v3, inf  ;;  %v8685_v50 = vand.u32 2147483648, %v8664_v3 }
0x32a0   :  { %vm8684_vm12 = vcmp.eq.f32.partialorder %v8664_v3, 0.0 }
0x32a1   :  { %13931 = vrsqrt.f32 %v8663_v7  ;;  %vm8675_vm13 = vcmp.eq.f32.partialorder %v8663_v7, inf  ;;  %v8678_v21 = vand.u32 2147483648, %v8663_v7  ;;  %vm8677_vm14 = vcmp.eq.f32.partialorder %v8663_v7, 0.0 }
0x32ac   :  { %v13930_v8 = vpop.eup %13929 }
0x32ad   :  { %v8681_v11 = vmul.f32 %v13930_v8, %v8664_v3  ;;  %v12172_v8 = vld [vmem:[%s15930_s10 + $0x14] ss:$0 sm:$0xff] }
0x32ae   :  { %v13932_v12 = vpop.eup %13931 }
0x32af   :  { %v8683_v16 = vsel %vm8682_vm11, %v8664_v3, %v8681_v11  ;;  %v8674_v10 = vmul.f32 %v13932_v12, %v8663_v7 }
0x32b0   :  { %v8686_v63 = vsel %vm8684_vm12, %v8685_v50, %v8683_v16  ;;  %v12185_v16 = vld [vmem:[%s15929_s9 + $0x1b8] sm:$0xff] }
0x32b1   :  { %v8688_v62 = vadd.f32 1e-06, %v8686_v63  ;;  %v8676_v53 = vsel %vm8675_vm13, %v8663_v7, %v8674_v10  ;;  %v12193_v63 = vld [vmem:[%s15929_s9 + $0x238] sm:$0xff] }
0x32b2   :  { %v8679_v6 = vsel %vm8677_vm14, %v8678_v21, %v8676_v53 }
0x32b3   :  { %13933 = vrcp.f32 %v8688_v62  ;;  %v8687_v19 = vadd.f32 1e-06, %v8679_v6  ;;  %v12184_v6 = vld [vmem:[%s15929_s9 + $0x1b0] sm:$0xff] }
0x32b5   :  { %13935 = vrcp.f32 %v8687_v19 }
0x32c0   :  { %v13934_v0 = vpop.eup %13933 }
0x32c1   :  { %v8692_v29 = vmul.f32 %v13934_v0, %v8672_v23  ;;  %v12182_v23 = vld [vmem:[%s15929_s9 + $0x1a0] sm:$0xff] }
0x32c2   :  { %v13936_v27 = vpop.eup %13935 }
0x32c3   :  { %v8690_v31 = vmul.f32 %v13936_v27, %v8671_v15  ;;  %v15495_v36 = vadd.f32 %v12150_v60, %v8692_v29  ;;  %v12192_v15 = vld [vmem:[%s15929_s9 + $0x230] sm:$0xff]  ;;  %v12191_v27 = vld [vmem:[%s15929_s9 + $0x228] sm:$0xff]  ;;  %v12190_v29 = vld [vmem:[%s15929_s9 + $0x220] sm:$0xff] }
0x32c5   :  { %v15493_v34 = vadd.f32 %v12150_v60, %v8690_v31 }
0x32c7   :  { %13541 = vmatprep.mubr.msk.f32.mxu0 %vm92_vm0, %v15493_v34 }
0x32c8   :  { %13542 = vmatmul.mubr.msk.f32.vlgmr.msra.gmra.mxu0 %vm92_vm0, %v15495_v36 }
0x32c9   :  { %13563 = vmatprep.mubr.msk.f32.mxu0 %vm92_vm0, %v15425_v25  ;;  %13556 = vmatpush3.msra.mxu0 %v12170_v44 }
0x32ca   :  { %13557 = vmatprep.subr.mxu0 %v12169_v46 }
0x32cb   :  { %13558 = vmatpush3.msra.mxu0 %v12169_v46 }
0x32cc   :  { %13559 = vmatprep.subr.mxu0 %v12168_v47 }
0x32cd   :  { %13560 = vmatpush3.msra.mxu0 %v12168_v47  ;;  %v12201_v47 = vld [vmem:[%s15929_s9 + $0x2b8] sm:$0xff] }
0x32ce   :  { %13561 = vmatprep.subr.mxu0 %v12167_v48 }
0x32cf   :  { %13562 = vmatpush3.msra.mxu0 %v12167_v48  ;;  %v12200_v48 = vld [vmem:[%s15929_s9 + $0x2b0] sm:$0xff] }
0x32d0   :  { %13564 = vmatmul.mubr.msk.f32.vlgmr.msra.gmra.mxu0 %vm92_vm0, %v15479_v1  ;;  %13576 = vmatprep.subr.mxu0 %v14009_v57 }
0x32d1   :  { %13578 = vmatprep.mubr.msk.f32.mxu0 %vm14010_vm5, %v14009_v57 }
0x3388   :  { %v13543_v39 = vpop.f32.mrf.mxu0 }
0x3389   :  { %v8792_v37 = vadd.f32 %v13543_v39, %v12156_v40 }
0x338a   :  { %v8786_v41 = vpop.f32.mrf.mxu0 }
0x338b   :  { %v8787_v43 = vadd.f32 %v12156_v40, %v8786_v41 }
0x338d   :  { %13569 = vmatmul.mubr.msk.f32.vlgmr.msra.gmra.mxu1 %vm419_vm6, %v8787_v43  ;;  %v12187_v43 = vld [vmem:[%s15930_s10 + $0xd] ss:$0 sm:$0xff] }
0x338e   :  { %13572 = vmatpush3.xpose.msk.msra.mxu1 %vm419_vm6, %v8880_v33  ;;  %13573 = vmatprep.mubr.msk.f32.mxu1 %vm14010_vm5, %v14009_v57 }
0x338f   :  { %13581 = vmatprep.subr.mxu1 %v14009_v57 }
0x3390   :  { %v13565_v7 = vpop.f32.mrf.mxu0 }
0x3391   :  { %13574 = vmatmul.mubr.msk.f32.vlgmr.msra.gmra.mxu1 %vm419_vm6, %v8792_v37  ;;  %v8968_v11 = vadd.f32 %v13565_v7, %v12172_v8 }
0x3392   :  { %13583 = vmatprep.mubr.msk.f32.mxu1 %vm14010_vm5, %v14009_v57  ;;  %v8962_v50 = vpop.f32.mrf.mxu0 }
0x3393   :  { %v8963_v12 = vadd.f32 %v12172_v8, %v8962_v50  ;;  %13582 = vmatpush3.msra.mxu1 %v8968_v11  ;;  %v12203_v50 = vld [vmem:[%s15930_s10 + $0x15] ss:$0 sm:$0xff] }
0x3394   :  { %13597 = vmatprep.subr.mxu1 %v12193_v63 }
0x3395   :  { %13577 = vmatpush3.msra.mxu0 %v8963_v12 }
0x3396   :  { %13586 = vmatprep.subr.mxu0 %v12185_v16 }
0x344d   :  { %v9043_v49 = vpop.f32.mrf.mxu1 }
0x344e   :  { %v9123_v51 = vmul.f32 0.35355338, %v9043_v49  ;;  %v12199_v49 = vld [vmem:[%s15929_s9 + $0x2a8] sm:$0xff] }
0x344f   :  { %v13570_v9 = vpop.f32.mrf.mxu1 }
0x3450   :  { %v9125_v20 = vadd.f32 %v9123_v51, %v14660_v22  ;;  %v12198_v51 = vld [vmem:[%s15929_s9 + $0x2a0] sm:$0xff] }
0x3451   :  { %v9119_v52 = vpop.f32.mrf.mxu1 }
0x3452   :  { %v9124_v24 = vmul.f32 0.35355338, %v9119_v52  ;;  %v9127_v32 = vsel %vm419_vm6, %v9125_v20, -inf }
0x3453   :  { %9128 = vmax.xlane.f32.xlu1 %v9127_v32  ;;  %v13575_v54 = vpop.f32.mrf.mxu1 }
0x3454   :  { %v9126_v55 = vadd.f32 %v9124_v24, %v14664_v26 }
0x3456   :  { %v9130_v56 = vsel %vm419_vm6, %v9126_v55, -inf }
0x3457   :  { %9131 = vmax.xlane.f32.xlu0 %v9130_v56 }
0x34dc   :  { %v9129_v58 = vpop.xlane.xlu1 %9128 }
0x34dd   :  { %v9133_v59 = vsub.f32 %v9125_v20, %v9129_v58 }
0x34df   :  { %v9135_v61 = vmul.f32 1.442695, %v9133_v59 }
0x34e0   :  { %v9132_v14 = vpop.xlane.xlu0 %9131 }
0x34e1   :  { %13937 = vpow2.f32 %v9135_v61  ;;  %v9134_v42 = vsub.f32 %v9126_v55, %v9132_v14 }
0x34e3   :  { %v9137_v18 = vmul.f32 1.442695, %v9134_v42 }
0x34e5   :  { %13939 = vpow2.f32 %v9137_v18 }
0x34ee   :  { %v13938_v35 = vpop.eup %13937 }
0x34ef   :  { %v9139_v2 = vsel %vm419_vm6, %v13938_v35, 0.0 }
0x34f0   :  { %9140 = vadd.xlane.f32.xlu1 %v9139_v2 }
0x34f2   :  { %v13940_v3 = vpop.eup %13939 }
0x34f3   :  { %v9142_v4 = vsel %vm419_vm6, %v13940_v3, 0.0 }
0x34f4   :  { %9143 = vadd.xlane.f32.xlu0 %v9142_v4 }
0x3579   :  { %v9141_v10 = vpop.xlane.xlu1 %9140 }
0x357a   :  { %13941 = vrcp.f32 %v9141_v10  ;;  %v12181_v10 = vld [vmem:[%s15931_s11 + $0x20] sm:$0xff] }
0x357d   :  { %v9144_v62 = vpop.xlane.xlu0 %9143 }
0x357e   :  { %13943 = vrcp.f32 %v9144_v62 }
0x3587   :  { %v13942_v21 = vpop.eup %13941 }
0x3588   :  { %v9146_v53 = vmul.f32 %v13942_v21, %v13938_v35 }
0x358a   :  { %13579 = vmatmul.mubr.msk.f32.vlgmr.msra.gmra.mxu0 %vm419_vm6, %v9146_v53 }
0x358b   :  { %v13944_v19 = vpop.eup %13943  ;;  %13587 = vmatpush3.msra.mxu0 %v12185_v16  ;;  %13594 = vmatprep.mubr.msk.f32.mxu0 %vm92_vm0, %v15493_v34 }
0x358c   :  { %13588 = vmatprep.subr.mxu0 %v12184_v6  ;;  %v9148_v0 = vmul.f32 %v13944_v19, %v13940_v3 }
0x358d   :  { %13589 = vmatpush3.msra.mxu0 %v12184_v6 }
0x358e   :  { %13590 = vmatprep.subr.mxu0 %v12183_v5  ;;  %13584 = vmatmul.mubr.msk.f32.vlgmr.msra.gmra.mxu1 %vm419_vm6, %v9148_v0  ;;  %v12228_v0 = vld [vmem:[%s15929_s9 + $0x258] sm:$0xff] }
0x358f   :  { %13591 = vmatpush3.msra.mxu0 %v12183_v5  ;;  %13598 = vmatpush3.msra.mxu1 %v12193_v63 }
0x3590   :  { %13592 = vmatprep.subr.mxu0 %v12182_v23  ;;  %13599 = vmatprep.subr.mxu1 %v12192_v15 }
0x3591   :  { %13593 = vmatpush3.msra.mxu0 %v12182_v23  ;;  %13600 = vmatpush3.msra.mxu1 %v12192_v15  ;;  %v12212_v23 = vld [vmem:[%s15931_s11 + $0x28] sm:$0xff]  ;;  %v12227_v15 = vld [vmem:[%s15929_s9 + $0x250] sm:$0xff] }
0x3592   :  { %13595 = vmatmul.mubr.msk.f32.vlgmr.msra.gmra.mxu0 %vm92_vm0, %v15495_v36  ;;  %13601 = vmatprep.subr.mxu1 %v12191_v27 }
0x3593   :  { %13602 = vmatpush3.msra.mxu1 %v12191_v27  ;;  %13605 = vmatprep.mubr.msk.f32.mxu1 %vm92_vm0, %v15425_v25  ;;  %v12226_v27 = vld [vmem:[%s15929_s9 + $0x248] sm:$0xff] }
0x3594   :  { %13603 = vmatprep.subr.mxu1 %v12190_v29  ;;  %13616 = vmatprep.mubr.msk.f32.mxu0 %vm92_vm0, %v15425_v25 }
0x3595   :  { %13604 = vmatpush3.msra.mxu1 %v12190_v29  ;;  %13608 = vmatprep.subr.mxu0 %v12201_v47  ;;  %v12220_v29 = vld [vmem:[%s15929_s9 + $0x1d8] sm:$0xff] }
0x3596   :  { %13606 = vmatmul.mubr.msk.f32.vlgmr.msra.gmra.mxu1 %vm92_vm0, %v15479_v1  ;;  %13619 = vmatprep.subr.mxu1 %v14009_v57 }
0x3597   :  { %13621 = vmatprep.mubr.msk.f32.mxu1 %vm14010_vm5, %v14009_v57  ;;  %13609 = vmatpush3.msra.mxu0 %v12201_v47 }
0x3598   :  { %13610 = vmatprep.subr.mxu0 %v12200_v48 }
0x3599   :  { %13611 = vmatpush3.msra.mxu0 %v12200_v48 }
0x359a   :  { %13612 = vmatprep.subr.mxu0 %v12199_v49 }
0x359b   :  { %13613 = vmatpush3.msra.mxu0 %v12199_v49 }
0x359c   :  { %13614 = vmatprep.subr.mxu0 %v12198_v51 }
0x359d   :  { %13615 = vmatpush3.msra.mxu0 %v12198_v51 }
0x359e   :  { %13617 = vmatmul.mubr.msk.f32.vlgmr.msra.gmra.mxu0 %vm92_vm0, %v15479_v1  ;;  %13629 = vmatprep.subr.mxu0 %v14009_v57 }
0x359f   :  { %13631 = vmatprep.mubr.msk.f32.mxu0 %vm14010_vm5, %v14009_v57 }
0x364a   :  { %v15584_v60 = vpop.f32.mrf.mxu0 }
0x364c   :  { %v13580_v31 = vpop.f32.mrf.mxu0 }
0x364e   :  { %v15586_v38 = vpop.f32.mrf.mxu1 }
0x3650   :  { %v13585_v30 = vpop.f32.mrf.mxu1 }
0x3652   :  { %v13596_v33 = vpop.f32.mrf.mxu0 }
0x3653   :  { %v9382_v46 = vadd.f32 %v13596_v33, %v12187_v43  ;;  %v12219_v33 = vld [vmem:[%s15929_s9 + $0x1d0] sm:$0xff] }
0x3654   :  { %v9376_v40 = vpop.f32.mrf.mxu0 }
0x3655   :  { %v9377_v37 = vadd.f32 %v12187_v43, %v9376_v40 }
0x3656   :  { %v13607_v13 = vpop.f32.mrf.mxu1 }
0x3657   :  { %v9470_v44 = vadd.f32 %v13607_v13, %v12195_v17 }
0x3658   :  { %v9464_v39 = vpop.f32.mrf.mxu1 }
0x3659   :  { %v9465_v41 = vadd.f32 %v12195_v17, %v9464_v39  ;;  %v12218_v17 = vld [vmem:[%s15929_s9 + $0x1c8] sm:$0xff]  ;;  %v12217_v39 = vld [vmem:[%s15929_s9 + $0x1c0] sm:$0xff] }
0x365b   :  { %13620 = vmatpush3.xpose.msk.msra.mxu1 %vm419_vm6, %v9465_v41 }
0x365c   :  { %13624 = vmatprep.subr.mxu1 %v14009_v57 }
0x365e   :  { %13622 = vmatmul.mubr.msk.f32.vlgmr.msra.gmra.mxu1 %vm419_vm6, %v9377_v37  ;;  %v13618_v11 = vpop.f32.mrf.mxu0  ;;  %v12230_v37 = vld [vmem:[%s15930_s10 + $0x12] ss:$0 sm:$0xff] }
0x365f   :  { %13625 = vmatpush3.xpose.msk.msra.mxu1 %vm419_vm6, %v9470_v44  ;;  %13626 = vmatprep.mubr.msk.f32.mxu1 %vm14010_vm5, %v14009_v57  ;;  %v9558_v63 = vadd.f32 %v13618_v11, %v12203_v50 }
0x3660   :  { %13634 = vmatprep.subr.mxu1 %v14009_v57  ;;  %v9552_v12 = vpop.f32.mrf.mxu0 }
0x3661   :  { %v9553_v16 = vadd.f32 %v12203_v50, %v9552_v12 }
0x3662   :  { %13627 = vmatmul.mubr.msk.f32.vlgmr.msra.gmra.mxu1 %vm419_vm6, %v9382_v46 }
0x3663   :  { %13636 = vmatprep.mubr.msk.f32.mxu1 %vm14010_vm5, %v14009_v57  ;;  %13630 = vmatpush3.msra.mxu0 %v9553_v16 }
0x3664   :  { %13635 = vmatpush3.msra.mxu1 %v9558_v63  ;;  %13639 = vmatprep.subr.mxu0 %v12212_v23 }
0x3665   :  { %13644 = vmatprep.subr.mxu1 %v12181_v10 }
0x371e   :  { %v9633_v9 = vpop.f32.mrf.mxu1 }
0x371f   :  { %v9713_v20 = vmul.f32 0.35355338, %v9633_v9  ;;  %v12222_v9 = vld [vmem:[%s15930_s10 + $0xe] ss:$0 sm:$0xff] }
0x3720   :  { %v13623_v52 = vpop.f32.mrf.mxu1 }
0x3721   :  { %v9715_v24 = vadd.f32 %v9713_v20, %v14660_v22 }
0x3722   :  { %v9709_v32 = vpop.f32.mrf.mxu1 }
0x3723   :  { %v9714_v54 = vmul.f32 0.35355338, %v9709_v32  ;;  %v9717_v55 = vsel %vm419_vm6, %v9715_v24, -inf  ;;  %v12236_v32 = vld [vmem:[%s15929_s9 + $0x2d8] sm:$0xff] }
0x3724   :  { %9718 = vmax.xlane.f32.xlu0 %v9717_v55  ;;  %v13628_v56 = vpop.f32.mrf.mxu1  ;;  %v12234_v55 = vld [vmem:[%s15929_s9 + $0x2c8] sm:$0xff] }
0x3725   :  { %v9716_v58 = vadd.f32 %v9714_v54, %v14664_v26  ;;  %v12235_v54 = vld [vmem:[%s15929_s9 + $0x2d0] sm:$0xff]  ;;  %v12233_v56 = vld [vmem:[%s15929_s9 + $0x2c0] sm:$0xff] }
0x3727   :  { %v9720_v59 = vsel %vm419_vm6, %v9716_v58, -inf }
0x3728   :  { %9721 = vmax.xlane.f32.xlu1 %v9720_v59 }
0x37ad   :  { %v9719_v61 = vpop.xlane.xlu0 %9718 }
0x37ae   :  { %v9723_v14 = vsub.f32 %v9715_v24, %v9719_v61 }
0x37b0   :  { %v9725_v42 = vmul.f32 1.442695, %v9723_v14 }
0x37b1   :  { %v9722_v18 = vpop.xlane.xlu1 %9721 }
0x37b2   :  { %13945 = vpow2.f32 %v9725_v42  ;;  %v9724_v35 = vsub.f32 %v9716_v58, %v9722_v18 }
0x37b4   :  { %v9727_v2 = vmul.f32 1.442695, %v9724_v35 }
0x37b6   :  { %13947 = vpow2.f32 %v9727_v2 }
0x37bf   :  { %v13946_v3 = vpop.eup %13945 }
0x37c0   :  { %v9729_v4 = vsel %vm419_vm6, %v13946_v3, 0.0 }
0x37c1   :  { %9730 = vadd.xlane.f32.xlu0 %v9729_v4 }
0x37c3   :  { %v13948_v7 = vpop.eup %13947 }
0x37c4   :  { %v9732_v8 = vsel %vm419_vm6, %v13948_v7, 0.0 }
0x37c5   :  { %9733 = vadd.xlane.f32.xlu1 %v9732_v8 }
0x384a   :  { %v9731_v62 = vpop.xlane.xlu0 %9730 }
0x384b   :  { %13949 = vrcp.f32 %v9731_v62 }
0x384e   :  { %v9734_v21 = vpop.xlane.xlu1 %9733 }
0x384f   :  { %13951 = vrcp.f32 %v9734_v21 }
0x3858   :  { %v13950_v53 = vpop.eup %13949 }
0x3859   :  { %v9736_v6 = vmul.f32 %v13950_v53, %v13946_v3 }
0x385b   :  { %13632 = vmatmul.mubr.msk.f32.vlgmr.msra.gmra.mxu0 %vm419_vm6, %v9736_v6  ;;  %v12238_v6 = vld [vmem:[%s15930_s10 + $0x16] ss:$0 sm:$0xff] }
0x385c   :  { %v13952_v19 = vpop.eup %13951  ;;  %13640 = vmatpush3.msra.mxu0 %v12212_v23  ;;  %v12253_v23 = vld [vmem:[%s15929_s9 + $0x1f8] sm:$0xff] }
0x385d   :  { %v9738_v5 = vmul.f32 %v13952_v19, %v13948_v7  ;;  %13649 = vmatprep.subr.mxu0 %v12220_v29 }
0x385f   :  { %13637 = vmatmul.mubr.msk.f32.vlgmr.msra.gmra.mxu1 %vm419_vm6, %v9738_v5 }
0x3860   :  { %13646 = vmatprep.mubr.msk.f32.mxu1 %vm419_vm6, %v15584_v60  ;;  %13645 = vmatpush3.msra.mxu1 %v12181_v10  ;;  %v12225_v60 = vld [vmem:[%s15929_s9 + $0x240] sm:$0xff] }
0x3861   :  { %13660 = vmatprep.subr.mxu1 %v12228_v0 }
0x3863   :  { %13647 = vmatmul.mubr.msk.f32.vlgmr.msra.gmra.mxu1 %vm419_vm6, %v15586_v38 }
0x3864   :  { %13661 = vmatpush3.msra.mxu1 %v12228_v0  ;;  %13668 = vmatprep.mubr.msk.f32.mxu1 %vm92_vm0, %v15425_v25 }
0x3865   :  { %13662 = vmatprep.subr.mxu1 %v12227_v15 }
0x3866   :  { %13663 = vmatpush3.msra.mxu1 %v12227_v15 }
0x3867   :  { %13664 = vmatprep.subr.mxu1 %v12226_v27 }
0x3868   :  { %13665 = vmatpush3.msra.mxu1 %v12226_v27 }
0x3869   :  { %13666 = vmatprep.subr.mxu1 %v12225_v60 }
0x386a   :  { %13667 = vmatpush3.msra.mxu1 %v12225_v60 }
0x386b   :  { %13669 = vmatmul.mubr.msk.f32.vlgmr.msra.gmra.mxu1 %vm92_vm0, %v15479_v1  ;;  %13682 = vmatprep.subr.mxu1 %v14009_v57 }
0x386c   :  { %13684 = vmatprep.mubr.msk.f32.mxu1 %vm14010_vm5, %v14009_v57 }
0x391b   :  { %v9808_v31 = vpop.f32.mrf.mxu0 }
0x391c   :  { %13641 = vmatprep.mubr.msk.f32.mxu0 %vm419_vm6, %v9808_v31 }
0x391d   :  { %v13633_v38 = vpop.f32.mrf.mxu0 }
0x391f   :  { %v9881_v30 = vpop.f32.mrf.mxu1 }
0x3920   :  { %13642 = vmatmul.mubr.msk.f32.vlgmr.msra.gmra.mxu0 %vm419_vm6, %v9881_v30  ;;  %v12252_v30 = vld [vmem:[%s15929_s9 + $0x1f0] sm:$0xff] }
0x3921   :  { %13650 = vmatpush3.msra.mxu0 %v12220_v29  ;;  %v13638_v13 = vpop.f32.mrf.mxu1  ;;  %13657 = vmatprep.mubr.msk.f32.mxu0 %vm92_vm0, %v15493_v34 }
0x3922   :  { %13651 = vmatprep.subr.mxu0 %v12219_v33  ;;  %v12250_v13 = vld [vmem:[%s15929_s9 + $0x1e0] sm:$0xff] }
0x3923   :  { %13652 = vmatpush3.msra.mxu0 %v12219_v33  ;;  %v15681_v40 = vpop.f32.mrf.mxu1  ;;  %v12251_v33 = vld [vmem:[%s15929_s9 + $0x1e8] sm:$0xff] }
0x3924   :  { %13653 = vmatprep.subr.mxu0 %v12218_v17 }
0x3925   :  { %13654 = vmatpush3.msra.mxu0 %v12218_v17  ;;  %v15683_v41 = vpop.f32.mrf.mxu1  ;;  %v12261_v17 = vld [vmem:[%s15929_s9 + $0x278] sm:$0xff] }
0x3926   :  { %13655 = vmatprep.subr.mxu0 %v12217_v39 }
0x3927   :  { %13656 = vmatpush3.msra.mxu0 %v12217_v39 }
0x3928   :  { %13658 = vmatmul.mubr.msk.f32.vlgmr.msra.gmra.mxu0 %vm92_vm0, %v15495_v36  ;;  %13671 = vmatprep.subr.mxu0 %v12236_v32 }
0x3929   :  { %13679 = vmatprep.mubr.msk.f32.mxu0 %vm92_vm0, %v15425_v25  ;;  %13672 = vmatpush3.msra.mxu0 %v12236_v32 }
0x392a   :  { %13673 = vmatprep.subr.mxu0 %v12235_v54 }
0x392b   :  { %v13670_v43 = vpop.f32.mrf.mxu1  ;;  %13674 = vmatpush3.msra.mxu0 %v12235_v54 }
0x392c   :  { %v10222_v44 = vadd.f32 %v13670_v43, %v12230_v37  ;;  %13675 = vmatprep.subr.mxu0 %v12234_v55 }
0x392d   :  { %v10216_v46 = vpop.f32.mrf.mxu1  ;;  %13676 = vmatpush3.msra.mxu0 %v12234_v55  ;;  %v12263_v55 = vld [vmem:[%s15930_s10 + $0x13] ss:$0 sm:$0xff] }
0x392e   :  { %v10217_v47 = vadd.f32 %v12230_v37, %v10216_v46  ;;  %13677 = vmatprep.subr.mxu0 %v12233_v56  ;;  %v12259_v46 = vld [vmem:[%s15929_s9 + $0x268] sm:$0xff] }
0x392f   :  { %13678 = vmatpush3.msra.mxu0 %v12233_v56 }
0x3930   :  { %13683 = vmatpush3.xpose.msk.msra.mxu1 %vm419_vm6, %v10217_v47  ;;  %13680 = vmatmul.mubr.msk.f32.vlgmr.msra.gmra.mxu0 %vm92_vm0, %v15479_v1  ;;  %v12258_v47 = vld [vmem:[%s15929_s9 + $0x260] sm:$0xff] }
0x3931   :  { %13687 = vmatprep.subr.mxu1 %v14009_v57  ;;  %13692 = vmatprep.subr.mxu0 %v14009_v57 }
0x3932   :  { %13694 = vmatprep.mubr.msk.f32.mxu0 %vm14010_vm5, %v14009_v57 }
0x39e0   :  { %v15690_v48 = vpop.f32.mrf.mxu0 }
0x39e2   :  { %v15692_v49 = vpop.f32.mrf.mxu0 }
0x39e8   :  { %v13659_v51 = vpop.f32.mrf.mxu0 }
0x39e9   :  { %v10134_v24 = vadd.f32 %v13659_v51, %v12222_v9 }
0x39ea   :  { %v10128_v20 = vpop.f32.mrf.mxu0 }
0x39eb   :  { %v10129_v52 = vadd.f32 %v12222_v9, %v10128_v20  ;;  %v10041_v9 = vadd.f32 %v15683_v41, %v15692_v49 }
0x39ed   :  { %13685 = vmatmul.mubr.msk.f32.vlgmr.msra.gmra.mxu1 %vm419_vm6, %v10129_v52 }
0x39ee   :  { %13688 = vmatpush3.xpose.msk.msra.mxu1 %vm419_vm6, %v10222_v44  ;;  %13689 = vmatprep.mubr.msk.f32.mxu1 %vm14010_vm5, %v14009_v57 }
0x39ef   :  { %13697 = vmatprep.subr.mxu1 %v14009_v57 }
0x39f0   :  { %v13681_v53 = vpop.f32.mrf.mxu0 }
0x39f1   :  { %13690 = vmatmul.mubr.msk.f32.vlgmr.msra.gmra.mxu1 %vm419_vm6, %v10134_v24  ;;  %v10310_v0 = vadd.f32 %v13681_v53, %v12238_v6 }
0x39f2   :  { %13699 = vmatprep.mubr.msk.f32.mxu1 %vm14010_vm5, %v14009_v57  ;;  %v10304_v19 = vpop.f32.mrf.mxu0 }
0x39f3   :  { %v10305_v5 = vadd.f32 %v12238_v6, %v10304_v19  ;;  %13698 = vmatpush3.msra.mxu1 %v10310_v0 }
0x39f4   :  { %13707 = vmatprep.subr.mxu1 %v12253_v23 }
0x39f5   :  { %13693 = vmatpush3.msra.mxu0 %v10305_v5  ;;  %v12271_v5 = vld [vmem:[%s15930_s10 + $0x17] ss:$0 sm:$0xff] }
0x3aad   :  { %v10385_v58 = vpop.f32.mrf.mxu1 }
0x3aae   :  { %v10465_v59 = vmul.f32 0.35355338, %v10385_v58 }
0x3aaf   :  { %v13686_v61 = vpop.f32.mrf.mxu1 }
0x3ab0   :  { %v10467_v14 = vadd.f32 %v10465_v59, %v14660_v22  ;;  %v12269_v61 = vld [vmem:[%s15929_s9 + $0x2f8] sm:$0xff] }
0x3ab1   :  { %v10461_v42 = vpop.f32.mrf.mxu1 }
0x3ab2   :  { %v10466_v18 = vmul.f32 0.35355338, %v10461_v42  ;;  %v10469_v35 = vsel %vm419_vm6, %v10467_v14, -inf  ;;  %v12267_v42 = vld [vmem:[%s15929_s9 + $0x2e8] sm:$0xff] }
0x3ab3   :  { %10470 = vmax.xlane.f32.xlu0 %v10469_v35  ;;  %v13691_v2 = vpop.f32.mrf.mxu1 }
0x3ab4   :  { %v10468_v3 = vadd.f32 %v10466_v18, %v14664_v26  ;;  %v12266_v18 = vld [vmem:[%s15929_s9 + $0x2e0] sm:$0xff] }
0x3ab6   :  { %v10472_v4 = vsel %vm419_vm6, %v10468_v3, -inf }
0x3ab7   :  { %10473 = vmax.xlane.f32.xlu1 %v10472_v4 }
0x3b3c   :  { %v10471_v7 = vpop.xlane.xlu0 %10470 }
0x3b3d   :  { %v10475_v8 = vsub.f32 %v10467_v14, %v10471_v7  ;;  %v12268_v14 = vld [vmem:[%s15929_s9 + $0x2f0] sm:$0xff] }
0x3b3f   :  { %v10477_v11 = vmul.f32 1.442695, %v10475_v8 }
0x3b40   :  { %v10474_v50 = vpop.xlane.xlu1 %10473 }
0x3b41   :  { %13953 = vpow2.f32 %v10477_v11  ;;  %v10476_v12 = vsub.f32 %v10468_v3, %v10474_v50 }
0x3b43   :  { %v10479_v16 = vmul.f32 1.442695, %v10476_v12 }
0x3b45   :  { %13955 = vpow2.f32 %v10479_v16 }
0x3b4e   :  { %v13954_v63 = vpop.eup %13953 }
0x3b4f   :  { %v10481_v10 = vsel %vm419_vm6, %v13954_v63, 0.0 }
0x3b50   :  { %10482 = vadd.xlane.f32.xlu0 %v10481_v10 }
0x3b52   :  { %v13956_v62 = vpop.eup %13955 }
0x3b53   :  { %v10484_v21 = vsel %vm419_vm6, %v13956_v62, 0.0 }
0x3b54   :  { %10485 = vadd.xlane.f32.xlu1 %v10484_v21 }
0x3bd9   :  { %v10483_v15 = vpop.xlane.xlu0 %10482 }
0x3bda   :  { %13957 = vrcp.f32 %v10483_v15 }
0x3bdd   :  { %v10486_v27 = vpop.xlane.xlu1 %10485 }
0x3bde   :  { %13959 = vrcp.f32 %v10486_v27 }
0x3be7   :  { %v13958_v29 = vpop.eup %13957 }
0x3be8   :  { %v10488_v60 = vmul.f32 %v13958_v29, %v13954_v63 }
0x3bea   :  { %13695 = vmatmul.mubr.msk.f32.vlgmr.msra.gmra.mxu0 %vm419_vm6, %v10488_v60 }
0x3beb   :  { %v13960_v31 = vpop.eup %13959 }
0x3bec   :  { %v10490_v38 = vmul.f32 %v13960_v31, %v13956_v62 }
0x3bee   :  { %13700 = vmatmul.mubr.msk.f32.vlgmr.msra.gmra.mxu1 %vm419_vm6, %v10490_v38 }
0x3bef   :  { %13708 = vmatpush3.msra.mxu1 %v12253_v23  ;;  %13715 = vmatprep.mubr.msk.f32.mxu1 %vm92_vm0, %v15493_v34  ;;  %v12247_v34 = vld [vmem:[%s15931_s11 + $0x30] sm:$0xff] }
0x3bf0   :  { %13709 = vmatprep.subr.mxu1 %v12252_v30  ;;  %13702 = vmatprep.subr.mxu0 %v12247_v34 }
0x3bf1   :  { %13710 = vmatpush3.msra.mxu1 %v12252_v30  ;;  %13703 = vmatpush3.msra.mxu0 %v12247_v34 }
0x3bf2   :  { %13711 = vmatprep.subr.mxu1 %v12251_v33  ;;  %13718 = vmatprep.subr.mxu0 %v12261_v17 }
0x3bf3   :  { %13712 = vmatpush3.msra.mxu1 %v12251_v33  ;;  %v12280_v33 = vld [vmem:[%s15931_s11 + $0x38] sm:$0xff] }
0x3bf4   :  { %13713 = vmatprep.subr.mxu1 %v12250_v13 }
0x3bf5   :  { %13714 = vmatpush3.msra.mxu1 %v12250_v13 }
0x3bf6   :  { %13716 = vmatmul.mubr.msk.f32.vlgmr.msra.gmra.mxu1 %vm92_vm0, %v15495_v36  ;;  %v12260_v36 = vld [vmem:[%s15929_s9 + $0x270] sm:$0xff]  ;;  %13729 = vmatprep.subr.mxu1 %v12269_v61 }
0x3bf7   :  { %13737 = vmatprep.mubr.msk.f32.mxu1 %vm92_vm0, %v15425_v25  ;;  %13730 = vmatpush3.msra.mxu1 %v12269_v61  ;;  %v12289_v61 = vld [vmem:[%s15933_s13 + $0x20] sm:$0xff] }
0x3bf8   :  { %13731 = vmatprep.subr.mxu1 %v12268_v14 }
0x3bf9   :  { %13732 = vmatpush3.msra.mxu1 %v12268_v14  ;;  %v12304_v14 = vld [vmem:[%s15935_s15 + $0x78] sm:$0xff] }
0x3bfa   :  { %13733 = vmatprep.subr.mxu1 %v12267_v42 }
0x3bfb   :  { %13734 = vmatpush3.msra.mxu1 %v12267_v42  ;;  %v12303_v42 = vld [vmem:[%s15935_s15 + $0x70] sm:$0xff] }
0x3bfc   :  { %13735 = vmatprep.subr.mxu1 %v12266_v18 }
0x3bfd   :  { %13736 = vmatpush3.msra.mxu1 %v12266_v18  ;;  %v12302_v18 = vld [vmem:[%s15935_s15 + $0x68] sm:$0xff] }
0x3bfe   :  { %13738 = vmatmul.mubr.msk.f32.vlgmr.msra.gmra.mxu1 %vm92_vm0, %v15479_v1  ;;  %13750 = vmatprep.subr.mxu1 %v14009_v57 }
0x3bff   :  { %13752 = vmatprep.mubr.msk.f32.mxu1 %vm14010_vm5, %v14009_v57 }
0x3caa   :  { %v10560_v39 = vpop.f32.mrf.mxu0 }
0x3cab   :  { %13704 = vmatprep.mubr.msk.f32.mxu0 %vm419_vm6, %v10560_v39 }
0x3cac   :  { %v13696_v43 = vpop.f32.mrf.mxu0 }
0x3cae   :  { %v10633_v37 = vpop.f32.mrf.mxu1 }
0x3caf   :  { %13705 = vmatmul.mubr.msk.f32.vlgmr.msra.gmra.mxu0 %vm419_vm6, %v10633_v37  ;;  %v12284_v37 = vld [vmem:[%s15932_s12 + $0x1] ss:$0 sm:$0xff] }
0x3cb0   :  { %13719 = vmatpush3.msra.mxu0 %v12261_v17  ;;  %v13701_v44 = vpop.f32.mrf.mxu1  ;;  %13726 = vmatprep.mubr.msk.f32.mxu0 %vm92_vm0, %v15425_v25  ;;  %v10046_v25 = vadd.f32 %v15681_v40, %v15690_v48  ;;  %v12255_v40 = vld [vmem:[%s15930_s10 + $0xf] ss:$0 sm:$0xff] }
0x3cb1   :  { %13720 = vmatprep.subr.mxu0 %v12260_v36 }
0x3cb2   :  { %13721 = vmatpush3.msra.mxu0 %v12260_v36 }
0x3cb3   :  { %13722 = vmatprep.subr.mxu0 %v12259_v46 }
0x3cb4   :  { %13723 = vmatpush3.msra.mxu0 %v12259_v46 }
0x3cb5   :  { %13724 = vmatprep.subr.mxu0 %v12258_v47 }
0x3cb6   :  { %13725 = vmatpush3.msra.mxu0 %v12258_v47  ;;  %v13717_v32 = vpop.f32.mrf.mxu1 }
0x3cb7   :  { %13727 = vmatmul.mubr.msk.f32.vlgmr.msra.gmra.mxu0 %vm92_vm0, %v15479_v1  ;;  %13740 = vmatprep.subr.mxu0 %v14009_v57  ;;  %v10807_v49 = vadd.f32 %v13717_v32, %v12255_v40 }
0x3cb8   :  { %13742 = vmatprep.mubr.msk.f32.mxu0 %vm14010_vm5, %v14009_v57  ;;  %v10801_v58 = vpop.f32.mrf.mxu1 }
0x3cb9   :  { %v10802_v41 = vadd.f32 %v12255_v40, %v10801_v58 }
0x3d6f   :  { %v13706_v51 = vpop.f32.mrf.mxu0 }
0x3d70   :  { %v15779_v20 = vadd.f32 %v13706_v51, %v10046_v25 }
0x3d71   :  { %v10711_v52 = vpop.f32.mrf.mxu0 }
0x3d72   :  { %v15781_v24 = vadd.f32 %v10711_v52, %v10041_v9 }
0x3d77   :  { %v13728_v54 = vpop.f32.mrf.mxu0 }
0x3d78   :  { %v10895_v48 = vadd.f32 %v13728_v54, %v12263_v55 }
0x3d79   :  { %v10889_v56 = vpop.f32.mrf.mxu0 }
0x3d7a   :  { %v10890_v59 = vadd.f32 %v12263_v55, %v10889_v56 }
0x3d7c   :  { %13741 = vmatpush3.xpose.msk.msra.mxu0 %vm419_vm6, %v10890_v59 }
0x3d7d   :  { %13745 = vmatprep.subr.mxu0 %v14009_v57 }
0x3d7f   :  { %13743 = vmatmul.mubr.msk.f32.vlgmr.msra.gmra.mxu0 %vm419_vm6, %v10802_v41  ;;  %v12292_v41 = vld [vmem:[%s15933_s13 + $0x38] sm:$0xff] }
0x3d80   :  { %13746 = vmatpush3.xpose.msk.msra.mxu0 %vm419_vm6, %v10895_v48  ;;  %13747 = vmatprep.mubr.msk.f32.mxu0 %vm14010_vm5, %v14009_v57  ;;  %v12291_v48 = vld [vmem:[%s15933_s13 + $0x30] sm:$0xff] }
0x3d81   :  { %13755 = vmatprep.subr.mxu0 %v14009_v57 }
0x3d83   :  { %13748 = vmatmul.mubr.msk.f32.vlgmr.msra.gmra.mxu0 %vm419_vm6, %v10807_v49  ;;  %v12290_v49 = vld [vmem:[%s15933_s13 + $0x28] sm:$0xff] }
0x3d84   :  { %13757 = vmatprep.mubr.msk.f32.mxu0 %vm14010_vm5, %v14009_v57 }
0x3e3f   :  { %v11058_v35 = vpop.f32.mrf.mxu0 }
0x3e40   :  { %v11138_v2 = vmul.f32 0.35355338, %v11058_v35  ;;  %v12301_v35 = vld [vmem:[%s15935_s15 + $0x60] sm:$0xff] }
0x3e41   :  { %v13744_v3 = vpop.f32.mrf.mxu0 }
0x3e42   :  { %v11140_v4 = vadd.f32 %v11138_v2, %v14660_v22 }
0x3e43   :  { %v11134_v7 = vpop.f32.mrf.mxu0 }
0x3e44   :  { %v11139_v8 = vmul.f32 0.35355338, %v11134_v7  ;;  %v11142_v11 = vsel %vm419_vm6, %v11140_v4, -inf }
0x3e45   :  { %11143 = vmax.xlane.f32.xlu0 %v11142_v11  ;;  %v13749_v50 = vpop.f32.mrf.mxu0 }
0x3e46   :  { %v11141_v12 = vadd.f32 %v11139_v8, %v14664_v26  ;;  %v13739_v26 = vpop.f32.mrf.mxu1 }
0x3e47   :  { %v10983_v15 = vadd.f32 %v13739_v26, %v12271_v5 }
0x3e48   :  { %v11145_v1 = vsel %vm419_vm6, %v11141_v12, -inf  ;;  %v10977_v0 = vpop.f32.mrf.mxu1 }
0x3e49   :  { %11146 = vmax.xlane.f32.xlu1 %v11145_v1  ;;  %v10978_v23 = vadd.f32 %v12271_v5, %v10977_v0  ;;  %13756 = vmatpush3.msra.mxu0 %v10983_v15 }
0x3e4a   :  { %13765 = vmatprep.subr.mxu0 %v12292_v41 }
0x3e4b   :  { %13751 = vmatpush3.msra.mxu1 %v10978_v23  ;;  %v12288_v23 = vld [vmem:[%s15938_s18 + $0x5] ss:$0 sm:$0xff] }
0x3e4c   :  { %13760 = vmatprep.subr.mxu1 %v12280_v33 }
0x3ece   :  { %v11144_v16 = vpop.xlane.xlu0 %11143 }
0x3ecf   :  { %v11148_v63 = vsub.f32 %v11140_v4, %v11144_v16 }
0x3ed1   :  { %v11150_v10 = vmul.f32 1.442695, %v11148_v63 }
0x3ed2   :  { %v11147_v57 = vpop.xlane.xlu1 %11146 }
0x3ed3   :  { %13961 = vpow2.f32 %v11150_v10  ;;  %v11149_v62 = vsub.f32 %v11141_v12, %v11147_v57 }
0x3ed5   :  { %v11152_v21 = vmul.f32 1.442695, %v11149_v62 }
0x3ed7   :  { %13963 = vpow2.f32 %v11152_v21 }
0x3ee0   :  { %v13962_v22 = vpop.eup %13961 }
0x3ee1   :  { %v11154_v53 = vsel %vm419_vm6, %v13962_v22, 0.0 }
0x3ee2   :  { %11155 = vadd.xlane.f32.xlu0 %v11154_v53  ;;  %v12287_v53 = vld [vmem:[%s15937_s17 + $0x5] ss:$0 sm:$0xff] }
0x3ee4   :  { %v13964_v6 = vpop.eup %13963 }
0x3ee5   :  { %v11157_v19 = vsel %vm419_vm6, %v13964_v6, 0.0 }
0x3ee6   :  { %11158 = vadd.xlane.f32.xlu1 %v11157_v19 }
0x3f6b   :  { %v11156_v27 = vpop.xlane.xlu0 %11155 }
0x3f6c   :  { %13965 = vrcp.f32 %v11156_v27 }
0x3f6f   :  { %v11159_v29 = vpop.xlane.xlu1 %11158 }
0x3f70   :  { %13967 = vrcp.f32 %v11159_v29 }
0x3f79   :  { %v13966_v60 = vpop.eup %13965 }
0x3f7a   :  { %v11161_v31 = vmul.f32 %v13966_v60, %v13962_v22  ;;  %v12300_v60 = vld [vmem:[%s15935_s15 + $0x58] sm:$0xff] }
0x3f7c   :  { %13753 = vmatmul.mubr.msk.f32.vlgmr.msra.gmra.mxu1 %vm419_vm6, %v11161_v31  ;;  %v12299_v31 = vld [vmem:[%s15935_s15 + $0x50] sm:$0xff] }
0x3f7d   :  { %v13968_v38 = vpop.eup %13967  ;;  %13761 = vmatpush3.msra.mxu1 %v12280_v33  ;;  %v12294_v33 = vld [vmem:[%s15934_s14 + $0x1] ss:$0 sm:$0xff] }
0x3f7e   :  { %v11163_v30 = vmul.f32 %v13968_v38, %v13964_v6  ;;  %13776 = vmatprep.subr.mxu1 %v12304_v14  ;;  %v12298_v38 = vld [vmem:[%s15935_s15 + $0x48] sm:$0xff] }
0x3f80   :  { %13758 = vmatmul.mubr.msk.f32.vlgmr.msra.gmra.mxu0 %vm419_vm6, %v11163_v30  ;;  %v12297_v30 = vld [vmem:[%s15935_s15 + $0x40] sm:$0xff] }
0x3f81   :  { %13766 = vmatpush3.msra.mxu0 %v12292_v41 }
0x3f82   :  { %13767 = vmatprep.subr.mxu0 %v12291_v48 }
0x3f83   :  { %13768 = vmatpush3.msra.mxu0 %v12291_v48 }
0x3f84   :  { %13769 = vmatprep.subr.mxu0 %v12290_v49 }
0x3f85   :  { %13770 = vmatpush3.msra.mxu0 %v12290_v49 }
0x3f86   :  { %13771 = vmatprep.subr.mxu0 %v12289_v61 }
0x3f87   :  { %13772 = vmatpush3.msra.mxu0 %v12289_v61 }
0x403c   :  { %v11233_v13 = vpop.f32.mrf.mxu1 }
0x403d   :  { %13762 = vmatprep.mubr.msk.f32.mxu1 %vm419_vm6, %v11233_v13 }
0x403e   :  { %v13754_v34 = vpop.f32.mrf.mxu1 }
0x4040   :  { %v11306_v17 = vpop.f32.mrf.mxu0 }
0x4041   :  { %13763 = vmatmul.mubr.msk.f32.vlgmr.msra.gmra.mxu1 %vm419_vm6, %v11306_v17 }
0x4042   :  { %v13759_v39 = vpop.f32.mrf.mxu0  ;;  %13777 = vmatpush3.msra.mxu1 %v12304_v14 }
0x4043   :  { %13778 = vmatprep.subr.mxu1 %v12303_v42 }
0x4044   :  { %13779 = vmatpush3.msra.mxu1 %v12303_v42 }
0x4045   :  { %13780 = vmatprep.subr.mxu1 %v12302_v18 }
0x4046   :  { %13781 = vmatpush3.msra.mxu1 %v12302_v18 }
0x4047   :  { %13782 = vmatprep.subr.mxu1 %v12301_v35 }
0x4048   :  { %13783 = vmatpush3.msra.mxu1 %v12301_v35 }
0x4049   :  { %13784 = vmatprep.subr.mxu1 %v12300_v60 }
0x404a   :  { %13785 = vmatpush3.msra.mxu1 %v12300_v60 }
0x404b   :  { %13786 = vmatprep.subr.mxu1 %v12299_v31 }
0x404c   :  { %13787 = vmatpush3.msra.mxu1 %v12299_v31 }
0x404d   :  { %13788 = vmatprep.subr.mxu1 %v12298_v38 }
0x404e   :  { %13789 = vmatpush3.msra.mxu1 %v12298_v38 }
0x404f   :  { %13790 = vmatprep.subr.mxu1 %v12297_v30 }
0x4050   :  { %13791 = vmatpush3.msra.mxu1 %v12297_v30 }
0x4101   :  { %v13764_v43 = vpop.f32.mrf.mxu1 }
0x4102   :  { %v11394_v36 = vadd.f32 %v13764_v43, %v15779_v20 }
0x4103   :  { %v11384_v44 = vpop.f32.mrf.mxu1 }
0x4104   :  { %v11404_v46 = vadd.f32 %v12284_v37, %v11394_v36  ;;  %v11393_v47 = vadd.f32 %v11384_v44, %v15781_v24  ;;  %v12306_v36 = vld [vmem:[%s15961_s27 + $0x1] ss:$0 sm:$0xff] }
0x4106   :  { %v15838_v25 = vadd.f32 %v11404_v46, %v15435_v28  ;;  %v11403_v51 = vadd.f32 %v12284_v37, %v11393_v47 }
0x4108   :  { %v15841_v9 = vadd.f32 %v11403_v51, %v15438_v45  ;;  %v11414_v52 = vsel %vm92_vm0, %v15838_v25, 0.0 }
0x4109   :  { %11415 = vadd.xlane.f32.xlu1 %v11414_v52 }
0x410a   :  { %v11411_v32 = vsel %vm92_vm0, %v15841_v9, 0.0 }
0x410b   :  { %11412 = vadd.xlane.f32.xlu0 %v11411_v32 }
0x4192   :  { %v11416_v20 = vpop.xlane.xlu1 %11415 }
0x4193   :  { %v11418_v54 = vmul.f32 0.03125, %v11416_v20 }
0x4194   :  { %v11413_v55 = vpop.xlane.xlu0 %11412 }
0x4195   :  { %v11420_v24 = vsub.f32 %v15838_v25, %v11418_v54  ;;  %v11417_v56 = vmul.f32 0.03125, %v11413_v55 }
0x4197   :  { %v11419_v28 = vsub.f32 %v15841_v9, %v11417_v56  ;;  %v11422_v58 = vmul.f32 %v11420_v24, %v11420_v24  ;;  %v11438_v19 = vmul.f32 %v12287_v53, %v11420_v24 }
0x4199   :  { %v11426_v45 = vsel %vm92_vm0, %v11422_v58, 0.0  ;;  %v11421_v59 = vmul.f32 %v11419_v28, %v11419_v28  ;;  %v11437_v26 = vmul.f32 %v12287_v53, %v11419_v28 }
0x419a   :  { %11427 = vadd.xlane.f32.xlu1 %v11426_v45 }
0x419b   :  { %v11423_v40 = vsel %vm92_vm0, %v11421_v59, 0.0 }
0x419c   :  { %11424 = vadd.xlane.f32.xlu0 %v11423_v40 }
0x4223   :  { %v11428_v2 = vpop.xlane.xlu1 %11427 }
0x4224   :  { %v11430_v3 = vmul.f32 0.032258064, %v11428_v2 }
0x4225   :  { %v11425_v4 = vpop.xlane.xlu0 %11424 }
0x4226   :  { %13969 = vrsqrt.f32 %v11430_v3  ;;  %v11429_v7 = vmul.f32 0.032258064, %v11425_v4  ;;  %vm11448_vm5 = vcmp.eq.f32.partialorder %v11430_v3, inf  ;;  %v11451_v50 = vand.u32 2147483648, %v11430_v3 }
0x4227   :  { %vm11450_vm6 = vcmp.eq.f32.partialorder %v11430_v3, 0.0 }
0x4228   :  { %13971 = vrsqrt.f32 %v11429_v7  ;;  %vm11441_vm15 = vcmp.eq.f32.partialorder %v11429_v7, inf  ;;  %v11444_v57 = vand.u32 2147483648, %v11429_v7  ;;  %vm11443_vm1 = vcmp.eq.f32.partialorder %v11429_v7, 0.0 }
0x4233   :  { %v13970_v8 = vpop.eup %13969 }
0x4234   :  { %v11447_v11 = vmul.f32 %v13970_v8, %v11430_v3 }
0x4235   :  { %v13972_v12 = vpop.eup %13971 }
0x4236   :  { %v11449_v1 = vsel %vm11448_vm5, %v11430_v3, %v11447_v11  ;;  %v11440_v63 = vmul.f32 %v13972_v12, %v11429_v7 }
0x4237   :  { %v11452_v16 = vsel %vm11450_vm6, %v11451_v50, %v11449_v1  ;;  %v12309_v1 = vld [vmem:[%s15939_s19] ss:$0 sm:$0xff]  ;;  %s13987_s19 = scalar_lea.vmem %s11729_s7, 256 }
0x4238   :  { %v11454_v10 = vadd.f32 1e-06, %v11452_v16  ;;  %v11442_v62 = vsel %vm11441_vm15, %v11429_v7, %v11440_v63  ;;  %p13988_p0 = scmp.ne.s32.totalorder %s11729_s7, %s13987_s19  ;;  %p13993_p2 = scmp.lt.s32.totalorder %s13987_s19, %s13987_s19 }
0x4239   :  { %v11445_v21 = vsel %vm11443_vm1, %v11444_v57, %v11442_v62 }
0x423a   :  { %13973 = vrcp.f32 %v11454_v10  ;;  %v11453_v22 = vadd.f32 1e-06, %v11445_v21  ;;  %v12310_v10 = vld [vmem:[%s15940_s20] ss:$0 sm:$0xff]  ;;  %p13994_p3 = por %p13993_p2, %p13992_p1 }
0x423c   :  { %13975 = vrcp.f32 %v11453_v22  ;;  %p13995_p4 = pnand %p13994_p3, %p13988_p0 }
0x4247   :  { %v13974_v6 = vpop.eup %13973 }
0x4248   :  { %v11458_v0 = vmul.f32 %v13974_v6, %v11438_v19 }
0x4249   :  { %v13976_v5 = vpop.eup %13975 }
0x424a   :  { %v11456_v15 = vmul.f32 %v13976_v5, %v11437_v26  ;;  %v11466_v29 = vadd.f32 %v12288_v23, %v11458_v0 }
0x424c   :  { %v11465_v27 = vadd.f32 %v12288_v23, %v11456_v15 }
0x424e   :  { %13773 = vmatprep.mubr.msk.f32.mxu0 %vm92_vm0, %v11465_v27 }
0x424f   :  { %13774 = vmatmul.mubr.msk.f32.vlgmr.msra.gmra.mxu0 %vm92_vm0, %v11466_v29 }
0x430f   :  { %v13775_v13 = vpop.f32.mrf.mxu0 }
0x4310   :  { %v11558_v34 = vadd.f32 %v13775_v13, %v12294_v33 }
0x4311   :  { %v11552_v17 = vpop.f32.mrf.mxu0 }
0x4312   :  { %v11553_v39 = vadd.f32 %v12294_v33, %v11552_v17  ;;  %v11562_v37 = vmax.f32 %v11558_v34, 0.0 }
0x4314   :  { %v11561_v43 = vmax.f32 %v11553_v39, 0.0 }
0x4316   :  { %13792 = vmatprep.mubr.msk.f32.mxu1 %vm5791_vm4, %v11561_v43 }
0x4317   :  { %13793 = vmatmul.mubr.msk.f32.vlgmr.msra.gmra.mxu1 %vm5791_vm4, %v11562_v37 }
0x43d7   :  { %v13794_v44 = vpop.f32.mrf.mxu1 }
0x43d8   :  { %v11658_v46 = vadd.f32 %v13794_v44, %v12306_v36 }
0x43d9   :  { %v11652_v47 = vpop.f32.mrf.mxu1 }
0x43da   :  { %v11653_v51 = vadd.f32 %v12306_v36, %v11652_v47  ;;  %v11662_v52 = vadd.f32 %v11658_v46, %v15838_v25 }
0x43dc   :  { %v11668_v32 = vsel %vm92_vm0, %v11662_v52, 0.0  ;;  %v11661_v20 = vadd.f32 %v11653_v51, %v15841_v9 }
0x43dd   :  { %11669 = vadd.xlane.f32.xlu1 %v11668_v32 }
0x43de   :  { %v11665_v54 = vsel %vm92_vm0, %v11661_v20, 0.0 }
0x43df   :  { %11666 = vadd.xlane.f32.xlu0 %v11665_v54 }
0x4466   :  { %v11670_v55 = vpop.xlane.xlu1 %11669 }
0x4467   :  { %v11672_v24 = vmul.f32 0.03125, %v11670_v55 }
0x4468   :  { %v11667_v56 = vpop.xlane.xlu0 %11666 }
0x4469   :  { %v11674_v28 = vsub.f32 %v11662_v52, %v11672_v24  ;;  %v11671_v58 = vmul.f32 0.03125, %v11667_v56 }
0x446b   :  { %v11673_v45 = vsub.f32 %v11661_v20, %v11671_v58  ;;  %v11676_v59 = vmul.f32 %v11674_v28, %v11674_v28  ;;  %v11692_v16 = vmul.f32 %v12309_v1, %v11674_v28 }
0x446d   :  { %v11680_v40 = vsel %vm92_vm0, %v11676_v59, 0.0  ;;  %v11675_v41 = vmul.f32 %v11673_v45, %v11673_v45  ;;  %v11691_v62 = vmul.f32 %v12309_v1, %v11673_v45 }
0x446e   :  { %11681 = vadd.xlane.f32.xlu1 %v11680_v40 }
0x446f   :  { %v11677_v25 = vsel %vm92_vm0, %v11675_v41, 0.0 }
0x4470   :  { %11678 = vadd.xlane.f32.xlu0 %v11677_v25 }
0x44f7   :  { %v11682_v48 = vpop.xlane.xlu1 %11681 }
0x44f8   :  { %v11684_v9 = vmul.f32 0.032258064, %v11682_v48 }
0x44f9   :  { %v11679_v49 = vpop.xlane.xlu0 %11678 }
0x44fa   :  { %13977 = vrsqrt.f32 %v11684_v9  ;;  %v11683_v61 = vmul.f32 0.032258064, %v11679_v49  ;;  %vm11702_vm2 = vcmp.eq.f32.partialorder %v11684_v9, inf  ;;  %v11705_v18 = vand.u32 2147483648, %v11684_v9 }
0x44fb   :  { %vm11704_vm3 = vcmp.eq.f32.partialorder %v11684_v9, 0.0 }
0x44fc   :  { %13979 = vrsqrt.f32 %v11683_v61  ;;  %vm11695_vm4 = vcmp.eq.f32.partialorder %v11683_v61, inf  ;;  %v11698_v8 = vand.u32 2147483648, %v11683_v61  ;;  %vm11697_vm7 = vcmp.eq.f32.partialorder %v11683_v61, 0.0 }
0x4507   :  { %v13978_v14 = vpop.eup %13977 }
0x4508   :  { %v11701_v42 = vmul.f32 %v13978_v14, %v11684_v9 }
0x4509   :  { %v13980_v35 = vpop.eup %13979 }
0x450a   :  { %v11703_v2 = vsel %vm11702_vm2, %v11684_v9, %v11701_v42  ;;  %v11694_v4 = vmul.f32 %v13980_v35, %v11683_v61 }
0x450b   :  { %v11706_v3 = vsel %vm11704_vm3, %v11705_v18, %v11703_v2 }
0x450c   :  { %v11708_v7 = vadd.f32 1e-06, %v11706_v3  ;;  %v11696_v11 = vsel %vm11695_vm4, %v11683_v61, %v11694_v4 }
0x450d   :  { %v11699_v50 = vsel %vm11697_vm7, %v11698_v8, %v11696_v11 }
0x450e   :  { %13981 = vrcp.f32 %v11708_v7  ;;  %v11707_v12 = vadd.f32 1e-06, %v11699_v50 }
0x4510   :  { %13983 = vrcp.f32 %v11707_v12 }
0x451b   :  { %v13982_v63 = vpop.eup %13981 }
0x451c   :  { %v11712_v57 = vmul.f32 %v13982_v63, %v11692_v16 }
0x451d   :  { %v13984_v21 = vpop.eup %13983 }
0x451e   :  { %v11720_v22 = vadd.f32 %v12310_v10, %v11712_v57  ;;  %v11710_v53 = vmul.f32 %v13984_v21, %v11691_v62 }
0x4520   :  { %11722 = vst.msk [vmem:[#allocation2 + $0x8] sm:$0xff] %vm92_vm0, %v11720_v22  ;;  %v11719_v6 = vadd.f32 %v12310_v10, %v11710_v53 }
0x4522   :  { %11721 = vst.msk [vmem:[#allocation2] sm:$0xff] %vm92_vm0, %v11719_v6 }
0x4523   :  { %13998 = shalt.err (!%p13995_p4)
}
0x4524   :  { %s14013_s20 = smov 128   ;;  %s14014_s29 = smov 8  }
0x4525   :  { %11734 = dma.vmem_to_hbm [thread:$0]  %s11729_s7, 256, %s15941_s21, [#allocation3], %s14013_s20, %s14013_s20, %s14014_s29  }
0x4526   :  { %14007 = dma.done.wait [#allocation3], 256  }
0x4527   :  { %14008 = vsyncadd [#allocation3], 4294967040 }
0x4528   :  { %11738 = vsyncpa [#allocation3], 1 }

</bundles_post_ra>
